<compile_context>
chip_gen: v7x
topology: tpu7x:2x2x1
jax: 0.10.0
libtpu: 0.0.40
codegen_flags: <defaults>
</compile_context>

<pallas_src>
import jax
import jax.numpy as jnp
from jax.experimental import pallas as pl
from jax.experimental.pallas import tpu as pltpu

HIDDEN = 128
NUM_LAYERS = 3


# --------------------------------------------------------------------------- #
# Kernel
# --------------------------------------------------------------------------- #
def encoder_kernel(x_ref,                 # (T*bb, D)   time-major input block
                   wih0_ref, b0_ref,      # (D, 4H), (1, 4H)
                   whh0_ref,              # (H, 4H)
                   wf1_ref, b1_ref,       # (2H, 4H), (1, 4H)  fused [Wih1; Whh1]
                   wf2_ref, b2_ref,       # (2H, 4H), (1, 4H)  fused [Wih2; Whh2]
                   wl_ref, bl_ref,        # (H, 2L), (1, 2L)   fused [W_mean | W_logvar]
                   eps_ref,               # (bb, L)
                   z_ref, mean_ref, logvar_ref,   # outputs (bb, L)
                   xg_ref):               # VMEM scratch (T*bb, 4H)
    H = HIDDEN
    bb, L = z_ref.shape
    TB = x_ref.shape[0]
    T = TB // bb

    # Layer-0 input projection for ALL timesteps: one big MXU-friendly matmul
    # (bias folded in), stored once to VMEM scratch and sliced per timestep.
    xg_ref[...] = (jnp.dot(x_ref[...], wih0_ref[...],
                           preferred_element_type=jnp.float32)
                   + jnp.broadcast_to(b0_ref[...], (TB, 4 * H)))

    # Hoisted loads / broadcasts (done once, not per timestep).
    whh0 = whh0_ref[...]
    wf1 = wf1_ref[...]
    wf2 = wf2_ref[...]
    b1 = jnp.broadcast_to(b1_ref[...], (bb, 4 * H))
    b2 = jnp.broadcast_to(b2_ref[...], (bb, 4 * H))

    zero = jnp.zeros((bb, H), jnp.float32)
    h0, h1, h2 = zero, zero, zero
    c0, c1, c2 = zero, zero, zero

    def gate_update(gates, c_prev):
        # gate order (i, f, o, g): one sigmoid slab + one tanh slab (EUP)
        sig = jax.nn.sigmoid(gates[:, : 3 * H])
        i_g = sig[:, 0 * H:1 * H]
        f_g = sig[:, 1 * H:2 * H]
        o_g = sig[:, 2 * H:3 * H]
        g_g = jnp.tanh(gates[:, 3 * H:])
        c_new = f_g * c_prev + i_g * g_g
        h_new = o_g * jnp.tanh(c_new)
        return h_new, c_new

    # Fully unrolled time loop (T is a small static constant); h/c live in vregs.
    for t in range(T):
        # layer 0: input projection precomputed above, only the recurrent matmul here
        g0 = xg_ref[pl.ds(t * bb, bb), :] + jnp.dot(
            h0, whh0, preferred_element_type=jnp.float32)
        h0, c0 = gate_update(g0, c0)

        # layer 1: one fused matmul over [h0, h1_prev]  (K = 256)
        g1 = jnp.dot(jnp.concatenate([h0, h1], axis=-1), wf1,
                     preferred_element_type=jnp.float32) + b1
        h1, c1 = gate_update(g1, c1)

        # layer 2
        g2 = jnp.dot(jnp.concatenate([h1, h2], axis=-1), wf2,
                     preferred_element_type=jnp.float32) + b2
        h2, c2 = gate_update(g2, c2)
        # TODO(synk): nn.LSTM inter-layer dropout (p=0.3) is train-only; eval-mode
        #             semantics (no dropout) are implemented here.

    # Fused linear heads: [z_mean | z_log_var] in one (H, 2L) matmul.
    heads = jnp.dot(h2, wl_ref[...], preferred_element_type=jnp.float32) + bl_ref[...]
    z_mean = heads[:, :L]
    z_log_var = heads[:, L:]

    mean_ref[...] = z_mean
    logvar_ref[...] = z_log_var
    z_ref[...] = z_mean + eps_ref[...] * jnp.exp(0.5 * z_log_var)


# --------------------------------------------------------------------------- #
# Parameter handling
# --------------------------------------------------------------------------- #
def init_params(key, feature_dim, latents_dim):
    """PyTorch-layout parameters (nn.LSTM / nn.Linear shapes, gate order i,f,g,o)."""
    H = HIDDEN
    bound = 1.0 / float(H ** 0.5)
    keys = jax.random.split(key, 4 * NUM_LAYERS + 4)

    def u(kk, shape):
        return jax.random.uniform(kk, shape, jnp.float32, -bound, bound)

    p = {}
    in_dims = [feature_dim, H, H]
    idx = 0
    for l in range(NUM_LAYERS):
        p[f"weight_ih_l{l}"] = u(keys[idx], (4 * H, in_dims[l])); idx += 1
        p[f"weight_hh_l{l}"] = u(keys[idx], (4 * H, H)); idx += 1
        p[f"bias_ih_l{l}"] = u(keys[idx], (4 * H,)); idx += 1
        p[f"bias_hh_l{l}"] = u(keys[idx], (4 * H,)); idx += 1
    p["linear_1_w"] = u(keys[idx], (latents_dim, H)); idx += 1
    p["linear_1_b"] = u(keys[idx], (latents_dim,)); idx += 1
    p["linear_2_w"] = u(keys[idx], (latents_dim, H)); idx += 1
    p["linear_2_b"] = u(keys[idx], (latents_dim,)); idx += 1
    return p


def prepare_params(pt):
    """Transpose, reorder gates (i,f,g,o)->(i,f,o,g), fuse [Wih;Whh] and the two heads."""
    H = HIDDEN
    perm = jnp.concatenate([
        jnp.arange(0 * H, 1 * H),   # i
        jnp.arange(1 * H, 2 * H),   # f
        jnp.arange(3 * H, 4 * H),   # o
        jnp.arange(2 * H, 3 * H),   # g
    ])
    kp = {}
    # layer 0: input weights kept separate (projection is batched over all timesteps)
    kp["wih0"] = pt["weight_ih_l0"].T[:, perm]                                   # (D, 4H)
    kp["b0"] = ((pt["bias_ih_l0"] + pt["bias_hh_l0"])[perm]).reshape(1, 4 * H)   # (1, 4H)
    kp["whh0"] = pt["weight_hh_l0"].T[:, perm]                                   # (H, 4H)
    for l in (1, 2):
        wf = jnp.concatenate([pt[f"weight_ih_l{l}"].T,
                              pt[f"weight_hh_l{l}"].T], axis=0)[:, perm]         # (2H, 4H)
        kp[f"wf{l}"] = wf
        kp[f"b{l}"] = ((pt[f"bias_ih_l{l}"] + pt[f"bias_hh_l{l}"])[perm]
                       ).reshape(1, 4 * H)                                       # (1, 4H)
    kp["wl"] = jnp.concatenate([pt["linear_1_w"].T, pt["linear_2_w"].T], axis=1)     # (H, 2L)
    kp["bl"] = jnp.concatenate([pt["linear_1_b"], pt["linear_2_b"]]).reshape(1, -1)  # (1, 2L)
    return kp


# --------------------------------------------------------------------------- #
# Wrapper
# --------------------------------------------------------------------------- #
def _round_up(n, m):
    return ((n + m - 1) // m) * m


def encoder_forward(x, kp, eps, ts, feature_dim):
    H = HIDDEN
    # inputs.view(-1, ts, feature_dim)
    xr = jnp.reshape(x, (-1, ts, feature_dim)).astype(jnp.float32)      # (B, T, D)
    B, T, D = xr.shape
    L = kp["wl"].shape[1] // 2
    eps32 = eps.astype(jnp.float32)

    # Batch tiling: pad B to a multiple of 8 (sublane alignment); tile at <=64
    # rows per grid step so h/c state + gate slabs stay mostly in vregs.
    if B <= 64:
        bb = _round_up(B, 8)
        Bp = bb
    else:
        bb = 64
        Bp = _round_up(B, bb)
    if Bp != B:
        xr = jnp.pad(xr, ((0, Bp - B), (0, 0), (0, 0)))
        eps32 = jnp.pad(eps32, ((0, Bp - B), (0, 0)))
    nb = Bp // bb

    # Layout plumbing (wrapper side): per batch-block, time-major, flattened to
    # 2D so the kernel can run a single (T*bb, D) x (D, 4H) input projection.
    x_blk = (xr.reshape(nb, bb, T, D)
               .transpose(0, 2, 1, 3)
               .reshape(nb * T * bb, D))                                 # (nb*T*bb, D)

    grid = (nb,)
    in_specs = [
        pl.BlockSpec((T * bb, D), lambda i: (i, 0)),         # x block (batch-tiled)
        pl.BlockSpec((D, 4 * H), lambda i: (0, 0)),          # wih0 (resident)
        pl.BlockSpec((1, 4 * H), lambda i: (0, 0)),          # b0
        pl.BlockSpec((H, 4 * H), lambda i: (0, 0)),          # whh0
        pl.BlockSpec((2 * H, 4 * H), lambda i: (0, 0)),      # wf1
        pl.BlockSpec((1, 4 * H), lambda i: (0, 0)),          # b1
        pl.BlockSpec((2 * H, 4 * H), lambda i: (0, 0)),      # wf2
        pl.BlockSpec((1, 4 * H), lambda i: (0, 0)),          # b2
        pl.BlockSpec((H, 2 * L), lambda i: (0, 0)),          # wl
        pl.BlockSpec((1, 2 * L), lambda i: (0, 0)),          # bl
        pl.BlockSpec((bb, L), lambda i: (i, 0)),             # eps
    ]
    out_specs = (pl.BlockSpec((bb, L), lambda i: (i, 0)),
                 pl.BlockSpec((bb, L), lambda i: (i, 0)),
                 pl.BlockSpec((bb, L), lambda i: (i, 0)))
    out_shape = (jax.ShapeDtypeStruct((Bp, L), jnp.float32),
                 jax.ShapeDtypeStruct((Bp, L), jnp.float32),
                 jax.ShapeDtypeStruct((Bp, L), jnp.float32))

    z, z_mean, z_log_var = pl.pallas_call(
        encoder_kernel,
        out_shape=out_shape,
        grid=grid,
        in_specs=in_specs,
        out_specs=out_specs,
        scratch_shapes=[pltpu.VMEM((T * bb, 4 * H), jnp.float32)],
        compiler_params=pltpu.CompilerParams(
            dimension_semantics=("parallel",),
            vmem_limit_bytes=32 * 1024 * 1024),
    )(x_blk, kp["wih0"], kp["b0"], kp["whh0"],
      kp["wf1"], kp["b1"], kp["wf2"], kp["b2"],
      kp["wl"], kp["bl"], eps32)

    if Bp != B:
        z, z_mean, z_log_var = z[:B], z_mean[:B], z_log_var[:B]
    return z, (z_mean, z_log_var)


# --------------------------------------------------------------------------- #
# Pure-JAX reference (directly from PyTorch-layout params) for correctness check
# --------------------------------------------------------------------------- #
def encoder_reference(x, pt, eps, ts, feature_dim):
    H = HIDDEN
    xr = jnp.reshape(x, (-1, ts, feature_dim)).astype(jnp.float32)
    B, T, _ = xr.shape
    h = [jnp.zeros((B, H), jnp.float32) for _ in range(NUM_LAYERS)]
    c = [jnp.zeros((B, H), jnp.float32) for _ in range(NUM_LAYERS)]
    for t in range(T):
        inp = xr[:, t, :]
        for l in range(NUM_LAYERS):
            b = pt[f"bias_ih_l{l}"] + pt[f"bias_hh_l{l}"]
            g = inp @ pt[f"weight_ih_l{l}"].T + h[l] @ pt[f"weight_hh_l{l}"].T + b
            i_g = jax.nn.sigmoid(g[:, 0 * H:1 * H])
            f_g = jax.nn.sigmoid(g[:, 1 * H:2 * H])
            g_g = jnp.tanh(g[:, 2 * H:3 * H])
            o_g = jax.nn.sigmoid(g[:, 3 * H:4 * H])
            c[l] = f_g * c[l] + i_g * g_g
            h[l] = o_g * jnp.tanh(c[l])
            inp = h[l]
    h_top = h[-1]
    z_mean = h_top @ pt["linear_1_w"].T + pt["linear_1_b"]
    z_log_var = h_top @ pt["linear_2_w"].T + pt["linear_2_b"]
    z = z_mean + eps * jnp.exp(0.5 * z_log_var)
    return z, (z_mean, z_log_var)


if __name__ == "__main__":
    key = jax.random.PRNGKey(0)
    ts, feature_dim, latents_dim = 8, 16, 16
    k_x, k_eps, k_p = jax.random.split(key, 3)
    pt_params = init_params(k_p, feature_dim, latents_dim)
    kparams = prepare_params(pt_params)

    for B in (8, 5):   # aligned batch + non-multiple-of-8 batch (padding path)
        kx, keps = jax.random.fold_in(k_x, B), jax.random.fold_in(k_eps, B)
        x = jax.random.normal(kx, (B, ts, feature_dim), dtype=jnp.float32)
        eps = jax.random.normal(keps, (B, latents_dim), dtype=jnp.float32)  # torch.randn_like(std)

        z, (z_mean, z_log_var) = encoder_forward(x, kparams, eps, ts, feature_dim)
        jax.block_until_ready((z, z_mean, z_log_var))

        assert z.shape == (B, latents_dim)
        assert z_mean.shape == (B, latents_dim)
        assert z_log_var.shape == (B, latents_dim)

        # Correctness vs. pure-JAX reference built from the PyTorch-layout params.
        z_r, (m_r, lv_r) = encoder_reference(x, pt_params, eps, ts, feature_dim)
        for got, ref in ((z, z_r), (z_mean, m_r), (z_log_var, lv_r)):
            assert float(jnp.max(jnp.abs(got - ref))) < 2e-2, "mismatch vs reference"

    print("KERNEL_OK")
</pallas_src>

<mosaic_0001>
module attributes {stable_mosaic.version = 11 : i64} {
  func.func @encoder_kernel(%arg0: i32, %arg1: memref<64x16xf32, #tpu.memory_space<vmem>>, %arg2: memref<16x512xf32, #tpu.memory_space<vmem>>, %arg3: memref<1x512xf32, #tpu.memory_space<vmem>>, %arg4: memref<128x512xf32, #tpu.memory_space<vmem>>, %arg5: memref<256x512xf32, #tpu.memory_space<vmem>>, %arg6: memref<1x512xf32, #tpu.memory_space<vmem>>, %arg7: memref<256x512xf32, #tpu.memory_space<vmem>>, %arg8: memref<1x512xf32, #tpu.memory_space<vmem>>, %arg9: memref<128x32xf32, #tpu.memory_space<vmem>>, %arg10: memref<1x32xf32, #tpu.memory_space<vmem>>, %arg11: memref<8x16xf32, #tpu.memory_space<vmem>>, %arg12: memref<8x16xf32, #tpu.memory_space<vmem>>, %arg13: memref<8x16xf32, #tpu.memory_space<vmem>>, %arg14: memref<8x16xf32, #tpu.memory_space<vmem>>, %arg15: memref<64x512xf32, #tpu.memory_space<vmem>>) attributes {dimension_semantics = [#tpu.dimension_semantics<parallel>], iteration_bounds = array<i64: 1>, scalar_prefetch = 0 : i64, scratch_operands = 1 : i64, tpu.core_type = #tpu.core_type<tc>, window_params = [{transform_indices = @transform_0, window_bounds = array<i64: 64, 16>}, {pipeline_mode = #tpu.pipeline_mode<synchronous>, transform_indices = @transform_1, window_bounds = array<i64: 16, 512>}, {pipeline_mode = #tpu.pipeline_mode<synchronous>, transform_indices = @transform_2, window_bounds = array<i64: 1, 512>}, {pipeline_mode = #tpu.pipeline_mode<synchronous>, transform_indices = @transform_3, window_bounds = array<i64: 128, 512>}, {pipeline_mode = #tpu.pipeline_mode<synchronous>, transform_indices = @transform_4, window_bounds = array<i64: 256, 512>}, {pipeline_mode = #tpu.pipeline_mode<synchronous>, transform_indices = @transform_5, window_bounds = array<i64: 1, 512>}, {pipeline_mode = #tpu.pipeline_mode<synchronous>, transform_indices = @transform_6, window_bounds = array<i64: 256, 512>}, {pipeline_mode = #tpu.pipeline_mode<synchronous>, transform_indices = @transform_7, window_bounds = array<i64: 1, 512>}, {pipeline_mode = #tpu.pipeline_mode<synchronous>, transform_indices = @transform_8, window_bounds = array<i64: 128, 32>}, {pipeline_mode = #tpu.pipeline_mode<synchronous>, transform_indices = @transform_9, window_bounds = array<i64: 1, 32>}, {transform_indices = @transform_10, window_bounds = array<i64: 8, 16>}, {transform_indices = @transform_11, window_bounds = array<i64: 8, 16>}, {transform_indices = @transform_12, window_bounds = array<i64: 8, 16>}, {transform_indices = @transform_13, window_bounds = array<i64: 8, 16>}]} {
    %c0 = arith.constant 0 : index
    %c0_0 = arith.constant 0 : index
    %0 = vector.load %arg1[%c0, %c0_0] : memref<64x16xf32, #tpu.memory_space<vmem>>, vector<64x16xf32>
    %c0_1 = arith.constant 0 : index
    %c0_2 = arith.constant 0 : index
    %1 = vector.load %arg2[%c0_1, %c0_2] : memref<16x512xf32, #tpu.memory_space<vmem>>, vector<16x512xf32>
    %cst = arith.constant dense<0.000000e+00> : vector<64x512xf32>
    %2 = tpu.matmul %0, %1, %cst {dimension_numbers = #tpu.dot_dimension_numbers<[1], [0], [0], [1], [0, 0, 1, 1], [], []>} : vector<64x16xf32>, vector<16x512xf32>, vector<64x512xf32> -> vector<64x512xf32>
    %c0_3 = arith.constant 0 : index
    %c0_4 = arith.constant 0 : index
    %3 = vector.load %arg3[%c0_3, %c0_4] : memref<1x512xf32, #tpu.memory_space<vmem>>, vector<1x512xf32>
    %4 = vector.shape_cast %3 : vector<1x512xf32> to vector<1x512xf32>
    %5 = vector.broadcast %4 : vector<1x512xf32> to vector<64x512xf32>
    %6 = arith.addf %2, %5 : vector<64x512xf32>
    %c0_5 = arith.constant 0 : index
    %c0_6 = arith.constant 0 : index
    %7 = vector.load %arg15[%c0_5, %c0_6] : memref<64x512xf32, #tpu.memory_space<vmem>>, vector<64x512xf32>
    tpu.vector_store %arg15[%c0_5, %c0_6], %6 {strides = array<i32>} : memref<64x512xf32, #tpu.memory_space<vmem>>, vector<64x512xf32>,
    %c0_7 = arith.constant 0 : index
    %c0_8 = arith.constant 0 : index
    %8 = vector.load %arg4[%c0_7, %c0_8] : memref<128x512xf32, #tpu.memory_space<vmem>>, vector<128x512xf32>
    %c0_9 = arith.constant 0 : index
    %c0_10 = arith.constant 0 : index
    %9 = vector.load %arg5[%c0_9, %c0_10] : memref<256x512xf32, #tpu.memory_space<vmem>>, vector<256x512xf32>
    %c0_11 = arith.constant 0 : index
    %c0_12 = arith.constant 0 : index
    %10 = vector.load %arg7[%c0_11, %c0_12] : memref<256x512xf32, #tpu.memory_space<vmem>>, vector<256x512xf32>
    %c0_13 = arith.constant 0 : index
    %c0_14 = arith.constant 0 : index
    %11 = vector.load %arg6[%c0_13, %c0_14] : memref<1x512xf32, #tpu.memory_space<vmem>>, vector<1x512xf32>
    %12 = vector.shape_cast %11 : vector<1x512xf32> to vector<1x512xf32>
    %13 = vector.broadcast %12 : vector<1x512xf32> to vector<8x512xf32>
    %c0_15 = arith.constant 0 : index
    %c0_16 = arith.constant 0 : index
    %14 = vector.load %arg8[%c0_15, %c0_16] : memref<1x512xf32, #tpu.memory_space<vmem>>, vector<1x512xf32>
    %15 = vector.shape_cast %14 : vector<1x512xf32> to vector<1x512xf32>
    %16 = vector.broadcast %15 : vector<1x512xf32> to vector<8x512xf32>
    %cst_17 = arith.constant 0.000000e+00 : f32
    %17 = vector.broadcast %cst_17 : f32 to vector<8x128xf32>
    %c0_18 = arith.constant 0 : index
    %c0_19 = arith.constant 0 : index
    %18 = vector.load %arg15[%c0_18, %c0_19] : memref<64x512xf32, #tpu.memory_space<vmem>>, vector<8x512xf32>
    %cst_20 = arith.constant dense<0.000000e+00> : vector<8x512xf32>
    %19 = tpu.matmul %17, %8, %cst_20 {dimension_numbers = #tpu.dot_dimension_numbers<[1], [0], [0], [1], [0, 0, 1, 1], [], []>} : vector<8x128xf32>, vector<128x512xf32>, vector<8x512xf32> -> vector<8x512xf32>
    %20 = arith.addf %18, %19 : vector<8x512xf32>
    %21 = vector.extract_strided_slice %20 {offsets = [0, 0], sizes = [8, 384], strides = [1, 1]} : vector<8x512xf32> to vector<8x384xf32>
    %22 = arith.negf %21 : vector<8x384xf32>
    %23 = math.exp %22 : vector<8x384xf32>
    %cst_21 = arith.constant 1.000000e+00 : f32
    %24 = vector.broadcast %cst_21 : f32 to vector<8x384xf32>
    %25 = arith.addf %24, %23 : vector<8x384xf32>
    %26 = arith.divf %24, %25 : vector<8x384xf32>
    %27 = vector.extract_strided_slice %26 {offsets = [0, 0], sizes = [8, 128], strides = [1, 1]} : vector<8x384xf32> to vector<8x128xf32>
    %28 = vector.extract_strided_slice %26 {offsets = [0, 128], sizes = [8, 128], strides = [1, 1]} : vector<8x384xf32> to vector<8x128xf32>
    %29 = vector.extract_strided_slice %26 {offsets = [0, 256], sizes = [8, 128], strides = [1, 1]} : vector<8x384xf32> to vector<8x128xf32>
    %30 = vector.extract_strided_slice %20 {offsets = [0, 384], sizes = [8, 128], strides = [1, 1]} : vector<8x512xf32> to vector<8x128xf32>
    %31 = math.tanh %30 : vector<8x128xf32>
    %32 = arith.mulf %28, %17 : vector<8x128xf32>
    %33 = arith.mulf %27, %31 : vector<8x128xf32>
    %34 = arith.addf %32, %33 : vector<8x128xf32>
    %35 = math.tanh %34 : vector<8x128xf32>
    %36 = arith.mulf %29, %35 : vector<8x128xf32>
    %37 = tpu.concatenate %36, %17 in 1 : vector<8x128xf32>, vector<8x128xf32> -> vector<8x256xf32>
    %cst_22 = arith.constant dense<0.000000e+00> : vector<8x512xf32>
    %38 = tpu.matmul %37, %9, %cst_22 {dimension_numbers = #tpu.dot_dimension_numbers<[1], [0], [0], [1], [0, 0, 1, 1], [], []>} : vector<8x256xf32>, vector<256x512xf32>, vector<8x512xf32> -> vector<8x512xf32>
    %39 = arith.addf %38, %13 : vector<8x512xf32>
    %40 = vector.extract_strided_slice %39 {offsets = [0, 0], sizes = [8, 384], strides = [1, 1]} : vector<8x512xf32> to vector<8x384xf32>
    %41 = arith.negf %40 : vector<8x384xf32>
    %42 = math.exp %41 : vector<8x384xf32>
    %cst_23 = arith.constant 1.000000e+00 : f32
    %43 = vector.broadcast %cst_23 : f32 to vector<8x384xf32>
    %44 = arith.addf %43, %42 : vector<8x384xf32>
    %45 = arith.divf %43, %44 : vector<8x384xf32>
    %46 = vector.extract_strided_slice %45 {offsets = [0, 0], sizes = [8, 128], strides = [1, 1]} : vector<8x384xf32> to vector<8x128xf32>
    %47 = vector.extract_strided_slice %45 {offsets = [0, 128], sizes = [8, 128], strides = [1, 1]} : vector<8x384xf32> to vector<8x128xf32>
    %48 = vector.extract_strided_slice %45 {offsets = [0, 256], sizes = [8, 128], strides = [1, 1]} : vector<8x384xf32> to vector<8x128xf32>
    %49 = vector.extract_strided_slice %39 {offsets = [0, 384], sizes = [8, 128], strides = [1, 1]} : vector<8x512xf32> to vector<8x128xf32>
    %50 = math.tanh %49 : vector<8x128xf32>
    %51 = arith.mulf %47, %17 : vector<8x128xf32>
    %52 = arith.mulf %46, %50 : vector<8x128xf32>
    %53 = arith.addf %51, %52 : vector<8x128xf32>
    %54 = math.tanh %53 : vector<8x128xf32>
    %55 = arith.mulf %48, %54 : vector<8x128xf32>
    %56 = tpu.concatenate %55, %17 in 1 : vector<8x128xf32>, vector<8x128xf32> -> vector<8x256xf32>
    %cst_24 = arith.constant dense<0.000000e+00> : vector<8x512xf32>
    %57 = tpu.matmul %56, %10, %cst_24 {dimension_numbers = #tpu.dot_dimension_numbers<[1], [0], [0], [1], [0, 0, 1, 1], [], []>} : vector<8x256xf32>, vector<256x512xf32>, vector<8x512xf32> -> vector<8x512xf32>
    %58 = arith.addf %57, %16 : vector<8x512xf32>
    %59 = vector.extract_strided_slice %58 {offsets = [0, 0], sizes = [8, 384], strides = [1, 1]} : vector<8x512xf32> to vector<8x384xf32>
    %60 = arith.negf %59 : vector<8x384xf32>
    %61 = math.exp %60 : vector<8x384xf32>
    %cst_25 = arith.constant 1.000000e+00 : f32
    %62 = vector.broadcast %cst_25 : f32 to vector<8x384xf32>
    %63 = arith.addf %62, %61 : vector<8x384xf32>
    %64 = arith.divf %62, %63 : vector<8x384xf32>
    %65 = vector.extract_strided_slice %64 {offsets = [0, 0], sizes = [8, 128], strides = [1, 1]} : vector<8x384xf32> to vector<8x128xf32>
    %66 = vector.extract_strided_slice %64 {offsets = [0, 128], sizes = [8, 128], strides = [1, 1]} : vector<8x384xf32> to vector<8x128xf32>
    %67 = vector.extract_strided_slice %64 {offsets = [0, 256], sizes = [8, 128], strides = [1, 1]} : vector<8x384xf32> to vector<8x128xf32>
    %68 = vector.extract_strided_slice %58 {offsets = [0, 384], sizes = [8, 128], strides = [1, 1]} : vector<8x512xf32> to vector<8x128xf32>
    %69 = math.tanh %68 : vector<8x128xf32>
    %70 = arith.mulf %66, %17 : vector<8x128xf32>
    %71 = arith.mulf %65, %69 : vector<8x128xf32>
    %72 = arith.addf %70, %71 : vector<8x128xf32>
    %73 = math.tanh %72 : vector<8x128xf32>
    %74 = arith.mulf %67, %73 : vector<8x128xf32>
    %c8 = arith.constant 8 : index
    %c0_26 = arith.constant 0 : index
    %75 = vector.load %arg15[%c8, %c0_26] : memref<64x512xf32, #tpu.memory_space<vmem>>, vector<8x512xf32>
    %cst_27 = arith.constant dense<0.000000e+00> : vector<8x512xf32>
    %76 = tpu.matmul %36, %8, %cst_27 {dimension_numbers = #tpu.dot_dimension_numbers<[1], [0], [0], [1], [0, 0, 1, 1], [], []>} : vector<8x128xf32>, vector<128x512xf32>, vector<8x512xf32> -> vector<8x512xf32>
    %77 = arith.addf %75, %76 : vector<8x512xf32>
    %78 = vector.extract_strided_slice %77 {offsets = [0, 0], sizes = [8, 384], strides = [1, 1]} : vector<8x512xf32> to vector<8x384xf32>
    %79 = arith.negf %78 : vector<8x384xf32>
    %80 = math.exp %79 : vector<8x384xf32>
    %cst_28 = arith.constant 1.000000e+00 : f32
    %81 = vector.broadcast %cst_28 : f32 to vector<8x384xf32>
    %82 = arith.addf %81, %80 : vector<8x384xf32>
    %83 = arith.divf %81, %82 : vector<8x384xf32>
    %84 = vector.extract_strided_slice %83 {offsets = [0, 0], sizes = [8, 128], strides = [1, 1]} : vector<8x384xf32> to vector<8x128xf32>
    %85 = vector.extract_strided_slice %83 {offsets = [0, 128], sizes = [8, 128], strides = [1, 1]} : vector<8x384xf32> to vector<8x128xf32>
    %86 = vector.extract_strided_slice %83 {offsets = [0, 256], sizes = [8, 128], strides = [1, 1]} : vector<8x384xf32> to vector<8x128xf32>
    %87 = vector.extract_strided_slice %77 {offsets = [0, 384], sizes = [8, 128], strides = [1, 1]} : vector<8x512xf32> to vector<8x128xf32>
    %88 = math.tanh %87 : vector<8x128xf32>
    %89 = arith.mulf %85, %34 : vector<8x128xf32>
    %90 = arith.mulf %84, %88 : vector<8x128xf32>
    %91 = arith.addf %89, %90 : vector<8x128xf32>
    %92 = math.tanh %91 : vector<8x128xf32>
    %93 = arith.mulf %86, %92 : vector<8x128xf32>
    %94 = tpu.concatenate %93, %55 in 1 : vector<8x128xf32>, vector<8x128xf32> -> vector<8x256xf32>
    %cst_29 = arith.constant dense<0.000000e+00> : vector<8x512xf32>
    %95 = tpu.matmul %94, %9, %cst_29 {dimension_numbers = #tpu.dot_dimension_numbers<[1], [0], [0], [1], [0, 0, 1, 1], [], []>} : vector<8x256xf32>, vector<256x512xf32>, vector<8x512xf32> -> vector<8x512xf32>
    %96 = arith.addf %95, %13 : vector<8x512xf32>
    %97 = vector.extract_strided_slice %96 {offsets = [0, 0], sizes = [8, 384], strides = [1, 1]} : vector<8x512xf32> to vector<8x384xf32>
    %98 = arith.negf %97 : vector<8x384xf32>
    %99 = math.exp %98 : vector<8x384xf32>
    %cst_30 = arith.constant 1.000000e+00 : f32
    %100 = vector.broadcast %cst_30 : f32 to vector<8x384xf32>
    %101 = arith.addf %100, %99 : vector<8x384xf32>
    %102 = arith.divf %100, %101 : vector<8x384xf32>
    %103 = vector.extract_strided_slice %102 {offsets = [0, 0], sizes = [8, 128], strides = [1, 1]} : vector<8x384xf32> to vector<8x128xf32>
    %104 = vector.extract_strided_slice %102 {offsets = [0, 128], sizes = [8, 128], strides = [1, 1]} : vector<8x384xf32> to vector<8x128xf32>
    %105 = vector.extract_strided_slice %102 {offsets = [0, 256], sizes = [8, 128], strides = [1, 1]} : vector<8x384xf32> to vector<8x128xf32>
    %106 = vector.extract_strided_slice %96 {offsets = [0, 384], sizes = [8, 128], strides = [1, 1]} : vector<8x512xf32> to vector<8x128xf32>
    %107 = math.tanh %106 : vector<8x128xf32>
    %108 = arith.mulf %104, %53 : vector<8x128xf32>
    %109 = arith.mulf %103, %107 : vector<8x128xf32>
    %110 = arith.addf %108, %109 : vector<8x128xf32>
    %111 = math.tanh %110 : vector<8x128xf32>
    %112 = arith.mulf %105, %111 : vector<8x128xf32>
    %113 = tpu.concatenate %112, %74 in 1 : vector<8x128xf32>, vector<8x128xf32> -> vector<8x256xf32>
    %cst_31 = arith.constant dense<0.000000e+00> : vector<8x512xf32>
    %114 = tpu.matmul %113, %10, %cst_31 {dimension_numbers = #tpu.dot_dimension_numbers<[1], [0], [0], [1], [0, 0, 1, 1], [], []>} : vector<8x256xf32>, vector<256x512xf32>, vector<8x512xf32> -> vector<8x512xf32>
    %115 = arith.addf %114, %16 : vector<8x512xf32>
    %116 = vector.extract_strided_slice %115 {offsets = [0, 0], sizes = [8, 384], strides = [1, 1]} : vector<8x512xf32> to vector<8x384xf32>
    %117 = arith.negf %116 : vector<8x384xf32>
    %118 = math.exp %117 : vector<8x384xf32>
    %cst_32 = arith.constant 1.000000e+00 : f32
    %119 = vector.broadcast %cst_32 : f32 to vector<8x384xf32>
    %120 = arith.addf %119, %118 : vector<8x384xf32>
    %121 = arith.divf %119, %120 : vector<8x384xf32>
    %122 = vector.extract_strided_slice %121 {offsets = [0, 0], sizes = [8, 128], strides = [1, 1]} : vector<8x384xf32> to vector<8x128xf32>
    %123 = vector.extract_strided_slice %121 {offsets = [0, 128], sizes = [8, 128], strides = [1, 1]} : vector<8x384xf32> to vector<8x128xf32>
    %124 = vector.extract_strided_slice %121 {offsets = [0, 256], sizes = [8, 128], strides = [1, 1]} : vector<8x384xf32> to vector<8x128xf32>
    %125 = vector.extract_strided_slice %115 {offsets = [0, 384], sizes = [8, 128], strides = [1, 1]} : vector<8x512xf32> to vector<8x128xf32>
    %126 = math.tanh %125 : vector<8x128xf32>
    %127 = arith.mulf %123, %72 : vector<8x128xf32>
    %128 = arith.mulf %122, %126 : vector<8x128xf32>
    %129 = arith.addf %127, %128 : vector<8x128xf32>
    %130 = math.tanh %129 : vector<8x128xf32>
    %131 = arith.mulf %124, %130 : vector<8x128xf32>
    %c16 = arith.constant 16 : index
    %c0_33 = arith.constant 0 : index
    %132 = vector.load %arg15[%c16, %c0_33] : memref<64x512xf32, #tpu.memory_space<vmem>>, vector<8x512xf32>
    %cst_34 = arith.constant dense<0.000000e+00> : vector<8x512xf32>
    %133 = tpu.matmul %93, %8, %cst_34 {dimension_numbers = #tpu.dot_dimension_numbers<[1], [0], [0], [1], [0, 0, 1, 1], [], []>} : vector<8x128xf32>, vector<128x512xf32>, vector<8x512xf32> -> vector<8x512xf32>
    %134 = arith.addf %132, %133 : vector<8x512xf32>
    %135 = vector.extract_strided_slice %134 {offsets = [0, 0], sizes = [8, 384], strides = [1, 1]} : vector<8x512xf32> to vector<8x384xf32>
    %136 = arith.negf %135 : vector<8x384xf32>
    %137 = math.exp %136 : vector<8x384xf32>
    %cst_35 = arith.constant 1.000000e+00 : f32
    %138 = vector.broadcast %cst_35 : f32 to vector<8x384xf32>
    %139 = arith.addf %138, %137 : vector<8x384xf32>
    %140 = arith.divf %138, %139 : vector<8x384xf32>
    %141 = vector.extract_strided_slice %140 {offsets = [0, 0], sizes = [8, 128], strides = [1, 1]} : vector<8x384xf32> to vector<8x128xf32>
    %142 = vector.extract_strided_slice %140 {offsets = [0, 128], sizes = [8, 128], strides = [1, 1]} : vector<8x384xf32> to vector<8x128xf32>
    %143 = vector.extract_strided_slice %140 {offsets = [0, 256], sizes = [8, 128], strides = [1, 1]} : vector<8x384xf32> to vector<8x128xf32>
    %144 = vector.extract_strided_slice %134 {offsets = [0, 384], sizes = [8, 128], strides = [1, 1]} : vector<8x512xf32> to vector<8x128xf32>
    %145 = math.tanh %144 : vector<8x128xf32>
    %146 = arith.mulf %142, %91 : vector<8x128xf32>
    %147 = arith.mulf %141, %145 : vector<8x128xf32>
    %148 = arith.addf %146, %147 : vector<8x128xf32>
    %149 = math.tanh %148 : vector<8x128xf32>
    %150 = arith.mulf %143, %149 : vector<8x128xf32>
    %151 = tpu.concatenate %150, %112 in 1 : vector<8x128xf32>, vector<8x128xf32> -> vector<8x256xf32>
    %cst_36 = arith.constant dense<0.000000e+00> : vector<8x512xf32>
    %152 = tpu.matmul %151, %9, %cst_36 {dimension_numbers = #tpu.dot_dimension_numbers<[1], [0], [0], [1], [0, 0, 1, 1], [], []>} : vector<8x256xf32>, vector<256x512xf32>, vector<8x512xf32> -> vector<8x512xf32>
    %153 = arith.addf %152, %13 : vector<8x512xf32>
    %154 = vector.extract_strided_slice %153 {offsets = [0, 0], sizes = [8, 384], strides = [1, 1]} : vector<8x512xf32> to vector<8x384xf32>
    %155 = arith.negf %154 : vector<8x384xf32>
    %156 = math.exp %155 : vector<8x384xf32>
    %cst_37 = arith.constant 1.000000e+00 : f32
    %157 = vector.broadcast %cst_37 : f32 to vector<8x384xf32>
    %158 = arith.addf %157, %156 : vector<8x384xf32>
    %159 = arith.divf %157, %158 : vector<8x384xf32>
    %160 = vector.extract_strided_slice %159 {offsets = [0, 0], sizes = [8, 128], strides = [1, 1]} : vector<8x384xf32> to vector<8x128xf32>
    %161 = vector.extract_strided_slice %159 {offsets = [0, 128], sizes = [8, 128], strides = [1, 1]} : vector<8x384xf32> to vector<8x128xf32>
    %162 = vector.extract_strided_slice %159 {offsets = [0, 256], sizes = [8, 128], strides = [1, 1]} : vector<8x384xf32> to vector<8x128xf32>
    %163 = vector.extract_strided_slice %153 {offsets = [0, 384], sizes = [8, 128], strides = [1, 1]} : vector<8x512xf32> to vector<8x128xf32>
    %164 = math.tanh %163 : vector<8x128xf32>
    %165 = arith.mulf %161, %110 : vector<8x128xf32>
    %166 = arith.mulf %160, %164 : vector<8x128xf32>
    %167 = arith.addf %165, %166 : vector<8x128xf32>
    %168 = math.tanh %167 : vector<8x128xf32>
    %169 = arith.mulf %162, %168 : vector<8x128xf32>
    %170 = tpu.concatenate %169, %131 in 1 : vector<8x128xf32>, vector<8x128xf32> -> vector<8x256xf32>
    %cst_38 = arith.constant dense<0.000000e+00> : vector<8x512xf32>
    %171 = tpu.matmul %170, %10, %cst_38 {dimension_numbers = #tpu.dot_dimension_numbers<[1], [0], [0], [1], [0, 0, 1, 1], [], []>} : vector<8x256xf32>, vector<256x512xf32>, vector<8x512xf32> -> vector<8x512xf32>
    %172 = arith.addf %171, %16 : vector<8x512xf32>
    %173 = vector.extract_strided_slice %172 {offsets = [0, 0], sizes = [8, 384], strides = [1, 1]} : vector<8x512xf32> to vector<8x384xf32>
    %174 = arith.negf %173 : vector<8x384xf32>
    %175 = math.exp %174 : vector<8x384xf32>
    %cst_39 = arith.constant 1.000000e+00 : f32
    %176 = vector.broadcast %cst_39 : f32 to vector<8x384xf32>
    %177 = arith.addf %176, %175 : vector<8x384xf32>
    %178 = arith.divf %176, %177 : vector<8x384xf32>
    %179 = vector.extract_strided_slice %178 {offsets = [0, 0], sizes = [8, 128], strides = [1, 1]} : vector<8x384xf32> to vector<8x128xf32>
    %180 = vector.extract_strided_slice %178 {offsets = [0, 128], sizes = [8, 128], strides = [1, 1]} : vector<8x384xf32> to vector<8x128xf32>
    %181 = vector.extract_strided_slice %178 {offsets = [0, 256], sizes = [8, 128], strides = [1, 1]} : vector<8x384xf32> to vector<8x128xf32>
    %182 = vector.extract_strided_slice %172 {offsets = [0, 384], sizes = [8, 128], strides = [1, 1]} : vector<8x512xf32> to vector<8x128xf32>
    %183 = math.tanh %182 : vector<8x128xf32>
    %184 = arith.mulf %180, %129 : vector<8x128xf32>
    %185 = arith.mulf %179, %183 : vector<8x128xf32>
    %186 = arith.addf %184, %185 : vector<8x128xf32>
    %187 = math.tanh %186 : vector<8x128xf32>
    %188 = arith.mulf %181, %187 : vector<8x128xf32>
    %c24 = arith.constant 24 : index
    %c0_40 = arith.constant 0 : index
    %189 = vector.load %arg15[%c24, %c0_40] : memref<64x512xf32, #tpu.memory_space<vmem>>, vector<8x512xf32>
    %cst_41 = arith.constant dense<0.000000e+00> : vector<8x512xf32>
    %190 = tpu.matmul %150, %8, %cst_41 {dimension_numbers = #tpu.dot_dimension_numbers<[1], [0], [0], [1], [0, 0, 1, 1], [], []>} : vector<8x128xf32>, vector<128x512xf32>, vector<8x512xf32> -> vector<8x512xf32>
    %191 = arith.addf %189, %190 : vector<8x512xf32>
    %192 = vector.extract_strided_slice %191 {offsets = [0, 0], sizes = [8, 384], strides = [1, 1]} : vector<8x512xf32> to vector<8x384xf32>
    %193 = arith.negf %192 : vector<8x384xf32>
    %194 = math.exp %193 : vector<8x384xf32>
    %cst_42 = arith.constant 1.000000e+00 : f32
    %195 = vector.broadcast %cst_42 : f32 to vector<8x384xf32>
    %196 = arith.addf %195, %194 : vector<8x384xf32>
    %197 = arith.divf %195, %196 : vector<8x384xf32>
    %198 = vector.extract_strided_slice %197 {offsets = [0, 0], sizes = [8, 128], strides = [1, 1]} : vector<8x384xf32> to vector<8x128xf32>
    %199 = vector.extract_strided_slice %197 {offsets = [0, 128], sizes = [8, 128], strides = [1, 1]} : vector<8x384xf32> to vector<8x128xf32>
    %200 = vector.extract_strided_slice %197 {offsets = [0, 256], sizes = [8, 128], strides = [1, 1]} : vector<8x384xf32> to vector<8x128xf32>
    %201 = vector.extract_strided_slice %191 {offsets = [0, 384], sizes = [8, 128], strides = [1, 1]} : vector<8x512xf32> to vector<8x128xf32>
    %202 = math.tanh %201 : vector<8x128xf32>
    %203 = arith.mulf %199, %148 : vector<8x128xf32>
    %204 = arith.mulf %198, %202 : vector<8x128xf32>
    %205 = arith.addf %203, %204 : vector<8x128xf32>
    %206 = math.tanh %205 : vector<8x128xf32>
    %207 = arith.mulf %200, %206 : vector<8x128xf32>
    %208 = tpu.concatenate %207, %169 in 1 : vector<8x128xf32>, vector<8x128xf32> -> vector<8x256xf32>
    %cst_43 = arith.constant dense<0.000000e+00> : vector<8x512xf32>
    %209 = tpu.matmul %208, %9, %cst_43 {dimension_numbers = #tpu.dot_dimension_numbers<[1], [0], [0], [1], [0, 0, 1, 1], [], []>} : vector<8x256xf32>, vector<256x512xf32>, vector<8x512xf32> -> vector<8x512xf32>
    %210 = arith.addf %209, %13 : vector<8x512xf32>
    %211 = vector.extract_strided_slice %210 {offsets = [0, 0], sizes = [8, 384], strides = [1, 1]} : vector<8x512xf32> to vector<8x384xf32>
    %212 = arith.negf %211 : vector<8x384xf32>
    %213 = math.exp %212 : vector<8x384xf32>
    %cst_44 = arith.constant 1.000000e+00 : f32
    %214 = vector.broadcast %cst_44 : f32 to vector<8x384xf32>
    %215 = arith.addf %214, %213 : vector<8x384xf32>
    %216 = arith.divf %214, %215 : vector<8x384xf32>
    %217 = vector.extract_strided_slice %216 {offsets = [0, 0], sizes = [8, 128], strides = [1, 1]} : vector<8x384xf32> to vector<8x128xf32>
    %218 = vector.extract_strided_slice %216 {offsets = [0, 128], sizes = [8, 128], strides = [1, 1]} : vector<8x384xf32> to vector<8x128xf32>
    %219 = vector.extract_strided_slice %216 {offsets = [0, 256], sizes = [8, 128], strides = [1, 1]} : vector<8x384xf32> to vector<8x128xf32>
    %220 = vector.extract_strided_slice %210 {offsets = [0, 384], sizes = [8, 128], strides = [1, 1]} : vector<8x512xf32> to vector<8x128xf32>
    %221 = math.tanh %220 : vector<8x128xf32>
    %222 = arith.mulf %218, %167 : vector<8x128xf32>
    %223 = arith.mulf %217, %221 : vector<8x128xf32>
    %224 = arith.addf %222, %223 : vector<8x128xf32>
    %225 = math.tanh %224 : vector<8x128xf32>
    %226 = arith.mulf %219, %225 : vector<8x128xf32>
    %227 = tpu.concatenate %226, %188 in 1 : vector<8x128xf32>, vector<8x128xf32> -> vector<8x256xf32>
    %cst_45 = arith.constant dense<0.000000e+00> : vector<8x512xf32>
    %228 = tpu.matmul %227, %10, %cst_45 {dimension_numbers = #tpu.dot_dimension_numbers<[1], [0], [0], [1], [0, 0, 1, 1], [], []>} : vector<8x256xf32>, vector<256x512xf32>, vector<8x512xf32> -> vector<8x512xf32>
    %229 = arith.addf %228, %16 : vector<8x512xf32>
    %230 = vector.extract_strided_slice %229 {offsets = [0, 0], sizes = [8, 384], strides = [1, 1]} : vector<8x512xf32> to vector<8x384xf32>
    %231 = arith.negf %230 : vector<8x384xf32>
    %232 = math.exp %231 : vector<8x384xf32>
    %cst_46 = arith.constant 1.000000e+00 : f32
    %233 = vector.broadcast %cst_46 : f32 to vector<8x384xf32>
    %234 = arith.addf %233, %232 : vector<8x384xf32>
    %235 = arith.divf %233, %234 : vector<8x384xf32>
    %236 = vector.extract_strided_slice %235 {offsets = [0, 0], sizes = [8, 128], strides = [1, 1]} : vector<8x384xf32> to vector<8x128xf32>
    %237 = vector.extract_strided_slice %235 {offsets = [0, 128], sizes = [8, 128], strides = [1, 1]} : vector<8x384xf32> to vector<8x128xf32>
    %238 = vector.extract_strided_slice %235 {offsets = [0, 256], sizes = [8, 128], strides = [1, 1]} : vector<8x384xf32> to vector<8x128xf32>
    %239 = vector.extract_strided_slice %229 {offsets = [0, 384], sizes = [8, 128], strides = [1, 1]} : vector<8x512xf32> to vector<8x128xf32>
    %240 = math.tanh %239 : vector<8x128xf32>
    %241 = arith.mulf %237, %186 : vector<8x128xf32>
    %242 = arith.mulf %236, %240 : vector<8x128xf32>
    %243 = arith.addf %241, %242 : vector<8x128xf32>
    %244 = math.tanh %243 : vector<8x128xf32>
    %245 = arith.mulf %238, %244 : vector<8x128xf32>
    %c32 = arith.constant 32 : index
    %c0_47 = arith.constant 0 : index
    %246 = vector.load %arg15[%c32, %c0_47] : memref<64x512xf32, #tpu.memory_space<vmem>>, vector<8x512xf32>
    %cst_48 = arith.constant dense<0.000000e+00> : vector<8x512xf32>
    %247 = tpu.matmul %207, %8, %cst_48 {dimension_numbers = #tpu.dot_dimension_numbers<[1], [0], [0], [1], [0, 0, 1, 1], [], []>} : vector<8x128xf32>, vector<128x512xf32>, vector<8x512xf32> -> vector<8x512xf32>
    %248 = arith.addf %246, %247 : vector<8x512xf32>
    %249 = vector.extract_strided_slice %248 {offsets = [0, 0], sizes = [8, 384], strides = [1, 1]} : vector<8x512xf32> to vector<8x384xf32>
    %250 = arith.negf %249 : vector<8x384xf32>
    %251 = math.exp %250 : vector<8x384xf32>
    %cst_49 = arith.constant 1.000000e+00 : f32
    %252 = vector.broadcast %cst_49 : f32 to vector<8x384xf32>
    %253 = arith.addf %252, %251 : vector<8x384xf32>
    %254 = arith.divf %252, %253 : vector<8x384xf32>
    %255 = vector.extract_strided_slice %254 {offsets = [0, 0], sizes = [8, 128], strides = [1, 1]} : vector<8x384xf32> to vector<8x128xf32>
    %256 = vector.extract_strided_slice %254 {offsets = [0, 128], sizes = [8, 128], strides = [1, 1]} : vector<8x384xf32> to vector<8x128xf32>
    %257 = vector.extract_strided_slice %254 {offsets = [0, 256], sizes = [8, 128], strides = [1, 1]} : vector<8x384xf32> to vector<8x128xf32>
    %258 = vector.extract_strided_slice %248 {offsets = [0, 384], sizes = [8, 128], strides = [1, 1]} : vector<8x512xf32> to vector<8x128xf32>
    %259 = math.tanh %258 : vector<8x128xf32>
    %260 = arith.mulf %256, %205 : vector<8x128xf32>
    %261 = arith.mulf %255, %259 : vector<8x128xf32>
    %262 = arith.addf %260, %261 : vector<8x128xf32>
    %263 = math.tanh %262 : vector<8x128xf32>
    %264 = arith.mulf %257, %263 : vector<8x128xf32>
    %265 = tpu.concatenate %264, %226 in 1 : vector<8x128xf32>, vector<8x128xf32> -> vector<8x256xf32>
    %cst_50 = arith.constant dense<0.000000e+00> : vector<8x512xf32>
    %266 = tpu.matmul %265, %9, %cst_50 {dimension_numbers = #tpu.dot_dimension_numbers<[1], [0], [0], [1], [0, 0, 1, 1], [], []>} : vector<8x256xf32>, vector<256x512xf32>, vector<8x512xf32> -> vector<8x512xf32>
    %267 = arith.addf %266, %13 : vector<8x512xf32>
    %268 = vector.extract_strided_slice %267 {offsets = [0, 0], sizes = [8, 384], strides = [1, 1]} : vector<8x512xf32> to vector<8x384xf32>
    %269 = arith.negf %268 : vector<8x384xf32>
    %270 = math.exp %269 : vector<8x384xf32>
    %cst_51 = arith.constant 1.000000e+00 : f32
    %271 = vector.broadcast %cst_51 : f32 to vector<8x384xf32>
    %272 = arith.addf %271, %270 : vector<8x384xf32>
    %273 = arith.divf %271, %272 : vector<8x384xf32>
    %274 = vector.extract_strided_slice %273 {offsets = [0, 0], sizes = [8, 128], strides = [1, 1]} : vector<8x384xf32> to vector<8x128xf32>
    %275 = vector.extract_strided_slice %273 {offsets = [0, 128], sizes = [8, 128], strides = [1, 1]} : vector<8x384xf32> to vector<8x128xf32>
    %276 = vector.extract_strided_slice %273 {offsets = [0, 256], sizes = [8, 128], strides = [1, 1]} : vector<8x384xf32> to vector<8x128xf32>
    %277 = vector.extract_strided_slice %267 {offsets = [0, 384], sizes = [8, 128], strides = [1, 1]} : vector<8x512xf32> to vector<8x128xf32>
    %278 = math.tanh %277 : vector<8x128xf32>
    %279 = arith.mulf %275, %224 : vector<8x128xf32>
    %280 = arith.mulf %274, %278 : vector<8x128xf32>
    %281 = arith.addf %279, %280 : vector<8x128xf32>
    %282 = math.tanh %281 : vector<8x128xf32>
    %283 = arith.mulf %276, %282 : vector<8x128xf32>
    %284 = tpu.concatenate %283, %245 in 1 : vector<8x128xf32>, vector<8x128xf32> -> vector<8x256xf32>
    %cst_52 = arith.constant dense<0.000000e+00> : vector<8x512xf32>
    %285 = tpu.matmul %284, %10, %cst_52 {dimension_numbers = #tpu.dot_dimension_numbers<[1], [0], [0], [1], [0, 0, 1, 1], [], []>} : vector<8x256xf32>, vector<256x512xf32>, vector<8x512xf32> -> vector<8x512xf32>
    %286 = arith.addf %285, %16 : vector<8x512xf32>
    %287 = vector.extract_strided_slice %286 {offsets = [0, 0], sizes = [8, 384], strides = [1, 1]} : vector<8x512xf32> to vector<8x384xf32>
    %288 = arith.negf %287 : vector<8x384xf32>
    %289 = math.exp %288 : vector<8x384xf32>
    %cst_53 = arith.constant 1.000000e+00 : f32
    %290 = vector.broadcast %cst_53 : f32 to vector<8x384xf32>
    %291 = arith.addf %290, %289 : vector<8x384xf32>
    %292 = arith.divf %290, %291 : vector<8x384xf32>
    %293 = vector.extract_strided_slice %292 {offsets = [0, 0], sizes = [8, 128], strides = [1, 1]} : vector<8x384xf32> to vector<8x128xf32>
    %294 = vector.extract_strided_slice %292 {offsets = [0, 128], sizes = [8, 128], strides = [1, 1]} : vector<8x384xf32> to vector<8x128xf32>
    %295 = vector.extract_strided_slice %292 {offsets = [0, 256], sizes = [8, 128], strides = [1, 1]} : vector<8x384xf32> to vector<8x128xf32>
    %296 = vector.extract_strided_slice %286 {offsets = [0, 384], sizes = [8, 128], strides = [1, 1]} : vector<8x512xf32> to vector<8x128xf32>
    %297 = math.tanh %296 : vector<8x128xf32>
    %298 = arith.mulf %294, %243 : vector<8x128xf32>
    %299 = arith.mulf %293, %297 : vector<8x128xf32>
    %300 = arith.addf %298, %299 : vector<8x128xf32>
    %301 = math.tanh %300 : vector<8x128xf32>
    %302 = arith.mulf %295, %301 : vector<8x128xf32>
    %c40 = arith.constant 40 : index
    %c0_54 = arith.constant 0 : index
    %303 = vector.load %arg15[%c40, %c0_54] : memref<64x512xf32, #tpu.memory_space<vmem>>, vector<8x512xf32>
    %cst_55 = arith.constant dense<0.000000e+00> : vector<8x512xf32>
    %304 = tpu.matmul %264, %8, %cst_55 {dimension_numbers = #tpu.dot_dimension_numbers<[1], [0], [0], [1], [0, 0, 1, 1], [], []>} : vector<8x128xf32>, vector<128x512xf32>, vector<8x512xf32> -> vector<8x512xf32>
    %305 = arith.addf %303, %304 : vector<8x512xf32>
    %306 = vector.extract_strided_slice %305 {offsets = [0, 0], sizes = [8, 384], strides = [1, 1]} : vector<8x512xf32> to vector<8x384xf32>
    %307 = arith.negf %306 : vector<8x384xf32>
    %308 = math.exp %307 : vector<8x384xf32>
    %cst_56 = arith.constant 1.000000e+00 : f32
    %309 = vector.broadcast %cst_56 : f32 to vector<8x384xf32>
    %310 = arith.addf %309, %308 : vector<8x384xf32>
    %311 = arith.divf %309, %310 : vector<8x384xf32>
    %312 = vector.extract_strided_slice %311 {offsets = [0, 0], sizes = [8, 128], strides = [1, 1]} : vector<8x384xf32> to vector<8x128xf32>
    %313 = vector.extract_strided_slice %311 {offsets = [0, 128], sizes = [8, 128], strides = [1, 1]} : vector<8x384xf32> to vector<8x128xf32>
    %314 = vector.extract_strided_slice %311 {offsets = [0, 256], sizes = [8, 128], strides = [1, 1]} : vector<8x384xf32> to vector<8x128xf32>
    %315 = vector.extract_strided_slice %305 {offsets = [0, 384], sizes = [8, 128], strides = [1, 1]} : vector<8x512xf32> to vector<8x128xf32>
    %316 = math.tanh %315 : vector<8x128xf32>
    %317 = arith.mulf %313, %262 : vector<8x128xf32>
    %318 = arith.mulf %312, %316 : vector<8x128xf32>
    %319 = arith.addf %317, %318 : vector<8x128xf32>
    %320 = math.tanh %319 : vector<8x128xf32>
    %321 = arith.mulf %314, %320 : vector<8x128xf32>
    %322 = tpu.concatenate %321, %283 in 1 : vector<8x128xf32>, vector<8x128xf32> -> vector<8x256xf32>
    %cst_57 = arith.constant dense<0.000000e+00> : vector<8x512xf32>
    %323 = tpu.matmul %322, %9, %cst_57 {dimension_numbers = #tpu.dot_dimension_numbers<[1], [0], [0], [1], [0, 0, 1, 1], [], []>} : vector<8x256xf32>, vector<256x512xf32>, vector<8x512xf32> -> vector<8x512xf32>
    %324 = arith.addf %323, %13 : vector<8x512xf32>
    %325 = vector.extract_strided_slice %324 {offsets = [0, 0], sizes = [8, 384], strides = [1, 1]} : vector<8x512xf32> to vector<8x384xf32>
    %326 = arith.negf %325 : vector<8x384xf32>
    %327 = math.exp %326 : vector<8x384xf32>
    %cst_58 = arith.constant 1.000000e+00 : f32
    %328 = vector.broadcast %cst_58 : f32 to vector<8x384xf32>
    %329 = arith.addf %328, %327 : vector<8x384xf32>
    %330 = arith.divf %328, %329 : vector<8x384xf32>
    %331 = vector.extract_strided_slice %330 {offsets = [0, 0], sizes = [8, 128], strides = [1, 1]} : vector<8x384xf32> to vector<8x128xf32>
    %332 = vector.extract_strided_slice %330 {offsets = [0, 128], sizes = [8, 128], strides = [1, 1]} : vector<8x384xf32> to vector<8x128xf32>
    %333 = vector.extract_strided_slice %330 {offsets = [0, 256], sizes = [8, 128], strides = [1, 1]} : vector<8x384xf32> to vector<8x128xf32>
    %334 = vector.extract_strided_slice %324 {offsets = [0, 384], sizes = [8, 128], strides = [1, 1]} : vector<8x512xf32> to vector<8x128xf32>
    %335 = math.tanh %334 : vector<8x128xf32>
    %336 = arith.mulf %332, %281 : vector<8x128xf32>
    %337 = arith.mulf %331, %335 : vector<8x128xf32>
    %338 = arith.addf %336, %337 : vector<8x128xf32>
    %339 = math.tanh %338 : vector<8x128xf32>
    %340 = arith.mulf %333, %339 : vector<8x128xf32>
    %341 = tpu.concatenate %340, %302 in 1 : vector<8x128xf32>, vector<8x128xf32> -> vector<8x256xf32>
    %cst_59 = arith.constant dense<0.000000e+00> : vector<8x512xf32>
    %342 = tpu.matmul %341, %10, %cst_59 {dimension_numbers = #tpu.dot_dimension_numbers<[1], [0], [0], [1], [0, 0, 1, 1], [], []>} : vector<8x256xf32>, vector<256x512xf32>, vector<8x512xf32> -> vector<8x512xf32>
    %343 = arith.addf %342, %16 : vector<8x512xf32>
    %344 = vector.extract_strided_slice %343 {offsets = [0, 0], sizes = [8, 384], strides = [1, 1]} : vector<8x512xf32> to vector<8x384xf32>
    %345 = arith.negf %344 : vector<8x384xf32>
    %346 = math.exp %345 : vector<8x384xf32>
    %cst_60 = arith.constant 1.000000e+00 : f32
    %347 = vector.broadcast %cst_60 : f32 to vector<8x384xf32>
    %348 = arith.addf %347, %346 : vector<8x384xf32>
    %349 = arith.divf %347, %348 : vector<8x384xf32>
    %350 = vector.extract_strided_slice %349 {offsets = [0, 0], sizes = [8, 128], strides = [1, 1]} : vector<8x384xf32> to vector<8x128xf32>
    %351 = vector.extract_strided_slice %349 {offsets = [0, 128], sizes = [8, 128], strides = [1, 1]} : vector<8x384xf32> to vector<8x128xf32>
    %352 = vector.extract_strided_slice %349 {offsets = [0, 256], sizes = [8, 128], strides = [1, 1]} : vector<8x384xf32> to vector<8x128xf32>
    %353 = vector.extract_strided_slice %343 {offsets = [0, 384], sizes = [8, 128], strides = [1, 1]} : vector<8x512xf32> to vector<8x128xf32>
    %354 = math.tanh %353 : vector<8x128xf32>
    %355 = arith.mulf %351, %300 : vector<8x128xf32>
    %356 = arith.mulf %350, %354 : vector<8x128xf32>
    %357 = arith.addf %355, %356 : vector<8x128xf32>
    %358 = math.tanh %357 : vector<8x128xf32>
    %359 = arith.mulf %352, %358 : vector<8x128xf32>
    %c48 = arith.constant 48 : index
    %c0_61 = arith.constant 0 : index
    %360 = vector.load %arg15[%c48, %c0_61] : memref<64x512xf32, #tpu.memory_space<vmem>>, vector<8x512xf32>
    %cst_62 = arith.constant dense<0.000000e+00> : vector<8x512xf32>
    %361 = tpu.matmul %321, %8, %cst_62 {dimension_numbers = #tpu.dot_dimension_numbers<[1], [0], [0], [1], [0, 0, 1, 1], [], []>} : vector<8x128xf32>, vector<128x512xf32>, vector<8x512xf32> -> vector<8x512xf32>
    %362 = arith.addf %360, %361 : vector<8x512xf32>
    %363 = vector.extract_strided_slice %362 {offsets = [0, 0], sizes = [8, 384], strides = [1, 1]} : vector<8x512xf32> to vector<8x384xf32>
    %364 = arith.negf %363 : vector<8x384xf32>
    %365 = math.exp %364 : vector<8x384xf32>
    %cst_63 = arith.constant 1.000000e+00 : f32
    %366 = vector.broadcast %cst_63 : f32 to vector<8x384xf32>
    %367 = arith.addf %366, %365 : vector<8x384xf32>
    %368 = arith.divf %366, %367 : vector<8x384xf32>
    %369 = vector.extract_strided_slice %368 {offsets = [0, 0], sizes = [8, 128], strides = [1, 1]} : vector<8x384xf32> to vector<8x128xf32>
    %370 = vector.extract_strided_slice %368 {offsets = [0, 128], sizes = [8, 128], strides = [1, 1]} : vector<8x384xf32> to vector<8x128xf32>
    %371 = vector.extract_strided_slice %368 {offsets = [0, 256], sizes = [8, 128], strides = [1, 1]} : vector<8x384xf32> to vector<8x128xf32>
    %372 = vector.extract_strided_slice %362 {offsets = [0, 384], sizes = [8, 128], strides = [1, 1]} : vector<8x512xf32> to vector<8x128xf32>
    %373 = math.tanh %372 : vector<8x128xf32>
    %374 = arith.mulf %370, %319 : vector<8x128xf32>
    %375 = arith.mulf %369, %373 : vector<8x128xf32>
    %376 = arith.addf %374, %375 : vector<8x128xf32>
    %377 = math.tanh %376 : vector<8x128xf32>
    %378 = arith.mulf %371, %377 : vector<8x128xf32>
    %379 = tpu.concatenate %378, %340 in 1 : vector<8x128xf32>, vector<8x128xf32> -> vector<8x256xf32>
    %cst_64 = arith.constant dense<0.000000e+00> : vector<8x512xf32>
    %380 = tpu.matmul %379, %9, %cst_64 {dimension_numbers = #tpu.dot_dimension_numbers<[1], [0], [0], [1], [0, 0, 1, 1], [], []>} : vector<8x256xf32>, vector<256x512xf32>, vector<8x512xf32> -> vector<8x512xf32>
    %381 = arith.addf %380, %13 : vector<8x512xf32>
    %382 = vector.extract_strided_slice %381 {offsets = [0, 0], sizes = [8, 384], strides = [1, 1]} : vector<8x512xf32> to vector<8x384xf32>
    %383 = arith.negf %382 : vector<8x384xf32>
    %384 = math.exp %383 : vector<8x384xf32>
    %cst_65 = arith.constant 1.000000e+00 : f32
    %385 = vector.broadcast %cst_65 : f32 to vector<8x384xf32>
    %386 = arith.addf %385, %384 : vector<8x384xf32>
    %387 = arith.divf %385, %386 : vector<8x384xf32>
    %388 = vector.extract_strided_slice %387 {offsets = [0, 0], sizes = [8, 128], strides = [1, 1]} : vector<8x384xf32> to vector<8x128xf32>
    %389 = vector.extract_strided_slice %387 {offsets = [0, 128], sizes = [8, 128], strides = [1, 1]} : vector<8x384xf32> to vector<8x128xf32>
    %390 = vector.extract_strided_slice %387 {offsets = [0, 256], sizes = [8, 128], strides = [1, 1]} : vector<8x384xf32> to vector<8x128xf32>
    %391 = vector.extract_strided_slice %381 {offsets = [0, 384], sizes = [8, 128], strides = [1, 1]} : vector<8x512xf32> to vector<8x128xf32>
    %392 = math.tanh %391 : vector<8x128xf32>
    %393 = arith.mulf %389, %338 : vector<8x128xf32>
    %394 = arith.mulf %388, %392 : vector<8x128xf32>
    %395 = arith.addf %393, %394 : vector<8x128xf32>
    %396 = math.tanh %395 : vector<8x128xf32>
    %397 = arith.mulf %390, %396 : vector<8x128xf32>
    %398 = tpu.concatenate %397, %359 in 1 : vector<8x128xf32>, vector<8x128xf32> -> vector<8x256xf32>
    %cst_66 = arith.constant dense<0.000000e+00> : vector<8x512xf32>
    %399 = tpu.matmul %398, %10, %cst_66 {dimension_numbers = #tpu.dot_dimension_numbers<[1], [0], [0], [1], [0, 0, 1, 1], [], []>} : vector<8x256xf32>, vector<256x512xf32>, vector<8x512xf32> -> vector<8x512xf32>
    %400 = arith.addf %399, %16 : vector<8x512xf32>
    %401 = vector.extract_strided_slice %400 {offsets = [0, 0], sizes = [8, 384], strides = [1, 1]} : vector<8x512xf32> to vector<8x384xf32>
    %402 = arith.negf %401 : vector<8x384xf32>
    %403 = math.exp %402 : vector<8x384xf32>
    %cst_67 = arith.constant 1.000000e+00 : f32
    %404 = vector.broadcast %cst_67 : f32 to vector<8x384xf32>
    %405 = arith.addf %404, %403 : vector<8x384xf32>
    %406 = arith.divf %404, %405 : vector<8x384xf32>
    %407 = vector.extract_strided_slice %406 {offsets = [0, 0], sizes = [8, 128], strides = [1, 1]} : vector<8x384xf32> to vector<8x128xf32>
    %408 = vector.extract_strided_slice %406 {offsets = [0, 128], sizes = [8, 128], strides = [1, 1]} : vector<8x384xf32> to vector<8x128xf32>
    %409 = vector.extract_strided_slice %406 {offsets = [0, 256], sizes = [8, 128], strides = [1, 1]} : vector<8x384xf32> to vector<8x128xf32>
    %410 = vector.extract_strided_slice %400 {offsets = [0, 384], sizes = [8, 128], strides = [1, 1]} : vector<8x512xf32> to vector<8x128xf32>
    %411 = math.tanh %410 : vector<8x128xf32>
    %412 = arith.mulf %408, %357 : vector<8x128xf32>
    %413 = arith.mulf %407, %411 : vector<8x128xf32>
    %414 = arith.addf %412, %413 : vector<8x128xf32>
    %415 = math.tanh %414 : vector<8x128xf32>
    %416 = arith.mulf %409, %415 : vector<8x128xf32>
    %c56 = arith.constant 56 : index
    %c0_68 = arith.constant 0 : index
    %417 = vector.load %arg15[%c56, %c0_68] : memref<64x512xf32, #tpu.memory_space<vmem>>, vector<8x512xf32>
    %cst_69 = arith.constant dense<0.000000e+00> : vector<8x512xf32>
    %418 = tpu.matmul %378, %8, %cst_69 {dimension_numbers = #tpu.dot_dimension_numbers<[1], [0], [0], [1], [0, 0, 1, 1], [], []>} : vector<8x128xf32>, vector<128x512xf32>, vector<8x512xf32> -> vector<8x512xf32>
    %419 = arith.addf %417, %418 : vector<8x512xf32>
    %420 = vector.extract_strided_slice %419 {offsets = [0, 0], sizes = [8, 384], strides = [1, 1]} : vector<8x512xf32> to vector<8x384xf32>
    %421 = arith.negf %420 : vector<8x384xf32>
    %422 = math.exp %421 : vector<8x384xf32>
    %cst_70 = arith.constant 1.000000e+00 : f32
    %423 = vector.broadcast %cst_70 : f32 to vector<8x384xf32>
    %424 = arith.addf %423, %422 : vector<8x384xf32>
    %425 = arith.divf %423, %424 : vector<8x384xf32>
    %426 = vector.extract_strided_slice %425 {offsets = [0, 0], sizes = [8, 128], strides = [1, 1]} : vector<8x384xf32> to vector<8x128xf32>
    %427 = vector.extract_strided_slice %425 {offsets = [0, 128], sizes = [8, 128], strides = [1, 1]} : vector<8x384xf32> to vector<8x128xf32>
    %428 = vector.extract_strided_slice %425 {offsets = [0, 256], sizes = [8, 128], strides = [1, 1]} : vector<8x384xf32> to vector<8x128xf32>
    %429 = vector.extract_strided_slice %419 {offsets = [0, 384], sizes = [8, 128], strides = [1, 1]} : vector<8x512xf32> to vector<8x128xf32>
    %430 = math.tanh %429 : vector<8x128xf32>
    %431 = arith.mulf %427, %376 : vector<8x128xf32>
    %432 = arith.mulf %426, %430 : vector<8x128xf32>
    %433 = arith.addf %431, %432 : vector<8x128xf32>
    %434 = math.tanh %433 : vector<8x128xf32>
    %435 = arith.mulf %428, %434 : vector<8x128xf32>
    %436 = tpu.concatenate %435, %397 in 1 : vector<8x128xf32>, vector<8x128xf32> -> vector<8x256xf32>
    %cst_71 = arith.constant dense<0.000000e+00> : vector<8x512xf32>
    %437 = tpu.matmul %436, %9, %cst_71 {dimension_numbers = #tpu.dot_dimension_numbers<[1], [0], [0], [1], [0, 0, 1, 1], [], []>} : vector<8x256xf32>, vector<256x512xf32>, vector<8x512xf32> -> vector<8x512xf32>
    %438 = arith.addf %437, %13 : vector<8x512xf32>
    %439 = vector.extract_strided_slice %438 {offsets = [0, 0], sizes = [8, 384], strides = [1, 1]} : vector<8x512xf32> to vector<8x384xf32>
    %440 = arith.negf %439 : vector<8x384xf32>
    %441 = math.exp %440 : vector<8x384xf32>
    %cst_72 = arith.constant 1.000000e+00 : f32
    %442 = vector.broadcast %cst_72 : f32 to vector<8x384xf32>
    %443 = arith.addf %442, %441 : vector<8x384xf32>
    %444 = arith.divf %442, %443 : vector<8x384xf32>
    %445 = vector.extract_strided_slice %444 {offsets = [0, 0], sizes = [8, 128], strides = [1, 1]} : vector<8x384xf32> to vector<8x128xf32>
    %446 = vector.extract_strided_slice %444 {offsets = [0, 128], sizes = [8, 128], strides = [1, 1]} : vector<8x384xf32> to vector<8x128xf32>
    %447 = vector.extract_strided_slice %444 {offsets = [0, 256], sizes = [8, 128], strides = [1, 1]} : vector<8x384xf32> to vector<8x128xf32>
    %448 = vector.extract_strided_slice %438 {offsets = [0, 384], sizes = [8, 128], strides = [1, 1]} : vector<8x512xf32> to vector<8x128xf32>
    %449 = math.tanh %448 : vector<8x128xf32>
    %450 = arith.mulf %446, %395 : vector<8x128xf32>
    %451 = arith.mulf %445, %449 : vector<8x128xf32>
    %452 = arith.addf %450, %451 : vector<8x128xf32>
    %453 = math.tanh %452 : vector<8x128xf32>
    %454 = arith.mulf %447, %453 : vector<8x128xf32>
    %455 = tpu.concatenate %454, %416 in 1 : vector<8x128xf32>, vector<8x128xf32> -> vector<8x256xf32>
    %cst_73 = arith.constant dense<0.000000e+00> : vector<8x512xf32>
    %456 = tpu.matmul %455, %10, %cst_73 {dimension_numbers = #tpu.dot_dimension_numbers<[1], [0], [0], [1], [0, 0, 1, 1], [], []>} : vector<8x256xf32>, vector<256x512xf32>, vector<8x512xf32> -> vector<8x512xf32>
    %457 = arith.addf %456, %16 : vector<8x512xf32>
    %458 = vector.extract_strided_slice %457 {offsets = [0, 0], sizes = [8, 384], strides = [1, 1]} : vector<8x512xf32> to vector<8x384xf32>
    %459 = arith.negf %458 : vector<8x384xf32>
    %460 = math.exp %459 : vector<8x384xf32>
    %cst_74 = arith.constant 1.000000e+00 : f32
    %461 = vector.broadcast %cst_74 : f32 to vector<8x384xf32>
    %462 = arith.addf %461, %460 : vector<8x384xf32>
    %463 = arith.divf %461, %462 : vector<8x384xf32>
    %464 = vector.extract_strided_slice %463 {offsets = [0, 0], sizes = [8, 128], strides = [1, 1]} : vector<8x384xf32> to vector<8x128xf32>
    %465 = vector.extract_strided_slice %463 {offsets = [0, 128], sizes = [8, 128], strides = [1, 1]} : vector<8x384xf32> to vector<8x128xf32>
    %466 = vector.extract_strided_slice %463 {offsets = [0, 256], sizes = [8, 128], strides = [1, 1]} : vector<8x384xf32> to vector<8x128xf32>
    %467 = vector.extract_strided_slice %457 {offsets = [0, 384], sizes = [8, 128], strides = [1, 1]} : vector<8x512xf32> to vector<8x128xf32>
    %468 = math.tanh %467 : vector<8x128xf32>
    %469 = arith.mulf %465, %414 : vector<8x128xf32>
    %470 = arith.mulf %464, %468 : vector<8x128xf32>
    %471 = arith.addf %469, %470 : vector<8x128xf32>
    %472 = math.tanh %471 : vector<8x128xf32>
    %473 = arith.mulf %466, %472 : vector<8x128xf32>
    %c0_75 = arith.constant 0 : index
    %c0_76 = arith.constant 0 : index
    %474 = vector.load %arg9[%c0_75, %c0_76] : memref<128x32xf32, #tpu.memory_space<vmem>>, vector<128x32xf32>
    %cst_77 = arith.constant dense<0.000000e+00> : vector<8x32xf32>
    %475 = tpu.matmul %473, %474, %cst_77 {dimension_numbers = #tpu.dot_dimension_numbers<[1], [0], [0], [1], [0, 0, 1, 1], [], []>} : vector<8x128xf32>, vector<128x32xf32>, vector<8x32xf32> -> vector<8x32xf32>
    %c0_78 = arith.constant 0 : index
    %c0_79 = arith.constant 0 : index
    %476 = vector.load %arg10[%c0_78, %c0_79] : memref<1x32xf32, #tpu.memory_space<vmem>>, vector<1x32xf32>
    %477 = vector.broadcast %476 : vector<1x32xf32> to vector<8x32xf32>
    %478 = arith.addf %475, %477 : vector<8x32xf32>
    %479 = vector.extract_strided_slice %478 {offsets = [0, 0], sizes = [8, 16], strides = [1, 1]} : vector<8x32xf32> to vector<8x16xf32>
    %480 = vector.extract_strided_slice %478 {offsets = [0, 16], sizes = [8, 16], strides = [1, 1]} : vector<8x32xf32> to vector<8x16xf32>
    %c0_80 = arith.constant 0 : index
    %c0_81 = arith.constant 0 : index
    %481 = vector.load %arg13[%c0_80, %c0_81] : memref<8x16xf32, #tpu.memory_space<vmem>>, vector<8x16xf32>
    tpu.vector_store %arg13[%c0_80, %c0_81], %479 {strides = array<i32>} : memref<8x16xf32, #tpu.memory_space<vmem>>, vector<8x16xf32>,
    %c0_82 = arith.constant 0 : index
    %c0_83 = arith.constant 0 : index
    %482 = vector.load %arg14[%c0_82, %c0_83] : memref<8x16xf32, #tpu.memory_space<vmem>>, vector<8x16xf32>
    tpu.vector_store %arg14[%c0_82, %c0_83], %480 {strides = array<i32>} : memref<8x16xf32, #tpu.memory_space<vmem>>, vector<8x16xf32>,
    %c0_84 = arith.constant 0 : index
    %c0_85 = arith.constant 0 : index
    %483 = vector.load %arg11[%c0_84, %c0_85] : memref<8x16xf32, #tpu.memory_space<vmem>>, vector<8x16xf32>
    %cst_86 = arith.constant 5.000000e-01 : f32
    %484 = vector.broadcast %cst_86 : f32 to vector<8x16xf32>
    %485 = arith.mulf %484, %480 : vector<8x16xf32>
    %486 = math.exp %485 : vector<8x16xf32>
    %487 = arith.mulf %483, %486 : vector<8x16xf32>
    %488 = arith.addf %479, %487 : vector<8x16xf32>
    %c0_87 = arith.constant 0 : index
    %c0_88 = arith.constant 0 : index
    %489 = vector.load %arg12[%c0_87, %c0_88] : memref<8x16xf32, #tpu.memory_space<vmem>>, vector<8x16xf32>
    tpu.vector_store %arg12[%c0_87, %c0_88], %488 {strides = array<i32>} : memref<8x16xf32, #tpu.memory_space<vmem>>, vector<8x16xf32>,
    return
  }
  func.func @transform_0(%arg0: i32) -> (i32, i32) {
    %c0_i32 = arith.constant 0 : i32
    %c0_i32_0 = arith.constant 0 : i32
    return %arg0, %c0_i32 : i32, i32
  }
  func.func @transform_1(%arg0: i32) -> (i32, i32) {
    %c0_i32 = arith.constant 0 : i32
    %c0_i32_0 = arith.constant 0 : i32
    %c0_i32_1 = arith.constant 0 : i32
    return %c0_i32, %c0_i32_0 : i32, i32
  }
  func.func @transform_2(%arg0: i32) -> (i32, i32) {
    %c0_i32 = arith.constant 0 : i32
    %c0_i32_0 = arith.constant 0 : i32
    %c0_i32_1 = arith.constant 0 : i32
    return %c0_i32, %c0_i32_0 : i32, i32
  }
  func.func @transform_3(%arg0: i32) -> (i32, i32) {
    %c0_i32 = arith.constant 0 : i32
    %c0_i32_0 = arith.constant 0 : i32
    %c0_i32_1 = arith.constant 0 : i32
    return %c0_i32, %c0_i32_0 : i32, i32
  }
  func.func @transform_4(%arg0: i32) -> (i32, i32) {
    %c0_i32 = arith.constant 0 : i32
    %c0_i32_0 = arith.constant 0 : i32
    %c0_i32_1 = arith.constant 0 : i32
    return %c0_i32, %c0_i32_0 : i32, i32
  }
  func.func @transform_5(%arg0: i32) -> (i32, i32) {
    %c0_i32 = arith.constant 0 : i32
    %c0_i32_0 = arith.constant 0 : i32
    %c0_i32_1 = arith.constant 0 : i32
    return %c0_i32, %c0_i32_0 : i32, i32
  }
  func.func @transform_6(%arg0: i32) -> (i32, i32) {
    %c0_i32 = arith.constant 0 : i32
    %c0_i32_0 = arith.constant 0 : i32
    %c0_i32_1 = arith.constant 0 : i32
    return %c0_i32, %c0_i32_0 : i32, i32
  }
  func.func @transform_7(%arg0: i32) -> (i32, i32) {
    %c0_i32 = arith.constant 0 : i32
    %c0_i32_0 = arith.constant 0 : i32
    %c0_i32_1 = arith.constant 0 : i32
    return %c0_i32, %c0_i32_0 : i32, i32
  }
  func.func @transform_8(%arg0: i32) -> (i32, i32) {
    %c0_i32 = arith.constant 0 : i32
    %c0_i32_0 = arith.constant 0 : i32
    %c0_i32_1 = arith.constant 0 : i32
    return %c0_i32, %c0_i32_0 : i32, i32
  }
  func.func @transform_9(%arg0: i32) -> (i32, i32) {
    %c0_i32 = arith.constant 0 : i32
    %c0_i32_0 = arith.constant 0 : i32
    %c0_i32_1 = arith.constant 0 : i32
    return %c0_i32, %c0_i32_0 : i32, i32
  }
  func.func @transform_10(%arg0: i32) -> (i32, i32) {
    %c0_i32 = arith.constant 0 : i32
    %c0_i32_0 = arith.constant 0 : i32
    return %arg0, %c0_i32 : i32, i32
  }
  func.func @transform_11(%arg0: i32) -> (i32, i32) {
    %c0_i32 = arith.constant 0 : i32
    %c0_i32_0 = arith.constant 0 : i32
    return %arg0, %c0_i32 : i32, i32
  }
  func.func @transform_12(%arg0: i32) -> (i32, i32) {
    %c0_i32 = arith.constant 0 : i32
    %c0_i32_0 = arith.constant 0 : i32
    return %arg0, %c0_i32 : i32, i32
  }
  func.func @transform_13(%arg0: i32) -> (i32, i32) {
    %c0_i32 = arith.constant 0 : i32
    %c0_i32_0 = arith.constant 0 : i32
    return %arg0, %c0_i32 : i32, i32
  }
}

</mosaic_0001>

<bundles_post_ra>
// kernel: tpu_custom_call.1
= control target key start
LH: loop header
LB: loop body
LE: loop exit
PB: predicated region body
PF: predicated region fallthrough
CT: control target
= control target key end

     0   :  { %19 = vsyncpa [#allocation4], 0  ;;  %s10510_s0 = inlined_call_operand.vmem [shape: f32[64,16], index: 0, kind: input, shape index: {}]   ;;  %s10511_s1 = inlined_call_operand.vmem [shape: f32[16,512], index: 1, kind: input, shape index: {}]   ;;  %s10512_s2 = inlined_call_operand.vmem [shape: f32[1,512], index: 2, kind: input, shape index: {}]   ;;  %s10513_s3 = inlined_call_operand.hbm [shape: f32[128,512], index: 3, kind: input, shape index: {}]   ;;  %s10514_s4 = inlined_call_operand.hbm [shape: f32[256,512], index: 4, kind: input, shape index: {}]   ;;  %s10515_s5 = inlined_call_operand.vmem [shape: f32[1,512], index: 5, kind: input, shape index: {}]   ;;  %s10516_s6 = inlined_call_operand.hbm [shape: f32[256,512], index: 6, kind: input, shape index: {}]   ;;  %s10517_s7 = inlined_call_operand.vmem [shape: f32[1,512], index: 7, kind: input, shape index: {}]   ;;  %s10518_s8 = inlined_call_operand.vmem [shape: f32[128,32], index: 8, kind: input, shape index: {}]   ;;  %s10519_s9 = inlined_call_operand.vmem [shape: f32[1,32], index: 9, kind: input, shape index: {}]   ;;  %s10520_s10 = inlined_call_operand.vmem [shape: f32[8,16], index: 10, kind: input, shape index: {}]   ;;  %s10521_s11 = inlined_call_operand.hbm [shape: f32[8,16], index: 11, kind: output, shape index: {0}]   ;;  %s10522_s12 = inlined_call_operand.hbm [shape: f32[8,16], index: 12, kind: output, shape index: {1}]   ;;  %s10523_s13 = inlined_call_operand.hbm [shape: f32[8,16], index: 13, kind: output, shape index: {2}]  }
   0x1   :  { %20 = vsyncpa [#allocation7], 0 }
   0x2   :  { %21 = vsyncpa [#allocation5], 0 }
   0x3   :  { %22 = vsyncpa [#allocation11], 0  ;;  %s8305_s25 = smov [#allocation6]   ;;  %s8306_s27 = smov [#allocation3]  }
   0x4   :  { %s46_s26 = sshll.u32 %s8305_s25, 4  ;;  %s34_s28 = sshll.u32 %s8306_s27, 4  ;;  %s47_s26 = int_to_ptr.vmem [resolvable:$true] %s46_s26  ;;  %s8387_s28 = int_to_ptr.vmem [resolvable:$true] %s34_s28 }
   0x5   :  { %s8165_s14 = scalar_lea.hbm %s10514_s4, 16384 }
   0x6   :  { %p8166_p0 = scmp.ne.s32.totalorder %s10514_s4, %s8165_s14  ;;  %p8169_p1 = scmp.lt.u32.totalorder %s8165_s14, %s10514_s4 }
   0x8   :  { %p8171_p2 = pnand %p8169_p1, %p8166_p0 }
   0xa   :  { %8174 = shalt.err (!%p8171_p2)
}
   0xb   :  { %s8175_s19 = scalar_lea.vmem %s47_s26, 16384  ;;  %p8180_p4 = scmp.lt.s32.totalorder %s47_s26, %s47_s26 }
   0xc   :  { %p8176_p3 = scmp.ne.s32.totalorder %s47_s26, %s8175_s19  ;;  %p8181_p5 = scmp.lt.s32.totalorder %s8175_s19, %s8175_s19 }
   0xe   :  { %p8182_p6 = por %p8181_p5, %p8180_p4 }
  0x10   :  { %p8183_p7 = pnand %p8182_p6, %p8176_p3 }
  0x12   :  { %8186 = shalt.err (!%p8183_p7)
}
  0x13   :  { %s8307_s20 = smov 512   ;;  %s8308_s21 = smov 32  }
  0x14   :  { %52 = dma.hbm_to_vmem [thread:$0]  %s10514_s4, 16384, %s47_s26, [#allocation7], %s8307_s20, %s8307_s20, %s8308_s21  }
  0x15   :  { %s8187_s27 = scalar_lea.hbm %s10513_s3, 8192 }
  0x16   :  { %p8188_p8 = scmp.ne.s32.totalorder %s10513_s3, %s8187_s27  ;;  %p8191_p9 = scmp.lt.u32.totalorder %s8187_s27, %s10513_s3 }
  0x18   :  { %p8193_p10 = pnand %p8191_p9, %p8188_p8 }
  0x1a   :  { %8196 = shalt.err (!%p8193_p10)
}
  0x1b   :  { %s8197_s16 = scalar_lea.vmem %s8387_s28, 8192  ;;  %p8202_p12 = scmp.lt.s32.totalorder %s8387_s28, %s8387_s28 }
  0x1c   :  { %p8198_p11 = scmp.ne.s32.totalorder %s8387_s28, %s8197_s16  ;;  %p8203_p13 = scmp.lt.s32.totalorder %s8197_s16, %s8197_s16 }
  0x1e   :  { %p8204_p0 = por %p8203_p13, %p8202_p12 }
  0x20   :  { %p8205_p1 = pnand %p8204_p0, %p8198_p11 }
  0x22   :  { %8208 = shalt.err (!%p8205_p1)
}
  0x23   :  { %40 = dma.hbm_to_vmem [thread:$0]  %s10513_s3, 8192, %s8387_s28, [#allocation4], %s8307_s20, %s8307_s20, %s8308_s21  }
  0x24   :  { %s8309_s17 = smov [#allocation8]   ;;  %s8209_s23 = scalar_lea.hbm %s10516_s6, 16384 }
  0x25   :  { %s60_s18 = sshll.u32 %s8309_s17, 4  ;;  %p8210_p2 = scmp.ne.s32.totalorder %s10516_s6, %s8209_s23  ;;  %s61_s18 = int_to_ptr.vmem [resolvable:$true] %s60_s18 }
  0x26   :  { %p8213_p3 = scmp.lt.u32.totalorder %s8209_s23, %s10516_s6 }
  0x28   :  { %p8215_p4 = pnand %p8213_p3, %p8210_p2 }
  0x2a   :  { %8218 = shalt.err (!%p8215_p4)
}
  0x2b   :  { %s8219_s30 = scalar_lea.vmem %s61_s18, 16384  ;;  %p8224_p6 = scmp.lt.s32.totalorder %s61_s18, %s61_s18 }
  0x2c   :  { %p8220_p5 = scmp.ne.s32.totalorder %s61_s18, %s8219_s30  ;;  %p8225_p7 = scmp.lt.s32.totalorder %s8219_s30, %s8219_s30 }
  0x2e   :  { %p8226_p8 = por %p8225_p7, %p8224_p6 }
  0x30   :  { %p8227_p9 = pnand %p8226_p8, %p8220_p5 }
  0x32   :  { %8230 = shalt.err (!%p8227_p9)
}
  0x33   :  { %66 = dma.hbm_to_vmem [thread:$0]  %s10516_s6, 16384, %s61_s18, [#allocation7], %s8307_s20, %s8307_s20, %s8308_s21  }
  0x34   :  { %8297 = dma.done.wait [#allocation4], 8192  }
  0x35   :  { %8298 = vsyncadd [#allocation4], 4294959104 }
  0x36   :  { %8299 = dma.done.wait [#allocation7], 32768  }
  0x37   :  { %8300 = vsyncadd [#allocation7], 4294934528  ;;  %v10524_v0 = vmov 0.0   ;;  %v93_v1 = vld [vmem:[%s10511_s1 + $0x8] sm:$0xff]  ;;  %v95_v3 = vld [vmem:[%s10511_s1 + $0x18] sm:$0xff]  ;;  %vm122_vm0 = vcmask 130048  }
  0x38   :  { %211 = vmatprep.mubr.f32.mxu0 %v10524_v0  ;;  %324 = vmatprep.mubr.f32.mxu1 %v10524_v0  ;;  %v97_v2 = vld [vmem:[%s10511_s1 + $0x28] sm:$0xff]  ;;  %v99_v5 = vld [vmem:[%s10511_s1 + $0x38] sm:$0xff]  ;;  %v92_v6 = vld [vmem:[%s10511_s1] sm:$0xff]  ;;  %vm8312_vm1 = vmmov 0   ;;  %s8313_s14 = smov [#allocation10]  }
  0x39   :  { %v5111_v4 = vpack.c.bf16 %v97_v2, %v93_v1  ;;  %v96_v7 = vld [vmem:[%s10511_s1 + $0x20] sm:$0xff]  ;;  %v5115_v8 = vpack.c.bf16 %v99_v5, %v95_v3  ;;  %v94_v10 = vld [vmem:[%s10511_s1 + $0x10] sm:$0xff]  ;;  %v406_v14 = vld [vmem:[#allocation3 + $0x8] sm:$0xff]  ;;  %s4943_s15 = sshll.u32 %s8313_s14, 4  ;;  %s4944_s15 = int_to_ptr.vmem [resolvable:$true] %s4943_s15 }
  0x3a   :  { %v5113_v9 = vpack.c.bf16 %v96_v7, %v92_v6  ;;  %v98_v11 = vld [vmem:[%s10511_s1 + $0x30] sm:$0xff]  ;;  %v84_v12 = vld [vmem:[%s10510_s0] sm:$0xff]  ;;  %v410_v15 = vld [vmem:[#allocation3 + $0x28] sm:$0xff]  ;;  %s8231_s16 = scalar_lea.vmem %s4944_s15, 128  ;;  %p8236_p11 = scmp.lt.s32.totalorder %s4944_s15, %s4944_s15 }
  0x3b   :  { %5112 = vmatprep.subr.bf16.mxu0 %v5111_v4  ;;  %v5117_v13 = vpack.c.bf16 %v98_v11, %v94_v10  ;;  %v408_v16 = vld [vmem:[#allocation3 + $0x18] sm:$0xff]  ;;  %5116 = vmatprep.subr.bf16.mxu1 %v5115_v8  ;;  %v8468_v17 = vpack.c.bf16 %v410_v15, %v406_v14  ;;  %v405_v19 = vld [vmem:[#allocation3] sm:$0xff]  ;;  %v407_v23 = vld [vmem:[#allocation3 + $0x10] sm:$0xff]  ;;  %p8232_p10 = scmp.ne.s32.totalorder %s4944_s15, %s8231_s16  ;;  %p8237_p12 = scmp.lt.s32.totalorder %s8231_s16, %s8231_s16 }
  0x3c   :  { %5114 = vmatpush1.bf16.msra.mxu0 %v5113_v9  ;;  %v412_v18 = vld [vmem:[#allocation3 + $0x38] sm:$0xff]  ;;  %v409_v20 = vld [vmem:[#allocation3 + $0x20] sm:$0xff]  ;;  %v411_v24 = vld [vmem:[#allocation3 + $0x30] sm:$0xff] }
  0x3d   :  { %10812 = vst [vmem:[#allocation17_spill] sm:$0xff] %v8468_v17  ;;  %5118 = vmatpush1.bf16.msra.mxu1 %v5117_v13  ;;  %v8470_v21 = vpack.c.bf16 %v412_v18, %v408_v16  ;;  %v8472_v22 = vpack.c.bf16 %v409_v20, %v405_v19  ;;  %5120 = vmatprep.subr.bf16.mxu0 %v8468_v17  ;;  %v414_v26 = vld [vmem:[#allocation3 + $0x48] sm:$0xff]  ;;  %v416_v28 = vld [vmem:[#allocation3 + $0x58] sm:$0xff]  ;;  %v413_v31 = vld [vmem:[#allocation3 + $0x40] sm:$0xff]  ;;  %p8238_p13 = por %p8237_p12, %p8236_p11 }
  0x3e   :  { %v8475_v25 = vpack.c.bf16 %v411_v24, %v407_v23  ;;  %v418_v27 = vld [vmem:[#allocation3 + $0x68] sm:$0xff]  ;;  %v420_v30 = vld [vmem:[#allocation3 + $0x78] sm:$0xff]  ;;  %v417_v32 = vld [vmem:[#allocation3 + $0x60] sm:$0xff] }
  0x3f   :  { %10813 = vst [vmem:[#allocation18_spill] sm:$0xff] %v8470_v21  ;;  %4970 = vmatmul.mubr.msk.f32.vlgmr.msra.gmra.mrb[0].mxu0 %vm122_vm0, %v84_v12  ;;  %5152 = vmatprep.subr.bf16.mxu1 %v8470_v21  ;;  %v8479_v29 = vpack.c.bf16 %v418_v27, %v414_v26  ;;  %v85_v33 = vld [vmem:[%s10510_s0 + $0x8] sm:$0xff]  ;;  %v8486_v34 = vpack.c.bf16 %v420_v30, %v416_v28  ;;  %v415_v36 = vld [vmem:[#allocation3 + $0x50] sm:$0xff]  ;;  %v424_v41 = vld [vmem:[#allocation3 + $0x98] sm:$0xff]  ;;  %p8239_p0 = pnand %p8238_p13, %p8232_p10 }
  0x40   :  { %4978 = vmatmul.mubr.msk.f32.vlgmr.msra.gmra.mrb[0].mxu1 %vm122_vm0, %v84_v12  ;;  %5122 = vmatpush1.bf16.msra.mxu0 %v8472_v22  ;;  %v8488_v35 = vpack.c.bf16 %v417_v32, %v413_v31  ;;  %v419_v37 = vld [vmem:[#allocation3 + $0x70] sm:$0xff]  ;;  %v422_v39 = vld [vmem:[#allocation3 + $0x88] sm:$0xff]  ;;  %v428_v43 = vld [vmem:[#allocation3 + $0xb8] sm:$0xff] }
  0x41   :  { %5154 = vmatpush1.bf16.msra.mxu1 %v8475_v25  ;;  %217 = vmatprep.mubr.f32.mxu0 %v10524_v0  ;;  %v8492_v38 = vpack.c.bf16 %v419_v37, %v415_v36  ;;  %v426_v40 = vld [vmem:[#allocation3 + $0xa8] sm:$0xff]  ;;  %v421_v44 = vld [vmem:[#allocation3 + $0x80] sm:$0xff]  ;;  %v86_v46 = vld [vmem:[%s10510_s0 + $0x10] sm:$0xff]  ;;  %v8503_v47 = vpack.c.bf16 %v428_v43, %v424_v41 }
  0x42   :  { %330 = vmatprep.mubr.f32.mxu1 %v10524_v0  ;;  %5124 = vmatprep.subr.bf16.mxu0 %v8479_v29  ;;  %v8496_v42 = vpack.c.bf16 %v426_v40, %v422_v39  ;;  %v425_v45 = vld [vmem:[#allocation3 + $0xa0] sm:$0xff]  ;;  %v423_v48 = vld [vmem:[#allocation3 + $0x90] sm:$0xff]  ;;  %v430_v51 = vld [vmem:[#allocation3 + $0xc8] sm:$0xff] }
  0x43   :  { %4971 = vmatmul.mubr.msk.f32.gmra.mrb[2].mxu0 %vm122_vm0, %v85_v33  ;;  %5156 = vmatprep.subr.bf16.mxu1 %v8486_v34  ;;  %v427_v49 = vld [vmem:[#allocation3 + $0xb0] sm:$0xff]  ;;  %v8507_v50 = vpack.c.bf16 %v425_v45, %v421_v44  ;;  %v434_v52 = vld [vmem:[#allocation3 + $0xe8] sm:$0xff]  ;;  %v432_v53 = vld [vmem:[#allocation3 + $0xd8] sm:$0xff] }
  0x44   :  { %4979 = vmatmul.mubr.msk.f32.gmra.mrb[2].mxu1 %vm122_vm0, %v85_v33  ;;  %5126 = vmatpush1.bf16.msra.mxu0 %v8488_v35  ;;  %v8511_v54 = vpack.c.bf16 %v427_v49, %v423_v48  ;;  %v436_v55 = vld [vmem:[#allocation3 + $0xf8] sm:$0xff]  ;;  %v429_v56 = vld [vmem:[#allocation3 + $0xc0] sm:$0xff]  ;;  %v8515_v58 = vpack.c.bf16 %v434_v52, %v430_v51  ;;  %v431_v59 = vld [vmem:[#allocation3 + $0xd0] sm:$0xff] }
  0x45   :  { %5158 = vmatpush1.bf16.msra.mxu1 %v8492_v38  ;;  %223 = vmatprep.mubr.f32.mxu0 %v10524_v0  ;;  %v433_v57 = vld [vmem:[#allocation3 + $0xe0] sm:$0xff]  ;;  %v435_v60 = vld [vmem:[#allocation3 + $0xf0] sm:$0xff]  ;;  %v8519_v61 = vpack.c.bf16 %v436_v55, %v432_v53  ;;  %v438_v62 = vld [vmem:[#allocation3 + $0x108] sm:$0xff] }
  0x46   :  { %336 = vmatprep.mubr.f32.mxu1 %v10524_v0  ;;  %5128 = vmatprep.subr.bf16.mxu0 %v8496_v42  ;;  %v442_v63 = vld [vmem:[#allocation3 + $0x128] sm:$0xff]  ;;  %v87_v1 = vld [vmem:[%s10510_s0 + $0x18] sm:$0xff]  ;;  %v8526_v2 = vpack.c.bf16 %v433_v57, %v429_v56  ;;  %v8530_v5 = vpack.c.bf16 %v435_v60, %v431_v59  ;;  %v437_v6 = vld [vmem:[#allocation3 + $0x100] sm:$0xff] }
  0x47   :  { %4972 = vmatmul.mubr.msk.f32.gmra.mrb[4].mxu0 %vm122_vm0, %v86_v46  ;;  %5160 = vmatprep.subr.bf16.mxu1 %v8503_v47  ;;  %v440_v3 = vld [vmem:[#allocation3 + $0x118] sm:$0xff]  ;;  %v441_v7 = vld [vmem:[#allocation3 + $0x120] sm:$0xff]  ;;  %v8534_v8 = vpack.c.bf16 %v442_v63, %v438_v62  ;;  %v439_v9 = vld [vmem:[#allocation3 + $0x110] sm:$0xff] }
  0x48   :  { %4980 = vmatmul.mubr.msk.f32.gmra.mrb[4].mxu1 %vm122_vm0, %v86_v46  ;;  %5130 = vmatpush1.bf16.msra.mxu0 %v8507_v50  ;;  %v444_v4 = vld [vmem:[#allocation3 + $0x138] sm:$0xff]  ;;  %v443_v10 = vld [vmem:[#allocation3 + $0x130] sm:$0xff]  ;;  %v446_v12 = vld [vmem:[#allocation3 + $0x148] sm:$0xff]  ;;  %v8545_v15 = vpack.c.bf16 %v441_v7, %v437_v6 }
  0x49   :  { %5162 = vmatpush1.bf16.msra.mxu1 %v8511_v54  ;;  %229 = vmatprep.mubr.f32.mxu0 %v10524_v0  ;;  %v8538_v11 = vpack.c.bf16 %v444_v4, %v440_v3  ;;  %v450_v13 = vld [vmem:[#allocation3 + $0x168] sm:$0xff]  ;;  %v88_v14 = vld [vmem:[%s10510_s0 + $0x20] sm:$0xff]  ;;  %v448_v16 = vld [vmem:[#allocation3 + $0x158] sm:$0xff]  ;;  %v8549_v19 = vpack.c.bf16 %v443_v10, %v439_v9 }
  0x4a   :  { %342 = vmatprep.mubr.f32.mxu1 %v10524_v0  ;;  %5132 = vmatprep.subr.bf16.mxu0 %v8515_v58  ;;  %v452_v18 = vld [vmem:[#allocation3 + $0x178] sm:$0xff]  ;;  %v445_v20 = vld [vmem:[#allocation3 + $0x140] sm:$0xff]  ;;  %v8553_v24 = vpack.c.bf16 %v450_v13, %v446_v12  ;;  %v447_v26 = vld [vmem:[#allocation3 + $0x150] sm:$0xff] }
  0x4b   :  { %4973 = vmatmul.mubr.msk.f32.gmra.mrb[6].mxu0 %vm122_vm0, %v87_v1  ;;  %5164 = vmatprep.subr.bf16.mxu1 %v8519_v61  ;;  %v449_v23 = vld [vmem:[#allocation3 + $0x160] sm:$0xff]  ;;  %v451_v27 = vld [vmem:[#allocation3 + $0x170] sm:$0xff]  ;;  %v8557_v28 = vpack.c.bf16 %v452_v18, %v448_v16  ;;  %v454_v30 = vld [vmem:[#allocation3 + $0x188] sm:$0xff] }
  0x4c   :  { %4981 = vmatmul.mubr.msk.f32.gmra.mrb[6].mxu1 %vm122_vm0, %v87_v1  ;;  %5134 = vmatpush1.bf16.msra.mxu0 %v8526_v2  ;;  %v458_v31 = vld [vmem:[#allocation3 + $0x1a8] sm:$0xff]  ;;  %v8564_v33 = vpack.c.bf16 %v449_v23, %v445_v20  ;;  %v456_v36 = vld [vmem:[#allocation3 + $0x198] sm:$0xff]  ;;  %v8568_v39 = vpack.c.bf16 %v451_v27, %v447_v26  ;;  %v453_v40 = vld [vmem:[#allocation3 + $0x180] sm:$0xff] }
  0x4d   :  { %5166 = vmatpush1.bf16.msra.mxu1 %v8530_v5  ;;  %235 = vmatprep.mubr.f32.mxu0 %v10524_v0  ;;  %v89_v32 = vld [vmem:[%s10510_s0 + $0x28] sm:$0xff]  ;;  %v460_v37 = vld [vmem:[#allocation3 + $0x1b8] sm:$0xff]  ;;  %v457_v41 = vld [vmem:[#allocation3 + $0x1a0] sm:$0xff]  ;;  %v8572_v43 = vpack.c.bf16 %v458_v31, %v454_v30 }
  0x4e   :  { %348 = vmatprep.mubr.f32.mxu1 %v10524_v0  ;;  %5136 = vmatprep.subr.bf16.mxu0 %v8534_v8  ;;  %v455_v44 = vld [vmem:[#allocation3 + $0x190] sm:$0xff]  ;;  %v8576_v46 = vpack.c.bf16 %v460_v37, %v456_v36  ;;  %v462_v48 = vld [vmem:[#allocation3 + $0x1c8] sm:$0xff]  ;;  %v8583_v52 = vpack.c.bf16 %v457_v41, %v453_v40  ;;  %v464_v53 = vld [vmem:[#allocation3 + $0x1d8] sm:$0xff] }
  0x4f   :  { %4974 = vmatmul.mubr.msk.f32.gmra.mrb[8].mxu0 %vm122_vm0, %v88_v14  ;;  %5168 = vmatprep.subr.bf16.mxu1 %v8538_v11  ;;  %v459_v45 = vld [vmem:[#allocation3 + $0x1b0] sm:$0xff]  ;;  %v466_v49 = vld [vmem:[#allocation3 + $0x1e8] sm:$0xff]  ;;  %v468_v55 = vld [vmem:[#allocation3 + $0x1f8] sm:$0xff] }
  0x50   :  { %4982 = vmatmul.mubr.msk.f32.gmra.mrb[8].mxu1 %vm122_vm0, %v88_v14  ;;  %5138 = vmatpush1.bf16.msra.mxu0 %v8545_v15  ;;  %v90_v51 = vld [vmem:[%s10510_s0 + $0x30] sm:$0xff]  ;;  %v8587_v56 = vpack.c.bf16 %v459_v45, %v455_v44  ;;  %v461_v57 = vld [vmem:[#allocation3 + $0x1c0] sm:$0xff]  ;;  %v8591_v60 = vpack.c.bf16 %v466_v49, %v462_v48  ;;  %v8595_v1 = vpack.c.bf16 %v468_v55, %v464_v53  ;;  %v470_v3 = vld [vmem:[#allocation6 + $0x8] sm:$0xff] }
  0x51   :  { %5170 = vmatpush1.bf16.msra.mxu1 %v8549_v19  ;;  %241 = vmatprep.mubr.f32.mxu0 %v10524_v0  ;;  %v465_v59 = vld [vmem:[#allocation3 + $0x1e0] sm:$0xff]  ;;  %v463_v62 = vld [vmem:[#allocation3 + $0x1d0] sm:$0xff]  ;;  %v474_v4 = vld [vmem:[#allocation6 + $0x28] sm:$0xff] }
  0x52   :  { %354 = vmatprep.mubr.f32.mxu1 %v10524_v0  ;;  %5140 = vmatprep.subr.bf16.mxu0 %v8553_v24  ;;  %10814 = vst [vmem:[#allocation19_spill] sm:$0xff] %v8591_v60  ;;  %v467_v63 = vld [vmem:[#allocation3 + $0x1f0] sm:$0xff]  ;;  %10815 = vst [vmem:[#allocation20_spill] sm:$0xff] %v8595_v1  ;;  %v91_v6 = vld [vmem:[%s10510_s0 + $0x38] sm:$0xff]  ;;  %v8602_v7 = vpack.c.bf16 %v465_v59, %v461_v57  ;;  %v8610_v18 = vpack.c.bf16 %v474_v4, %v470_v3 }
  0x53   :  { %4975 = vmatmul.mubr.msk.f32.gmra.mrb[10].mxu0 %vm122_vm0, %v89_v32  ;;  %5172 = vmatprep.subr.bf16.mxu1 %v8557_v28  ;;  %v472_v9 = vld [vmem:[#allocation6 + $0x18] sm:$0xff]  ;;  %v8606_v12 = vpack.c.bf16 %v467_v63, %v463_v62  ;;  %v469_v13 = vld [vmem:[#allocation6] sm:$0xff]  ;;  %v471_v16 = vld [vmem:[#allocation6 + $0x10] sm:$0xff] }
  0x54   :  { %4983 = vmatmul.mubr.msk.f32.gmra.mrb[10].mxu1 %vm122_vm0, %v89_v32  ;;  %5142 = vmatpush1.bf16.msra.mxu0 %v8564_v33  ;;  %10816 = vst [vmem:[#allocation21_spill] sm:$0xff] %v8602_v7  ;;  %v476_v10 = vld [vmem:[#allocation6 + $0x38] sm:$0xff]  ;;  %v473_v14 = vld [vmem:[#allocation6 + $0x20] sm:$0xff]  ;;  %10818 = vst [vmem:[#allocation23_spill] sm:$0xff] %v8610_v18 }
  0x55   :  { %5174 = vmatpush1.bf16.msra.mxu1 %v8568_v39  ;;  %247 = vmatprep.mubr.f32.mxu0 %v10524_v0  ;;  %10817 = vst [vmem:[#allocation22_spill] sm:$0xff] %v8606_v12  ;;  %v475_v20 = vld [vmem:[#allocation6 + $0x30] sm:$0xff]  ;;  %v478_v23 = vld [vmem:[#allocation6 + $0x48] sm:$0xff]  ;;  %v8614_v27 = vpack.c.bf16 %v476_v10, %v472_v9  ;;  %v480_v30 = vld [vmem:[#allocation6 + $0x58] sm:$0xff]  ;;  %v8618_v32 = vpack.c.bf16 %v473_v14, %v469_v13 }
  0x56   :  { %360 = vmatprep.mubr.f32.mxu1 %v10524_v0  ;;  %5144 = vmatprep.subr.bf16.mxu0 %v8572_v43  ;;  %v482_v26 = vld [vmem:[#allocation6 + $0x68] sm:$0xff]  ;;  %v484_v31 = vld [vmem:[#allocation6 + $0x78] sm:$0xff]  ;;  %v8622_v36 = vpack.c.bf16 %v475_v20, %v471_v16  ;;  %v477_v40 = vld [vmem:[#allocation6 + $0x40] sm:$0xff] }
  0x57   :  { %4976 = vmatmul.mubr.msk.f32.gmra.mrb[12].mxu0 %vm122_vm0, %v90_v51  ;;  %5176 = vmatprep.subr.bf16.mxu1 %v8576_v46  ;;  %10819 = vst [vmem:[#allocation24_spill] sm:$0xff] %v8614_v27  ;;  %10820 = vst [vmem:[#allocation25_spill] sm:$0xff] %v8618_v32  ;;  %v8624_v37 = vpack.c.bf16 %v482_v26, %v478_v23  ;;  %v481_v41 = vld [vmem:[#allocation6 + $0x60] sm:$0xff]  ;;  %v479_v44 = vld [vmem:[#allocation6 + $0x50] sm:$0xff]  ;;  %v8628_v45 = vpack.c.bf16 %v484_v31, %v480_v30 }
  0x58   :  { %4984 = vmatmul.mubr.msk.f32.gmra.mrb[12].mxu1 %vm122_vm0, %v90_v51  ;;  %5146 = vmatpush1.bf16.msra.mxu0 %v8583_v52  ;;  %10821 = vst [vmem:[#allocation26_spill] sm:$0xff] %v8622_v36  ;;  %v483_v48 = vld [vmem:[#allocation6 + $0x70] sm:$0xff]  ;;  %v486_v49 = vld [vmem:[#allocation6 + $0x88] sm:$0xff]  ;;  %v488_v53 = vld [vmem:[#allocation6 + $0x98] sm:$0xff]  ;;  %v8634_v57 = vpack.c.bf16 %v481_v41, %v477_v40 }
  0x59   :  { %5178 = vmatpush1.bf16.msra.mxu1 %v8587_v56  ;;  %253 = vmatprep.mubr.f32.mxu0 %v10524_v0  ;;  %10822 = vst [vmem:[#allocation27_spill] sm:$0xff] %v8624_v37  ;;  %10823 = vst [vmem:[#allocation28_spill] sm:$0xff] %v8628_v45  ;;  %v490_v51 = vld [vmem:[#allocation6 + $0xa8] sm:$0xff]  ;;  %v492_v55 = vld [vmem:[#allocation6 + $0xb8] sm:$0xff]  ;;  %v8638_v59 = vpack.c.bf16 %v483_v48, %v479_v44 }
  0x5a   :  { %366 = vmatprep.mubr.f32.mxu1 %v10524_v0  ;;  %5148 = vmatprep.subr.bf16.mxu0 %v8591_v60  ;;  %10824 = vst [vmem:[#allocation29_spill] sm:$0xff] %v8634_v57  ;;  %v8640_v62 = vpack.c.bf16 %v490_v51, %v486_v49  ;;  %v485_v63 = vld [vmem:[#allocation6 + $0x80] sm:$0xff]  ;;  %v487_v4 = vld [vmem:[#allocation6 + $0x90] sm:$0xff]  ;;  %v494_v10 = vld [vmem:[#allocation6 + $0xc8] sm:$0xff] }
  0x5b   :  { %4977 = vmatmul.mubr.msk.f32.gmra.mrb[14].mxu0 %vm122_vm0, %v91_v6  ;;  %5180 = vmatprep.subr.bf16.mxu1 %v8595_v1  ;;  %10825 = vst [vmem:[#allocation30_spill] sm:$0xff] %v8638_v59  ;;  %v489_v3 = vld [vmem:[#allocation6 + $0xa0] sm:$0xff]  ;;  %v491_v9 = vld [vmem:[#allocation6 + $0xb0] sm:$0xff]  ;;  %v498_v13 = vld [vmem:[#allocation6 + $0xe8] sm:$0xff] }
  0x5c   :  { %4985 = vmatmul.mubr.msk.f32.gmra.mrb[14].mxu1 %vm122_vm0, %v91_v6  ;;  %5150 = vmatpush1.bf16.msra.mxu0 %v8602_v7  ;;  %10826 = vst [vmem:[#allocation31_spill] sm:$0xff] %v8640_v62  ;;  %v8643_v6 = vpack.c.bf16 %v492_v55, %v488_v53  ;;  %v496_v14 = vld [vmem:[#allocation6 + $0xd8] sm:$0xff]  ;;  %v8648_v20 = vpack.c.bf16 %v489_v3, %v485_v63  ;;  %v493_v30 = vld [vmem:[#allocation6 + $0xc0] sm:$0xff]  ;;  %v495_v40 = vld [vmem:[#allocation6 + $0xd0] sm:$0xff] }
  0x5d   :  { %5182 = vmatpush1.bf16.msra.mxu1 %v8606_v12  ;;  %837 = vmatprep.mubr.f32.mxu0 %v10524_v0  ;;  %v500_v16 = vld [vmem:[#allocation6 + $0xf8] sm:$0xff]  ;;  %v8652_v23 = vpack.c.bf16 %v491_v9, %v487_v4  ;;  %v8654_v26 = vpack.c.bf16 %v498_v13, %v494_v10  ;;  %v497_v31 = vld [vmem:[#allocation6 + $0xe0] sm:$0xff]  ;;  %v499_v44 = vld [vmem:[#allocation6 + $0xf0] sm:$0xff] }
  0x5e   :  { %908 = vmatprep.mubr.f32.mxu1 %v10524_v0  ;;  %5184 = vmatprep.subr.bf16.mxu0 %v8610_v18  ;;  %10827 = vst [vmem:[#allocation32_spill] sm:$0xff] %v8643_v6  ;;  %10828 = vst [vmem:[#allocation33_spill] sm:$0xff] %v8648_v20  ;;  %v8657_v41 = vpack.c.bf16 %v500_v16, %v496_v14  ;;  %v502_v48 = vld [vmem:[#allocation6 + $0x108] sm:$0xff]  ;;  %v504_v51 = vld [vmem:[#allocation6 + $0x118] sm:$0xff]  ;;  %v8660_v55 = vpack.c.bf16 %v497_v31, %v493_v30 }
  0x5f   :  { %838 = vmatmul.mubr.f32.vlgmr.msra.gmra.mrb[0].mxu0 %v10524_v0  ;;  %5248 = vmatprep.subr.bf16.mxu1 %v8614_v27  ;;  %10829 = vst [vmem:[#allocation34_spill] sm:$0xff] %v8652_v23  ;;  %10830 = vst [vmem:[#allocation35_spill] sm:$0xff] %v8654_v26  ;;  %v506_v49 = vld [vmem:[#allocation6 + $0x128] sm:$0xff]  ;;  %v508_v53 = vld [vmem:[#allocation6 + $0x138] sm:$0xff]  ;;  %v8664_v63 = vpack.c.bf16 %v499_v44, %v495_v40 }
  0x60   :  { %909 = vmatmul.mubr.f32.vlgmr.msra.gmra.mrb[0].mxu1 %v10524_v0  ;;  %5186 = vmatpush1.bf16.msra.mxu0 %v8618_v32  ;;  %10831 = vst [vmem:[#allocation36_spill] sm:$0xff] %v8657_v41  ;;  %10832 = vst [vmem:[#allocation37_spill] sm:$0xff] %v8660_v55  ;;  %v8666_v3 = vpack.c.bf16 %v506_v49, %v502_v48  ;;  %v8669_v4 = vpack.c.bf16 %v508_v53, %v504_v51  ;;  %v501_v9 = vld [vmem:[#allocation6 + $0x100] sm:$0xff]  ;;  %v503_v13 = vld [vmem:[#allocation6 + $0x110] sm:$0xff] }
  0x61   :  { %5250 = vmatpush1.bf16.msra.mxu1 %v8622_v36  ;;  %5188 = vmatprep.subr.bf16.mxu0 %v8624_v37  ;;  %10833 = vst [vmem:[#allocation38_spill] sm:$0xff] %v8664_v63  ;;  %v505_v10 = vld [vmem:[#allocation6 + $0x120] sm:$0xff]  ;;  %v507_v16 = vld [vmem:[#allocation6 + $0x130] sm:$0xff]  ;;  %v510_v31 = vld [vmem:[#allocation6 + $0x148] sm:$0xff] }
  0x62   :  { %5252 = vmatprep.subr.bf16.mxu1 %v8628_v45  ;;  %1007 = vmatprep.mubr.f32.mxu0 %v10524_v0  ;;  %10834 = vst [vmem:[#allocation39_spill] sm:$0xff] %v8666_v3  ;;  %10835 = vst [vmem:[#allocation40_spill] sm:$0xff] %v8669_v4  ;;  %v8675_v14 = vpack.c.bf16 %v505_v10, %v501_v9  ;;  %v8677_v30 = vpack.c.bf16 %v507_v16, %v503_v13  ;;  %v514_v40 = vld [vmem:[#allocation6 + $0x168] sm:$0xff]  ;;  %v512_v44 = vld [vmem:[#allocation6 + $0x158] sm:$0xff] }
  0x63   :  { %1078 = vmatprep.mubr.f32.mxu1 %v10524_v0  ;;  %v8681_v48 = vpack.c.bf16 %v514_v40, %v510_v31  ;;  %v516_v49 = vld [vmem:[#allocation6 + $0x178] sm:$0xff]  ;;  %v509_v51 = vld [vmem:[#allocation6 + $0x140] sm:$0xff]  ;;  %v511_v9 = vld [vmem:[#allocation6 + $0x150] sm:$0xff] }
  0x64   :  { %5190 = vmatpush1.bf16.msra.mxu0 %v8634_v57  ;;  %10836 = vst [vmem:[#allocation41_spill] sm:$0xff] %v8675_v14  ;;  %10837 = vst [vmem:[#allocation42_spill] sm:$0xff] %v8677_v30  ;;  %v513_v53 = vld [vmem:[#allocation6 + $0x160] sm:$0xff]  ;;  %v8683_v0 = vpack.c.bf16 %v516_v49, %v512_v44  ;;  %v515_v10 = vld [vmem:[#allocation6 + $0x170] sm:$0xff] }
  0x65   :  { %5254 = vmatpush1.bf16.msra.mxu1 %v8638_v59  ;;  %5192 = vmatprep.subr.bf16.mxu0 %v8640_v62  ;;  %10838 = vst [vmem:[#allocation43_spill] sm:$0xff] %v8681_v48  ;;  %v8688_v13 = vpack.c.bf16 %v515_v10, %v511_v9  ;;  %v518_v16 = vld [vmem:[#allocation6 + $0x188] sm:$0xff]  ;;  %v520_v40 = vld [vmem:[#allocation6 + $0x198] sm:$0xff]  ;;  %v517_v49 = vld [vmem:[#allocation6 + $0x180] sm:$0xff] }
  0x66   :  { %5256 = vmatprep.subr.bf16.mxu1 %v8643_v6  ;;  %10839 = vst [vmem:[#allocation44_spill] sm:$0xff] %v8683_v0  ;;  %v522_v31 = vld [vmem:[#allocation6 + $0x1a8] sm:$0xff]  ;;  %v524_v44 = vld [vmem:[#allocation6 + $0x1b8] sm:$0xff]  ;;  %v519_v9 = vld [vmem:[#allocation6 + $0x190] sm:$0xff] }
  0x67   :  { %10841 = vst [vmem:[#allocation46_spill] sm:$0xff] %v8688_v13  ;;  %v523_v10 = vld [vmem:[#allocation6 + $0x1b0] sm:$0xff]  ;;  %v614_v62 = vld [vmem:[#allocation8 + $0x88] sm:$0xff]  ;;  %v616_v57 = vld [vmem:[#allocation8 + $0x98] sm:$0xff] }
  0x68   :  { %5194 = vmatpush1.bf16.msra.mxu0 %v8648_v20  ;;  %v618_v59 = vld [vmem:[#allocation8 + $0xa8] sm:$0xff]  ;;  %v620_v45 = vld [vmem:[#allocation8 + $0xb8] sm:$0xff] }
  0x69   :  { %5258 = vmatpush1.bf16.msra.mxu1 %v8652_v23  ;;  %5196 = vmatprep.subr.bf16.mxu0 %v8654_v26  ;;  %v632_v37 = vld [vmem:[#allocation8 + $0x118] sm:$0xff] }
  0x6a   :  { %5260 = vmatprep.subr.bf16.mxu1 %v8657_v41 }
  0x6c   :  { %5198 = vmatpush1.bf16.msra.mxu0 %v8660_v55 }
  0x6d   :  { %5262 = vmatpush1.bf16.msra.mxu1 %v8664_v63  ;;  %5200 = vmatprep.subr.bf16.mxu0 %v8666_v3  ;;  %v576_v3 = vld [vmem:[#allocation6 + $0x358] sm:$0xff] }
  0x6e   :  { %5264 = vmatprep.subr.bf16.mxu1 %v8669_v4  ;;  %v8685_v4 = vpack.c.bf16 %v513_v53, %v509_v51  ;;  %v521_v51 = vld [vmem:[#allocation6 + $0x1a0] sm:$0xff]  ;;  %v8695_v53 = vpack.c.bf16 %v524_v44, %v520_v40  ;;  %v532_v40 = vld [vmem:[#allocation6 + $0x1f8] sm:$0xff] }
  0x6f   :  { %v525_v44 = vld [vmem:[#allocation6 + $0x1c0] sm:$0xff] }
  0x70   :  { %5202 = vmatpush1.bf16.msra.mxu0 %v8675_v14  ;;  %10840 = vst [vmem:[#allocation45_spill] sm:$0xff] %v8685_v4  ;;  %10843 = vst [vmem:[#allocation48_spill] sm:$0xff] %v8695_v53  ;;  %v8697_v14 = vpack.c.bf16 %v521_v51, %v517_v49  ;;  %v529_v49 = vld [vmem:[#allocation6 + $0x1e0] sm:$0xff] }
  0x71   :  { %5266 = vmatpush1.bf16.msra.mxu1 %v8677_v30  ;;  %5204 = vmatprep.subr.bf16.mxu0 %v8681_v48  ;;  %v8693_v30 = vpack.c.bf16 %v522_v31, %v518_v16  ;;  %v530_v16 = vld [vmem:[#allocation6 + $0x1e8] sm:$0xff]  ;;  %v528_v31 = vld [vmem:[#allocation6 + $0x1d8] sm:$0xff]  ;;  %v8709_v48 = vpack.c.bf16 %v529_v49, %v525_v44  ;;  %v537_v44 = vld [vmem:[#allocation6 + $0x220] sm:$0xff] }
  0x72   :  { %5268 = vmatprep.subr.bf16.mxu1 %v8683_v0  ;;  %10844 = vst [vmem:[#allocation49_spill] sm:$0xff] %v8697_v14  ;;  %v8700_v0 = vpack.c.bf16 %v523_v10, %v519_v9  ;;  %v8707_v51 = vpack.c.bf16 %v532_v40, %v528_v31  ;;  %v527_v9 = vld [vmem:[#allocation6 + $0x1d0] sm:$0xff]  ;;  %v540_v31 = vld [vmem:[#allocation6 + $0x238] sm:$0xff]  ;;  %v533_v40 = vld [vmem:[#allocation6 + $0x200] sm:$0xff] }
  0x73   :  { %10842 = vst [vmem:[#allocation47_spill] sm:$0xff] %v8693_v30  ;;  %10848 = vst [vmem:[#allocation53_spill] sm:$0xff] %v8709_v48  ;;  %v531_v10 = vld [vmem:[#allocation6 + $0x1f0] sm:$0xff] }
  0x74   :  { %5206 = vmatpush1.bf16.msra.mxu0 %v8685_v4  ;;  %10845 = vst [vmem:[#allocation50_spill] sm:$0xff] %v8700_v0  ;;  %10847 = vst [vmem:[#allocation52_spill] sm:$0xff] %v8707_v51 }
  0x75   :  { %5270 = vmatpush1.bf16.msra.mxu1 %v8688_v13  ;;  %5208 = vmatprep.subr.bf16.mxu0 %v8693_v30  ;;  %v526_v13 = vld [vmem:[#allocation6 + $0x1c8] sm:$0xff]  ;;  %v8721_v30 = vpack.c.bf16 %v537_v44, %v533_v40  ;;  %v545_v40 = vld [vmem:[#allocation6 + $0x260] sm:$0xff] }
  0x76   :  { %5272 = vmatprep.subr.bf16.mxu1 %v8695_v53  ;;  %v8705_v4 = vpack.c.bf16 %v530_v16, %v526_v13  ;;  %v8712_v53 = vpack.c.bf16 %v531_v10, %v527_v9  ;;  %v538_v13 = vld [vmem:[#allocation6 + $0x228] sm:$0xff]  ;;  %v536_v16 = vld [vmem:[#allocation6 + $0x218] sm:$0xff]  ;;  %v535_v9 = vld [vmem:[#allocation6 + $0x210] sm:$0xff] }
  0x77   :  { %v8719_v49 = vpack.c.bf16 %v540_v31, %v536_v16  ;;  %10852 = vst [vmem:[#allocation57_spill] sm:$0xff] %v8721_v30  ;;  %v539_v10 = vld [vmem:[#allocation6 + $0x230] sm:$0xff]  ;;  %v548_v16 = vld [vmem:[#allocation6 + $0x278] sm:$0xff]  ;;  %v541_v31 = vld [vmem:[#allocation6 + $0x240] sm:$0xff] }
  0x78   :  { %5210 = vmatpush1.bf16.msra.mxu0 %v8697_v14  ;;  %10846 = vst [vmem:[#allocation51_spill] sm:$0xff] %v8705_v4  ;;  %10849 = vst [vmem:[#allocation54_spill] sm:$0xff] %v8712_v53 }
  0x79   :  { %5274 = vmatpush1.bf16.msra.mxu1 %v8700_v0  ;;  %5212 = vmatprep.subr.bf16.mxu0 %v8705_v4  ;;  %v534_v0 = vld [vmem:[#allocation6 + $0x208] sm:$0xff]  ;;  %10851 = vst [vmem:[#allocation56_spill] sm:$0xff] %v8719_v49  ;;  %v8733_v4 = vpack.c.bf16 %v545_v40, %v541_v31  ;;  %v553_v31 = vld [vmem:[#allocation6 + $0x2a0] sm:$0xff] }
  0x7a   :  { %5276 = vmatprep.subr.bf16.mxu1 %v8707_v51  ;;  %v8717_v14 = vpack.c.bf16 %v538_v13, %v534_v0  ;;  %v8724_v51 = vpack.c.bf16 %v539_v10, %v535_v9  ;;  %v546_v0 = vld [vmem:[#allocation6 + $0x268] sm:$0xff]  ;;  %v544_v13 = vld [vmem:[#allocation6 + $0x258] sm:$0xff]  ;;  %v543_v9 = vld [vmem:[#allocation6 + $0x250] sm:$0xff] }
  0x7b   :  { %v8731_v44 = vpack.c.bf16 %v548_v16, %v544_v13  ;;  %10856 = vst [vmem:[#allocation61_spill] sm:$0xff] %v8733_v4  ;;  %v547_v10 = vld [vmem:[#allocation6 + $0x270] sm:$0xff]  ;;  %v556_v13 = vld [vmem:[#allocation6 + $0x2b8] sm:$0xff]  ;;  %v549_v16 = vld [vmem:[#allocation6 + $0x280] sm:$0xff] }
  0x7c   :  { %5214 = vmatpush1.bf16.msra.mxu0 %v8709_v48  ;;  %10850 = vst [vmem:[#allocation55_spill] sm:$0xff] %v8717_v14  ;;  %10853 = vst [vmem:[#allocation58_spill] sm:$0xff] %v8724_v51 }
  0x7d   :  { %5278 = vmatpush1.bf16.msra.mxu1 %v8712_v53  ;;  %5216 = vmatprep.subr.bf16.mxu0 %v8717_v14  ;;  %v542_v53 = vld [vmem:[#allocation6 + $0x248] sm:$0xff]  ;;  %10855 = vst [vmem:[#allocation60_spill] sm:$0xff] %v8731_v44  ;;  %v8745_v14 = vpack.c.bf16 %v553_v31, %v549_v16  ;;  %v561_v16 = vld [vmem:[#allocation6 + $0x2e0] sm:$0xff] }
  0x7e   :  { %5280 = vmatprep.subr.bf16.mxu1 %v8719_v49  ;;  %v8729_v48 = vpack.c.bf16 %v546_v0, %v542_v53  ;;  %v8736_v49 = vpack.c.bf16 %v547_v10, %v543_v9  ;;  %v554_v53 = vld [vmem:[#allocation6 + $0x2a8] sm:$0xff]  ;;  %v552_v0 = vld [vmem:[#allocation6 + $0x298] sm:$0xff]  ;;  %v551_v9 = vld [vmem:[#allocation6 + $0x290] sm:$0xff] }
  0x7f   :  { %v8743_v40 = vpack.c.bf16 %v556_v13, %v552_v0  ;;  %10860 = vst [vmem:[#allocation65_spill] sm:$0xff] %v8745_v14  ;;  %v555_v10 = vld [vmem:[#allocation6 + $0x2b0] sm:$0xff]  ;;  %v564_v0 = vld [vmem:[#allocation6 + $0x2f8] sm:$0xff]  ;;  %v557_v13 = vld [vmem:[#allocation6 + $0x2c0] sm:$0xff] }
  0x80   :  { %5218 = vmatpush1.bf16.msra.mxu0 %v8721_v30  ;;  %10854 = vst [vmem:[#allocation59_spill] sm:$0xff] %v8729_v48  ;;  %10857 = vst [vmem:[#allocation62_spill] sm:$0xff] %v8736_v49 }
  0x81   :  { %5282 = vmatpush1.bf16.msra.mxu1 %v8724_v51  ;;  %5220 = vmatprep.subr.bf16.mxu0 %v8729_v48  ;;  %v550_v51 = vld [vmem:[#allocation6 + $0x288] sm:$0xff]  ;;  %10859 = vst [vmem:[#allocation64_spill] sm:$0xff] %v8743_v40  ;;  %v8757_v48 = vpack.c.bf16 %v561_v16, %v557_v13  ;;  %v569_v13 = vld [vmem:[#allocation6 + $0x320] sm:$0xff] }
  0x82   :  { %5284 = vmatprep.subr.bf16.mxu1 %v8731_v44  ;;  %v8741_v30 = vpack.c.bf16 %v554_v53, %v550_v51  ;;  %v8748_v44 = vpack.c.bf16 %v555_v10, %v551_v9  ;;  %v562_v51 = vld [vmem:[#allocation6 + $0x2e8] sm:$0xff]  ;;  %v560_v53 = vld [vmem:[#allocation6 + $0x2d8] sm:$0xff]  ;;  %v559_v9 = vld [vmem:[#allocation6 + $0x2d0] sm:$0xff] }
  0x83   :  { %v8755_v31 = vpack.c.bf16 %v564_v0, %v560_v53  ;;  %10864 = vst [vmem:[#allocation69_spill] sm:$0xff] %v8757_v48  ;;  %v563_v10 = vld [vmem:[#allocation6 + $0x2f0] sm:$0xff]  ;;  %v572_v53 = vld [vmem:[#allocation6 + $0x338] sm:$0xff]  ;;  %v565_v0 = vld [vmem:[#allocation6 + $0x300] sm:$0xff] }
  0x84   :  { %5222 = vmatpush1.bf16.msra.mxu0 %v8733_v4  ;;  %10858 = vst [vmem:[#allocation63_spill] sm:$0xff] %v8741_v30  ;;  %10861 = vst [vmem:[#allocation66_spill] sm:$0xff] %v8748_v44 }
  0x85   :  { %5286 = vmatpush1.bf16.msra.mxu1 %v8736_v49  ;;  %5224 = vmatprep.subr.bf16.mxu0 %v8741_v30  ;;  %v558_v49 = vld [vmem:[#allocation6 + $0x2c8] sm:$0xff]  ;;  %10863 = vst [vmem:[#allocation68_spill] sm:$0xff] %v8755_v31  ;;  %v8769_v30 = vpack.c.bf16 %v569_v13, %v565_v0 }
  0x86   :  { %5288 = vmatprep.subr.bf16.mxu1 %v8743_v40  ;;  %v8753_v4 = vpack.c.bf16 %v562_v51, %v558_v49  ;;  %v8760_v40 = vpack.c.bf16 %v563_v10, %v559_v9  ;;  %v570_v49 = vld [vmem:[#allocation6 + $0x328] sm:$0xff]  ;;  %v568_v51 = vld [vmem:[#allocation6 + $0x318] sm:$0xff]  ;;  %v567_v9 = vld [vmem:[#allocation6 + $0x310] sm:$0xff] }
  0x87   :  { %v8767_v16 = vpack.c.bf16 %v572_v53, %v568_v51  ;;  %10868 = vst [vmem:[#allocation73_spill] sm:$0xff] %v8769_v30  ;;  %v571_v10 = vld [vmem:[#allocation6 + $0x330] sm:$0xff]  ;;  %v573_v51 = vld [vmem:[#allocation6 + $0x340] sm:$0xff] }
  0x88   :  { %5226 = vmatpush1.bf16.msra.mxu0 %v8745_v14  ;;  %10862 = vst [vmem:[#allocation67_spill] sm:$0xff] %v8753_v4  ;;  %10865 = vst [vmem:[#allocation70_spill] sm:$0xff] %v8760_v40  ;;  %v577_v53 = vld [vmem:[#allocation6 + $0x360] sm:$0xff] }
  0x89   :  { %5290 = vmatpush1.bf16.msra.mxu1 %v8748_v44  ;;  %5228 = vmatprep.subr.bf16.mxu0 %v8753_v4  ;;  %v566_v44 = vld [vmem:[#allocation6 + $0x308] sm:$0xff]  ;;  %10867 = vst [vmem:[#allocation72_spill] sm:$0xff] %v8767_v16  ;;  %v8781_v13 = vpack.c.bf16 %v577_v53, %v573_v51  ;;  %v583_v51 = vld [vmem:[#allocation6 + $0x390] sm:$0xff] }
  0x8a   :  { %5292 = vmatprep.subr.bf16.mxu1 %v8755_v31  ;;  %v8765_v14 = vpack.c.bf16 %v570_v49, %v566_v44  ;;  %v8772_v31 = vpack.c.bf16 %v571_v10, %v567_v9  ;;  %v578_v4 = vld [vmem:[#allocation6 + $0x368] sm:$0xff]  ;;  %v580_v49 = vld [vmem:[#allocation6 + $0x378] sm:$0xff]  ;;  %v575_v9 = vld [vmem:[#allocation6 + $0x350] sm:$0xff] }
  0x8b   :  { %v8779_v0 = vpack.c.bf16 %v580_v49, %v576_v3  ;;  %10872 = vst [vmem:[#allocation77_spill] sm:$0xff] %v8781_v13  ;;  %v579_v10 = vld [vmem:[#allocation6 + $0x370] sm:$0xff]  ;;  %v581_v3 = vld [vmem:[#allocation6 + $0x380] sm:$0xff] }
  0x8c   :  { %5230 = vmatpush1.bf16.msra.mxu0 %v8757_v48  ;;  %10866 = vst [vmem:[#allocation71_spill] sm:$0xff] %v8765_v14  ;;  %10869 = vst [vmem:[#allocation74_spill] sm:$0xff] %v8772_v31  ;;  %v574_v48 = vld [vmem:[#allocation6 + $0x348] sm:$0xff]  ;;  %v585_v49 = vld [vmem:[#allocation6 + $0x3a0] sm:$0xff] }
  0x8d   :  { %5294 = vmatpush1.bf16.msra.mxu1 %v8760_v40  ;;  %5232 = vmatprep.subr.bf16.mxu0 %v8765_v14  ;;  %v8776_v44 = vpack.c.bf16 %v578_v4, %v574_v48  ;;  %10871 = vst [vmem:[#allocation76_spill] sm:$0xff] %v8779_v0  ;;  %v582_v14 = vld [vmem:[#allocation6 + $0x388] sm:$0xff]  ;;  %v8784_v40 = vpack.c.bf16 %v579_v10, %v575_v9  ;;  %v588_v4 = vld [vmem:[#allocation6 + $0x3b8] sm:$0xff] }
  0x8e   :  { %5296 = vmatprep.subr.bf16.mxu1 %v8767_v16  ;;  %v586_v16 = vld [vmem:[#allocation6 + $0x3a8] sm:$0xff]  ;;  %v8792_v53 = vpack.c.bf16 %v585_v49, %v581_v3  ;;  %v593_v3 = vld [vmem:[#allocation6 + $0x3e0] sm:$0xff]  ;;  %v591_v49 = vld [vmem:[#allocation6 + $0x3d0] sm:$0xff] }
  0x8f   :  { %10870 = vst [vmem:[#allocation75_spill] sm:$0xff] %v8776_v44  ;;  %10873 = vst [vmem:[#allocation78_spill] sm:$0xff] %v8784_v40  ;;  %v8787_v48 = vpack.c.bf16 %v586_v16, %v582_v14  ;;  %v594_v9 = vld [vmem:[#allocation6 + $0x3e8] sm:$0xff]  ;;  %v596_v16 = vld [vmem:[#allocation6 + $0x3f8] sm:$0xff] }
  0x90   :  { %5234 = vmatpush1.bf16.msra.mxu0 %v8769_v30  ;;  %v584_v30 = vld [vmem:[#allocation6 + $0x398] sm:$0xff]  ;;  %10876 = vst [vmem:[#allocation81_spill] sm:$0xff] %v8792_v53 }
  0x91   :  { %5298 = vmatpush1.bf16.msra.mxu1 %v8772_v31  ;;  %5236 = vmatprep.subr.bf16.mxu0 %v8776_v44  ;;  %10874 = vst [vmem:[#allocation79_spill] sm:$0xff] %v8787_v48  ;;  %v8789_v63 = vpack.c.bf16 %v588_v4, %v584_v30  ;;  %v587_v31 = vld [vmem:[#allocation6 + $0x3b0] sm:$0xff]  ;;  %v590_v44 = vld [vmem:[#allocation6 + $0x3c8] sm:$0xff]  ;;  %v592_v30 = vld [vmem:[#allocation6 + $0x3d8] sm:$0xff] }
  0x92   :  { %5300 = vmatprep.subr.bf16.mxu1 %v8779_v0  ;;  %v8796_v10 = vpack.c.bf16 %v587_v31, %v583_v51  ;;  %v8798_v14 = vpack.c.bf16 %v594_v9, %v590_v44  ;;  %v589_v4 = vld [vmem:[#allocation6 + $0x3c0] sm:$0xff]  ;;  %v8801_v0 = vpack.c.bf16 %v596_v16, %v592_v30  ;;  %v598_v44 = vld [vmem:[#allocation8 + $0x8] sm:$0xff]  ;;  %v600_v9 = vld [vmem:[#allocation8 + $0x18] sm:$0xff] }
  0x93   :  { %10875 = vst [vmem:[#allocation80_spill] sm:$0xff] %v8789_v63  ;;  %v8804_v55 = vpack.c.bf16 %v593_v3, %v589_v4  ;;  %v602_v51 = vld [vmem:[#allocation8 + $0x28] sm:$0xff]  ;;  %v604_v16 = vld [vmem:[#allocation8 + $0x38] sm:$0xff] }
  0x94   :  { %5238 = vmatpush1.bf16.msra.mxu0 %v8781_v13  ;;  %10877 = vst [vmem:[#allocation82_spill] sm:$0xff] %v8796_v10  ;;  %10878 = vst [vmem:[#allocation83_spill] sm:$0xff] %v8798_v14  ;;  %v595_v13 = vld [vmem:[#allocation6 + $0x3f0] sm:$0xff]  ;;  %v8813_v30 = vpack.c.bf16 %v602_v51, %v598_v44  ;;  %v8815_v4 = vpack.c.bf16 %v604_v16, %v600_v9 }
  0x95   :  { %5302 = vmatpush1.bf16.msra.mxu1 %v8784_v40  ;;  %5240 = vmatprep.subr.bf16.mxu0 %v8787_v48  ;;  %10879 = vst [vmem:[#allocation84_spill] sm:$0xff] %v8801_v0  ;;  %10880 = vst [vmem:[#allocation85_spill] sm:$0xff] %v8804_v55  ;;  %v8808_v31 = vpack.c.bf16 %v595_v13, %v591_v49  ;;  %v102_v13 = vlaneseq }
  0x96   :  { %5304 = vmatprep.subr.bf16.mxu1 %v8789_v63  ;;  %10882 = vst [vmem:[#allocation87_spill] sm:$0xff] %v8813_v30  ;;  %10883 = vst [vmem:[#allocation88_spill] sm:$0xff] %v8815_v4 }
  0x97   :  { %10881 = vst [vmem:[#allocation86_spill] sm:$0xff] %v8808_v31  ;;  %v103_v3 = vshrl.u32 %v102_v13, 7 }
  0x98   :  { %5242 = vmatpush1.bf16.msra.mxu0 %v8792_v53 }
  0x99   :  { %5306 = vmatpush1.bf16.msra.mxu1 %v8796_v10  ;;  %5244 = vmatprep.subr.bf16.mxu0 %v8798_v14  ;;  %v8819_v49 = vsub.s32 0, %v103_v3  ;;  %v8832_v16 = vsub.s32 2, %v103_v3  ;;  %v8839_v48 = vsub.s32 3, %v103_v3 }
  0x9a   :  { %5308 = vmatprep.subr.bf16.mxu1 %v8801_v0  ;;  %v8824_v0 = vsub.s32 1, %v103_v3 }
  0x9c   :  { %5246 = vmatpush1.bf16.msra.mxu0 %v8804_v55  ;;  %v100_v55 = vld [vmem:[%s10512_s2] sm:$0xf] }
  0x9d   :  { %5310 = vmatpush1.bf16.msra.mxu1 %v8808_v31  ;;  %5312 = vmatprep.subr.bf16.mxu0 %v8813_v30  ;;  %v8827_v44 = vrot.slane %v100_v55, %v8819_v49  ;;  %v8830_v51 = vrot.slane %v100_v55, %v8824_v0  ;;  %v8837_v53 = vrot.slane %v100_v55, %v8832_v16 }
  0x9e   :  { %5376 = vmatprep.subr.bf16.mxu1 %v8815_v4  ;;  %v8843_v41 = vrot.slane %v100_v55, %v8839_v48 }
  0x9f   :  { %10884 = vst [vmem:[#allocation89_spill] sm:$0xff] %v8827_v44  ;;  %10885 = vst [vmem:[#allocation90_spill] sm:$0xff] %v8830_v51 }
  0xa0   :  { %10886 = vst [vmem:[#allocation91_spill] sm:$0xff] %v8837_v53  ;;  %10887 = vst [vmem:[#allocation92_spill] sm:$0xff] %v8843_v41 }
 0x132   :  { %v839_v9 = vpop.f32.mrb[0].mxu0 }
 0x133   :  { %v7703_v4 = vadd.f32 %v839_v9, %v8827_v44  ;;  %v910_v13 = vpop.f32.mrb[0].mxu1  ;;  %v841_v30 = vpop.f32.mrb[1].mxu0 }
 0x134   :  { %v7704_v31 = vadd.f32 %v841_v30, %v8830_v51  ;;  %v912_v14 = vpop.f32.mrb[1].mxu1  ;;  %v7719_v40 = vadd.f32 %v910_v13, %v8837_v53 }
 0x135   :  { %v4986_v10 = vmul.f32 -1.442695, %v7703_v4  ;;  %v7720_v44 = vadd.f32 %v912_v14, %v8843_v41  ;;  %v599_v14 = vld [vmem:[#allocation8 + $0x10] sm:$0xff] }
 0x136   :  { %v4987_v63 = vmul.f32 -1.442695, %v7704_v31  ;;  %v4988_v9 = vmul.f32 -1.442695, %v7719_v40  ;;  %v597_v40 = vld [vmem:[#allocation8] sm:$0xff] }
 0x137   :  { %7779 = vpow2.f32 %v4986_v10 }
 0x138   :  { %7781 = vpow2.f32 %v4987_v63 }
 0x139   :  { %7783 = vpow2.f32 %v4988_v9  ;;  %v603_v9 = vld [vmem:[#allocation8 + $0x30] sm:$0xff] }
 0x13a   :  { %7785 = vtanh.f32 %v7720_v44  ;;  %v606_v44 = vld [vmem:[#allocation8 + $0x48] sm:$0xff] }
 0x141   :  { %v7780_v26 = vpop.eup %7779 }
 0x142   :  { %v928_v30 = vadd.f32 1.0, %v7780_v26  ;;  %v7782_v4 = vpop.eup %7781  ;;  %v601_v26 = vld [vmem:[#allocation8 + $0x20] sm:$0xff] }
 0x143   :  { %v929_v51 = vadd.f32 1.0, %v7782_v4  ;;  %v7784_v10 = vpop.eup %7783  ;;  %v608_v4 = vld [vmem:[#allocation8 + $0x58] sm:$0xff]  ;;  %v8849_v6 = vpack.c.bf16 %v601_v26, %v597_v40  ;;  %v613_v40 = vld [vmem:[#allocation8 + $0x80] sm:$0xff] }
 0x144   :  { %7787 = vrcp.f32 %v928_v30  ;;  %v7786_v31 = vpop.eup %7785  ;;  %v930_v13 = vadd.f32 1.0, %v7784_v10  ;;  %v610_v30 = vld [vmem:[#allocation8 + $0x68] sm:$0xff]  ;;  %v617_v26 = vld [vmem:[#allocation8 + $0xa0] sm:$0xff] }
 0x145   :  { %7789 = vrcp.f32 %v929_v51  ;;  %v612_v51 = vld [vmem:[#allocation8 + $0x78] sm:$0xff]  ;;  %10889 = vst [vmem:[#allocation94_spill] sm:$0xff] %v8849_v6 }
 0x146   :  { %7791 = vrcp.f32 %v930_v13  ;;  %v607_v13 = vld [vmem:[#allocation8 + $0x50] sm:$0xff] }
 0x14e   :  { %v7788_v3 = vpop.eup %7787 }
 0x14f   :  { %v939_v63 = vmul.f32 %v7788_v3, %v7786_v31  ;;  %v7790_v23 = vpop.eup %7789  ;;  %v8851_v31 = vpack.c.bf16 %v603_v9, %v599_v14  ;;  %v8855_v3 = vpack.c.bf16 %v610_v30, %v606_v44  ;;  %v8869_v14 = vpack.c.bf16 %v618_v59, %v614_v62  ;;  %v615_v44 = vld [vmem:[#allocation8 + $0x90] sm:$0xff] }
 0x150   :  { %v938_v53 = vmul.f32 0.0, %v7790_v23  ;;  %v7792_v41 = vpop.eup %7791  ;;  %v605_v23 = vld [vmem:[#allocation8 + $0x40] sm:$0xff]  ;;  %v8871_v9 = vpack.c.bf16 %v620_v45, %v616_v57  ;;  %v619_v30 = vld [vmem:[#allocation8 + $0xb0] sm:$0xff] }
 0x151   :  { %10890 = vst [vmem:[#allocation95_spill] sm:$0xff] %v8851_v31  ;;  %10891 = vst [vmem:[#allocation96_spill] sm:$0xff] %v8855_v3  ;;  %v8879_v59 = vpack.c.bf16 %v619_v30, %v615_v44  ;;  %v621_v45 = vld [vmem:[#allocation8 + $0xc0] sm:$0xff] }
 0x152   :  { %v8846_v55 = vadd.f32 %v939_v63, %v938_v53  ;;  %v609_v53 = vld [vmem:[#allocation8 + $0x60] sm:$0xff]  ;;  %v8857_v63 = vpack.c.bf16 %v612_v51, %v608_v4  ;;  %10895 = vst [vmem:[#allocation100_spill] sm:$0xff] %v8869_v14  ;;  %10896 = vst [vmem:[#allocation101_spill] sm:$0xff] %v8871_v9  ;;  %v622_v4 = vld [vmem:[#allocation8 + $0xc8] sm:$0xff] }
 0x153   :  { %v626_v51 = vld [vmem:[#allocation8 + $0xe8] sm:$0xff]  ;;  %10899 = vst [vmem:[#allocation103_spill] sm:$0xff] %v8879_v59  ;;  %v625_v57 = vld [vmem:[#allocation8 + $0xe0] sm:$0xff] }
 0x154   :  { %10888 = vst [vmem:[#allocation93_spill] sm:$0xff] %v8846_v55  ;;  %7793 = vtanh.f32 %v8846_v55  ;;  %10892 = vst [vmem:[#allocation97_spill] sm:$0xff] %v8857_v63  ;;  %v611_v55 = vld [vmem:[#allocation8 + $0x70] sm:$0xff]  ;;  %v8883_v62 = vpack.c.bf16 %v626_v51, %v622_v4  ;;  %v629_v44 = vld [vmem:[#allocation8 + $0x100] sm:$0xff] }
 0x155   :  { %v633_v30 = vld [vmem:[#allocation8 + $0x120] sm:$0xff]  ;;  %v631_v4 = vld [vmem:[#allocation8 + $0x110] sm:$0xff] }
 0x156   :  { %10900 = vst [vmem:[#allocation104_spill] sm:$0xff] %v8883_v62  ;;  %v635_v51 = vld [vmem:[#allocation8 + $0x130] sm:$0xff] }
 0x15e   :  { %v7794_v20 = vpop.eup %7793 }
 0x15f   :  { %v8853_v10 = vmul.f32 %v7794_v20, %v7792_v41  ;;  %v8863_v20 = vpack.c.bf16 %v609_v53, %v605_v23  ;;  %v8865_v41 = vpack.c.bf16 %v611_v55, %v607_v13  ;;  %v10897_v23 = vmov 0.0   ;;  %v623_v13 = vld [vmem:[#allocation8 + $0xd0] sm:$0xff] }
 0x160   :  { %v8877_v55 = vpack.c.bf16 %v617_v26, %v613_v40  ;;  %v8889_v40 = vpack.c.bf16 %v625_v57, %v621_v45  ;;  %v8901_v45 = vpack.c.bf16 %v633_v30, %v629_v44  ;;  %v644_v57 = vld [vmem:[#allocation8 + $0x178] sm:$0xff] }
 0x161   :  { %1008 = vmatmul.mubr.f32.vlgmr.msra.gmra.mrb[16].mxu0 %v8853_v10  ;;  %1079 = vmatmul.mubr.f32.vlgmr.msra.gmra.mrb[16].mxu1 %v8853_v10  ;;  %10893 = vst [vmem:[#allocation98_spill] sm:$0xff] %v8863_v20  ;;  %10894 = vst [vmem:[#allocation99_spill] sm:$0xff] %v8865_v41 }
 0x162   :  { %5314 = vmatpush1.bf16.msra.mxu0 %v8849_v6  ;;  %5378 = vmatpush1.bf16.msra.mxu1 %v8851_v31  ;;  %v624_v6 = vld [vmem:[#allocation8 + $0xd8] sm:$0xff]  ;;  %10898 = vst [vmem:[#allocation102_spill] sm:$0xff] %v8877_v55  ;;  %10902 = vst [vmem:[#allocation106_spill] sm:$0xff] %v8889_v40 }
 0x163   :  { %5316 = vmatprep.subr.bf16.mxu0 %v8855_v3  ;;  %5380 = vmatprep.subr.bf16.mxu1 %v8857_v63  ;;  %v628_v31 = vld [vmem:[#allocation8 + $0xf8] sm:$0xff]  ;;  %v627_v63 = vld [vmem:[#allocation8 + $0xf0] sm:$0xff]  ;;  %v630_v3 = vld [vmem:[#allocation8 + $0x108] sm:$0xff]  ;;  %10906 = vst [vmem:[#allocation110_spill] sm:$0xff] %v8901_v45 }
 0x164   :  { %1173 = vmatprep.mubr.f32.mxu0 %v10897_v23  ;;  %1244 = vmatprep.mubr.f32.mxu1 %v10897_v23  ;;  %v8885_v53 = vpack.c.bf16 %v628_v31, %v624_v6  ;;  %v8891_v26 = vpack.c.bf16 %v627_v63, %v623_v13  ;;  %v8903_v63 = vpack.c.bf16 %v635_v51, %v631_v4  ;;  %v637_v13 = vld [vmem:[#allocation8 + $0x140] sm:$0xff]  ;;  %v639_v4 = vld [vmem:[#allocation8 + $0x150] sm:$0xff] }
 0x165   :  { %v643_v51 = vld [vmem:[#allocation8 + $0x170] sm:$0xff] }
 0x166   :  { %5318 = vmatpush1.bf16.msra.mxu0 %v8863_v20  ;;  %5382 = vmatpush1.bf16.msra.mxu1 %v8865_v41  ;;  %10901 = vst [vmem:[#allocation105_spill] sm:$0xff] %v8885_v53  ;;  %v634_v20 = vld [vmem:[#allocation8 + $0x128] sm:$0xff]  ;;  %v636_v41 = vld [vmem:[#allocation8 + $0x138] sm:$0xff]  ;;  %10903 = vst [vmem:[#allocation107_spill] sm:$0xff] %v8891_v26 }
 0x167   :  { %5320 = vmatprep.subr.bf16.mxu0 %v8869_v14  ;;  %5384 = vmatprep.subr.bf16.mxu1 %v8871_v9  ;;  %v8895_v6 = vpack.c.bf16 %v634_v20, %v630_v3  ;;  %v8897_v31 = vpack.c.bf16 %v636_v41, %v632_v37  ;;  %10907 = vst [vmem:[#allocation111_spill] sm:$0xff] %v8903_v63  ;;  %v638_v37 = vld [vmem:[#allocation8 + $0x148] sm:$0xff]  ;;  %v640_v20 = vld [vmem:[#allocation8 + $0x158] sm:$0xff] }
 0x168   :  { %v642_v3 = vld [vmem:[#allocation8 + $0x168] sm:$0xff]  ;;  %v8911_v44 = vpack.c.bf16 %v644_v57, %v640_v20  ;;  %v652_v20 = vld [vmem:[#allocation8 + $0x1b8] sm:$0xff]  ;;  %v649_v57 = vld [vmem:[#allocation8 + $0x1a0] sm:$0xff] }
 0x169   :  { %10904 = vst [vmem:[#allocation108_spill] sm:$0xff] %v8895_v6  ;;  %10905 = vst [vmem:[#allocation109_spill] sm:$0xff] %v8897_v31  ;;  %v8909_v41 = vpack.c.bf16 %v642_v3, %v638_v37  ;;  %v650_v37 = vld [vmem:[#allocation8 + $0x1a8] sm:$0xff]  ;;  %v648_v3 = vld [vmem:[#allocation8 + $0x198] sm:$0xff] }
 0x16a   :  { %5322 = vmatpush1.bf16.msra.mxu0 %v8877_v55  ;;  %5386 = vmatpush1.bf16.msra.mxu1 %v8879_v59  ;;  %10909 = vst [vmem:[#allocation113_spill] sm:$0xff] %v8911_v44 }
 0x16b   :  { %5324 = vmatprep.subr.bf16.mxu0 %v8883_v62  ;;  %5388 = vmatprep.subr.bf16.mxu1 %v8885_v53  ;;  %10908 = vst [vmem:[#allocation112_spill] sm:$0xff] %v8909_v41  ;;  %v716_v53 = vld [vmem:[#allocation8 + $0x3b8] sm:$0xff] }
 0x16e   :  { %5326 = vmatpush1.bf16.msra.mxu0 %v8889_v40  ;;  %5390 = vmatpush1.bf16.msra.mxu1 %v8891_v26  ;;  %v641_v26 = vld [vmem:[#allocation8 + $0x160] sm:$0xff]  ;;  %v712_v40 = vld [vmem:[#allocation8 + $0x398] sm:$0xff] }
 0x16f   :  { %5328 = vmatprep.subr.bf16.mxu0 %v8895_v6  ;;  %5392 = vmatprep.subr.bf16.mxu1 %v8897_v31  ;;  %v8913_v30 = vpack.c.bf16 %v641_v26, %v637_v13  ;;  %v8916_v31 = vpack.c.bf16 %v643_v51, %v639_v4  ;;  %v645_v26 = vld [vmem:[#allocation8 + $0x180] sm:$0xff]  ;;  %v8923_v13 = vpack.c.bf16 %v652_v20, %v648_v3  ;;  %v647_v4 = vld [vmem:[#allocation8 + $0x190] sm:$0xff]  ;;  %v660_v3 = vld [vmem:[#allocation8 + $0x1f8] sm:$0xff] }
 0x170   :  { %v8925_v6 = vpack.c.bf16 %v649_v57, %v645_v26  ;;  %v651_v51 = vld [vmem:[#allocation8 + $0x1b0] sm:$0xff]  ;;  %v653_v20 = vld [vmem:[#allocation8 + $0x1c0] sm:$0xff] }
 0x171   :  { %10910 = vst [vmem:[#allocation114_spill] sm:$0xff] %v8913_v30  ;;  %10911 = vst [vmem:[#allocation115_spill] sm:$0xff] %v8916_v31  ;;  %v657_v26 = vld [vmem:[#allocation8 + $0x1e0] sm:$0xff] }
 0x172   :  { %5330 = vmatpush1.bf16.msra.mxu0 %v8901_v45  ;;  %5394 = vmatpush1.bf16.msra.mxu1 %v8903_v63  ;;  %v646_v63 = vld [vmem:[#allocation8 + $0x188] sm:$0xff]  ;;  %10913 = vst [vmem:[#allocation117_spill] sm:$0xff] %v8923_v13  ;;  %10914 = vst [vmem:[#allocation118_spill] sm:$0xff] %v8925_v6 }
 0x173   :  { %5332 = vmatprep.subr.bf16.mxu0 %v8909_v41  ;;  %5396 = vmatprep.subr.bf16.mxu1 %v8911_v44  ;;  %v8921_v45 = vpack.c.bf16 %v650_v37, %v646_v63  ;;  %v8928_v44 = vpack.c.bf16 %v651_v51, %v647_v4  ;;  %v658_v63 = vld [vmem:[#allocation8 + $0x1e8] sm:$0xff]  ;;  %v656_v37 = vld [vmem:[#allocation8 + $0x1d8] sm:$0xff]  ;;  %v8937_v41 = vpack.c.bf16 %v657_v26, %v653_v20  ;;  %v655_v4 = vld [vmem:[#allocation8 + $0x1d0] sm:$0xff] }
 0x174   :  { %v8935_v57 = vpack.c.bf16 %v660_v3, %v656_v37  ;;  %v659_v51 = vld [vmem:[#allocation8 + $0x1f0] sm:$0xff]  ;;  %v668_v37 = vld [vmem:[#allocation8 + $0x238] sm:$0xff]  ;;  %v661_v3 = vld [vmem:[#allocation8 + $0x200] sm:$0xff] }
 0x175   :  { %10912 = vst [vmem:[#allocation116_spill] sm:$0xff] %v8921_v45  ;;  %10915 = vst [vmem:[#allocation119_spill] sm:$0xff] %v8928_v44  ;;  %v665_v20 = vld [vmem:[#allocation8 + $0x220] sm:$0xff] }
 0x176   :  { %5334 = vmatpush1.bf16.msra.mxu0 %v8913_v30  ;;  %5398 = vmatpush1.bf16.msra.mxu1 %v8916_v31  ;;  %v654_v31 = vld [vmem:[#allocation8 + $0x1c8] sm:$0xff]  ;;  %10917 = vst [vmem:[#allocation121_spill] sm:$0xff] %v8935_v57  ;;  %10918 = vst [vmem:[#allocation122_spill] sm:$0xff] %v8937_v41 }
 0x177   :  { %5336 = vmatprep.subr.bf16.mxu0 %v8921_v45  ;;  %5400 = vmatprep.subr.bf16.mxu1 %v8923_v13  ;;  %v8933_v30 = vpack.c.bf16 %v658_v63, %v654_v31  ;;  %v8940_v13 = vpack.c.bf16 %v659_v51, %v655_v4  ;;  %v666_v31 = vld [vmem:[#allocation8 + $0x228] sm:$0xff]  ;;  %v664_v63 = vld [vmem:[#allocation8 + $0x218] sm:$0xff]  ;;  %v8949_v45 = vpack.c.bf16 %v665_v20, %v661_v3  ;;  %v663_v4 = vld [vmem:[#allocation8 + $0x210] sm:$0xff] }
 0x178   :  { %v8947_v26 = vpack.c.bf16 %v668_v37, %v664_v63  ;;  %v667_v51 = vld [vmem:[#allocation8 + $0x230] sm:$0xff]  ;;  %v676_v63 = vld [vmem:[#allocation8 + $0x278] sm:$0xff]  ;;  %v669_v37 = vld [vmem:[#allocation8 + $0x240] sm:$0xff] }
 0x179   :  { %10916 = vst [vmem:[#allocation120_spill] sm:$0xff] %v8933_v30  ;;  %10919 = vst [vmem:[#allocation123_spill] sm:$0xff] %v8940_v13  ;;  %v673_v3 = vld [vmem:[#allocation8 + $0x260] sm:$0xff] }
 0x17a   :  { %5338 = vmatpush1.bf16.msra.mxu0 %v8925_v6  ;;  %5402 = vmatpush1.bf16.msra.mxu1 %v8928_v44  ;;  %v662_v44 = vld [vmem:[#allocation8 + $0x208] sm:$0xff]  ;;  %10921 = vst [vmem:[#allocation125_spill] sm:$0xff] %v8947_v26  ;;  %10922 = vst [vmem:[#allocation126_spill] sm:$0xff] %v8949_v45 }
 0x17b   :  { %5340 = vmatprep.subr.bf16.mxu0 %v8933_v30  ;;  %5404 = vmatprep.subr.bf16.mxu1 %v8935_v57  ;;  %v8945_v6 = vpack.c.bf16 %v666_v31, %v662_v44  ;;  %v8952_v57 = vpack.c.bf16 %v667_v51, %v663_v4  ;;  %v674_v44 = vld [vmem:[#allocation8 + $0x268] sm:$0xff]  ;;  %v672_v31 = vld [vmem:[#allocation8 + $0x258] sm:$0xff]  ;;  %v8961_v30 = vpack.c.bf16 %v673_v3, %v669_v37  ;;  %v671_v4 = vld [vmem:[#allocation8 + $0x250] sm:$0xff] }
 0x17c   :  { %v8959_v20 = vpack.c.bf16 %v676_v63, %v672_v31  ;;  %v675_v51 = vld [vmem:[#allocation8 + $0x270] sm:$0xff]  ;;  %v684_v31 = vld [vmem:[#allocation8 + $0x2b8] sm:$0xff]  ;;  %v677_v63 = vld [vmem:[#allocation8 + $0x280] sm:$0xff] }
 0x17d   :  { %10920 = vst [vmem:[#allocation124_spill] sm:$0xff] %v8945_v6  ;;  %10923 = vst [vmem:[#allocation127_spill] sm:$0xff] %v8952_v57  ;;  %v681_v37 = vld [vmem:[#allocation8 + $0x2a0] sm:$0xff] }
 0x17e   :  { %5342 = vmatpush1.bf16.msra.mxu0 %v8937_v41  ;;  %5406 = vmatpush1.bf16.msra.mxu1 %v8940_v13  ;;  %v670_v13 = vld [vmem:[#allocation8 + $0x248] sm:$0xff]  ;;  %10925 = vst [vmem:[#allocation129_spill] sm:$0xff] %v8959_v20  ;;  %10926 = vst [vmem:[#allocation130_spill] sm:$0xff] %v8961_v30 }
 0x17f   :  { %5344 = vmatprep.subr.bf16.mxu0 %v8945_v6  ;;  %5408 = vmatprep.subr.bf16.mxu1 %v8947_v26  ;;  %v8957_v41 = vpack.c.bf16 %v674_v44, %v670_v13  ;;  %v8964_v26 = vpack.c.bf16 %v675_v51, %v671_v4  ;;  %v682_v13 = vld [vmem:[#allocation8 + $0x2a8] sm:$0xff]  ;;  %v680_v44 = vld [vmem:[#allocation8 + $0x298] sm:$0xff]  ;;  %v8973_v6 = vpack.c.bf16 %v681_v37, %v677_v63  ;;  %v679_v4 = vld [vmem:[#allocation8 + $0x290] sm:$0xff] }
 0x180   :  { %v8971_v3 = vpack.c.bf16 %v684_v31, %v680_v44  ;;  %v683_v51 = vld [vmem:[#allocation8 + $0x2b0] sm:$0xff]  ;;  %v692_v44 = vld [vmem:[#allocation8 + $0x2f8] sm:$0xff]  ;;  %v685_v31 = vld [vmem:[#allocation8 + $0x2c0] sm:$0xff] }
 0x181   :  { %10924 = vst [vmem:[#allocation128_spill] sm:$0xff] %v8957_v41  ;;  %10927 = vst [vmem:[#allocation131_spill] sm:$0xff] %v8964_v26  ;;  %v689_v63 = vld [vmem:[#allocation8 + $0x2e0] sm:$0xff] }
 0x182   :  { %5346 = vmatpush1.bf16.msra.mxu0 %v8949_v45  ;;  %5410 = vmatpush1.bf16.msra.mxu1 %v8952_v57  ;;  %v678_v57 = vld [vmem:[#allocation8 + $0x288] sm:$0xff]  ;;  %10929 = vst [vmem:[#allocation133_spill] sm:$0xff] %v8971_v3  ;;  %10930 = vst [vmem:[#allocation134_spill] sm:$0xff] %v8973_v6 }
 0x183   :  { %5348 = vmatprep.subr.bf16.mxu0 %v8957_v41  ;;  %5412 = vmatprep.subr.bf16.mxu1 %v8959_v20  ;;  %v8969_v45 = vpack.c.bf16 %v682_v13, %v678_v57  ;;  %v8976_v20 = vpack.c.bf16 %v683_v51, %v679_v4  ;;  %v690_v57 = vld [vmem:[#allocation8 + $0x2e8] sm:$0xff]  ;;  %v688_v13 = vld [vmem:[#allocation8 + $0x2d8] sm:$0xff]  ;;  %v8985_v41 = vpack.c.bf16 %v689_v63, %v685_v31  ;;  %v687_v4 = vld [vmem:[#allocation8 + $0x2d0] sm:$0xff] }
 0x184   :  { %v8983_v37 = vpack.c.bf16 %v692_v44, %v688_v13  ;;  %v691_v51 = vld [vmem:[#allocation8 + $0x2f0] sm:$0xff]  ;;  %v700_v13 = vld [vmem:[#allocation8 + $0x338] sm:$0xff]  ;;  %v693_v44 = vld [vmem:[#allocation8 + $0x300] sm:$0xff] }
 0x185   :  { %10928 = vst [vmem:[#allocation132_spill] sm:$0xff] %v8969_v45  ;;  %10931 = vst [vmem:[#allocation135_spill] sm:$0xff] %v8976_v20  ;;  %v697_v31 = vld [vmem:[#allocation8 + $0x320] sm:$0xff] }
 0x186   :  { %5350 = vmatpush1.bf16.msra.mxu0 %v8961_v30  ;;  %5414 = vmatpush1.bf16.msra.mxu1 %v8964_v26  ;;  %v686_v26 = vld [vmem:[#allocation8 + $0x2c8] sm:$0xff]  ;;  %10933 = vst [vmem:[#allocation137_spill] sm:$0xff] %v8983_v37  ;;  %10934 = vst [vmem:[#allocation138_spill] sm:$0xff] %v8985_v41 }
 0x187   :  { %5352 = vmatprep.subr.bf16.mxu0 %v8969_v45  ;;  %5416 = vmatprep.subr.bf16.mxu1 %v8971_v3  ;;  %v8981_v30 = vpack.c.bf16 %v690_v57, %v686_v26  ;;  %v8988_v3 = vpack.c.bf16 %v691_v51, %v687_v4  ;;  %v698_v26 = vld [vmem:[#allocation8 + $0x328] sm:$0xff]  ;;  %v696_v57 = vld [vmem:[#allocation8 + $0x318] sm:$0xff]  ;;  %v8997_v45 = vpack.c.bf16 %v697_v31, %v693_v44  ;;  %v695_v4 = vld [vmem:[#allocation8 + $0x310] sm:$0xff] }
 0x188   :  { %v8995_v63 = vpack.c.bf16 %v700_v13, %v696_v57  ;;  %v699_v51 = vld [vmem:[#allocation8 + $0x330] sm:$0xff]  ;;  %v708_v57 = vld [vmem:[#allocation8 + $0x378] sm:$0xff]  ;;  %v701_v13 = vld [vmem:[#allocation8 + $0x340] sm:$0xff] }
 0x189   :  { %10932 = vst [vmem:[#allocation136_spill] sm:$0xff] %v8981_v30  ;;  %10935 = vst [vmem:[#allocation139_spill] sm:$0xff] %v8988_v3  ;;  %v705_v44 = vld [vmem:[#allocation8 + $0x360] sm:$0xff] }
 0x18a   :  { %5354 = vmatpush1.bf16.msra.mxu0 %v8973_v6  ;;  %5418 = vmatpush1.bf16.msra.mxu1 %v8976_v20  ;;  %v694_v20 = vld [vmem:[#allocation8 + $0x308] sm:$0xff]  ;;  %10937 = vst [vmem:[#allocation141_spill] sm:$0xff] %v8995_v63  ;;  %10938 = vst [vmem:[#allocation142_spill] sm:$0xff] %v8997_v45 }
 0x18b   :  { %5356 = vmatprep.subr.bf16.mxu0 %v8981_v30  ;;  %5420 = vmatprep.subr.bf16.mxu1 %v8983_v37  ;;  %v8993_v6 = vpack.c.bf16 %v698_v26, %v694_v20  ;;  %v9000_v37 = vpack.c.bf16 %v699_v51, %v695_v4  ;;  %v706_v20 = vld [vmem:[#allocation8 + $0x368] sm:$0xff]  ;;  %v704_v26 = vld [vmem:[#allocation8 + $0x358] sm:$0xff]  ;;  %v9009_v30 = vpack.c.bf16 %v705_v44, %v701_v13  ;;  %v703_v4 = vld [vmem:[#allocation8 + $0x350] sm:$0xff] }
 0x18c   :  { %v9007_v31 = vpack.c.bf16 %v708_v57, %v704_v26  ;;  %v707_v51 = vld [vmem:[#allocation8 + $0x370] sm:$0xff]  ;;  %v709_v26 = vld [vmem:[#allocation8 + $0x380] sm:$0xff] }
 0x18d   :  { %10936 = vst [vmem:[#allocation140_spill] sm:$0xff] %v8993_v6  ;;  %10939 = vst [vmem:[#allocation143_spill] sm:$0xff] %v9000_v37  ;;  %v713_v57 = vld [vmem:[#allocation8 + $0x3a0] sm:$0xff]  ;;  %v711_v13 = vld [vmem:[#allocation8 + $0x390] sm:$0xff] }
 0x18e   :  { %5358 = vmatpush1.bf16.msra.mxu0 %v8985_v41  ;;  %5422 = vmatpush1.bf16.msra.mxu1 %v8988_v3  ;;  %v702_v3 = vld [vmem:[#allocation8 + $0x348] sm:$0xff]  ;;  %10941 = vst [vmem:[#allocation145_spill] sm:$0xff] %v9007_v31  ;;  %10942 = vst [vmem:[#allocation146_spill] sm:$0xff] %v9009_v30  ;;  %v9021_v44 = vpack.c.bf16 %v713_v57, %v709_v26  ;;  %v723_v26 = vld [vmem:[#allocation8 + $0x3f0] sm:$0xff] }
 0x18f   :  { %5360 = vmatprep.subr.bf16.mxu0 %v8993_v6  ;;  %5424 = vmatprep.subr.bf16.mxu1 %v8995_v63  ;;  %v9005_v41 = vpack.c.bf16 %v706_v20, %v702_v3  ;;  %v710_v6 = vld [vmem:[#allocation8 + $0x388] sm:$0xff]  ;;  %v9018_v20 = vpack.c.bf16 %v716_v53, %v712_v40  ;;  %v720_v53 = vld [vmem:[#allocation8 + $0x3d8] sm:$0xff] }
 0x190   :  { %v714_v63 = vld [vmem:[#allocation8 + $0x3a8] sm:$0xff]  ;;  %10946 = vst [vmem:[#allocation150_spill] sm:$0xff] %v9021_v44  ;;  %v724_v40 = vld [vmem:[#allocation8 + $0x3f8] sm:$0xff] }
 0x191   :  { %10940 = vst [vmem:[#allocation144_spill] sm:$0xff] %v9005_v41  ;;  %v9016_v3 = vpack.c.bf16 %v714_v63, %v710_v6  ;;  %10945 = vst [vmem:[#allocation149_spill] sm:$0xff] %v9018_v20  ;;  %v717_v63 = vld [vmem:[#allocation8 + $0x3c0] sm:$0xff] }
 0x192   :  { %5362 = vmatpush1.bf16.msra.mxu0 %v8997_v45  ;;  %5426 = vmatpush1.bf16.msra.mxu1 %v9000_v37  ;;  %v9012_v45 = vpack.c.bf16 %v707_v51, %v703_v4  ;;  %v715_v4 = vld [vmem:[#allocation8 + $0x3b0] sm:$0xff]  ;;  %v718_v51 = vld [vmem:[#allocation8 + $0x3c8] sm:$0xff]  ;;  %v721_v37 = vld [vmem:[#allocation8 + $0x3e0] sm:$0xff] }
 0x193   :  { %5364 = vmatprep.subr.bf16.mxu0 %v9005_v41  ;;  %5428 = vmatprep.subr.bf16.mxu1 %v9007_v31  ;;  %10944 = vst [vmem:[#allocation148_spill] sm:$0xff] %v9016_v3  ;;  %v722_v41 = vld [vmem:[#allocation8 + $0x3e8] sm:$0xff]  ;;  %v9025_v31 = vpack.c.bf16 %v715_v4, %v711_v13  ;;  %v9032_v57 = vpack.c.bf16 %v721_v37, %v717_v63 }
 0x194   :  { %10943 = vst [vmem:[#allocation147_spill] sm:$0xff] %v9012_v45  ;;  %v9027_v6 = vpack.c.bf16 %v722_v41, %v718_v51  ;;  %v725_v41 = vld [vmem:[%s10515_s5] sm:$0xf] }
 0x195   :  { %10947 = vst [vmem:[#allocation151_spill] sm:$0xff] %v9025_v31  ;;  %10950 = vst [vmem:[#allocation154_spill] sm:$0xff] %v9032_v57  ;;  %v9047_v37 = vrot.slane %v725_v41, %v8819_v49 }
 0x196   :  { %5366 = vmatpush1.bf16.msra.mxu0 %v9009_v30  ;;  %5430 = vmatpush1.bf16.msra.mxu1 %v9012_v45  ;;  %10948 = vst [vmem:[#allocation152_spill] sm:$0xff] %v9027_v6  ;;  %v9029_v30 = vpack.c.bf16 %v724_v40, %v720_v53  ;;  %v719_v45 = vld [vmem:[#allocation8 + $0x3d0] sm:$0xff] }
 0x197   :  { %5368 = vmatprep.subr.bf16.mxu0 %v9016_v3  ;;  %5432 = vmatprep.subr.bf16.mxu1 %v9018_v20  ;;  %v9036_v13 = vpack.c.bf16 %v723_v26, %v719_v45  ;;  %10952 = vst [vmem:[#allocation156_spill] sm:$0xff] %v9047_v37  ;;  %v9050_v45 = vrot.slane %v725_v41, %v8824_v0 }
 0x198   :  { %10949 = vst [vmem:[#allocation153_spill] sm:$0xff] %v9029_v30 }
 0x199   :  { %10951 = vst [vmem:[#allocation155_spill] sm:$0xff] %v9036_v13  ;;  %10953 = vst [vmem:[#allocation157_spill] sm:$0xff] %v9050_v45 }
 0x19a   :  { %5370 = vmatpush1.bf16.msra.mxu0 %v9021_v44  ;;  %5434 = vmatpush1.bf16.msra.mxu1 %v9025_v31 }
 0x19b   :  { %5372 = vmatprep.subr.bf16.mxu0 %v9027_v6  ;;  %5436 = vmatprep.subr.bf16.mxu1 %v9029_v30 }
 0x19e   :  { %5374 = vmatpush1.bf16.msra.mxu0 %v9032_v57  ;;  %5438 = vmatpush1.bf16.msra.mxu1 %v9036_v13  ;;  %v9055_v13 = vrot.slane %v725_v41, %v8832_v16  ;;  %v9058_v57 = vrot.slane %v725_v41, %v8839_v48 }
 0x19f   :  { %5440 = vmatprep.subr.bf16.mxu0 %v8468_v17  ;;  %5472 = vmatprep.subr.bf16.mxu1 %v8470_v21 }
 0x234   :  { %v1009_v4 = vpop.f32.mrb[16].mxu0  ;;  %v1080_v51 = vpop.f32.mrb[16].mxu1 }
 0x235   :  { %v1010_v53 = vadd.f32 %v1009_v4, %v9047_v37  ;;  %v1011_v40 = vpop.f32.mrb[17].mxu0  ;;  %v1082_v63 = vpop.f32.mrb[17].mxu1  ;;  %v1081_v30 = vadd.f32 %v1080_v51, %v9055_v13 }
 0x236   :  { %v1012_v26 = vadd.f32 %v1011_v40, %v9050_v45  ;;  %v1083_v6 = vadd.f32 %v1082_v63, %v9058_v57  ;;  %v10959_v63 = vld [vmem:[#allocation32_spill] sm:$0xff] }
 0x237   :  { %v4989_v17 = vmul.f32 -1.442695, %v1010_v53  ;;  %v4991_v31 = vmul.f32 -1.442695, %v1081_v30 }
 0x238   :  { %v4990_v21 = vmul.f32 -1.442695, %v1012_v26 }
 0x239   :  { %7795 = vpow2.f32 %v4989_v17 }
 0x23a   :  { %7797 = vpow2.f32 %v4990_v21 }
 0x23b   :  { %7799 = vtanh.f32 %v1083_v6 }
 0x23c   :  { %7801 = vpow2.f32 %v4991_v31  ;;  %v10954_v31 = vld [vmem:[#allocation27_spill] sm:$0xff] }
 0x243   :  { %v7796_v4 = vpop.eup %7795 }
 0x244   :  { %v1094_v37 = vadd.f32 1.0, %v7796_v4  ;;  %v7798_v44 = vpop.eup %7797  ;;  %v10960_v4 = vld [vmem:[#allocation33_spill] sm:$0xff] }
 0x245   :  { %v1095_v53 = vadd.f32 1.0, %v7798_v44  ;;  %v7800_v17 = vpop.eup %7799  ;;  %v10956_v44 = vld [vmem:[#allocation29_spill] sm:$0xff] }
 0x246   :  { %7803 = vrcp.f32 %v1094_v37  ;;  %v7802_v40 = vpop.eup %7801  ;;  %v10957_v37 = vld [vmem:[#allocation30_spill] sm:$0xff] }
 0x247   :  { %7805 = vrcp.f32 %v1095_v53  ;;  %v1096_v41 = vadd.f32 1.0, %v7802_v40  ;;  %v10962_v53 = vld [vmem:[#allocation35_spill] sm:$0xff]  ;;  %v10964_v40 = vld [vmem:[#allocation37_spill] sm:$0xff] }
 0x249   :  { %7807 = vrcp.f32 %v1096_v41  ;;  %v10967_v41 = vld [vmem:[#allocation40_spill] sm:$0xff] }
 0x250   :  { %v7804_v26 = vpop.eup %7803 }
 0x251   :  { %v1105_v21 = vmul.f32 %v7804_v26, %v7800_v17  ;;  %v7806_v45 = vpop.eup %7805  ;;  %v10963_v17 = vld [vmem:[#allocation36_spill] sm:$0xff]  ;;  %v10965_v26 = vld [vmem:[#allocation38_spill] sm:$0xff] }
 0x252   :  { %v1104_v20 = vmul.f32 0.0, %v7806_v45  ;;  %v10958_v45 = vld [vmem:[#allocation31_spill] sm:$0xff] }
 0x253   :  { %v7808_v30 = vpop.eup %7807 }
 0x254   :  { %v9062_v3 = vadd.f32 %v1105_v21, %v1104_v20  ;;  %v10955_v20 = vld [vmem:[#allocation28_spill] sm:$0xff]  ;;  %v10966_v21 = vld [vmem:[#allocation39_spill] sm:$0xff] }
 0x256   :  { %7809 = vtanh.f32 %v9062_v3 }
 0x260   :  { %v7810_v51 = vpop.eup %7809 }
 0x261   :  { %v1108_v6 = vmul.f32 %v7810_v51, %v7808_v30  ;;  %v10968_v30 = vld [vmem:[#allocation41_spill] sm:$0xff]  ;;  %v10969_v51 = vld [vmem:[#allocation42_spill] sm:$0xff] }
 0x263   :  { %1174 = vmatmul.mubr.f32.vlgmr.msra.gmra.mrb[18].mxu0 %v1108_v6  ;;  %1245 = vmatmul.mubr.f32.vlgmr.msra.gmra.mrb[18].mxu1 %v1108_v6 }
 0x264   :  { %5442 = vmatpush1.bf16.msra.mxu0 %v8472_v22  ;;  %5474 = vmatpush1.bf16.msra.mxu1 %v8475_v25 }
 0x265   :  { %5444 = vmatprep.subr.bf16.mxu0 %v8479_v29  ;;  %5476 = vmatprep.subr.bf16.mxu1 %v8486_v34 }
 0x266   :  { %1343 = vmatprep.mubr.f32.mxu0 %v10897_v23  ;;  %1414 = vmatprep.mubr.f32.mxu1 %v10897_v23 }
 0x268   :  { %5446 = vmatpush1.bf16.msra.mxu0 %v8488_v35  ;;  %5478 = vmatpush1.bf16.msra.mxu1 %v8492_v38 }
 0x269   :  { %5448 = vmatprep.subr.bf16.mxu0 %v8496_v42  ;;  %5480 = vmatprep.subr.bf16.mxu1 %v8503_v47 }
 0x26c   :  { %5450 = vmatpush1.bf16.msra.mxu0 %v8507_v50  ;;  %5482 = vmatpush1.bf16.msra.mxu1 %v8511_v54 }
 0x26d   :  { %5452 = vmatprep.subr.bf16.mxu0 %v8515_v58  ;;  %5484 = vmatprep.subr.bf16.mxu1 %v8519_v61 }
 0x270   :  { %5454 = vmatpush1.bf16.msra.mxu0 %v8526_v2  ;;  %5486 = vmatpush1.bf16.msra.mxu1 %v8530_v5 }
 0x271   :  { %5456 = vmatprep.subr.bf16.mxu0 %v8534_v8  ;;  %5488 = vmatprep.subr.bf16.mxu1 %v8538_v11 }
 0x274   :  { %5458 = vmatpush1.bf16.msra.mxu0 %v8545_v15  ;;  %5490 = vmatpush1.bf16.msra.mxu1 %v8549_v19 }
 0x275   :  { %5460 = vmatprep.subr.bf16.mxu0 %v8553_v24  ;;  %5492 = vmatprep.subr.bf16.mxu1 %v8557_v28 }
 0x278   :  { %5462 = vmatpush1.bf16.msra.mxu0 %v8564_v33  ;;  %5494 = vmatpush1.bf16.msra.mxu1 %v8568_v39 }
 0x279   :  { %5464 = vmatprep.subr.bf16.mxu0 %v8572_v43  ;;  %5496 = vmatprep.subr.bf16.mxu1 %v8576_v46 }
 0x27c   :  { %5466 = vmatpush1.bf16.msra.mxu0 %v8583_v52  ;;  %5498 = vmatpush1.bf16.msra.mxu1 %v8587_v56 }
 0x27d   :  { %5468 = vmatprep.subr.bf16.mxu0 %v8591_v60  ;;  %5500 = vmatprep.subr.bf16.mxu1 %v8595_v1 }
 0x280   :  { %5470 = vmatpush1.bf16.msra.mxu0 %v8602_v7  ;;  %5502 = vmatpush1.bf16.msra.mxu1 %v8606_v12 }
 0x281   :  { %5504 = vmatprep.subr.bf16.mxu0 %v8610_v18  ;;  %5568 = vmatprep.subr.bf16.mxu1 %v8614_v27 }
 0x283   :  { %1344 = vmatmul.mubr.f32.vlgmr.msra.gmra.mrb[2].mxu0 %v8853_v10  ;;  %1415 = vmatmul.mubr.f32.vlgmr.msra.gmra.mrb[2].mxu1 %v8853_v10  ;;  %v10961_v10 = vld [vmem:[#allocation34_spill] sm:$0xff] }
 0x284   :  { %1513 = vmatprep.mubr.f32.mxu0 %v1108_v6  ;;  %1584 = vmatprep.mubr.f32.mxu1 %v1108_v6  ;;  %v10970_v6 = vld [vmem:[#allocation43_spill] sm:$0xff] }
 0x285   :  { %5506 = vmatpush1.bf16.msra.mxu0 %v8618_v32  ;;  %5570 = vmatpush1.bf16.msra.mxu1 %v8622_v36 }
 0x286   :  { %5508 = vmatprep.subr.bf16.mxu0 %v10954_v31  ;;  %5572 = vmatprep.subr.bf16.mxu1 %v10955_v20 }
 0x289   :  { %5510 = vmatpush1.bf16.msra.mxu0 %v10956_v44  ;;  %5574 = vmatpush1.bf16.msra.mxu1 %v10957_v37 }
 0x28a   :  { %5512 = vmatprep.subr.bf16.mxu0 %v10958_v45  ;;  %5576 = vmatprep.subr.bf16.mxu1 %v10959_v63 }
 0x28d   :  { %5514 = vmatpush1.bf16.msra.mxu0 %v10960_v4  ;;  %5578 = vmatpush1.bf16.msra.mxu1 %v10961_v10  ;;  %v10971_v4 = vld [vmem:[#allocation44_spill] sm:$0xff]  ;;  %v10972_v10 = vld [vmem:[#allocation45_spill] sm:$0xff] }
 0x28e   :  { %5516 = vmatprep.subr.bf16.mxu0 %v10962_v53  ;;  %5580 = vmatprep.subr.bf16.mxu1 %v10963_v17  ;;  %v10973_v53 = vld [vmem:[#allocation46_spill] sm:$0xff]  ;;  %v10974_v17 = vld [vmem:[#allocation47_spill] sm:$0xff] }
 0x291   :  { %5518 = vmatpush1.bf16.msra.mxu0 %v10964_v40  ;;  %5582 = vmatpush1.bf16.msra.mxu1 %v10965_v26  ;;  %v10975_v40 = vld [vmem:[#allocation48_spill] sm:$0xff]  ;;  %v10976_v26 = vld [vmem:[#allocation49_spill] sm:$0xff] }
 0x292   :  { %5520 = vmatprep.subr.bf16.mxu0 %v10966_v21  ;;  %5584 = vmatprep.subr.bf16.mxu1 %v10967_v41  ;;  %v10977_v21 = vld [vmem:[#allocation50_spill] sm:$0xff]  ;;  %v10978_v41 = vld [vmem:[#allocation51_spill] sm:$0xff] }
 0x295   :  { %5522 = vmatpush1.bf16.msra.mxu0 %v10968_v30  ;;  %5586 = vmatpush1.bf16.msra.mxu1 %v10969_v51  ;;  %v10979_v30 = vld [vmem:[#allocation52_spill] sm:$0xff]  ;;  %v10980_v51 = vld [vmem:[#allocation53_spill] sm:$0xff] }
 0x296   :  { %5524 = vmatprep.subr.bf16.mxu0 %v10970_v6  ;;  %5588 = vmatprep.subr.bf16.mxu1 %v10971_v4  ;;  %v10981_v6 = vld [vmem:[#allocation54_spill] sm:$0xff]  ;;  %v10982_v4 = vld [vmem:[#allocation55_spill] sm:$0xff] }
 0x299   :  { %5526 = vmatpush1.bf16.msra.mxu0 %v10972_v10  ;;  %5590 = vmatpush1.bf16.msra.mxu1 %v10973_v53  ;;  %v10983_v10 = vld [vmem:[#allocation56_spill] sm:$0xff]  ;;  %v10984_v53 = vld [vmem:[#allocation57_spill] sm:$0xff] }
 0x29a   :  { %5528 = vmatprep.subr.bf16.mxu0 %v10974_v17  ;;  %5592 = vmatprep.subr.bf16.mxu1 %v10975_v40  ;;  %v10985_v17 = vld [vmem:[#allocation58_spill] sm:$0xff]  ;;  %v10986_v40 = vld [vmem:[#allocation59_spill] sm:$0xff] }
 0x29d   :  { %5530 = vmatpush1.bf16.msra.mxu0 %v10976_v26  ;;  %5594 = vmatpush1.bf16.msra.mxu1 %v10977_v21  ;;  %v10987_v26 = vld [vmem:[#allocation60_spill] sm:$0xff]  ;;  %v10988_v21 = vld [vmem:[#allocation61_spill] sm:$0xff] }
 0x29e   :  { %5532 = vmatprep.subr.bf16.mxu0 %v10978_v41  ;;  %5596 = vmatprep.subr.bf16.mxu1 %v10979_v30  ;;  %v10989_v41 = vld [vmem:[#allocation62_spill] sm:$0xff]  ;;  %v10990_v30 = vld [vmem:[#allocation63_spill] sm:$0xff] }
 0x2a1   :  { %5534 = vmatpush1.bf16.msra.mxu0 %v10980_v51  ;;  %5598 = vmatpush1.bf16.msra.mxu1 %v10981_v6  ;;  %v10991_v51 = vld [vmem:[#allocation64_spill] sm:$0xff]  ;;  %v10992_v6 = vld [vmem:[#allocation65_spill] sm:$0xff] }
 0x2a2   :  { %5536 = vmatprep.subr.bf16.mxu0 %v10982_v4  ;;  %5600 = vmatprep.subr.bf16.mxu1 %v10983_v10  ;;  %v10993_v4 = vld [vmem:[#allocation66_spill] sm:$0xff]  ;;  %v10994_v10 = vld [vmem:[#allocation67_spill] sm:$0xff] }
 0x2a5   :  { %5538 = vmatpush1.bf16.msra.mxu0 %v10984_v53  ;;  %5602 = vmatpush1.bf16.msra.mxu1 %v10985_v17  ;;  %v10995_v53 = vld [vmem:[#allocation68_spill] sm:$0xff]  ;;  %v10996_v17 = vld [vmem:[#allocation69_spill] sm:$0xff] }
 0x2a6   :  { %5540 = vmatprep.subr.bf16.mxu0 %v10986_v40  ;;  %5604 = vmatprep.subr.bf16.mxu1 %v10987_v26  ;;  %v10997_v40 = vld [vmem:[#allocation70_spill] sm:$0xff]  ;;  %v10998_v26 = vld [vmem:[#allocation71_spill] sm:$0xff] }
 0x2a9   :  { %5542 = vmatpush1.bf16.msra.mxu0 %v10988_v21  ;;  %5606 = vmatpush1.bf16.msra.mxu1 %v10989_v41  ;;  %v10999_v21 = vld [vmem:[#allocation72_spill] sm:$0xff]  ;;  %v11000_v41 = vld [vmem:[#allocation73_spill] sm:$0xff] }
 0x2aa   :  { %5544 = vmatprep.subr.bf16.mxu0 %v10990_v30  ;;  %5608 = vmatprep.subr.bf16.mxu1 %v10991_v51  ;;  %v11001_v30 = vld [vmem:[#allocation74_spill] sm:$0xff]  ;;  %v11002_v51 = vld [vmem:[#allocation75_spill] sm:$0xff] }
 0x2ad   :  { %5546 = vmatpush1.bf16.msra.mxu0 %v10992_v6  ;;  %5610 = vmatpush1.bf16.msra.mxu1 %v10993_v4  ;;  %v11003_v6 = vld [vmem:[#allocation76_spill] sm:$0xff]  ;;  %v11004_v4 = vld [vmem:[#allocation77_spill] sm:$0xff] }
 0x2ae   :  { %5548 = vmatprep.subr.bf16.mxu0 %v10994_v10  ;;  %5612 = vmatprep.subr.bf16.mxu1 %v10995_v53  ;;  %v11005_v10 = vld [vmem:[#allocation78_spill] sm:$0xff]  ;;  %v11006_v53 = vld [vmem:[#allocation79_spill] sm:$0xff] }
 0x2b1   :  { %5550 = vmatpush1.bf16.msra.mxu0 %v10996_v17  ;;  %5614 = vmatpush1.bf16.msra.mxu1 %v10997_v40  ;;  %v11007_v17 = vld [vmem:[#allocation80_spill] sm:$0xff]  ;;  %v11008_v40 = vld [vmem:[#allocation81_spill] sm:$0xff] }
 0x2b2   :  { %5552 = vmatprep.subr.bf16.mxu0 %v10998_v26  ;;  %5616 = vmatprep.subr.bf16.mxu1 %v10999_v21  ;;  %v11009_v26 = vld [vmem:[#allocation82_spill] sm:$0xff]  ;;  %v11010_v21 = vld [vmem:[#allocation83_spill] sm:$0xff] }
 0x2b5   :  { %5554 = vmatpush1.bf16.msra.mxu0 %v11000_v41  ;;  %5618 = vmatpush1.bf16.msra.mxu1 %v11001_v30  ;;  %v11011_v41 = vld [vmem:[#allocation84_spill] sm:$0xff]  ;;  %v11012_v30 = vld [vmem:[#allocation85_spill] sm:$0xff] }
 0x2b6   :  { %5556 = vmatprep.subr.bf16.mxu0 %v11002_v51  ;;  %5620 = vmatprep.subr.bf16.mxu1 %v11003_v6  ;;  %v11013_v51 = vld [vmem:[#allocation86_spill] sm:$0xff]  ;;  %v11014_v6 = vld [vmem:[#allocation87_spill] sm:$0xff] }
 0x2b9   :  { %5558 = vmatpush1.bf16.msra.mxu0 %v11004_v4  ;;  %5622 = vmatpush1.bf16.msra.mxu1 %v11005_v10  ;;  %v11015_v4 = vld [vmem:[#allocation88_spill] sm:$0xff] }
 0x2ba   :  { %5560 = vmatprep.subr.bf16.mxu0 %v11006_v53  ;;  %5624 = vmatprep.subr.bf16.mxu1 %v11007_v17  ;;  %v747_v17 = vld [vmem:[%s10517_s7] sm:$0xf] }
 0x2bb   :  { %v9177_v63 = vrot.slane %v747_v17, %v8839_v48  ;;  %v11019_v48 = vld [vmem:[#allocation89_spill] sm:$0xff] }
 0x2bd   :  { %5562 = vmatpush1.bf16.msra.mxu0 %v11008_v40  ;;  %5626 = vmatpush1.bf16.msra.mxu1 %v11009_v26  ;;  %v9169_v40 = vrot.slane %v747_v17, %v8819_v49  ;;  %v9172_v26 = vrot.slane %v747_v17, %v8824_v0  ;;  %11018 = vst [vmem:[#allocation160_spill] sm:$0xff] %v9177_v63 }
 0x2be   :  { %5564 = vmatprep.subr.bf16.mxu0 %v11010_v21  ;;  %5628 = vmatprep.subr.bf16.mxu1 %v11011_v41 }
 0x2bf   :  { %11016 = vst [vmem:[#allocation158_spill] sm:$0xff] %v9169_v40  ;;  %11017 = vst [vmem:[#allocation159_spill] sm:$0xff] %v9172_v26 }
 0x2c1   :  { %5566 = vmatpush1.bf16.msra.mxu0 %v11012_v30  ;;  %5630 = vmatpush1.bf16.msra.mxu1 %v11013_v51 }
 0x2c2   :  { %5632 = vmatprep.subr.bf16.mxu0 %v11014_v6  ;;  %5696 = vmatprep.subr.bf16.mxu1 %v11015_v4 }
 0x336   :  { %v1175_v21 = vpop.f32.mrb[18].mxu0  ;;  %v1246_v41 = vpop.f32.mrb[18].mxu1 }
 0x337   :  { %v1176_v30 = vadd.f32 %v1175_v21, %v9169_v40  ;;  %v1177_v53 = vpop.f32.mrb[19].mxu0  ;;  %v1248_v51 = vpop.f32.mrb[19].mxu1 }
 0x338   :  { %v1178_v6 = vadd.f32 %v1177_v53, %v9172_v26  ;;  %v1249_v49 = vadd.f32 %v1248_v51, %v9177_v63  ;;  %v11020_v63 = vld [vmem:[#allocation90_spill] sm:$0xff] }
 0x339   :  { %v4992_v10 = vmul.f32 -1.442695, %v1176_v30 }
 0x33a   :  { %v4993_v4 = vmul.f32 -1.442695, %v1178_v6 }
 0x33b   :  { %7811 = vpow2.f32 %v4992_v10 }
 0x33c   :  { %7813 = vpow2.f32 %v4993_v4 }
 0x33d   :  { %7815 = vtanh.f32 %v1249_v49 }
 0x345   :  { %v7812_v45 = vpop.eup %7811 }
 0x346   :  { %v1260_v0 = vadd.f32 1.0, %v7812_v45  ;;  %v7814_v37 = vpop.eup %7813 }
 0x347   :  { %v1261_v44 = vadd.f32 1.0, %v7814_v37  ;;  %v7816_v21 = vpop.eup %7815  ;;  %v11021_v37 = vld [vmem:[#allocation91_spill] sm:$0xff] }
 0x348   :  { %7817 = vrcp.f32 %v1260_v0 }
 0x349   :  { %7819 = vrcp.f32 %v1261_v44  ;;  %v9185_v44 = vrot.slane %v747_v17, %v8832_v16 }
 0x34b   :  { %v1247_v0 = vadd.f32 %v1246_v41, %v9185_v44 }
 0x352   :  { %v7818_v40 = vpop.eup %7817 }
 0x353   :  { %v1271_v20 = vmul.f32 %v7818_v40, %v7816_v21  ;;  %v7820_v53 = vpop.eup %7819  ;;  %v11022_v21 = vld [vmem:[#allocation92_spill] sm:$0xff] }
 0x354   :  { %v1270_v30 = vmul.f32 0.0, %v7820_v53 }
 0x356   :  { %v1345_v6 = vpop.f32.mrb[2].mxu0  ;;  %v1416_v10 = vpop.f32.mrb[2].mxu1  ;;  %v9180_v4 = vadd.f32 %v1271_v20, %v1270_v30 }
 0x357   :  { %v7705_v26 = vadd.f32 %v1345_v6, %v11019_v48  ;;  %v1347_v31 = vpop.f32.mrb[3].mxu0  ;;  %v1418_v51 = vpop.f32.mrb[3].mxu1  ;;  %v7721_v40 = vadd.f32 %v1416_v10, %v11021_v37  ;;  %v4994_v6 = vmul.f32 -1.442695, %v1247_v0 }
 0x358   :  { %v7706_v45 = vadd.f32 %v1347_v31, %v11020_v63  ;;  %v7722_v20 = vadd.f32 %v1418_v51, %v11022_v21 }
 0x359   :  { %v4995_v36 = vmul.f32 -1.442695, %v7705_v26  ;;  %v4997_v53 = vmul.f32 -1.442695, %v7721_v40 }
 0x35a   :  { %v4996_v49 = vmul.f32 -1.442695, %v7706_v45 }
 0x35b   :  { %7821 = vpow2.f32 %v4995_v36 }
 0x35c   :  { %7823 = vpow2.f32 %v4996_v49  ;;  %v11023_v49 = vld [vmem:[#allocation93_spill] sm:$0xff] }
 0x35d   :  { %7825 = vtanh.f32 %v7722_v20 }
 0x35e   :  { %7827 = vpow2.f32 %v4997_v53 }
 0x365   :  { %v7822_v30 = vpop.eup %7821 }
 0x366   :  { %v1434_v48 = vadd.f32 1.0, %v7822_v30  ;;  %v7824_v32 = vpop.eup %7823 }
 0x367   :  { %v1435_v31 = vadd.f32 1.0, %v7824_v32  ;;  %v7826_v36 = vpop.eup %7825 }
 0x368   :  { %7829 = vrcp.f32 %v1434_v48  ;;  %v7828_v16 = vpop.eup %7827 }
 0x369   :  { %7831 = vpow2.f32 %v4994_v6  ;;  %v1436_v41 = vadd.f32 1.0, %v7828_v16  ;;  %v11024_v6 = vld [vmem:[#allocation94_spill] sm:$0xff]  ;;  %v11027_v16 = vld [vmem:[#allocation97_spill] sm:$0xff] }
 0x36a   :  { %7833 = vrcp.f32 %v1435_v31  ;;  %v11025_v31 = vld [vmem:[#allocation95_spill] sm:$0xff] }
 0x36b   :  { %7835 = vtanh.f32 %v9180_v4 }
 0x36c   :  { %7837 = vrcp.f32 %v1436_v41  ;;  %v11032_v41 = vld [vmem:[#allocation107_spill] sm:$0xff] }
 0x372   :  { %v7830_v17 = vpop.eup %7829 }
 0x373   :  { %v7832_v26 = vpop.eup %7831  ;;  %v1445_v10 = vmul.f32 %v7830_v17, %v7826_v36  ;;  %v11026_v36 = vld [vmem:[#allocation96_spill] sm:$0xff]  ;;  %v11028_v17 = vld [vmem:[#allocation98_spill] sm:$0xff] }
 0x374   :  { %v7834_v45 = vpop.eup %7833  ;;  %v1262_v40 = vadd.f32 1.0, %v7832_v26  ;;  %v11029_v26 = vld [vmem:[#allocation99_spill] sm:$0xff] }
 0x375   :  { %v1444_v51 = vmul.f32 %v7834_v45, %v11023_v49  ;;  %v7836_v32 = vpop.eup %7835  ;;  %v11031_v45 = vld [vmem:[#allocation106_spill] sm:$0xff]  ;;  %v11033_v49 = vld [vmem:[#allocation108_spill] sm:$0xff] }
 0x376   :  { %v7838_v48 = vpop.eup %7837 }
 0x377   :  { %v9191_v21 = vadd.f32 %v1445_v10, %v1444_v51  ;;  %v11030_v10 = vld [vmem:[#allocation105_spill] sm:$0xff] }
 0x378   :  { %v11034_v51 = vld [vmem:[#allocation109_spill] sm:$0xff] }
 0x379   :  { %7839 = vtanh.f32 %v9191_v21 }
 0x37a   :  { %7841 = vrcp.f32 %v1262_v40  ;;  %v11035_v40 = vld [vmem:[#allocation110_spill] sm:$0xff] }
 0x383   :  { %v7840_v0 = vpop.eup %7839 }
 0x384   :  { %v7842_v20 = vpop.eup %7841  ;;  %v9195_v53 = vmul.f32 %v7840_v0, %v7838_v48  ;;  %v11037_v48 = vld [vmem:[#allocation112_spill] sm:$0xff]  ;;  %v11038_v0 = vld [vmem:[#allocation113_spill] sm:$0xff] }
 0x385   :  { %v1274_v30 = vmul.f32 %v7842_v20, %v7836_v32  ;;  %v11036_v32 = vld [vmem:[#allocation111_spill] sm:$0xff]  ;;  %v11039_v20 = vld [vmem:[#allocation114_spill] sm:$0xff] }
 0x386   :  { %1514 = vmatmul.mubr.f32.vlgmr.msra.gmra.mrb[20].mxu0 %v9195_v53  ;;  %1585 = vmatmul.mubr.f32.vlgmr.msra.gmra.mrb[20].mxu1 %v9195_v53 }
 0x387   :  { %1679 = vmatprep.mubr.f32.mxu0 %v1274_v30  ;;  %1750 = vmatprep.mubr.f32.mxu1 %v1274_v30  ;;  %v11040_v30 = vld [vmem:[#allocation115_spill] sm:$0xff] }
 0x388   :  { %5634 = vmatpush1.bf16.msra.mxu0 %v11024_v6  ;;  %5698 = vmatpush1.bf16.msra.mxu1 %v11025_v31 }
 0x389   :  { %5636 = vmatprep.subr.bf16.mxu0 %v11026_v36  ;;  %5700 = vmatprep.subr.bf16.mxu1 %v11027_v16 }
 0x38c   :  { %5638 = vmatpush1.bf16.msra.mxu0 %v11028_v17  ;;  %5702 = vmatpush1.bf16.msra.mxu1 %v11029_v26 }
 0x38d   :  { %5640 = vmatprep.subr.bf16.mxu0 %v8869_v14  ;;  %5704 = vmatprep.subr.bf16.mxu1 %v8871_v9 }
 0x390   :  { %5642 = vmatpush1.bf16.msra.mxu0 %v8877_v55  ;;  %5706 = vmatpush1.bf16.msra.mxu1 %v8879_v59  ;;  %v11084_v55 = vld [vmem:[#allocation157_spill] sm:$0xff] }
 0x391   :  { %5644 = vmatprep.subr.bf16.mxu0 %v8883_v62  ;;  %5708 = vmatprep.subr.bf16.mxu1 %v11030_v10  ;;  %v11041_v10 = vld [vmem:[#allocation116_spill] sm:$0xff] }
 0x392   :  { %v11083_v62 = vld [vmem:[#allocation156_spill] sm:$0xff] }
 0x394   :  { %5646 = vmatpush1.bf16.msra.mxu0 %v11031_v45  ;;  %5710 = vmatpush1.bf16.msra.mxu1 %v11032_v41  ;;  %v11042_v45 = vld [vmem:[#allocation117_spill] sm:$0xff]  ;;  %v11043_v41 = vld [vmem:[#allocation118_spill] sm:$0xff] }
 0x395   :  { %5648 = vmatprep.subr.bf16.mxu0 %v11033_v49  ;;  %5712 = vmatprep.subr.bf16.mxu1 %v11034_v51  ;;  %v11044_v49 = vld [vmem:[#allocation119_spill] sm:$0xff]  ;;  %v11045_v51 = vld [vmem:[#allocation120_spill] sm:$0xff] }
 0x398   :  { %5650 = vmatpush1.bf16.msra.mxu0 %v11035_v40  ;;  %5714 = vmatpush1.bf16.msra.mxu1 %v11036_v32  ;;  %v11046_v40 = vld [vmem:[#allocation121_spill] sm:$0xff]  ;;  %v11047_v32 = vld [vmem:[#allocation122_spill] sm:$0xff] }
 0x399   :  { %5652 = vmatprep.subr.bf16.mxu0 %v11037_v48  ;;  %5716 = vmatprep.subr.bf16.mxu1 %v11038_v0  ;;  %v11048_v48 = vld [vmem:[#allocation123_spill] sm:$0xff]  ;;  %v11049_v0 = vld [vmem:[#allocation124_spill] sm:$0xff] }
 0x39c   :  { %5654 = vmatpush1.bf16.msra.mxu0 %v11039_v20  ;;  %5718 = vmatpush1.bf16.msra.mxu1 %v11040_v30  ;;  %v11050_v20 = vld [vmem:[#allocation125_spill] sm:$0xff]  ;;  %v11051_v30 = vld [vmem:[#allocation126_spill] sm:$0xff] }
 0x39d   :  { %5656 = vmatprep.subr.bf16.mxu0 %v11041_v10  ;;  %5720 = vmatprep.subr.bf16.mxu1 %v11042_v45  ;;  %v11052_v10 = vld [vmem:[#allocation127_spill] sm:$0xff]  ;;  %v11053_v45 = vld [vmem:[#allocation128_spill] sm:$0xff] }
 0x3a0   :  { %5658 = vmatpush1.bf16.msra.mxu0 %v11043_v41  ;;  %5722 = vmatpush1.bf16.msra.mxu1 %v11044_v49  ;;  %v11054_v41 = vld [vmem:[#allocation129_spill] sm:$0xff]  ;;  %v11055_v49 = vld [vmem:[#allocation130_spill] sm:$0xff] }
 0x3a1   :  { %5660 = vmatprep.subr.bf16.mxu0 %v11045_v51  ;;  %5724 = vmatprep.subr.bf16.mxu1 %v11046_v40  ;;  %v11056_v51 = vld [vmem:[#allocation131_spill] sm:$0xff]  ;;  %v11057_v40 = vld [vmem:[#allocation132_spill] sm:$0xff] }
 0x3a4   :  { %5662 = vmatpush1.bf16.msra.mxu0 %v11047_v32  ;;  %5726 = vmatpush1.bf16.msra.mxu1 %v11048_v48  ;;  %v11058_v32 = vld [vmem:[#allocation133_spill] sm:$0xff]  ;;  %v11059_v48 = vld [vmem:[#allocation134_spill] sm:$0xff] }
 0x3a5   :  { %5664 = vmatprep.subr.bf16.mxu0 %v11049_v0  ;;  %5728 = vmatprep.subr.bf16.mxu1 %v11050_v20  ;;  %v11060_v0 = vld [vmem:[#allocation135_spill] sm:$0xff]  ;;  %v11061_v20 = vld [vmem:[#allocation136_spill] sm:$0xff] }
 0x3a8   :  { %5666 = vmatpush1.bf16.msra.mxu0 %v11051_v30  ;;  %5730 = vmatpush1.bf16.msra.mxu1 %v11052_v10  ;;  %v11062_v30 = vld [vmem:[#allocation137_spill] sm:$0xff]  ;;  %v11063_v10 = vld [vmem:[#allocation138_spill] sm:$0xff] }
 0x3a9   :  { %5668 = vmatprep.subr.bf16.mxu0 %v11053_v45  ;;  %5732 = vmatprep.subr.bf16.mxu1 %v11054_v41  ;;  %v11064_v45 = vld [vmem:[#allocation139_spill] sm:$0xff]  ;;  %v11065_v41 = vld [vmem:[#allocation140_spill] sm:$0xff] }
 0x3ac   :  { %5670 = vmatpush1.bf16.msra.mxu0 %v11055_v49  ;;  %5734 = vmatpush1.bf16.msra.mxu1 %v11056_v51  ;;  %v11066_v49 = vld [vmem:[#allocation141_spill] sm:$0xff]  ;;  %v11067_v51 = vld [vmem:[#allocation142_spill] sm:$0xff] }
 0x3ad   :  { %5672 = vmatprep.subr.bf16.mxu0 %v11057_v40  ;;  %5736 = vmatprep.subr.bf16.mxu1 %v11058_v32  ;;  %v11068_v40 = vld [vmem:[#allocation143_spill] sm:$0xff]  ;;  %v11069_v32 = vld [vmem:[#allocation144_spill] sm:$0xff] }
 0x3b0   :  { %5674 = vmatpush1.bf16.msra.mxu0 %v11059_v48  ;;  %5738 = vmatpush1.bf16.msra.mxu1 %v11060_v0  ;;  %v11070_v48 = vld [vmem:[#allocation145_spill] sm:$0xff]  ;;  %v11071_v0 = vld [vmem:[#allocation146_spill] sm:$0xff] }
 0x3b1   :  { %5676 = vmatprep.subr.bf16.mxu0 %v11061_v20  ;;  %5740 = vmatprep.subr.bf16.mxu1 %v11062_v30  ;;  %v11072_v20 = vld [vmem:[#allocation147_spill] sm:$0xff]  ;;  %v11073_v30 = vld [vmem:[#allocation148_spill] sm:$0xff] }
 0x3b4   :  { %5678 = vmatpush1.bf16.msra.mxu0 %v11063_v10  ;;  %5742 = vmatpush1.bf16.msra.mxu1 %v11064_v45  ;;  %v11074_v10 = vld [vmem:[#allocation149_spill] sm:$0xff]  ;;  %v11075_v45 = vld [vmem:[#allocation150_spill] sm:$0xff] }
 0x3b5   :  { %5680 = vmatprep.subr.bf16.mxu0 %v11065_v41  ;;  %5744 = vmatprep.subr.bf16.mxu1 %v11066_v49  ;;  %v11076_v41 = vld [vmem:[#allocation151_spill] sm:$0xff]  ;;  %v11077_v49 = vld [vmem:[#allocation152_spill] sm:$0xff] }
 0x3b8   :  { %5682 = vmatpush1.bf16.msra.mxu0 %v11067_v51  ;;  %5746 = vmatpush1.bf16.msra.mxu1 %v11068_v40  ;;  %v11078_v51 = vld [vmem:[#allocation153_spill] sm:$0xff]  ;;  %v11079_v40 = vld [vmem:[#allocation154_spill] sm:$0xff] }
 0x3b9   :  { %5684 = vmatprep.subr.bf16.mxu0 %v11069_v32  ;;  %5748 = vmatprep.subr.bf16.mxu1 %v11070_v48  ;;  %v11080_v32 = vld [vmem:[#allocation155_spill] sm:$0xff]  ;;  %v11081_v48 = vld [vmem:[#allocation17_spill] sm:$0xff] }
 0x3bc   :  { %5686 = vmatpush1.bf16.msra.mxu0 %v11071_v0  ;;  %5750 = vmatpush1.bf16.msra.mxu1 %v11072_v20  ;;  %v11082_v0 = vld [vmem:[#allocation18_spill] sm:$0xff] }
 0x3bd   :  { %5688 = vmatprep.subr.bf16.mxu0 %v11073_v30  ;;  %5752 = vmatprep.subr.bf16.mxu1 %v11074_v10 }
 0x3c0   :  { %5690 = vmatpush1.bf16.msra.mxu0 %v11075_v45  ;;  %5754 = vmatpush1.bf16.msra.mxu1 %v11076_v41 }
 0x3c1   :  { %5692 = vmatprep.subr.bf16.mxu0 %v11077_v49  ;;  %5756 = vmatprep.subr.bf16.mxu1 %v11078_v51 }
 0x3c4   :  { %5694 = vmatpush1.bf16.msra.mxu0 %v11079_v40  ;;  %5758 = vmatpush1.bf16.msra.mxu1 %v11080_v32 }
 0x3c5   :  { %5760 = vmatprep.subr.bf16.mxu0 %v11081_v48  ;;  %5792 = vmatprep.subr.bf16.mxu1 %v11082_v0 }
 0x459   :  { %v1515_v20 = vpop.f32.mrb[20].mxu0  ;;  %v1586_v30 = vpop.f32.mrb[20].mxu1 }
 0x45a   :  { %v1516_v10 = vadd.f32 %v1515_v20, %v11083_v62  ;;  %v1517_v59 = vpop.f32.mrb[21].mxu0  ;;  %v1588_v45 = vpop.f32.mrb[21].mxu1  ;;  %v1587_v40 = vadd.f32 %v1586_v30, %v9055_v13 }
 0x45b   :  { %v1518_v41 = vadd.f32 %v1517_v59, %v11084_v55  ;;  %v1589_v32 = vadd.f32 %v1588_v45, %v9058_v57 }
 0x45c   :  { %v4998_v9 = vmul.f32 -1.442695, %v1516_v10  ;;  %v5000_v51 = vmul.f32 -1.442695, %v1587_v40 }
 0x45d   :  { %v4999_v49 = vmul.f32 -1.442695, %v1518_v41 }
 0x45e   :  { %7843 = vpow2.f32 %v4998_v9 }
 0x45f   :  { %7845 = vpow2.f32 %v4999_v49 }
 0x460   :  { %7847 = vtanh.f32 %v1589_v32 }
 0x461   :  { %7849 = vpow2.f32 %v5000_v51  ;;  %v11089_v51 = vld [vmem:[#allocation29_spill] sm:$0xff] }
 0x468   :  { %v7844_v48 = vpop.eup %7843 }
 0x469   :  { %v1600_v14 = vadd.f32 1.0, %v7844_v48  ;;  %v7846_v0 = vpop.eup %7845  ;;  %v11090_v48 = vld [vmem:[#allocation30_spill] sm:$0xff] }
 0x46a   :  { %v1601_v20 = vadd.f32 1.0, %v7846_v0  ;;  %v7848_v62 = vpop.eup %7847  ;;  %v11091_v0 = vld [vmem:[#allocation31_spill] sm:$0xff] }
 0x46b   :  { %7851 = vrcp.f32 %v1600_v14  ;;  %v7850_v26 = vpop.eup %7849  ;;  %v11085_v14 = vld [vmem:[#allocation25_spill] sm:$0xff] }
 0x46c   :  { %7853 = vrcp.f32 %v1601_v20  ;;  %v1602_v9 = vadd.f32 1.0, %v7850_v26  ;;  %v11088_v26 = vld [vmem:[#allocation28_spill] sm:$0xff] }
 0x46d   :  { %v11092_v20 = vld [vmem:[#allocation32_spill] sm:$0xff] }
 0x46e   :  { %7855 = vrcp.f32 %v1602_v9  ;;  %v11097_v9 = vld [vmem:[#allocation37_spill] sm:$0xff] }
 0x475   :  { %v7852_v59 = vpop.eup %7851 }
 0x476   :  { %v1611_v10 = vmul.f32 %v7852_v59, %v7848_v62  ;;  %v7854_v41 = vpop.eup %7853  ;;  %v11086_v62 = vld [vmem:[#allocation26_spill] sm:$0xff]  ;;  %v11093_v59 = vld [vmem:[#allocation33_spill] sm:$0xff] }
 0x477   :  { %v1610_v49 = vmul.f32 %v7854_v41, %v9062_v3  ;;  %v11087_v3 = vld [vmem:[#allocation27_spill] sm:$0xff]  ;;  %v11096_v41 = vld [vmem:[#allocation36_spill] sm:$0xff] }
 0x478   :  { %v7856_v45 = vpop.eup %7855 }
 0x479   :  { %v9268_v30 = vadd.f32 %v1611_v10, %v1610_v49  ;;  %v11095_v10 = vld [vmem:[#allocation35_spill] sm:$0xff]  ;;  %v11098_v49 = vld [vmem:[#allocation38_spill] sm:$0xff] }
 0x47b   :  { %7857 = vtanh.f32 %v9268_v30 }
 0x485   :  { %v7858_v40 = vpop.eup %7857 }
 0x486   :  { %v1614_v32 = vmul.f32 %v7858_v40, %v7856_v45  ;;  %v11099_v45 = vld [vmem:[#allocation39_spill] sm:$0xff]  ;;  %v11100_v40 = vld [vmem:[#allocation40_spill] sm:$0xff] }
 0x488   :  { %1680 = vmatmul.mubr.f32.vlgmr.msra.gmra.mrb[22].mxu0 %v1614_v32  ;;  %1751 = vmatmul.mubr.f32.vlgmr.msra.gmra.mrb[22].mxu1 %v1614_v32 }
 0x489   :  { %5762 = vmatpush1.bf16.msra.mxu0 %v8472_v22  ;;  %5794 = vmatpush1.bf16.msra.mxu1 %v8475_v25 }
 0x48a   :  { %5764 = vmatprep.subr.bf16.mxu0 %v8479_v29  ;;  %5796 = vmatprep.subr.bf16.mxu1 %v8486_v34 }
 0x48b   :  { %1849 = vmatprep.mubr.f32.mxu0 %v10897_v23  ;;  %1920 = vmatprep.mubr.f32.mxu1 %v10897_v23 }
 0x48d   :  { %5766 = vmatpush1.bf16.msra.mxu0 %v8488_v35  ;;  %5798 = vmatpush1.bf16.msra.mxu1 %v8492_v38 }
 0x48e   :  { %5768 = vmatprep.subr.bf16.mxu0 %v8496_v42  ;;  %5800 = vmatprep.subr.bf16.mxu1 %v8503_v47 }
 0x491   :  { %5770 = vmatpush1.bf16.msra.mxu0 %v8507_v50  ;;  %5802 = vmatpush1.bf16.msra.mxu1 %v8511_v54 }
 0x492   :  { %5772 = vmatprep.subr.bf16.mxu0 %v8515_v58  ;;  %5804 = vmatprep.subr.bf16.mxu1 %v8519_v61 }
 0x495   :  { %5774 = vmatpush1.bf16.msra.mxu0 %v8526_v2  ;;  %5806 = vmatpush1.bf16.msra.mxu1 %v8530_v5 }
 0x496   :  { %5776 = vmatprep.subr.bf16.mxu0 %v8534_v8  ;;  %5808 = vmatprep.subr.bf16.mxu1 %v8538_v11 }
 0x499   :  { %5778 = vmatpush1.bf16.msra.mxu0 %v8545_v15  ;;  %5810 = vmatpush1.bf16.msra.mxu1 %v8549_v19 }
 0x49a   :  { %5780 = vmatprep.subr.bf16.mxu0 %v8553_v24  ;;  %5812 = vmatprep.subr.bf16.mxu1 %v8557_v28 }
 0x49d   :  { %5782 = vmatpush1.bf16.msra.mxu0 %v8564_v33  ;;  %5814 = vmatpush1.bf16.msra.mxu1 %v8568_v39 }
 0x49e   :  { %5784 = vmatprep.subr.bf16.mxu0 %v8572_v43  ;;  %5816 = vmatprep.subr.bf16.mxu1 %v8576_v46 }
 0x4a1   :  { %5786 = vmatpush1.bf16.msra.mxu0 %v8583_v52  ;;  %5818 = vmatpush1.bf16.msra.mxu1 %v8587_v56 }
 0x4a2   :  { %5788 = vmatprep.subr.bf16.mxu0 %v8591_v60  ;;  %5820 = vmatprep.subr.bf16.mxu1 %v8595_v1 }
 0x4a5   :  { %5790 = vmatpush1.bf16.msra.mxu0 %v8602_v7  ;;  %5822 = vmatpush1.bf16.msra.mxu1 %v8606_v12 }
 0x4a6   :  { %5824 = vmatprep.subr.bf16.mxu0 %v8610_v18  ;;  %5888 = vmatprep.subr.bf16.mxu1 %v8614_v27 }
 0x4a8   :  { %1850 = vmatmul.mubr.f32.vlgmr.msra.gmra.mrb[4].mxu0 %v9195_v53  ;;  %1921 = vmatmul.mubr.f32.vlgmr.msra.gmra.mrb[4].mxu1 %v9195_v53  ;;  %v11094_v53 = vld [vmem:[#allocation34_spill] sm:$0xff] }
 0x4a9   :  { %2019 = vmatprep.mubr.f32.mxu0 %v1614_v32  ;;  %2090 = vmatprep.mubr.f32.mxu1 %v1614_v32  ;;  %v11101_v32 = vld [vmem:[#allocation41_spill] sm:$0xff] }
 0x4aa   :  { %5826 = vmatpush1.bf16.msra.mxu0 %v11085_v14  ;;  %5890 = vmatpush1.bf16.msra.mxu1 %v11086_v62 }
 0x4ab   :  { %5828 = vmatprep.subr.bf16.mxu0 %v11087_v3  ;;  %5892 = vmatprep.subr.bf16.mxu1 %v11088_v26  ;;  %v11150_v26 = vld [vmem:[#allocation159_spill] sm:$0xff] }
 0x4ae   :  { %5830 = vmatpush1.bf16.msra.mxu0 %v11089_v51  ;;  %5894 = vmatpush1.bf16.msra.mxu1 %v11090_v48  ;;  %v11149_v48 = vld [vmem:[#allocation158_spill] sm:$0xff] }
 0x4af   :  { %5832 = vmatprep.subr.bf16.mxu0 %v11091_v0  ;;  %5896 = vmatprep.subr.bf16.mxu1 %v11092_v20  ;;  %v11102_v0 = vld [vmem:[#allocation42_spill] sm:$0xff]  ;;  %v11103_v20 = vld [vmem:[#allocation43_spill] sm:$0xff] }
 0x4b2   :  { %5834 = vmatpush1.bf16.msra.mxu0 %v11093_v59  ;;  %5898 = vmatpush1.bf16.msra.mxu1 %v11094_v53  ;;  %v11104_v59 = vld [vmem:[#allocation44_spill] sm:$0xff]  ;;  %v11105_v53 = vld [vmem:[#allocation45_spill] sm:$0xff] }
 0x4b3   :  { %5836 = vmatprep.subr.bf16.mxu0 %v11095_v10  ;;  %5900 = vmatprep.subr.bf16.mxu1 %v11096_v41  ;;  %v11106_v10 = vld [vmem:[#allocation46_spill] sm:$0xff]  ;;  %v11107_v41 = vld [vmem:[#allocation47_spill] sm:$0xff] }
 0x4b6   :  { %5838 = vmatpush1.bf16.msra.mxu0 %v11097_v9  ;;  %5902 = vmatpush1.bf16.msra.mxu1 %v11098_v49  ;;  %v11108_v9 = vld [vmem:[#allocation48_spill] sm:$0xff]  ;;  %v11109_v49 = vld [vmem:[#allocation49_spill] sm:$0xff] }
 0x4b7   :  { %5840 = vmatprep.subr.bf16.mxu0 %v11099_v45  ;;  %5904 = vmatprep.subr.bf16.mxu1 %v11100_v40  ;;  %v11110_v45 = vld [vmem:[#allocation50_spill] sm:$0xff]  ;;  %v11111_v40 = vld [vmem:[#allocation51_spill] sm:$0xff] }
 0x4ba   :  { %5842 = vmatpush1.bf16.msra.mxu0 %v11101_v32  ;;  %5906 = vmatpush1.bf16.msra.mxu1 %v11102_v0  ;;  %v11112_v32 = vld [vmem:[#allocation52_spill] sm:$0xff]  ;;  %v11113_v0 = vld [vmem:[#allocation53_spill] sm:$0xff] }
 0x4bb   :  { %5844 = vmatprep.subr.bf16.mxu0 %v11103_v20  ;;  %5908 = vmatprep.subr.bf16.mxu1 %v11104_v59  ;;  %v11114_v20 = vld [vmem:[#allocation54_spill] sm:$0xff]  ;;  %v11115_v59 = vld [vmem:[#allocation55_spill] sm:$0xff] }
 0x4be   :  { %5846 = vmatpush1.bf16.msra.mxu0 %v11105_v53  ;;  %5910 = vmatpush1.bf16.msra.mxu1 %v11106_v10  ;;  %v11116_v53 = vld [vmem:[#allocation56_spill] sm:$0xff]  ;;  %v11117_v10 = vld [vmem:[#allocation57_spill] sm:$0xff] }
 0x4bf   :  { %5848 = vmatprep.subr.bf16.mxu0 %v11107_v41  ;;  %5912 = vmatprep.subr.bf16.mxu1 %v11108_v9  ;;  %v11118_v41 = vld [vmem:[#allocation58_spill] sm:$0xff]  ;;  %v11119_v9 = vld [vmem:[#allocation59_spill] sm:$0xff] }
 0x4c2   :  { %5850 = vmatpush1.bf16.msra.mxu0 %v11109_v49  ;;  %5914 = vmatpush1.bf16.msra.mxu1 %v11110_v45  ;;  %v11120_v49 = vld [vmem:[#allocation60_spill] sm:$0xff]  ;;  %v11121_v45 = vld [vmem:[#allocation61_spill] sm:$0xff] }
 0x4c3   :  { %5852 = vmatprep.subr.bf16.mxu0 %v11111_v40  ;;  %5916 = vmatprep.subr.bf16.mxu1 %v11112_v32  ;;  %v11122_v40 = vld [vmem:[#allocation62_spill] sm:$0xff]  ;;  %v11123_v32 = vld [vmem:[#allocation63_spill] sm:$0xff] }
 0x4c6   :  { %5854 = vmatpush1.bf16.msra.mxu0 %v11113_v0  ;;  %5918 = vmatpush1.bf16.msra.mxu1 %v11114_v20  ;;  %v11124_v0 = vld [vmem:[#allocation64_spill] sm:$0xff]  ;;  %v11125_v20 = vld [vmem:[#allocation65_spill] sm:$0xff] }
 0x4c7   :  { %5856 = vmatprep.subr.bf16.mxu0 %v11115_v59  ;;  %5920 = vmatprep.subr.bf16.mxu1 %v11116_v53  ;;  %v11126_v59 = vld [vmem:[#allocation66_spill] sm:$0xff]  ;;  %v11127_v53 = vld [vmem:[#allocation67_spill] sm:$0xff] }
 0x4ca   :  { %5858 = vmatpush1.bf16.msra.mxu0 %v11117_v10  ;;  %5922 = vmatpush1.bf16.msra.mxu1 %v11118_v41  ;;  %v11128_v10 = vld [vmem:[#allocation68_spill] sm:$0xff]  ;;  %v11129_v41 = vld [vmem:[#allocation69_spill] sm:$0xff] }
 0x4cb   :  { %5860 = vmatprep.subr.bf16.mxu0 %v11119_v9  ;;  %5924 = vmatprep.subr.bf16.mxu1 %v11120_v49  ;;  %v11130_v9 = vld [vmem:[#allocation70_spill] sm:$0xff]  ;;  %v11131_v49 = vld [vmem:[#allocation71_spill] sm:$0xff] }
 0x4ce   :  { %5862 = vmatpush1.bf16.msra.mxu0 %v11121_v45  ;;  %5926 = vmatpush1.bf16.msra.mxu1 %v11122_v40  ;;  %v11132_v45 = vld [vmem:[#allocation72_spill] sm:$0xff]  ;;  %v11133_v40 = vld [vmem:[#allocation73_spill] sm:$0xff] }
 0x4cf   :  { %5864 = vmatprep.subr.bf16.mxu0 %v11123_v32  ;;  %5928 = vmatprep.subr.bf16.mxu1 %v11124_v0  ;;  %v11134_v32 = vld [vmem:[#allocation74_spill] sm:$0xff]  ;;  %v11135_v0 = vld [vmem:[#allocation75_spill] sm:$0xff] }
 0x4d2   :  { %5866 = vmatpush1.bf16.msra.mxu0 %v11125_v20  ;;  %5930 = vmatpush1.bf16.msra.mxu1 %v11126_v59  ;;  %v11136_v20 = vld [vmem:[#allocation76_spill] sm:$0xff]  ;;  %v11137_v59 = vld [vmem:[#allocation77_spill] sm:$0xff] }
 0x4d3   :  { %5868 = vmatprep.subr.bf16.mxu0 %v11127_v53  ;;  %5932 = vmatprep.subr.bf16.mxu1 %v11128_v10  ;;  %v11138_v53 = vld [vmem:[#allocation78_spill] sm:$0xff]  ;;  %v11139_v10 = vld [vmem:[#allocation79_spill] sm:$0xff] }
 0x4d6   :  { %5870 = vmatpush1.bf16.msra.mxu0 %v11129_v41  ;;  %5934 = vmatpush1.bf16.msra.mxu1 %v11130_v9  ;;  %v11140_v41 = vld [vmem:[#allocation80_spill] sm:$0xff]  ;;  %v11141_v9 = vld [vmem:[#allocation81_spill] sm:$0xff] }
 0x4d7   :  { %5872 = vmatprep.subr.bf16.mxu0 %v11131_v49  ;;  %5936 = vmatprep.subr.bf16.mxu1 %v11132_v45  ;;  %v11142_v49 = vld [vmem:[#allocation82_spill] sm:$0xff]  ;;  %v11143_v45 = vld [vmem:[#allocation83_spill] sm:$0xff] }
 0x4da   :  { %5874 = vmatpush1.bf16.msra.mxu0 %v11133_v40  ;;  %5938 = vmatpush1.bf16.msra.mxu1 %v11134_v32  ;;  %v11144_v40 = vld [vmem:[#allocation84_spill] sm:$0xff]  ;;  %v11145_v32 = vld [vmem:[#allocation85_spill] sm:$0xff] }
 0x4db   :  { %5876 = vmatprep.subr.bf16.mxu0 %v11135_v0  ;;  %5940 = vmatprep.subr.bf16.mxu1 %v11136_v20  ;;  %v11146_v0 = vld [vmem:[#allocation86_spill] sm:$0xff]  ;;  %v11147_v20 = vld [vmem:[#allocation87_spill] sm:$0xff] }
 0x4de   :  { %5878 = vmatpush1.bf16.msra.mxu0 %v11137_v59  ;;  %5942 = vmatpush1.bf16.msra.mxu1 %v11138_v53  ;;  %v11148_v59 = vld [vmem:[#allocation88_spill] sm:$0xff] }
 0x4df   :  { %5880 = vmatprep.subr.bf16.mxu0 %v11139_v10  ;;  %5944 = vmatprep.subr.bf16.mxu1 %v11140_v41 }
 0x4e2   :  { %5882 = vmatpush1.bf16.msra.mxu0 %v11141_v9  ;;  %5946 = vmatpush1.bf16.msra.mxu1 %v11142_v49 }
 0x4e3   :  { %5884 = vmatprep.subr.bf16.mxu0 %v11143_v45  ;;  %5948 = vmatprep.subr.bf16.mxu1 %v11144_v40  ;;  %v11151_v40 = vld [vmem:[#allocation160_spill] sm:$0xff] }
 0x4e6   :  { %5886 = vmatpush1.bf16.msra.mxu0 %v11145_v32  ;;  %5950 = vmatpush1.bf16.msra.mxu1 %v11146_v0 }
 0x4e7   :  { %5952 = vmatprep.subr.bf16.mxu0 %v11147_v20  ;;  %6016 = vmatprep.subr.bf16.mxu1 %v11148_v59 }
 0x55b   :  { %v1681_v53 = vpop.f32.mrb[22].mxu0  ;;  %v1752_v10 = vpop.f32.mrb[22].mxu1 }
 0x55c   :  { %v1682_v41 = vadd.f32 %v1681_v53, %v11149_v48  ;;  %v1683_v51 = vpop.f32.mrb[23].mxu0  ;;  %v1754_v9 = vpop.f32.mrb[23].mxu1 }
 0x55d   :  { %v1684_v49 = vadd.f32 %v1683_v51, %v11150_v26  ;;  %v1755_v32 = vadd.f32 %v1754_v9, %v11151_v40 }
 0x55e   :  { %v5001_v3 = vmul.f32 -1.442695, %v1682_v41 }
 0x55f   :  { %v5002_v45 = vmul.f32 -1.442695, %v1684_v49 }
 0x560   :  { %7859 = vpow2.f32 %v5001_v3  ;;  %v11152_v3 = vld [vmem:[#allocation89_spill] sm:$0xff] }
 0x561   :  { %7861 = vpow2.f32 %v5002_v45 }
 0x562   :  { %7863 = vtanh.f32 %v1755_v32 }
 0x56a   :  { %v7860_v62 = vpop.eup %7859 }
 0x56b   :  { %v1766_v0 = vadd.f32 1.0, %v7860_v62  ;;  %v7862_v14 = vpop.eup %7861 }
 0x56c   :  { %v1767_v59 = vadd.f32 1.0, %v7862_v14  ;;  %v7864_v20 = vpop.eup %7863 }
 0x56d   :  { %7865 = vrcp.f32 %v1766_v0 }
 0x56e   :  { %7867 = vrcp.f32 %v1767_v59 }
 0x577   :  { %v7866_v27 = vpop.eup %7865 }
 0x578   :  { %v1777_v53 = vmul.f32 %v7866_v27, %v7864_v20  ;;  %v7868_v48 = vpop.eup %7867  ;;  %v1753_v27 = vadd.f32 %v1752_v10, %v9185_v44  ;;  %v11153_v20 = vld [vmem:[#allocation92_spill] sm:$0xff] }
 0x579   :  { %v1776_v18 = vmul.f32 %v7868_v48, %v9180_v4 }
 0x57b   :  { %v1851_v51 = vpop.f32.mrb[4].mxu0  ;;  %v1922_v41 = vpop.f32.mrb[4].mxu1  ;;  %v9375_v49 = vadd.f32 %v1777_v53, %v1776_v18  ;;  %v5003_v18 = vmul.f32 -1.442695, %v1753_v27 }
 0x57c   :  { %v7707_v45 = vadd.f32 %v1851_v51, %v11152_v3  ;;  %v1853_v9 = vpop.f32.mrb[5].mxu0  ;;  %v1924_v40 = vpop.f32.mrb[5].mxu1  ;;  %v7723_v14 = vadd.f32 %v1922_v41, %v11021_v37 }
 0x57d   :  { %v7708_v62 = vadd.f32 %v1853_v9, %v11020_v63  ;;  %v7724_v4 = vadd.f32 %v1924_v40, %v11153_v20 }
 0x57e   :  { %v5004_v32 = vmul.f32 -1.442695, %v7707_v45  ;;  %v5006_v48 = vmul.f32 -1.442695, %v7723_v14 }
 0x57f   :  { %v5005_v0 = vmul.f32 -1.442695, %v7708_v62 }
 0x580   :  { %7869 = vpow2.f32 %v5004_v32 }
 0x581   :  { %7871 = vpow2.f32 %v5005_v0 }
 0x582   :  { %7873 = vtanh.f32 %v7724_v4 }
 0x583   :  { %7875 = vpow2.f32 %v5006_v48 }
 0x58a   :  { %v7870_v59 = vpop.eup %7869 }
 0x58b   :  { %v1940_v53 = vadd.f32 1.0, %v7870_v59  ;;  %v7872_v51 = vpop.eup %7871 }
 0x58c   :  { %v1941_v3 = vadd.f32 1.0, %v7872_v51  ;;  %v7874_v45 = vpop.eup %7873  ;;  %v11156_v51 = vld [vmem:[#allocation101_spill] sm:$0xff] }
 0x58d   :  { %7877 = vrcp.f32 %v1940_v53  ;;  %v7876_v9 = vpop.eup %7875  ;;  %v11155_v53 = vld [vmem:[#allocation100_spill] sm:$0xff] }
 0x58e   :  { %7879 = vpow2.f32 %v5003_v18  ;;  %v1942_v10 = vadd.f32 1.0, %v7876_v9  ;;  %v11158_v9 = vld [vmem:[#allocation103_spill] sm:$0xff] }
 0x58f   :  { %7881 = vrcp.f32 %v1941_v3 }
 0x590   :  { %7883 = vtanh.f32 %v9375_v49 }
 0x591   :  { %7885 = vrcp.f32 %v1942_v10  ;;  %v11163_v10 = vld [vmem:[#allocation108_spill] sm:$0xff] }
 0x597   :  { %v7878_v62 = vpop.eup %7877 }
 0x598   :  { %v7880_v32 = vpop.eup %7879  ;;  %v1951_v41 = vmul.f32 %v7878_v62, %v7874_v45  ;;  %v11157_v45 = vld [vmem:[#allocation102_spill] sm:$0xff]  ;;  %v11159_v62 = vld [vmem:[#allocation104_spill] sm:$0xff] }
 0x599   :  { %v7882_v0 = vpop.eup %7881  ;;  %v1768_v14 = vadd.f32 1.0, %v7880_v32  ;;  %v11160_v32 = vld [vmem:[#allocation105_spill] sm:$0xff] }
 0x59a   :  { %v1950_v40 = vmul.f32 %v7882_v0, %v9191_v21  ;;  %v7884_v27 = vpop.eup %7883  ;;  %v11154_v21 = vld [vmem:[#allocation99_spill] sm:$0xff] }
 0x59b   :  { %v7886_v3 = vpop.eup %7885  ;;  %v11162_v0 = vld [vmem:[#allocation107_spill] sm:$0xff] }
 0x59c   :  { %v9383_v20 = vadd.f32 %v1951_v41, %v1950_v40  ;;  %v11161_v41 = vld [vmem:[#allocation106_spill] sm:$0xff]  ;;  %v11164_v40 = vld [vmem:[#allocation109_spill] sm:$0xff] }
 0x59e   :  { %7887 = vtanh.f32 %v9383_v20 }
 0x59f   :  { %7889 = vrcp.f32 %v1768_v14  ;;  %v11165_v14 = vld [vmem:[#allocation110_spill] sm:$0xff] }
 0x5a8   :  { %v7888_v4 = vpop.eup %7887 }
 0x5a9   :  { %v7890_v48 = vpop.eup %7889  ;;  %v9387_v59 = vmul.f32 %v7888_v4, %v7886_v3  ;;  %v11167_v3 = vld [vmem:[#allocation112_spill] sm:$0xff]  ;;  %v11168_v4 = vld [vmem:[#allocation113_spill] sm:$0xff] }
 0x5aa   :  { %v1780_v18 = vmul.f32 %v7890_v48, %v7884_v27  ;;  %v11166_v27 = vld [vmem:[#allocation111_spill] sm:$0xff]  ;;  %v11169_v48 = vld [vmem:[#allocation114_spill] sm:$0xff] }
 0x5ab   :  { %2020 = vmatmul.mubr.f32.vlgmr.msra.gmra.mrb[24].mxu0 %v9387_v59  ;;  %2091 = vmatmul.mubr.f32.vlgmr.msra.gmra.mrb[24].mxu1 %v9387_v59 }
 0x5ac   :  { %2185 = vmatprep.mubr.f32.mxu0 %v1780_v18  ;;  %2256 = vmatprep.mubr.f32.mxu1 %v1780_v18  ;;  %v11170_v18 = vld [vmem:[#allocation115_spill] sm:$0xff] }
 0x5ad   :  { %5954 = vmatpush1.bf16.msra.mxu0 %v11024_v6  ;;  %6018 = vmatpush1.bf16.msra.mxu1 %v11025_v31 }
 0x5ae   :  { %5956 = vmatprep.subr.bf16.mxu0 %v11026_v36  ;;  %6020 = vmatprep.subr.bf16.mxu1 %v11027_v16 }
 0x5b1   :  { %5958 = vmatpush1.bf16.msra.mxu0 %v11028_v17  ;;  %6022 = vmatpush1.bf16.msra.mxu1 %v11154_v21 }
 0x5b2   :  { %5960 = vmatprep.subr.bf16.mxu0 %v11155_v53  ;;  %6024 = vmatprep.subr.bf16.mxu1 %v11156_v51 }
 0x5b5   :  { %5962 = vmatpush1.bf16.msra.mxu0 %v11157_v45  ;;  %6026 = vmatpush1.bf16.msra.mxu1 %v11158_v9 }
 0x5b6   :  { %5964 = vmatprep.subr.bf16.mxu0 %v11159_v62  ;;  %6028 = vmatprep.subr.bf16.mxu1 %v11160_v32  ;;  %v11171_v32 = vld [vmem:[#allocation116_spill] sm:$0xff] }
 0x5b7   :  { %v11213_v62 = vld [vmem:[#allocation156_spill] sm:$0xff] }
 0x5b9   :  { %5966 = vmatpush1.bf16.msra.mxu0 %v11161_v41  ;;  %6030 = vmatpush1.bf16.msra.mxu1 %v11162_v0  ;;  %v11172_v41 = vld [vmem:[#allocation117_spill] sm:$0xff]  ;;  %v11173_v0 = vld [vmem:[#allocation118_spill] sm:$0xff] }
 0x5ba   :  { %5968 = vmatprep.subr.bf16.mxu0 %v11163_v10  ;;  %6032 = vmatprep.subr.bf16.mxu1 %v11164_v40  ;;  %v11174_v10 = vld [vmem:[#allocation119_spill] sm:$0xff]  ;;  %v11175_v40 = vld [vmem:[#allocation120_spill] sm:$0xff] }
 0x5bd   :  { %5970 = vmatpush1.bf16.msra.mxu0 %v11165_v14  ;;  %6034 = vmatpush1.bf16.msra.mxu1 %v11166_v27  ;;  %v11176_v14 = vld [vmem:[#allocation121_spill] sm:$0xff]  ;;  %v11177_v27 = vld [vmem:[#allocation122_spill] sm:$0xff] }
 0x5be   :  { %5972 = vmatprep.subr.bf16.mxu0 %v11167_v3  ;;  %6036 = vmatprep.subr.bf16.mxu1 %v11168_v4  ;;  %v11178_v3 = vld [vmem:[#allocation123_spill] sm:$0xff]  ;;  %v11179_v4 = vld [vmem:[#allocation124_spill] sm:$0xff] }
 0x5c1   :  { %5974 = vmatpush1.bf16.msra.mxu0 %v11169_v48  ;;  %6038 = vmatpush1.bf16.msra.mxu1 %v11170_v18  ;;  %v11180_v48 = vld [vmem:[#allocation125_spill] sm:$0xff]  ;;  %v11181_v18 = vld [vmem:[#allocation126_spill] sm:$0xff] }
 0x5c2   :  { %5976 = vmatprep.subr.bf16.mxu0 %v11171_v32  ;;  %6040 = vmatprep.subr.bf16.mxu1 %v11172_v41  ;;  %v11182_v32 = vld [vmem:[#allocation127_spill] sm:$0xff]  ;;  %v11183_v41 = vld [vmem:[#allocation128_spill] sm:$0xff] }
 0x5c5   :  { %5978 = vmatpush1.bf16.msra.mxu0 %v11173_v0  ;;  %6042 = vmatpush1.bf16.msra.mxu1 %v11174_v10  ;;  %v11184_v0 = vld [vmem:[#allocation129_spill] sm:$0xff]  ;;  %v11185_v10 = vld [vmem:[#allocation130_spill] sm:$0xff] }
 0x5c6   :  { %5980 = vmatprep.subr.bf16.mxu0 %v11175_v40  ;;  %6044 = vmatprep.subr.bf16.mxu1 %v11176_v14  ;;  %v11186_v40 = vld [vmem:[#allocation131_spill] sm:$0xff]  ;;  %v11187_v14 = vld [vmem:[#allocation132_spill] sm:$0xff] }
 0x5c9   :  { %5982 = vmatpush1.bf16.msra.mxu0 %v11177_v27  ;;  %6046 = vmatpush1.bf16.msra.mxu1 %v11178_v3  ;;  %v11188_v27 = vld [vmem:[#allocation133_spill] sm:$0xff]  ;;  %v11189_v3 = vld [vmem:[#allocation134_spill] sm:$0xff] }
 0x5ca   :  { %5984 = vmatprep.subr.bf16.mxu0 %v11179_v4  ;;  %6048 = vmatprep.subr.bf16.mxu1 %v11180_v48  ;;  %v11190_v4 = vld [vmem:[#allocation135_spill] sm:$0xff]  ;;  %v11191_v48 = vld [vmem:[#allocation136_spill] sm:$0xff] }
 0x5cd   :  { %5986 = vmatpush1.bf16.msra.mxu0 %v11181_v18  ;;  %6050 = vmatpush1.bf16.msra.mxu1 %v11182_v32  ;;  %v11192_v18 = vld [vmem:[#allocation137_spill] sm:$0xff]  ;;  %v11193_v32 = vld [vmem:[#allocation138_spill] sm:$0xff] }
 0x5ce   :  { %5988 = vmatprep.subr.bf16.mxu0 %v11183_v41  ;;  %6052 = vmatprep.subr.bf16.mxu1 %v11184_v0  ;;  %v11194_v41 = vld [vmem:[#allocation139_spill] sm:$0xff]  ;;  %v11195_v0 = vld [vmem:[#allocation140_spill] sm:$0xff] }
 0x5d1   :  { %5990 = vmatpush1.bf16.msra.mxu0 %v11185_v10  ;;  %6054 = vmatpush1.bf16.msra.mxu1 %v11186_v40  ;;  %v11196_v10 = vld [vmem:[#allocation141_spill] sm:$0xff]  ;;  %v11197_v40 = vld [vmem:[#allocation142_spill] sm:$0xff] }
 0x5d2   :  { %5992 = vmatprep.subr.bf16.mxu0 %v11187_v14  ;;  %6056 = vmatprep.subr.bf16.mxu1 %v11188_v27  ;;  %v11198_v14 = vld [vmem:[#allocation143_spill] sm:$0xff]  ;;  %v11199_v27 = vld [vmem:[#allocation144_spill] sm:$0xff] }
 0x5d5   :  { %5994 = vmatpush1.bf16.msra.mxu0 %v11189_v3  ;;  %6058 = vmatpush1.bf16.msra.mxu1 %v11190_v4  ;;  %v11200_v3 = vld [vmem:[#allocation145_spill] sm:$0xff]  ;;  %v11201_v4 = vld [vmem:[#allocation146_spill] sm:$0xff] }
 0x5d6   :  { %5996 = vmatprep.subr.bf16.mxu0 %v11191_v48  ;;  %6060 = vmatprep.subr.bf16.mxu1 %v11192_v18  ;;  %v11202_v48 = vld [vmem:[#allocation147_spill] sm:$0xff]  ;;  %v11203_v18 = vld [vmem:[#allocation148_spill] sm:$0xff] }
 0x5d9   :  { %5998 = vmatpush1.bf16.msra.mxu0 %v11193_v32  ;;  %6062 = vmatpush1.bf16.msra.mxu1 %v11194_v41  ;;  %v11204_v32 = vld [vmem:[#allocation149_spill] sm:$0xff]  ;;  %v11205_v41 = vld [vmem:[#allocation150_spill] sm:$0xff] }
 0x5da   :  { %6000 = vmatprep.subr.bf16.mxu0 %v11195_v0  ;;  %6064 = vmatprep.subr.bf16.mxu1 %v11196_v10  ;;  %v11206_v0 = vld [vmem:[#allocation151_spill] sm:$0xff]  ;;  %v11207_v10 = vld [vmem:[#allocation152_spill] sm:$0xff] }
 0x5dd   :  { %6002 = vmatpush1.bf16.msra.mxu0 %v11197_v40  ;;  %6066 = vmatpush1.bf16.msra.mxu1 %v11198_v14  ;;  %v11208_v40 = vld [vmem:[#allocation153_spill] sm:$0xff]  ;;  %v11209_v14 = vld [vmem:[#allocation154_spill] sm:$0xff] }
 0x5de   :  { %6004 = vmatprep.subr.bf16.mxu0 %v11199_v27  ;;  %6068 = vmatprep.subr.bf16.mxu1 %v11200_v3  ;;  %v11210_v27 = vld [vmem:[#allocation155_spill] sm:$0xff]  ;;  %v11211_v3 = vld [vmem:[#allocation17_spill] sm:$0xff] }
 0x5e1   :  { %6006 = vmatpush1.bf16.msra.mxu0 %v11201_v4  ;;  %6070 = vmatpush1.bf16.msra.mxu1 %v11202_v48  ;;  %v11212_v4 = vld [vmem:[#allocation18_spill] sm:$0xff] }
 0x5e2   :  { %6008 = vmatprep.subr.bf16.mxu0 %v11203_v18  ;;  %6072 = vmatprep.subr.bf16.mxu1 %v11204_v32 }
 0x5e5   :  { %6010 = vmatpush1.bf16.msra.mxu0 %v11205_v41  ;;  %6074 = vmatpush1.bf16.msra.mxu1 %v11206_v0 }
 0x5e6   :  { %6012 = vmatprep.subr.bf16.mxu0 %v11207_v10  ;;  %6076 = vmatprep.subr.bf16.mxu1 %v11208_v40 }
 0x5e9   :  { %6014 = vmatpush1.bf16.msra.mxu0 %v11209_v14  ;;  %6078 = vmatpush1.bf16.msra.mxu1 %v11210_v27 }
 0x5ea   :  { %6080 = vmatprep.subr.bf16.mxu0 %v11211_v3  ;;  %6112 = vmatprep.subr.bf16.mxu1 %v11212_v4 }
 0x67e   :  { %v2021_v48 = vpop.f32.mrb[24].mxu0  ;;  %v2092_v18 = vpop.f32.mrb[24].mxu1 }
 0x67f   :  { %v2022_v32 = vadd.f32 %v2021_v48, %v11213_v62  ;;  %v2023_v9 = vpop.f32.mrb[25].mxu0  ;;  %v2094_v41 = vpop.f32.mrb[25].mxu1  ;;  %v2093_v14 = vadd.f32 %v2092_v18, %v9055_v13 }
 0x680   :  { %v2024_v0 = vadd.f32 %v2023_v9, %v11084_v55  ;;  %v2095_v27 = vadd.f32 %v2094_v41, %v9058_v57 }
 0x681   :  { %v5007_v45 = vmul.f32 -1.442695, %v2022_v32  ;;  %v5009_v40 = vmul.f32 -1.442695, %v2093_v14 }
 0x682   :  { %v5008_v10 = vmul.f32 -1.442695, %v2024_v0 }
 0x683   :  { %7891 = vpow2.f32 %v5007_v45 }
 0x684   :  { %7893 = vpow2.f32 %v5008_v10 }
 0x685   :  { %7895 = vtanh.f32 %v2095_v27 }
 0x686   :  { %7897 = vpow2.f32 %v5009_v40  ;;  %v11218_v40 = vld [vmem:[#allocation27_spill] sm:$0xff] }
 0x68d   :  { %v7892_v3 = vpop.eup %7891 }
 0x68e   :  { %v2106_v51 = vadd.f32 1.0, %v7892_v3  ;;  %v7894_v4 = vpop.eup %7893  ;;  %v11219_v3 = vld [vmem:[#allocation28_spill] sm:$0xff] }
 0x68f   :  { %v2107_v48 = vadd.f32 1.0, %v7894_v4  ;;  %v7896_v62 = vpop.eup %7895  ;;  %v11220_v4 = vld [vmem:[#allocation29_spill] sm:$0xff] }
 0x690   :  { %7899 = vrcp.f32 %v2106_v51  ;;  %v7898_v53 = vpop.eup %7897  ;;  %v11216_v51 = vld [vmem:[#allocation25_spill] sm:$0xff] }
 0x691   :  { %7901 = vrcp.f32 %v2107_v48  ;;  %v2108_v45 = vadd.f32 1.0, %v7898_v53  ;;  %v11215_v53 = vld [vmem:[#allocation24_spill] sm:$0xff]  ;;  %v11221_v48 = vld [vmem:[#allocation30_spill] sm:$0xff] }
 0x693   :  { %7903 = vrcp.f32 %v2108_v45  ;;  %v11226_v45 = vld [vmem:[#allocation35_spill] sm:$0xff] }
 0x69a   :  { %v7900_v9 = vpop.eup %7899 }
 0x69b   :  { %v2117_v32 = vmul.f32 %v7900_v9, %v7896_v62  ;;  %v7902_v0 = vpop.eup %7901  ;;  %v11217_v62 = vld [vmem:[#allocation26_spill] sm:$0xff]  ;;  %v11222_v9 = vld [vmem:[#allocation31_spill] sm:$0xff] }
 0x69c   :  { %v2116_v10 = vmul.f32 %v7902_v0, %v9268_v30  ;;  %v11214_v30 = vld [vmem:[#allocation23_spill] sm:$0xff]  ;;  %v11224_v0 = vld [vmem:[#allocation33_spill] sm:$0xff] }
 0x69d   :  { %v7904_v41 = vpop.eup %7903 }
 0x69e   :  { %v9460_v18 = vadd.f32 %v2117_v32, %v2116_v10  ;;  %v11223_v32 = vld [vmem:[#allocation32_spill] sm:$0xff] }
 0x69f   :  { %v11227_v10 = vld [vmem:[#allocation36_spill] sm:$0xff] }
 0x6a0   :  { %7905 = vtanh.f32 %v9460_v18 }
 0x6aa   :  { %v7906_v14 = vpop.eup %7905 }
 0x6ab   :  { %v2120_v27 = vmul.f32 %v7906_v14, %v7904_v41  ;;  %v11228_v41 = vld [vmem:[#allocation37_spill] sm:$0xff]  ;;  %v11229_v14 = vld [vmem:[#allocation38_spill] sm:$0xff] }
 0x6ad   :  { %2186 = vmatmul.mubr.f32.vlgmr.msra.gmra.mrb[26].mxu0 %v2120_v27  ;;  %2257 = vmatmul.mubr.f32.vlgmr.msra.gmra.mrb[26].mxu1 %v2120_v27 }
 0x6ae   :  { %6082 = vmatpush1.bf16.msra.mxu0 %v8472_v22  ;;  %6114 = vmatpush1.bf16.msra.mxu1 %v8475_v25 }
 0x6af   :  { %6084 = vmatprep.subr.bf16.mxu0 %v8479_v29  ;;  %6116 = vmatprep.subr.bf16.mxu1 %v8486_v34 }
 0x6b0   :  { %2355 = vmatprep.mubr.f32.mxu0 %v10897_v23  ;;  %2426 = vmatprep.mubr.f32.mxu1 %v10897_v23 }
 0x6b2   :  { %6086 = vmatpush1.bf16.msra.mxu0 %v8488_v35  ;;  %6118 = vmatpush1.bf16.msra.mxu1 %v8492_v38 }
 0x6b3   :  { %6088 = vmatprep.subr.bf16.mxu0 %v8496_v42  ;;  %6120 = vmatprep.subr.bf16.mxu1 %v8503_v47 }
 0x6b6   :  { %6090 = vmatpush1.bf16.msra.mxu0 %v8507_v50  ;;  %6122 = vmatpush1.bf16.msra.mxu1 %v8511_v54 }
 0x6b7   :  { %6092 = vmatprep.subr.bf16.mxu0 %v8515_v58  ;;  %6124 = vmatprep.subr.bf16.mxu1 %v8519_v61 }
 0x6ba   :  { %6094 = vmatpush1.bf16.msra.mxu0 %v8526_v2  ;;  %6126 = vmatpush1.bf16.msra.mxu1 %v8530_v5 }
 0x6bb   :  { %6096 = vmatprep.subr.bf16.mxu0 %v8534_v8  ;;  %6128 = vmatprep.subr.bf16.mxu1 %v8538_v11 }
 0x6be   :  { %6098 = vmatpush1.bf16.msra.mxu0 %v8545_v15  ;;  %6130 = vmatpush1.bf16.msra.mxu1 %v8549_v19 }
 0x6bf   :  { %6100 = vmatprep.subr.bf16.mxu0 %v8553_v24  ;;  %6132 = vmatprep.subr.bf16.mxu1 %v8557_v28 }
 0x6c2   :  { %6102 = vmatpush1.bf16.msra.mxu0 %v8564_v33  ;;  %6134 = vmatpush1.bf16.msra.mxu1 %v8568_v39 }
 0x6c3   :  { %6104 = vmatprep.subr.bf16.mxu0 %v8572_v43  ;;  %6136 = vmatprep.subr.bf16.mxu1 %v8576_v46 }
 0x6c6   :  { %6106 = vmatpush1.bf16.msra.mxu0 %v8583_v52  ;;  %6138 = vmatpush1.bf16.msra.mxu1 %v8587_v56 }
 0x6c7   :  { %6108 = vmatprep.subr.bf16.mxu0 %v8591_v60  ;;  %6140 = vmatprep.subr.bf16.mxu1 %v8595_v1 }
 0x6ca   :  { %6110 = vmatpush1.bf16.msra.mxu0 %v8602_v7  ;;  %6142 = vmatpush1.bf16.msra.mxu1 %v8606_v12 }
 0x6cb   :  { %6144 = vmatprep.subr.bf16.mxu0 %v11214_v30  ;;  %6208 = vmatprep.subr.bf16.mxu1 %v11215_v53 }
 0x6cd   :  { %2356 = vmatmul.mubr.f32.vlgmr.msra.gmra.mrb[6].mxu0 %v9387_v59  ;;  %2427 = vmatmul.mubr.f32.vlgmr.msra.gmra.mrb[6].mxu1 %v9387_v59  ;;  %v11225_v59 = vld [vmem:[#allocation34_spill] sm:$0xff] }
 0x6ce   :  { %2525 = vmatprep.mubr.f32.mxu0 %v2120_v27  ;;  %2596 = vmatprep.mubr.f32.mxu1 %v2120_v27  ;;  %v11230_v27 = vld [vmem:[#allocation39_spill] sm:$0xff] }
 0x6cf   :  { %6146 = vmatpush1.bf16.msra.mxu0 %v11216_v51  ;;  %6210 = vmatpush1.bf16.msra.mxu1 %v11217_v62 }
 0x6d0   :  { %6148 = vmatprep.subr.bf16.mxu0 %v11218_v40  ;;  %6212 = vmatprep.subr.bf16.mxu1 %v11219_v3  ;;  %v11280_v3 = vld [vmem:[#allocation158_spill] sm:$0xff] }
 0x6d3   :  { %6150 = vmatpush1.bf16.msra.mxu0 %v11220_v4  ;;  %6214 = vmatpush1.bf16.msra.mxu1 %v11221_v48  ;;  %v11231_v4 = vld [vmem:[#allocation40_spill] sm:$0xff]  ;;  %v11232_v48 = vld [vmem:[#allocation41_spill] sm:$0xff] }
 0x6d4   :  { %6152 = vmatprep.subr.bf16.mxu0 %v11222_v9  ;;  %6216 = vmatprep.subr.bf16.mxu1 %v11223_v32  ;;  %v11233_v9 = vld [vmem:[#allocation42_spill] sm:$0xff]  ;;  %v11234_v32 = vld [vmem:[#allocation43_spill] sm:$0xff] }
 0x6d7   :  { %6154 = vmatpush1.bf16.msra.mxu0 %v11224_v0  ;;  %6218 = vmatpush1.bf16.msra.mxu1 %v11225_v59  ;;  %v11235_v0 = vld [vmem:[#allocation44_spill] sm:$0xff]  ;;  %v11236_v59 = vld [vmem:[#allocation45_spill] sm:$0xff] }
 0x6d8   :  { %6156 = vmatprep.subr.bf16.mxu0 %v11226_v45  ;;  %6220 = vmatprep.subr.bf16.mxu1 %v11227_v10  ;;  %v11237_v45 = vld [vmem:[#allocation46_spill] sm:$0xff]  ;;  %v11238_v10 = vld [vmem:[#allocation47_spill] sm:$0xff] }
 0x6db   :  { %6158 = vmatpush1.bf16.msra.mxu0 %v11228_v41  ;;  %6222 = vmatpush1.bf16.msra.mxu1 %v11229_v14  ;;  %v11239_v41 = vld [vmem:[#allocation48_spill] sm:$0xff]  ;;  %v11240_v14 = vld [vmem:[#allocation49_spill] sm:$0xff] }
 0x6dc   :  { %6160 = vmatprep.subr.bf16.mxu0 %v11230_v27  ;;  %6224 = vmatprep.subr.bf16.mxu1 %v11231_v4  ;;  %v11241_v27 = vld [vmem:[#allocation50_spill] sm:$0xff]  ;;  %v11242_v4 = vld [vmem:[#allocation51_spill] sm:$0xff] }
 0x6df   :  { %6162 = vmatpush1.bf16.msra.mxu0 %v11232_v48  ;;  %6226 = vmatpush1.bf16.msra.mxu1 %v11233_v9  ;;  %v11243_v48 = vld [vmem:[#allocation52_spill] sm:$0xff]  ;;  %v11244_v9 = vld [vmem:[#allocation53_spill] sm:$0xff] }
 0x6e0   :  { %6164 = vmatprep.subr.bf16.mxu0 %v11234_v32  ;;  %6228 = vmatprep.subr.bf16.mxu1 %v11235_v0  ;;  %v11245_v32 = vld [vmem:[#allocation54_spill] sm:$0xff]  ;;  %v11246_v0 = vld [vmem:[#allocation55_spill] sm:$0xff] }
 0x6e3   :  { %6166 = vmatpush1.bf16.msra.mxu0 %v11236_v59  ;;  %6230 = vmatpush1.bf16.msra.mxu1 %v11237_v45  ;;  %v11247_v59 = vld [vmem:[#allocation56_spill] sm:$0xff]  ;;  %v11248_v45 = vld [vmem:[#allocation57_spill] sm:$0xff] }
 0x6e4   :  { %6168 = vmatprep.subr.bf16.mxu0 %v11238_v10  ;;  %6232 = vmatprep.subr.bf16.mxu1 %v11239_v41  ;;  %v11249_v10 = vld [vmem:[#allocation58_spill] sm:$0xff]  ;;  %v11250_v41 = vld [vmem:[#allocation59_spill] sm:$0xff] }
 0x6e7   :  { %6170 = vmatpush1.bf16.msra.mxu0 %v11240_v14  ;;  %6234 = vmatpush1.bf16.msra.mxu1 %v11241_v27  ;;  %v11251_v14 = vld [vmem:[#allocation60_spill] sm:$0xff]  ;;  %v11252_v27 = vld [vmem:[#allocation61_spill] sm:$0xff] }
 0x6e8   :  { %6172 = vmatprep.subr.bf16.mxu0 %v11242_v4  ;;  %6236 = vmatprep.subr.bf16.mxu1 %v11243_v48  ;;  %v11253_v4 = vld [vmem:[#allocation62_spill] sm:$0xff]  ;;  %v11254_v48 = vld [vmem:[#allocation63_spill] sm:$0xff] }
 0x6eb   :  { %6174 = vmatpush1.bf16.msra.mxu0 %v11244_v9  ;;  %6238 = vmatpush1.bf16.msra.mxu1 %v11245_v32  ;;  %v11255_v9 = vld [vmem:[#allocation64_spill] sm:$0xff]  ;;  %v11256_v32 = vld [vmem:[#allocation65_spill] sm:$0xff] }
 0x6ec   :  { %6176 = vmatprep.subr.bf16.mxu0 %v11246_v0  ;;  %6240 = vmatprep.subr.bf16.mxu1 %v11247_v59  ;;  %v11257_v0 = vld [vmem:[#allocation66_spill] sm:$0xff]  ;;  %v11258_v59 = vld [vmem:[#allocation67_spill] sm:$0xff] }
 0x6ef   :  { %6178 = vmatpush1.bf16.msra.mxu0 %v11248_v45  ;;  %6242 = vmatpush1.bf16.msra.mxu1 %v11249_v10  ;;  %v11259_v45 = vld [vmem:[#allocation68_spill] sm:$0xff]  ;;  %v11260_v10 = vld [vmem:[#allocation69_spill] sm:$0xff] }
 0x6f0   :  { %6180 = vmatprep.subr.bf16.mxu0 %v11250_v41  ;;  %6244 = vmatprep.subr.bf16.mxu1 %v11251_v14  ;;  %v11261_v41 = vld [vmem:[#allocation70_spill] sm:$0xff]  ;;  %v11262_v14 = vld [vmem:[#allocation71_spill] sm:$0xff] }
 0x6f3   :  { %6182 = vmatpush1.bf16.msra.mxu0 %v11252_v27  ;;  %6246 = vmatpush1.bf16.msra.mxu1 %v11253_v4  ;;  %v11263_v27 = vld [vmem:[#allocation72_spill] sm:$0xff]  ;;  %v11264_v4 = vld [vmem:[#allocation73_spill] sm:$0xff] }
 0x6f4   :  { %6184 = vmatprep.subr.bf16.mxu0 %v11254_v48  ;;  %6248 = vmatprep.subr.bf16.mxu1 %v11255_v9  ;;  %v11265_v48 = vld [vmem:[#allocation74_spill] sm:$0xff]  ;;  %v11266_v9 = vld [vmem:[#allocation75_spill] sm:$0xff] }
 0x6f7   :  { %6186 = vmatpush1.bf16.msra.mxu0 %v11256_v32  ;;  %6250 = vmatpush1.bf16.msra.mxu1 %v11257_v0  ;;  %v11267_v32 = vld [vmem:[#allocation76_spill] sm:$0xff]  ;;  %v11268_v0 = vld [vmem:[#allocation77_spill] sm:$0xff] }
 0x6f8   :  { %6188 = vmatprep.subr.bf16.mxu0 %v11258_v59  ;;  %6252 = vmatprep.subr.bf16.mxu1 %v11259_v45  ;;  %v11269_v59 = vld [vmem:[#allocation78_spill] sm:$0xff]  ;;  %v11270_v45 = vld [vmem:[#allocation79_spill] sm:$0xff] }
 0x6fb   :  { %6190 = vmatpush1.bf16.msra.mxu0 %v11260_v10  ;;  %6254 = vmatpush1.bf16.msra.mxu1 %v11261_v41  ;;  %v11271_v10 = vld [vmem:[#allocation80_spill] sm:$0xff]  ;;  %v11272_v41 = vld [vmem:[#allocation81_spill] sm:$0xff] }
 0x6fc   :  { %6192 = vmatprep.subr.bf16.mxu0 %v11262_v14  ;;  %6256 = vmatprep.subr.bf16.mxu1 %v11263_v27  ;;  %v11273_v14 = vld [vmem:[#allocation82_spill] sm:$0xff]  ;;  %v11274_v27 = vld [vmem:[#allocation83_spill] sm:$0xff] }
 0x6ff   :  { %6194 = vmatpush1.bf16.msra.mxu0 %v11264_v4  ;;  %6258 = vmatpush1.bf16.msra.mxu1 %v11265_v48  ;;  %v11275_v4 = vld [vmem:[#allocation84_spill] sm:$0xff]  ;;  %v11276_v48 = vld [vmem:[#allocation85_spill] sm:$0xff] }
 0x700   :  { %6196 = vmatprep.subr.bf16.mxu0 %v11266_v9  ;;  %6260 = vmatprep.subr.bf16.mxu1 %v11267_v32  ;;  %v11277_v9 = vld [vmem:[#allocation86_spill] sm:$0xff]  ;;  %v11278_v32 = vld [vmem:[#allocation87_spill] sm:$0xff] }
 0x703   :  { %6198 = vmatpush1.bf16.msra.mxu0 %v11268_v0  ;;  %6262 = vmatpush1.bf16.msra.mxu1 %v11269_v59  ;;  %v11279_v0 = vld [vmem:[#allocation88_spill] sm:$0xff] }
 0x704   :  { %6200 = vmatprep.subr.bf16.mxu0 %v11270_v45  ;;  %6264 = vmatprep.subr.bf16.mxu1 %v11271_v10 }
 0x707   :  { %6202 = vmatpush1.bf16.msra.mxu0 %v11272_v41  ;;  %6266 = vmatpush1.bf16.msra.mxu1 %v11273_v14 }
 0x708   :  { %6204 = vmatprep.subr.bf16.mxu0 %v11274_v27  ;;  %6268 = vmatprep.subr.bf16.mxu1 %v11275_v4  ;;  %v11281_v4 = vld [vmem:[#allocation160_spill] sm:$0xff] }
 0x70b   :  { %6206 = vmatpush1.bf16.msra.mxu0 %v11276_v48  ;;  %6270 = vmatpush1.bf16.msra.mxu1 %v11277_v9 }
 0x70c   :  { %6272 = vmatprep.subr.bf16.mxu0 %v11278_v32  ;;  %6336 = vmatprep.subr.bf16.mxu1 %v11279_v0 }
 0x780   :  { %v2187_v59 = vpop.f32.mrb[26].mxu0  ;;  %v2258_v45 = vpop.f32.mrb[26].mxu1 }
 0x781   :  { %v2188_v10 = vadd.f32 %v2187_v59, %v11280_v3  ;;  %v2189_v40 = vpop.f32.mrb[27].mxu0  ;;  %v2260_v41 = vpop.f32.mrb[27].mxu1 }
 0x782   :  { %v2190_v14 = vadd.f32 %v2189_v40, %v11150_v26  ;;  %v2261_v48 = vadd.f32 %v2260_v41, %v11281_v4 }
 0x783   :  { %v5010_v62 = vmul.f32 -1.442695, %v2188_v10 }
 0x784   :  { %v5011_v27 = vmul.f32 -1.442695, %v2190_v14 }
 0x785   :  { %7907 = vpow2.f32 %v5010_v62  ;;  %v11282_v62 = vld [vmem:[#allocation89_spill] sm:$0xff] }
 0x786   :  { %7909 = vpow2.f32 %v5011_v27 }
 0x787   :  { %7911 = vtanh.f32 %v2261_v48 }
 0x78f   :  { %v7908_v51 = vpop.eup %7907 }
 0x790   :  { %v2272_v9 = vadd.f32 1.0, %v7908_v51  ;;  %v7910_v53 = vpop.eup %7909 }
 0x791   :  { %v2273_v0 = vadd.f32 1.0, %v7910_v53  ;;  %v7912_v32 = vpop.eup %7911 }
 0x792   :  { %7913 = vrcp.f32 %v2272_v9 }
 0x793   :  { %7915 = vrcp.f32 %v2273_v0 }
 0x79c   :  { %v7914_v30 = vpop.eup %7913 }
 0x79d   :  { %v2283_v59 = vmul.f32 %v7914_v30, %v7912_v32  ;;  %v7916_v3 = vpop.eup %7915  ;;  %v2259_v30 = vadd.f32 %v2258_v45, %v9185_v44  ;;  %v11283_v32 = vld [vmem:[#allocation92_spill] sm:$0xff] }
 0x79e   :  { %v2282_v12 = vmul.f32 %v7916_v3, %v9375_v49 }
 0x7a0   :  { %v2357_v40 = vpop.f32.mrb[6].mxu0  ;;  %v2428_v10 = vpop.f32.mrb[6].mxu1  ;;  %v9567_v14 = vadd.f32 %v2283_v59, %v2282_v12  ;;  %v5012_v12 = vmul.f32 -1.442695, %v2259_v30 }
 0x7a1   :  { %v7709_v27 = vadd.f32 %v2357_v40, %v11282_v62  ;;  %v2359_v41 = vpop.f32.mrb[7].mxu0  ;;  %v2430_v4 = vpop.f32.mrb[7].mxu1  ;;  %v7725_v53 = vadd.f32 %v2428_v10, %v11021_v37 }
 0x7a2   :  { %v7710_v51 = vadd.f32 %v2359_v41, %v11020_v63  ;;  %v7726_v49 = vadd.f32 %v2430_v4, %v11283_v32 }
 0x7a3   :  { %v5013_v48 = vmul.f32 -1.442695, %v7709_v27  ;;  %v5015_v3 = vmul.f32 -1.442695, %v7725_v53 }
 0x7a4   :  { %v5014_v9 = vmul.f32 -1.442695, %v7710_v51 }
 0x7a5   :  { %7917 = vpow2.f32 %v5013_v48 }
 0x7a6   :  { %7919 = vpow2.f32 %v5014_v9 }
 0x7a7   :  { %7921 = vtanh.f32 %v7726_v49 }
 0x7a8   :  { %7923 = vpow2.f32 %v5015_v3 }
 0x7af   :  { %v7918_v0 = vpop.eup %7917 }
 0x7b0   :  { %v2446_v59 = vadd.f32 1.0, %v7918_v0  ;;  %v7920_v40 = vpop.eup %7919 }
 0x7b1   :  { %v2447_v62 = vadd.f32 1.0, %v7920_v40  ;;  %v7922_v27 = vpop.eup %7921  ;;  %v11286_v40 = vld [vmem:[#allocation102_spill] sm:$0xff] }
 0x7b2   :  { %7925 = vrcp.f32 %v2446_v59  ;;  %v7924_v41 = vpop.eup %7923  ;;  %v11285_v59 = vld [vmem:[#allocation101_spill] sm:$0xff] }
 0x7b3   :  { %7927 = vpow2.f32 %v5012_v12  ;;  %v2448_v45 = vadd.f32 1.0, %v7924_v41  ;;  %v11288_v41 = vld [vmem:[#allocation104_spill] sm:$0xff] }
 0x7b4   :  { %7929 = vrcp.f32 %v2447_v62 }
 0x7b5   :  { %7931 = vtanh.f32 %v9567_v14 }
 0x7b6   :  { %7933 = vrcp.f32 %v2448_v45  ;;  %v11293_v45 = vld [vmem:[#allocation109_spill] sm:$0xff] }
 0x7bc   :  { %v7926_v51 = vpop.eup %7925 }
 0x7bd   :  { %v7928_v48 = vpop.eup %7927  ;;  %v2457_v10 = vmul.f32 %v7926_v51, %v7922_v27  ;;  %v11287_v27 = vld [vmem:[#allocation103_spill] sm:$0xff]  ;;  %v11289_v51 = vld [vmem:[#allocation105_spill] sm:$0xff] }
 0x7be   :  { %v7930_v9 = vpop.eup %7929  ;;  %v2274_v53 = vadd.f32 1.0, %v7928_v48  ;;  %v11290_v48 = vld [vmem:[#allocation106_spill] sm:$0xff] }
 0x7bf   :  { %v2456_v4 = vmul.f32 %v7930_v9, %v9383_v20  ;;  %v7932_v30 = vpop.eup %7931  ;;  %v11284_v20 = vld [vmem:[#allocation100_spill] sm:$0xff] }
 0x7c0   :  { %v7934_v62 = vpop.eup %7933  ;;  %v11292_v9 = vld [vmem:[#allocation108_spill] sm:$0xff] }
 0x7c1   :  { %v9575_v32 = vadd.f32 %v2457_v10, %v2456_v4  ;;  %v11291_v10 = vld [vmem:[#allocation107_spill] sm:$0xff]  ;;  %v11294_v4 = vld [vmem:[#allocation110_spill] sm:$0xff] }
 0x7c3   :  { %7935 = vtanh.f32 %v9575_v32 }
 0x7c4   :  { %7937 = vrcp.f32 %v2274_v53  ;;  %v11295_v53 = vld [vmem:[#allocation111_spill] sm:$0xff] }
 0x7cd   :  { %v7936_v49 = vpop.eup %7935 }
 0x7ce   :  { %v7938_v3 = vpop.eup %7937  ;;  %v9579_v0 = vmul.f32 %v7936_v49, %v7934_v62  ;;  %v11297_v62 = vld [vmem:[#allocation113_spill] sm:$0xff]  ;;  %v11298_v49 = vld [vmem:[#allocation114_spill] sm:$0xff] }
 0x7cf   :  { %v2286_v12 = vmul.f32 %v7938_v3, %v7932_v30  ;;  %v11296_v30 = vld [vmem:[#allocation112_spill] sm:$0xff]  ;;  %v11299_v3 = vld [vmem:[#allocation115_spill] sm:$0xff] }
 0x7d0   :  { %2526 = vmatmul.mubr.f32.vlgmr.msra.gmra.mrb[28].mxu0 %v9579_v0  ;;  %2597 = vmatmul.mubr.f32.vlgmr.msra.gmra.mrb[28].mxu1 %v9579_v0 }
 0x7d1   :  { %2691 = vmatprep.mubr.f32.mxu0 %v2286_v12  ;;  %2762 = vmatprep.mubr.f32.mxu1 %v2286_v12  ;;  %v11300_v12 = vld [vmem:[#allocation116_spill] sm:$0xff] }
 0x7d2   :  { %6274 = vmatpush1.bf16.msra.mxu0 %v11024_v6  ;;  %6338 = vmatpush1.bf16.msra.mxu1 %v11025_v31 }
 0x7d3   :  { %6276 = vmatprep.subr.bf16.mxu0 %v11026_v36  ;;  %6340 = vmatprep.subr.bf16.mxu1 %v11027_v16 }
 0x7d6   :  { %6278 = vmatpush1.bf16.msra.mxu0 %v11028_v17  ;;  %6342 = vmatpush1.bf16.msra.mxu1 %v11154_v21 }
 0x7d7   :  { %6280 = vmatprep.subr.bf16.mxu0 %v11284_v20  ;;  %6344 = vmatprep.subr.bf16.mxu1 %v11285_v59 }
 0x7da   :  { %6282 = vmatpush1.bf16.msra.mxu0 %v11286_v40  ;;  %6346 = vmatpush1.bf16.msra.mxu1 %v11287_v27 }
 0x7db   :  { %6284 = vmatprep.subr.bf16.mxu0 %v11288_v41  ;;  %6348 = vmatprep.subr.bf16.mxu1 %v11289_v51  ;;  %v11342_v51 = vld [vmem:[#allocation156_spill] sm:$0xff] }
 0x7de   :  { %6286 = vmatpush1.bf16.msra.mxu0 %v11290_v48  ;;  %6350 = vmatpush1.bf16.msra.mxu1 %v11291_v10  ;;  %v11301_v48 = vld [vmem:[#allocation117_spill] sm:$0xff]  ;;  %v11302_v10 = vld [vmem:[#allocation118_spill] sm:$0xff] }
 0x7df   :  { %6288 = vmatprep.subr.bf16.mxu0 %v11292_v9  ;;  %6352 = vmatprep.subr.bf16.mxu1 %v11293_v45  ;;  %v11303_v9 = vld [vmem:[#allocation119_spill] sm:$0xff]  ;;  %v11304_v45 = vld [vmem:[#allocation120_spill] sm:$0xff] }
 0x7e2   :  { %6290 = vmatpush1.bf16.msra.mxu0 %v11294_v4  ;;  %6354 = vmatpush1.bf16.msra.mxu1 %v11295_v53  ;;  %v11305_v4 = vld [vmem:[#allocation121_spill] sm:$0xff]  ;;  %v11306_v53 = vld [vmem:[#allocation122_spill] sm:$0xff] }
 0x7e3   :  { %6292 = vmatprep.subr.bf16.mxu0 %v11296_v30  ;;  %6356 = vmatprep.subr.bf16.mxu1 %v11297_v62  ;;  %v11307_v30 = vld [vmem:[#allocation123_spill] sm:$0xff]  ;;  %v11308_v62 = vld [vmem:[#allocation124_spill] sm:$0xff] }
 0x7e6   :  { %6294 = vmatpush1.bf16.msra.mxu0 %v11298_v49  ;;  %6358 = vmatpush1.bf16.msra.mxu1 %v11299_v3  ;;  %v11309_v49 = vld [vmem:[#allocation125_spill] sm:$0xff]  ;;  %v11310_v3 = vld [vmem:[#allocation126_spill] sm:$0xff] }
 0x7e7   :  { %6296 = vmatprep.subr.bf16.mxu0 %v11300_v12  ;;  %6360 = vmatprep.subr.bf16.mxu1 %v11301_v48  ;;  %v11311_v12 = vld [vmem:[#allocation127_spill] sm:$0xff]  ;;  %v11312_v48 = vld [vmem:[#allocation128_spill] sm:$0xff] }
 0x7ea   :  { %6298 = vmatpush1.bf16.msra.mxu0 %v11302_v10  ;;  %6362 = vmatpush1.bf16.msra.mxu1 %v11303_v9  ;;  %v11313_v10 = vld [vmem:[#allocation129_spill] sm:$0xff]  ;;  %v11314_v9 = vld [vmem:[#allocation130_spill] sm:$0xff] }
 0x7eb   :  { %6300 = vmatprep.subr.bf16.mxu0 %v11304_v45  ;;  %6364 = vmatprep.subr.bf16.mxu1 %v11305_v4  ;;  %v11315_v45 = vld [vmem:[#allocation131_spill] sm:$0xff]  ;;  %v11316_v4 = vld [vmem:[#allocation132_spill] sm:$0xff] }
 0x7ee   :  { %6302 = vmatpush1.bf16.msra.mxu0 %v11306_v53  ;;  %6366 = vmatpush1.bf16.msra.mxu1 %v11307_v30  ;;  %v11317_v53 = vld [vmem:[#allocation133_spill] sm:$0xff]  ;;  %v11318_v30 = vld [vmem:[#allocation134_spill] sm:$0xff] }
 0x7ef   :  { %6304 = vmatprep.subr.bf16.mxu0 %v11308_v62  ;;  %6368 = vmatprep.subr.bf16.mxu1 %v11309_v49  ;;  %v11319_v62 = vld [vmem:[#allocation135_spill] sm:$0xff]  ;;  %v11320_v49 = vld [vmem:[#allocation136_spill] sm:$0xff] }
 0x7f2   :  { %6306 = vmatpush1.bf16.msra.mxu0 %v11310_v3  ;;  %6370 = vmatpush1.bf16.msra.mxu1 %v11311_v12  ;;  %v11321_v3 = vld [vmem:[#allocation137_spill] sm:$0xff]  ;;  %v11322_v12 = vld [vmem:[#allocation138_spill] sm:$0xff] }
 0x7f3   :  { %6308 = vmatprep.subr.bf16.mxu0 %v11312_v48  ;;  %6372 = vmatprep.subr.bf16.mxu1 %v11313_v10  ;;  %v11323_v48 = vld [vmem:[#allocation139_spill] sm:$0xff]  ;;  %v11324_v10 = vld [vmem:[#allocation140_spill] sm:$0xff] }
 0x7f6   :  { %6310 = vmatpush1.bf16.msra.mxu0 %v11314_v9  ;;  %6374 = vmatpush1.bf16.msra.mxu1 %v11315_v45  ;;  %v11325_v9 = vld [vmem:[#allocation141_spill] sm:$0xff]  ;;  %v11326_v45 = vld [vmem:[#allocation142_spill] sm:$0xff] }
 0x7f7   :  { %6312 = vmatprep.subr.bf16.mxu0 %v11316_v4  ;;  %6376 = vmatprep.subr.bf16.mxu1 %v11317_v53  ;;  %v11327_v4 = vld [vmem:[#allocation143_spill] sm:$0xff]  ;;  %v11328_v53 = vld [vmem:[#allocation144_spill] sm:$0xff] }
 0x7fa   :  { %6314 = vmatpush1.bf16.msra.mxu0 %v11318_v30  ;;  %6378 = vmatpush1.bf16.msra.mxu1 %v11319_v62  ;;  %v11329_v30 = vld [vmem:[#allocation145_spill] sm:$0xff]  ;;  %v11330_v62 = vld [vmem:[#allocation146_spill] sm:$0xff] }
 0x7fb   :  { %6316 = vmatprep.subr.bf16.mxu0 %v11320_v49  ;;  %6380 = vmatprep.subr.bf16.mxu1 %v11321_v3  ;;  %v11331_v49 = vld [vmem:[#allocation147_spill] sm:$0xff]  ;;  %v11332_v3 = vld [vmem:[#allocation148_spill] sm:$0xff] }
 0x7fe   :  { %6318 = vmatpush1.bf16.msra.mxu0 %v11322_v12  ;;  %6382 = vmatpush1.bf16.msra.mxu1 %v11323_v48  ;;  %v11333_v12 = vld [vmem:[#allocation149_spill] sm:$0xff]  ;;  %v11334_v48 = vld [vmem:[#allocation150_spill] sm:$0xff] }
 0x7ff   :  { %6320 = vmatprep.subr.bf16.mxu0 %v11324_v10  ;;  %6384 = vmatprep.subr.bf16.mxu1 %v11325_v9  ;;  %v11335_v10 = vld [vmem:[#allocation151_spill] sm:$0xff]  ;;  %v11336_v9 = vld [vmem:[#allocation152_spill] sm:$0xff] }
 0x802   :  { %6322 = vmatpush1.bf16.msra.mxu0 %v11326_v45  ;;  %6386 = vmatpush1.bf16.msra.mxu1 %v11327_v4  ;;  %v11337_v45 = vld [vmem:[#allocation153_spill] sm:$0xff]  ;;  %v11338_v4 = vld [vmem:[#allocation154_spill] sm:$0xff] }
 0x803   :  { %6324 = vmatprep.subr.bf16.mxu0 %v11328_v53  ;;  %6388 = vmatprep.subr.bf16.mxu1 %v11329_v30  ;;  %v11339_v53 = vld [vmem:[#allocation155_spill] sm:$0xff]  ;;  %v11340_v30 = vld [vmem:[#allocation17_spill] sm:$0xff] }
 0x806   :  { %6326 = vmatpush1.bf16.msra.mxu0 %v11330_v62  ;;  %6390 = vmatpush1.bf16.msra.mxu1 %v11331_v49  ;;  %v11341_v62 = vld [vmem:[#allocation18_spill] sm:$0xff] }
 0x807   :  { %6328 = vmatprep.subr.bf16.mxu0 %v11332_v3  ;;  %6392 = vmatprep.subr.bf16.mxu1 %v11333_v12 }
 0x80a   :  { %6330 = vmatpush1.bf16.msra.mxu0 %v11334_v48  ;;  %6394 = vmatpush1.bf16.msra.mxu1 %v11335_v10 }
 0x80b   :  { %6332 = vmatprep.subr.bf16.mxu0 %v11336_v9  ;;  %6396 = vmatprep.subr.bf16.mxu1 %v11337_v45 }
 0x80e   :  { %6334 = vmatpush1.bf16.msra.mxu0 %v11338_v4  ;;  %6398 = vmatpush1.bf16.msra.mxu1 %v11339_v53 }
 0x80f   :  { %6400 = vmatprep.subr.bf16.mxu0 %v11340_v30  ;;  %6432 = vmatprep.subr.bf16.mxu1 %v11341_v62 }
 0x8a3   :  { %v2527_v49 = vpop.f32.mrb[28].mxu0  ;;  %v2598_v3 = vpop.f32.mrb[28].mxu1 }
 0x8a4   :  { %v2528_v12 = vadd.f32 %v2527_v49, %v11342_v51  ;;  %v2529_v41 = vpop.f32.mrb[29].mxu0  ;;  %v2600_v48 = vpop.f32.mrb[29].mxu1  ;;  %v2599_v4 = vadd.f32 %v2598_v3, %v9055_v13 }
 0x8a5   :  { %v2530_v10 = vadd.f32 %v2529_v41, %v11084_v55  ;;  %v2601_v53 = vadd.f32 %v2600_v48, %v9058_v57 }
 0x8a6   :  { %v5016_v27 = vmul.f32 -1.442695, %v2528_v12  ;;  %v5018_v45 = vmul.f32 -1.442695, %v2599_v4 }
 0x8a7   :  { %v5017_v9 = vmul.f32 -1.442695, %v2530_v10 }
 0x8a8   :  { %7939 = vpow2.f32 %v5016_v27 }
 0x8a9   :  { %7941 = vpow2.f32 %v5017_v9 }
 0x8aa   :  { %7943 = vtanh.f32 %v2601_v53 }
 0x8ab   :  { %7945 = vpow2.f32 %v5018_v45  ;;  %v11347_v45 = vld [vmem:[#allocation26_spill] sm:$0xff] }
 0x8b2   :  { %v7940_v30 = vpop.eup %7939 }
 0x8b3   :  { %v2612_v40 = vadd.f32 1.0, %v7940_v30  ;;  %v7942_v62 = vpop.eup %7941  ;;  %v11348_v30 = vld [vmem:[#allocation27_spill] sm:$0xff] }
 0x8b4   :  { %v2613_v49 = vadd.f32 1.0, %v7942_v62  ;;  %v7944_v51 = vpop.eup %7943  ;;  %v11349_v62 = vld [vmem:[#allocation28_spill] sm:$0xff] }
 0x8b5   :  { %7947 = vrcp.f32 %v2612_v40  ;;  %v7946_v59 = vpop.eup %7945  ;;  %v11345_v40 = vld [vmem:[#allocation24_spill] sm:$0xff] }
 0x8b6   :  { %7949 = vrcp.f32 %v2613_v49  ;;  %v2614_v27 = vadd.f32 1.0, %v7946_v59  ;;  %v11344_v59 = vld [vmem:[#allocation23_spill] sm:$0xff]  ;;  %v11350_v49 = vld [vmem:[#allocation29_spill] sm:$0xff] }
 0x8b8   :  { %7951 = vrcp.f32 %v2614_v27  ;;  %v11354_v27 = vld [vmem:[#allocation33_spill] sm:$0xff] }
 0x8bf   :  { %v7948_v41 = vpop.eup %7947 }
 0x8c0   :  { %v2623_v12 = vmul.f32 %v7948_v41, %v7944_v51  ;;  %v7950_v10 = vpop.eup %7949  ;;  %v11346_v51 = vld [vmem:[#allocation25_spill] sm:$0xff]  ;;  %v11351_v41 = vld [vmem:[#allocation30_spill] sm:$0xff] }
 0x8c1   :  { %v2622_v9 = vmul.f32 %v7950_v10, %v9460_v18  ;;  %v11343_v18 = vld [vmem:[#allocation22_spill] sm:$0xff]  ;;  %v11353_v10 = vld [vmem:[#allocation32_spill] sm:$0xff] }
 0x8c2   :  { %v7952_v48 = vpop.eup %7951 }
 0x8c3   :  { %v9652_v3 = vadd.f32 %v2623_v12, %v2622_v9  ;;  %v11352_v12 = vld [vmem:[#allocation31_spill] sm:$0xff] }
 0x8c4   :  { %v11356_v9 = vld [vmem:[#allocation35_spill] sm:$0xff] }
 0x8c5   :  { %7953 = vtanh.f32 %v9652_v3 }
 0x8cf   :  { %v7954_v4 = vpop.eup %7953 }
 0x8d0   :  { %v2626_v53 = vmul.f32 %v7954_v4, %v7952_v48  ;;  %v11357_v48 = vld [vmem:[#allocation36_spill] sm:$0xff]  ;;  %v11358_v4 = vld [vmem:[#allocation37_spill] sm:$0xff] }
 0x8d2   :  { %2692 = vmatmul.mubr.f32.vlgmr.msra.gmra.mrb[30].mxu0 %v2626_v53  ;;  %2763 = vmatmul.mubr.f32.vlgmr.msra.gmra.mrb[30].mxu1 %v2626_v53 }
 0x8d3   :  { %6402 = vmatpush1.bf16.msra.mxu0 %v8472_v22  ;;  %6434 = vmatpush1.bf16.msra.mxu1 %v8475_v25 }
 0x8d4   :  { %6404 = vmatprep.subr.bf16.mxu0 %v8479_v29  ;;  %6436 = vmatprep.subr.bf16.mxu1 %v8486_v34 }
 0x8d5   :  { %2861 = vmatprep.mubr.f32.mxu0 %v10897_v23  ;;  %2932 = vmatprep.mubr.f32.mxu1 %v10897_v23 }
 0x8d7   :  { %6406 = vmatpush1.bf16.msra.mxu0 %v8488_v35  ;;  %6438 = vmatpush1.bf16.msra.mxu1 %v8492_v38 }
 0x8d8   :  { %6408 = vmatprep.subr.bf16.mxu0 %v8496_v42  ;;  %6440 = vmatprep.subr.bf16.mxu1 %v8503_v47 }
 0x8db   :  { %6410 = vmatpush1.bf16.msra.mxu0 %v8507_v50  ;;  %6442 = vmatpush1.bf16.msra.mxu1 %v8511_v54 }
 0x8dc   :  { %6412 = vmatprep.subr.bf16.mxu0 %v8515_v58  ;;  %6444 = vmatprep.subr.bf16.mxu1 %v8519_v61 }
 0x8df   :  { %6414 = vmatpush1.bf16.msra.mxu0 %v8526_v2  ;;  %6446 = vmatpush1.bf16.msra.mxu1 %v8530_v5 }
 0x8e0   :  { %6416 = vmatprep.subr.bf16.mxu0 %v8534_v8  ;;  %6448 = vmatprep.subr.bf16.mxu1 %v8538_v11 }
 0x8e3   :  { %6418 = vmatpush1.bf16.msra.mxu0 %v8545_v15  ;;  %6450 = vmatpush1.bf16.msra.mxu1 %v8549_v19 }
 0x8e4   :  { %6420 = vmatprep.subr.bf16.mxu0 %v8553_v24  ;;  %6452 = vmatprep.subr.bf16.mxu1 %v8557_v28 }
 0x8e7   :  { %6422 = vmatpush1.bf16.msra.mxu0 %v8564_v33  ;;  %6454 = vmatpush1.bf16.msra.mxu1 %v8568_v39 }
 0x8e8   :  { %6424 = vmatprep.subr.bf16.mxu0 %v8572_v43  ;;  %6456 = vmatprep.subr.bf16.mxu1 %v8576_v46 }
 0x8eb   :  { %6426 = vmatpush1.bf16.msra.mxu0 %v8583_v52  ;;  %6458 = vmatpush1.bf16.msra.mxu1 %v8587_v56 }
 0x8ec   :  { %6428 = vmatprep.subr.bf16.mxu0 %v8591_v60  ;;  %6460 = vmatprep.subr.bf16.mxu1 %v8595_v1 }
 0x8ef   :  { %6430 = vmatpush1.bf16.msra.mxu0 %v8602_v7  ;;  %6462 = vmatpush1.bf16.msra.mxu1 %v11343_v18 }
 0x8f0   :  { %6464 = vmatprep.subr.bf16.mxu0 %v11344_v59  ;;  %6528 = vmatprep.subr.bf16.mxu1 %v11345_v40 }
 0x8f2   :  { %2862 = vmatmul.mubr.f32.vlgmr.msra.gmra.mrb[8].mxu0 %v9579_v0  ;;  %2933 = vmatmul.mubr.f32.vlgmr.msra.gmra.mrb[8].mxu1 %v9579_v0  ;;  %v11355_v0 = vld [vmem:[#allocation34_spill] sm:$0xff] }
 0x8f3   :  { %3031 = vmatprep.mubr.f32.mxu0 %v2626_v53  ;;  %3102 = vmatprep.mubr.f32.mxu1 %v2626_v53  ;;  %v11359_v53 = vld [vmem:[#allocation38_spill] sm:$0xff] }
 0x8f4   :  { %6466 = vmatpush1.bf16.msra.mxu0 %v11346_v51  ;;  %6530 = vmatpush1.bf16.msra.mxu1 %v11347_v45 }
 0x8f5   :  { %6468 = vmatprep.subr.bf16.mxu0 %v11348_v30  ;;  %6532 = vmatprep.subr.bf16.mxu1 %v11349_v62  ;;  %v11360_v62 = vld [vmem:[#allocation39_spill] sm:$0xff]  ;;  %v11410_v30 = vld [vmem:[#allocation158_spill] sm:$0xff] }
 0x8f8   :  { %6470 = vmatpush1.bf16.msra.mxu0 %v11350_v49  ;;  %6534 = vmatpush1.bf16.msra.mxu1 %v11351_v41  ;;  %v11361_v49 = vld [vmem:[#allocation40_spill] sm:$0xff]  ;;  %v11362_v41 = vld [vmem:[#allocation41_spill] sm:$0xff] }
 0x8f9   :  { %6472 = vmatprep.subr.bf16.mxu0 %v11352_v12  ;;  %6536 = vmatprep.subr.bf16.mxu1 %v11353_v10  ;;  %v11363_v12 = vld [vmem:[#allocation42_spill] sm:$0xff]  ;;  %v11364_v10 = vld [vmem:[#allocation43_spill] sm:$0xff] }
 0x8fc   :  { %6474 = vmatpush1.bf16.msra.mxu0 %v11354_v27  ;;  %6538 = vmatpush1.bf16.msra.mxu1 %v11355_v0  ;;  %v11365_v27 = vld [vmem:[#allocation44_spill] sm:$0xff]  ;;  %v11366_v0 = vld [vmem:[#allocation45_spill] sm:$0xff] }
 0x8fd   :  { %6476 = vmatprep.subr.bf16.mxu0 %v11356_v9  ;;  %6540 = vmatprep.subr.bf16.mxu1 %v11357_v48  ;;  %v11367_v9 = vld [vmem:[#allocation46_spill] sm:$0xff]  ;;  %v11368_v48 = vld [vmem:[#allocation47_spill] sm:$0xff] }
 0x900   :  { %6478 = vmatpush1.bf16.msra.mxu0 %v11358_v4  ;;  %6542 = vmatpush1.bf16.msra.mxu1 %v11359_v53  ;;  %v11369_v4 = vld [vmem:[#allocation48_spill] sm:$0xff]  ;;  %v11370_v53 = vld [vmem:[#allocation49_spill] sm:$0xff] }
 0x901   :  { %6480 = vmatprep.subr.bf16.mxu0 %v11360_v62  ;;  %6544 = vmatprep.subr.bf16.mxu1 %v11361_v49  ;;  %v11371_v62 = vld [vmem:[#allocation50_spill] sm:$0xff]  ;;  %v11372_v49 = vld [vmem:[#allocation51_spill] sm:$0xff] }
 0x904   :  { %6482 = vmatpush1.bf16.msra.mxu0 %v11362_v41  ;;  %6546 = vmatpush1.bf16.msra.mxu1 %v11363_v12  ;;  %v11373_v41 = vld [vmem:[#allocation52_spill] sm:$0xff]  ;;  %v11374_v12 = vld [vmem:[#allocation53_spill] sm:$0xff] }
 0x905   :  { %6484 = vmatprep.subr.bf16.mxu0 %v11364_v10  ;;  %6548 = vmatprep.subr.bf16.mxu1 %v11365_v27  ;;  %v11375_v10 = vld [vmem:[#allocation54_spill] sm:$0xff]  ;;  %v11376_v27 = vld [vmem:[#allocation55_spill] sm:$0xff] }
 0x908   :  { %6486 = vmatpush1.bf16.msra.mxu0 %v11366_v0  ;;  %6550 = vmatpush1.bf16.msra.mxu1 %v11367_v9  ;;  %v11377_v0 = vld [vmem:[#allocation56_spill] sm:$0xff]  ;;  %v11378_v9 = vld [vmem:[#allocation57_spill] sm:$0xff] }
 0x909   :  { %6488 = vmatprep.subr.bf16.mxu0 %v11368_v48  ;;  %6552 = vmatprep.subr.bf16.mxu1 %v11369_v4  ;;  %v11379_v48 = vld [vmem:[#allocation58_spill] sm:$0xff]  ;;  %v11380_v4 = vld [vmem:[#allocation59_spill] sm:$0xff] }
 0x90c   :  { %6490 = vmatpush1.bf16.msra.mxu0 %v11370_v53  ;;  %6554 = vmatpush1.bf16.msra.mxu1 %v11371_v62  ;;  %v11381_v53 = vld [vmem:[#allocation60_spill] sm:$0xff]  ;;  %v11382_v62 = vld [vmem:[#allocation61_spill] sm:$0xff] }
 0x90d   :  { %6492 = vmatprep.subr.bf16.mxu0 %v11372_v49  ;;  %6556 = vmatprep.subr.bf16.mxu1 %v11373_v41  ;;  %v11383_v49 = vld [vmem:[#allocation62_spill] sm:$0xff]  ;;  %v11384_v41 = vld [vmem:[#allocation63_spill] sm:$0xff] }
 0x910   :  { %6494 = vmatpush1.bf16.msra.mxu0 %v11374_v12  ;;  %6558 = vmatpush1.bf16.msra.mxu1 %v11375_v10  ;;  %v11385_v12 = vld [vmem:[#allocation64_spill] sm:$0xff]  ;;  %v11386_v10 = vld [vmem:[#allocation65_spill] sm:$0xff] }
 0x911   :  { %6496 = vmatprep.subr.bf16.mxu0 %v11376_v27  ;;  %6560 = vmatprep.subr.bf16.mxu1 %v11377_v0  ;;  %v11387_v27 = vld [vmem:[#allocation66_spill] sm:$0xff]  ;;  %v11388_v0 = vld [vmem:[#allocation67_spill] sm:$0xff] }
 0x914   :  { %6498 = vmatpush1.bf16.msra.mxu0 %v11378_v9  ;;  %6562 = vmatpush1.bf16.msra.mxu1 %v11379_v48  ;;  %v11389_v9 = vld [vmem:[#allocation68_spill] sm:$0xff]  ;;  %v11390_v48 = vld [vmem:[#allocation69_spill] sm:$0xff] }
 0x915   :  { %6500 = vmatprep.subr.bf16.mxu0 %v11380_v4  ;;  %6564 = vmatprep.subr.bf16.mxu1 %v11381_v53  ;;  %v11391_v4 = vld [vmem:[#allocation70_spill] sm:$0xff]  ;;  %v11392_v53 = vld [vmem:[#allocation71_spill] sm:$0xff] }
 0x918   :  { %6502 = vmatpush1.bf16.msra.mxu0 %v11382_v62  ;;  %6566 = vmatpush1.bf16.msra.mxu1 %v11383_v49  ;;  %v11393_v62 = vld [vmem:[#allocation72_spill] sm:$0xff]  ;;  %v11394_v49 = vld [vmem:[#allocation73_spill] sm:$0xff] }
 0x919   :  { %6504 = vmatprep.subr.bf16.mxu0 %v11384_v41  ;;  %6568 = vmatprep.subr.bf16.mxu1 %v11385_v12  ;;  %v11395_v41 = vld [vmem:[#allocation74_spill] sm:$0xff]  ;;  %v11396_v12 = vld [vmem:[#allocation75_spill] sm:$0xff] }
 0x91c   :  { %6506 = vmatpush1.bf16.msra.mxu0 %v11386_v10  ;;  %6570 = vmatpush1.bf16.msra.mxu1 %v11387_v27  ;;  %v11397_v10 = vld [vmem:[#allocation76_spill] sm:$0xff]  ;;  %v11398_v27 = vld [vmem:[#allocation77_spill] sm:$0xff] }
 0x91d   :  { %6508 = vmatprep.subr.bf16.mxu0 %v11388_v0  ;;  %6572 = vmatprep.subr.bf16.mxu1 %v11389_v9  ;;  %v11399_v0 = vld [vmem:[#allocation78_spill] sm:$0xff]  ;;  %v11400_v9 = vld [vmem:[#allocation79_spill] sm:$0xff] }
 0x920   :  { %6510 = vmatpush1.bf16.msra.mxu0 %v11390_v48  ;;  %6574 = vmatpush1.bf16.msra.mxu1 %v11391_v4  ;;  %v11401_v48 = vld [vmem:[#allocation80_spill] sm:$0xff]  ;;  %v11402_v4 = vld [vmem:[#allocation81_spill] sm:$0xff] }
 0x921   :  { %6512 = vmatprep.subr.bf16.mxu0 %v11392_v53  ;;  %6576 = vmatprep.subr.bf16.mxu1 %v11393_v62  ;;  %v11403_v53 = vld [vmem:[#allocation82_spill] sm:$0xff]  ;;  %v11404_v62 = vld [vmem:[#allocation83_spill] sm:$0xff] }
 0x924   :  { %6514 = vmatpush1.bf16.msra.mxu0 %v11394_v49  ;;  %6578 = vmatpush1.bf16.msra.mxu1 %v11395_v41  ;;  %v11405_v49 = vld [vmem:[#allocation84_spill] sm:$0xff]  ;;  %v11406_v41 = vld [vmem:[#allocation85_spill] sm:$0xff] }
 0x925   :  { %6516 = vmatprep.subr.bf16.mxu0 %v11396_v12  ;;  %6580 = vmatprep.subr.bf16.mxu1 %v11397_v10  ;;  %v11407_v12 = vld [vmem:[#allocation86_spill] sm:$0xff]  ;;  %v11408_v10 = vld [vmem:[#allocation87_spill] sm:$0xff] }
 0x928   :  { %6518 = vmatpush1.bf16.msra.mxu0 %v11398_v27  ;;  %6582 = vmatpush1.bf16.msra.mxu1 %v11399_v0  ;;  %v11409_v27 = vld [vmem:[#allocation88_spill] sm:$0xff] }
 0x929   :  { %6520 = vmatprep.subr.bf16.mxu0 %v11400_v9  ;;  %6584 = vmatprep.subr.bf16.mxu1 %v11401_v48 }
 0x92c   :  { %6522 = vmatpush1.bf16.msra.mxu0 %v11402_v4  ;;  %6586 = vmatpush1.bf16.msra.mxu1 %v11403_v53 }
 0x92d   :  { %6524 = vmatprep.subr.bf16.mxu0 %v11404_v62  ;;  %6588 = vmatprep.subr.bf16.mxu1 %v11405_v49  ;;  %v11411_v49 = vld [vmem:[#allocation160_spill] sm:$0xff] }
 0x930   :  { %6526 = vmatpush1.bf16.msra.mxu0 %v11406_v41  ;;  %6590 = vmatpush1.bf16.msra.mxu1 %v11407_v12 }
 0x931   :  { %6592 = vmatprep.subr.bf16.mxu0 %v11408_v10  ;;  %6656 = vmatprep.subr.bf16.mxu1 %v11409_v27 }
 0x9a5   :  { %v2693_v0 = vpop.f32.mrb[30].mxu0  ;;  %v2764_v9 = vpop.f32.mrb[30].mxu1 }
 0x9a6   :  { %v2694_v48 = vadd.f32 %v2693_v0, %v11410_v30  ;;  %v2695_v45 = vpop.f32.mrb[31].mxu0  ;;  %v2766_v4 = vpop.f32.mrb[31].mxu1 }
 0x9a7   :  { %v2696_v53 = vadd.f32 %v2695_v45, %v11150_v26  ;;  %v2767_v41 = vadd.f32 %v2766_v4, %v11411_v49 }
 0x9a8   :  { %v5019_v51 = vmul.f32 -1.442695, %v2694_v48 }
 0x9a9   :  { %v5020_v62 = vmul.f32 -1.442695, %v2696_v53 }
 0x9aa   :  { %7955 = vpow2.f32 %v5019_v51  ;;  %v11412_v51 = vld [vmem:[#allocation89_spill] sm:$0xff] }
 0x9ab   :  { %7957 = vpow2.f32 %v5020_v62 }
 0x9ac   :  { %7959 = vtanh.f32 %v2767_v41 }
 0x9b4   :  { %v7956_v40 = vpop.eup %7955 }
 0x9b5   :  { %v2778_v12 = vadd.f32 1.0, %v7956_v40  ;;  %v7958_v59 = vpop.eup %7957 }
 0x9b6   :  { %v2779_v27 = vadd.f32 1.0, %v7958_v59  ;;  %v7960_v10 = vpop.eup %7959 }
 0x9b7   :  { %7961 = vrcp.f32 %v2778_v12 }
 0x9b8   :  { %7963 = vrcp.f32 %v2779_v27 }
 0x9c1   :  { %v7962_v18 = vpop.eup %7961 }
 0x9c2   :  { %v2789_v0 = vmul.f32 %v7962_v18, %v7960_v10  ;;  %v7964_v30 = vpop.eup %7963  ;;  %v2765_v18 = vadd.f32 %v2764_v9, %v9185_v44  ;;  %v11413_v10 = vld [vmem:[#allocation92_spill] sm:$0xff] }
 0x9c3   :  { %v2788_v7 = vmul.f32 %v7964_v30, %v9567_v14 }
 0x9c5   :  { %v2863_v45 = vpop.f32.mrb[8].mxu0  ;;  %v2934_v48 = vpop.f32.mrb[8].mxu1  ;;  %v9759_v53 = vadd.f32 %v2789_v0, %v2788_v7  ;;  %v5021_v7 = vmul.f32 -1.442695, %v2765_v18 }
 0x9c6   :  { %v7711_v62 = vadd.f32 %v2863_v45, %v11412_v51  ;;  %v2865_v4 = vpop.f32.mrb[9].mxu0  ;;  %v2936_v49 = vpop.f32.mrb[9].mxu1  ;;  %v7727_v59 = vadd.f32 %v2934_v48, %v11021_v37 }
 0x9c7   :  { %v7712_v40 = vadd.f32 %v2865_v4, %v11020_v63  ;;  %v7728_v14 = vadd.f32 %v2936_v49, %v11413_v10 }
 0x9c8   :  { %v5022_v41 = vmul.f32 -1.442695, %v7711_v62  ;;  %v5024_v30 = vmul.f32 -1.442695, %v7727_v59 }
 0x9c9   :  { %v5023_v12 = vmul.f32 -1.442695, %v7712_v40 }
 0x9ca   :  { %7965 = vpow2.f32 %v5022_v41 }
 0x9cb   :  { %7967 = vpow2.f32 %v5023_v12 }
 0x9cc   :  { %7969 = vtanh.f32 %v7728_v14 }
 0x9cd   :  { %7971 = vpow2.f32 %v5024_v30 }
 0x9d4   :  { %v7966_v27 = vpop.eup %7965 }
 0x9d5   :  { %v2952_v0 = vadd.f32 1.0, %v7966_v27  ;;  %v7968_v45 = vpop.eup %7967 }
 0x9d6   :  { %v2953_v51 = vadd.f32 1.0, %v7968_v45  ;;  %v7970_v62 = vpop.eup %7969  ;;  %v11416_v45 = vld [vmem:[#allocation103_spill] sm:$0xff] }
 0x9d7   :  { %7973 = vrcp.f32 %v2952_v0  ;;  %v7972_v4 = vpop.eup %7971  ;;  %v11415_v0 = vld [vmem:[#allocation102_spill] sm:$0xff] }
 0x9d8   :  { %7975 = vpow2.f32 %v5021_v7  ;;  %v2954_v9 = vadd.f32 1.0, %v7972_v4  ;;  %v11418_v4 = vld [vmem:[#allocation105_spill] sm:$0xff] }
 0x9d9   :  { %7977 = vrcp.f32 %v2953_v51 }
 0x9da   :  { %7979 = vtanh.f32 %v9759_v53 }
 0x9db   :  { %7981 = vrcp.f32 %v2954_v9  ;;  %v11423_v9 = vld [vmem:[#allocation110_spill] sm:$0xff] }
 0x9e1   :  { %v7974_v40 = vpop.eup %7973 }
 0x9e2   :  { %v7976_v41 = vpop.eup %7975  ;;  %v2963_v48 = vmul.f32 %v7974_v40, %v7970_v62  ;;  %v11417_v62 = vld [vmem:[#allocation104_spill] sm:$0xff]  ;;  %v11419_v40 = vld [vmem:[#allocation106_spill] sm:$0xff] }
 0x9e3   :  { %v7978_v12 = vpop.eup %7977  ;;  %v2780_v59 = vadd.f32 1.0, %v7976_v41  ;;  %v11420_v41 = vld [vmem:[#allocation107_spill] sm:$0xff] }
 0x9e4   :  { %v2962_v49 = vmul.f32 %v7978_v12, %v9575_v32  ;;  %v7980_v18 = vpop.eup %7979  ;;  %v11414_v32 = vld [vmem:[#allocation101_spill] sm:$0xff] }
 0x9e5   :  { %v7982_v51 = vpop.eup %7981  ;;  %v11422_v12 = vld [vmem:[#allocation109_spill] sm:$0xff] }
 0x9e6   :  { %v9767_v10 = vadd.f32 %v2963_v48, %v2962_v49  ;;  %v11421_v48 = vld [vmem:[#allocation108_spill] sm:$0xff]  ;;  %v11424_v49 = vld [vmem:[#allocation111_spill] sm:$0xff] }
 0x9e8   :  { %7983 = vtanh.f32 %v9767_v10 }
 0x9e9   :  { %7985 = vrcp.f32 %v2780_v59  ;;  %v11425_v59 = vld [vmem:[#allocation112_spill] sm:$0xff] }
 0x9f2   :  { %v7984_v14 = vpop.eup %7983 }
 0x9f3   :  { %v7986_v30 = vpop.eup %7985  ;;  %v9771_v27 = vmul.f32 %v7984_v14, %v7982_v51  ;;  %v11427_v51 = vld [vmem:[#allocation114_spill] sm:$0xff]  ;;  %v11428_v14 = vld [vmem:[#allocation115_spill] sm:$0xff] }
 0x9f4   :  { %v2792_v7 = vmul.f32 %v7986_v30, %v7980_v18  ;;  %v11426_v18 = vld [vmem:[#allocation113_spill] sm:$0xff]  ;;  %v11429_v30 = vld [vmem:[#allocation116_spill] sm:$0xff] }
 0x9f5   :  { %3032 = vmatmul.mubr.f32.vlgmr.msra.gmra.mrb[32].mxu0 %v9771_v27  ;;  %3103 = vmatmul.mubr.f32.vlgmr.msra.gmra.mrb[32].mxu1 %v9771_v27 }
 0x9f6   :  { %3197 = vmatprep.mubr.f32.mxu0 %v2792_v7  ;;  %3268 = vmatprep.mubr.f32.mxu1 %v2792_v7  ;;  %v11430_v7 = vld [vmem:[#allocation117_spill] sm:$0xff] }
 0x9f7   :  { %6594 = vmatpush1.bf16.msra.mxu0 %v11024_v6  ;;  %6658 = vmatpush1.bf16.msra.mxu1 %v11025_v31 }
 0x9f8   :  { %6596 = vmatprep.subr.bf16.mxu0 %v11026_v36  ;;  %6660 = vmatprep.subr.bf16.mxu1 %v11027_v16 }
 0x9fb   :  { %6598 = vmatpush1.bf16.msra.mxu0 %v11028_v17  ;;  %6662 = vmatpush1.bf16.msra.mxu1 %v11154_v21 }
 0x9fc   :  { %6600 = vmatprep.subr.bf16.mxu0 %v11284_v20  ;;  %6664 = vmatprep.subr.bf16.mxu1 %v11414_v32 }
 0x9ff   :  { %6602 = vmatpush1.bf16.msra.mxu0 %v11415_v0  ;;  %6666 = vmatpush1.bf16.msra.mxu1 %v11416_v45 }
 0xa00   :  { %6604 = vmatprep.subr.bf16.mxu0 %v11417_v62  ;;  %6668 = vmatprep.subr.bf16.mxu1 %v11418_v4 }
 0xa03   :  { %6606 = vmatpush1.bf16.msra.mxu0 %v11419_v40  ;;  %6670 = vmatpush1.bf16.msra.mxu1 %v11420_v41  ;;  %v11431_v41 = vld [vmem:[#allocation118_spill] sm:$0xff]  ;;  %v11471_v40 = vld [vmem:[#allocation156_spill] sm:$0xff] }
 0xa04   :  { %6608 = vmatprep.subr.bf16.mxu0 %v11421_v48  ;;  %6672 = vmatprep.subr.bf16.mxu1 %v11422_v12  ;;  %v11432_v48 = vld [vmem:[#allocation119_spill] sm:$0xff]  ;;  %v11433_v12 = vld [vmem:[#allocation120_spill] sm:$0xff] }
 0xa07   :  { %6610 = vmatpush1.bf16.msra.mxu0 %v11423_v9  ;;  %6674 = vmatpush1.bf16.msra.mxu1 %v11424_v49  ;;  %v11434_v9 = vld [vmem:[#allocation121_spill] sm:$0xff]  ;;  %v11435_v49 = vld [vmem:[#allocation122_spill] sm:$0xff] }
 0xa08   :  { %6612 = vmatprep.subr.bf16.mxu0 %v11425_v59  ;;  %6676 = vmatprep.subr.bf16.mxu1 %v11426_v18  ;;  %v11436_v59 = vld [vmem:[#allocation123_spill] sm:$0xff]  ;;  %v11437_v18 = vld [vmem:[#allocation124_spill] sm:$0xff] }
 0xa0b   :  { %6614 = vmatpush1.bf16.msra.mxu0 %v11427_v51  ;;  %6678 = vmatpush1.bf16.msra.mxu1 %v11428_v14  ;;  %v11438_v51 = vld [vmem:[#allocation125_spill] sm:$0xff]  ;;  %v11439_v14 = vld [vmem:[#allocation126_spill] sm:$0xff] }
 0xa0c   :  { %6616 = vmatprep.subr.bf16.mxu0 %v11429_v30  ;;  %6680 = vmatprep.subr.bf16.mxu1 %v11430_v7  ;;  %v11440_v30 = vld [vmem:[#allocation127_spill] sm:$0xff]  ;;  %v11441_v7 = vld [vmem:[#allocation128_spill] sm:$0xff] }
 0xa0f   :  { %6618 = vmatpush1.bf16.msra.mxu0 %v11431_v41  ;;  %6682 = vmatpush1.bf16.msra.mxu1 %v11432_v48  ;;  %v11442_v41 = vld [vmem:[#allocation129_spill] sm:$0xff]  ;;  %v11443_v48 = vld [vmem:[#allocation130_spill] sm:$0xff] }
 0xa10   :  { %6620 = vmatprep.subr.bf16.mxu0 %v11433_v12  ;;  %6684 = vmatprep.subr.bf16.mxu1 %v11434_v9  ;;  %v11444_v12 = vld [vmem:[#allocation131_spill] sm:$0xff]  ;;  %v11445_v9 = vld [vmem:[#allocation132_spill] sm:$0xff] }
 0xa13   :  { %6622 = vmatpush1.bf16.msra.mxu0 %v11435_v49  ;;  %6686 = vmatpush1.bf16.msra.mxu1 %v11436_v59  ;;  %v11446_v49 = vld [vmem:[#allocation133_spill] sm:$0xff]  ;;  %v11447_v59 = vld [vmem:[#allocation134_spill] sm:$0xff] }
 0xa14   :  { %6624 = vmatprep.subr.bf16.mxu0 %v11437_v18  ;;  %6688 = vmatprep.subr.bf16.mxu1 %v11438_v51  ;;  %v11448_v18 = vld [vmem:[#allocation135_spill] sm:$0xff]  ;;  %v11449_v51 = vld [vmem:[#allocation136_spill] sm:$0xff] }
 0xa17   :  { %6626 = vmatpush1.bf16.msra.mxu0 %v11439_v14  ;;  %6690 = vmatpush1.bf16.msra.mxu1 %v11440_v30  ;;  %v11450_v14 = vld [vmem:[#allocation137_spill] sm:$0xff]  ;;  %v11451_v30 = vld [vmem:[#allocation138_spill] sm:$0xff] }
 0xa18   :  { %6628 = vmatprep.subr.bf16.mxu0 %v11441_v7  ;;  %6692 = vmatprep.subr.bf16.mxu1 %v11442_v41  ;;  %v11452_v7 = vld [vmem:[#allocation139_spill] sm:$0xff]  ;;  %v11453_v41 = vld [vmem:[#allocation140_spill] sm:$0xff] }
 0xa1b   :  { %6630 = vmatpush1.bf16.msra.mxu0 %v11443_v48  ;;  %6694 = vmatpush1.bf16.msra.mxu1 %v11444_v12  ;;  %v11454_v48 = vld [vmem:[#allocation141_spill] sm:$0xff]  ;;  %v11455_v12 = vld [vmem:[#allocation142_spill] sm:$0xff] }
 0xa1c   :  { %6632 = vmatprep.subr.bf16.mxu0 %v11445_v9  ;;  %6696 = vmatprep.subr.bf16.mxu1 %v11446_v49  ;;  %v11456_v9 = vld [vmem:[#allocation143_spill] sm:$0xff]  ;;  %v11457_v49 = vld [vmem:[#allocation144_spill] sm:$0xff] }
 0xa1f   :  { %6634 = vmatpush1.bf16.msra.mxu0 %v11447_v59  ;;  %6698 = vmatpush1.bf16.msra.mxu1 %v11448_v18  ;;  %v11458_v59 = vld [vmem:[#allocation145_spill] sm:$0xff]  ;;  %v11459_v18 = vld [vmem:[#allocation146_spill] sm:$0xff] }
 0xa20   :  { %6636 = vmatprep.subr.bf16.mxu0 %v11449_v51  ;;  %6700 = vmatprep.subr.bf16.mxu1 %v11450_v14  ;;  %v11460_v51 = vld [vmem:[#allocation147_spill] sm:$0xff]  ;;  %v11461_v14 = vld [vmem:[#allocation148_spill] sm:$0xff] }
 0xa23   :  { %6638 = vmatpush1.bf16.msra.mxu0 %v11451_v30  ;;  %6702 = vmatpush1.bf16.msra.mxu1 %v11452_v7  ;;  %v11462_v30 = vld [vmem:[#allocation149_spill] sm:$0xff]  ;;  %v11463_v7 = vld [vmem:[#allocation150_spill] sm:$0xff] }
 0xa24   :  { %6640 = vmatprep.subr.bf16.mxu0 %v11453_v41  ;;  %6704 = vmatprep.subr.bf16.mxu1 %v11454_v48  ;;  %v11464_v41 = vld [vmem:[#allocation151_spill] sm:$0xff]  ;;  %v11465_v48 = vld [vmem:[#allocation152_spill] sm:$0xff] }
 0xa27   :  { %6642 = vmatpush1.bf16.msra.mxu0 %v11455_v12  ;;  %6706 = vmatpush1.bf16.msra.mxu1 %v11456_v9  ;;  %v11466_v12 = vld [vmem:[#allocation153_spill] sm:$0xff]  ;;  %v11467_v9 = vld [vmem:[#allocation154_spill] sm:$0xff] }
 0xa28   :  { %6644 = vmatprep.subr.bf16.mxu0 %v11457_v49  ;;  %6708 = vmatprep.subr.bf16.mxu1 %v11458_v59  ;;  %v11468_v49 = vld [vmem:[#allocation155_spill] sm:$0xff]  ;;  %v11469_v59 = vld [vmem:[#allocation17_spill] sm:$0xff] }
 0xa2b   :  { %6646 = vmatpush1.bf16.msra.mxu0 %v11459_v18  ;;  %6710 = vmatpush1.bf16.msra.mxu1 %v11460_v51  ;;  %v11470_v18 = vld [vmem:[#allocation18_spill] sm:$0xff] }
 0xa2c   :  { %6648 = vmatprep.subr.bf16.mxu0 %v11461_v14  ;;  %6712 = vmatprep.subr.bf16.mxu1 %v11462_v30 }
 0xa2f   :  { %6650 = vmatpush1.bf16.msra.mxu0 %v11463_v7  ;;  %6714 = vmatpush1.bf16.msra.mxu1 %v11464_v41 }
 0xa30   :  { %6652 = vmatprep.subr.bf16.mxu0 %v11465_v48  ;;  %6716 = vmatprep.subr.bf16.mxu1 %v11466_v12 }
 0xa33   :  { %6654 = vmatpush1.bf16.msra.mxu0 %v11467_v9  ;;  %6718 = vmatpush1.bf16.msra.mxu1 %v11468_v49 }
 0xa34   :  { %6720 = vmatprep.subr.bf16.mxu0 %v11469_v59  ;;  %6752 = vmatprep.subr.bf16.mxu1 %v11470_v18 }
 0xac8   :  { %v3033_v51 = vpop.f32.mrb[32].mxu0  ;;  %v3104_v14 = vpop.f32.mrb[32].mxu1 }
 0xac9   :  { %v3034_v30 = vadd.f32 %v3033_v51, %v11471_v40  ;;  %v3035_v4 = vpop.f32.mrb[33].mxu0  ;;  %v3106_v7 = vpop.f32.mrb[33].mxu1  ;;  %v3105_v9 = vadd.f32 %v3104_v14, %v9055_v13 }
 0xaca   :  { %v3036_v41 = vadd.f32 %v3035_v4, %v11084_v55  ;;  %v3107_v49 = vadd.f32 %v3106_v7, %v9058_v57  ;;  %v11478_v7 = vld [vmem:[#allocation27_spill] sm:$0xff] }
 0xacb   :  { %v5025_v62 = vmul.f32 -1.442695, %v3034_v30  ;;  %v5027_v12 = vmul.f32 -1.442695, %v3105_v9 }
 0xacc   :  { %v5026_v48 = vmul.f32 -1.442695, %v3036_v41 }
 0xacd   :  { %7987 = vpow2.f32 %v5025_v62 }
 0xace   :  { %7989 = vpow2.f32 %v5026_v48 }
 0xacf   :  { %7991 = vtanh.f32 %v3107_v49 }
 0xad0   :  { %7993 = vpow2.f32 %v5027_v12  ;;  %v11476_v12 = vld [vmem:[#allocation25_spill] sm:$0xff] }
 0xad7   :  { %v7988_v59 = vpop.eup %7987 }
 0xad8   :  { %v3118_v45 = vadd.f32 1.0, %v7988_v59  ;;  %v7990_v18 = vpop.eup %7989 }
 0xad9   :  { %v3119_v51 = vadd.f32 1.0, %v7990_v18  ;;  %v7992_v40 = vpop.eup %7991  ;;  %v11477_v18 = vld [vmem:[#allocation26_spill] sm:$0xff] }
 0xada   :  { %7995 = vrcp.f32 %v3118_v45  ;;  %v7994_v0 = vpop.eup %7993  ;;  %v11474_v45 = vld [vmem:[#allocation23_spill] sm:$0xff] }
 0xadb   :  { %7997 = vrcp.f32 %v3119_v51  ;;  %v3120_v62 = vadd.f32 1.0, %v7994_v0  ;;  %v11473_v0 = vld [vmem:[#allocation22_spill] sm:$0xff]  ;;  %v11479_v51 = vld [vmem:[#allocation28_spill] sm:$0xff] }
 0xadd   :  { %7999 = vrcp.f32 %v3120_v62  ;;  %v11483_v62 = vld [vmem:[#allocation32_spill] sm:$0xff] }
 0xae4   :  { %v7996_v4 = vpop.eup %7995 }
 0xae5   :  { %v3129_v30 = vmul.f32 %v7996_v4, %v7992_v40  ;;  %v7998_v41 = vpop.eup %7997  ;;  %v11475_v40 = vld [vmem:[#allocation24_spill] sm:$0xff]  ;;  %v11480_v4 = vld [vmem:[#allocation29_spill] sm:$0xff] }
 0xae6   :  { %v3128_v48 = vmul.f32 %v7998_v41, %v9652_v3  ;;  %v11472_v3 = vld [vmem:[#allocation21_spill] sm:$0xff]  ;;  %v11482_v41 = vld [vmem:[#allocation31_spill] sm:$0xff] }
 0xae7   :  { %v8000_v9 = vpop.eup %7999 }
 0xae8   :  { %v9844_v14 = vadd.f32 %v3129_v30, %v3128_v48  ;;  %v11481_v30 = vld [vmem:[#allocation30_spill] sm:$0xff]  ;;  %v11484_v48 = vld [vmem:[#allocation33_spill] sm:$0xff] }
 0xaea   :  { %8001 = vtanh.f32 %v9844_v14 }
 0xaf4   :  { %v8002_v49 = vpop.eup %8001 }
 0xaf5   :  { %v3132_v59 = vmul.f32 %v8002_v49, %v8000_v9  ;;  %v11486_v9 = vld [vmem:[#allocation35_spill] sm:$0xff]  ;;  %v11487_v49 = vld [vmem:[#allocation36_spill] sm:$0xff] }
 0xaf7   :  { %3198 = vmatmul.mubr.f32.vlgmr.msra.gmra.mrb[34].mxu0 %v3132_v59  ;;  %3269 = vmatmul.mubr.f32.vlgmr.msra.gmra.mrb[34].mxu1 %v3132_v59 }
 0xaf8   :  { %6722 = vmatpush1.bf16.msra.mxu0 %v8472_v22  ;;  %6754 = vmatpush1.bf16.msra.mxu1 %v8475_v25 }
 0xaf9   :  { %6724 = vmatprep.subr.bf16.mxu0 %v8479_v29  ;;  %6756 = vmatprep.subr.bf16.mxu1 %v8486_v34 }
 0xafa   :  { %3367 = vmatprep.mubr.f32.mxu0 %v10897_v23  ;;  %3438 = vmatprep.mubr.f32.mxu1 %v10897_v23 }
 0xafc   :  { %6726 = vmatpush1.bf16.msra.mxu0 %v8488_v35  ;;  %6758 = vmatpush1.bf16.msra.mxu1 %v8492_v38 }
 0xafd   :  { %6728 = vmatprep.subr.bf16.mxu0 %v8496_v42  ;;  %6760 = vmatprep.subr.bf16.mxu1 %v8503_v47 }
 0xb00   :  { %6730 = vmatpush1.bf16.msra.mxu0 %v8507_v50  ;;  %6762 = vmatpush1.bf16.msra.mxu1 %v8511_v54 }
 0xb01   :  { %6732 = vmatprep.subr.bf16.mxu0 %v8515_v58  ;;  %6764 = vmatprep.subr.bf16.mxu1 %v8519_v61 }
 0xb04   :  { %6734 = vmatpush1.bf16.msra.mxu0 %v8526_v2  ;;  %6766 = vmatpush1.bf16.msra.mxu1 %v8530_v5 }
 0xb05   :  { %6736 = vmatprep.subr.bf16.mxu0 %v8534_v8  ;;  %6768 = vmatprep.subr.bf16.mxu1 %v8538_v11 }
 0xb08   :  { %6738 = vmatpush1.bf16.msra.mxu0 %v8545_v15  ;;  %6770 = vmatpush1.bf16.msra.mxu1 %v8549_v19 }
 0xb09   :  { %6740 = vmatprep.subr.bf16.mxu0 %v8553_v24  ;;  %6772 = vmatprep.subr.bf16.mxu1 %v8557_v28 }
 0xb0c   :  { %6742 = vmatpush1.bf16.msra.mxu0 %v8564_v33  ;;  %6774 = vmatpush1.bf16.msra.mxu1 %v8568_v39 }
 0xb0d   :  { %6744 = vmatprep.subr.bf16.mxu0 %v8572_v43  ;;  %6776 = vmatprep.subr.bf16.mxu1 %v8576_v46 }
 0xb10   :  { %6746 = vmatpush1.bf16.msra.mxu0 %v8583_v52  ;;  %6778 = vmatpush1.bf16.msra.mxu1 %v8587_v56 }
 0xb11   :  { %6748 = vmatprep.subr.bf16.mxu0 %v8591_v60  ;;  %6780 = vmatprep.subr.bf16.mxu1 %v8595_v1 }
 0xb14   :  { %6750 = vmatpush1.bf16.msra.mxu0 %v11472_v3  ;;  %6782 = vmatpush1.bf16.msra.mxu1 %v11473_v0 }
 0xb15   :  { %6784 = vmatprep.subr.bf16.mxu0 %v11474_v45  ;;  %6848 = vmatprep.subr.bf16.mxu1 %v11475_v40 }
 0xb17   :  { %3368 = vmatmul.mubr.f32.vlgmr.msra.gmra.mrb[10].mxu0 %v9771_v27  ;;  %3439 = vmatmul.mubr.f32.vlgmr.msra.gmra.mrb[10].mxu1 %v9771_v27  ;;  %v11485_v27 = vld [vmem:[#allocation34_spill] sm:$0xff] }
 0xb18   :  { %3537 = vmatprep.mubr.f32.mxu0 %v3132_v59  ;;  %3608 = vmatprep.mubr.f32.mxu1 %v3132_v59  ;;  %v11488_v59 = vld [vmem:[#allocation37_spill] sm:$0xff] }
 0xb19   :  { %6786 = vmatpush1.bf16.msra.mxu0 %v11476_v12  ;;  %6850 = vmatpush1.bf16.msra.mxu1 %v11477_v18  ;;  %v11540_v18 = vld [vmem:[#allocation158_spill] sm:$0xff] }
 0xb1a   :  { %6788 = vmatprep.subr.bf16.mxu0 %v11478_v7  ;;  %6852 = vmatprep.subr.bf16.mxu1 %v11479_v51  ;;  %v11489_v7 = vld [vmem:[#allocation38_spill] sm:$0xff]  ;;  %v11490_v51 = vld [vmem:[#allocation39_spill] sm:$0xff] }
 0xb1d   :  { %6790 = vmatpush1.bf16.msra.mxu0 %v11480_v4  ;;  %6854 = vmatpush1.bf16.msra.mxu1 %v11481_v30  ;;  %v11491_v4 = vld [vmem:[#allocation40_spill] sm:$0xff]  ;;  %v11492_v30 = vld [vmem:[#allocation41_spill] sm:$0xff] }
 0xb1e   :  { %6792 = vmatprep.subr.bf16.mxu0 %v11482_v41  ;;  %6856 = vmatprep.subr.bf16.mxu1 %v11483_v62  ;;  %v11493_v41 = vld [vmem:[#allocation42_spill] sm:$0xff]  ;;  %v11494_v62 = vld [vmem:[#allocation43_spill] sm:$0xff] }
 0xb21   :  { %6794 = vmatpush1.bf16.msra.mxu0 %v11484_v48  ;;  %6858 = vmatpush1.bf16.msra.mxu1 %v11485_v27  ;;  %v11495_v48 = vld [vmem:[#allocation44_spill] sm:$0xff]  ;;  %v11496_v27 = vld [vmem:[#allocation45_spill] sm:$0xff] }
 0xb22   :  { %6796 = vmatprep.subr.bf16.mxu0 %v11486_v9  ;;  %6860 = vmatprep.subr.bf16.mxu1 %v11487_v49  ;;  %v11497_v9 = vld [vmem:[#allocation46_spill] sm:$0xff]  ;;  %v11498_v49 = vld [vmem:[#allocation47_spill] sm:$0xff] }
 0xb25   :  { %6798 = vmatpush1.bf16.msra.mxu0 %v11488_v59  ;;  %6862 = vmatpush1.bf16.msra.mxu1 %v11489_v7  ;;  %v11499_v59 = vld [vmem:[#allocation48_spill] sm:$0xff]  ;;  %v11500_v7 = vld [vmem:[#allocation49_spill] sm:$0xff] }
 0xb26   :  { %6800 = vmatprep.subr.bf16.mxu0 %v11490_v51  ;;  %6864 = vmatprep.subr.bf16.mxu1 %v11491_v4  ;;  %v11501_v51 = vld [vmem:[#allocation50_spill] sm:$0xff]  ;;  %v11502_v4 = vld [vmem:[#allocation51_spill] sm:$0xff] }
 0xb29   :  { %6802 = vmatpush1.bf16.msra.mxu0 %v11492_v30  ;;  %6866 = vmatpush1.bf16.msra.mxu1 %v11493_v41  ;;  %v11503_v30 = vld [vmem:[#allocation52_spill] sm:$0xff]  ;;  %v11504_v41 = vld [vmem:[#allocation53_spill] sm:$0xff] }
 0xb2a   :  { %6804 = vmatprep.subr.bf16.mxu0 %v11494_v62  ;;  %6868 = vmatprep.subr.bf16.mxu1 %v11495_v48  ;;  %v11505_v62 = vld [vmem:[#allocation54_spill] sm:$0xff]  ;;  %v11506_v48 = vld [vmem:[#allocation55_spill] sm:$0xff] }
 0xb2d   :  { %6806 = vmatpush1.bf16.msra.mxu0 %v11496_v27  ;;  %6870 = vmatpush1.bf16.msra.mxu1 %v11497_v9  ;;  %v11507_v27 = vld [vmem:[#allocation56_spill] sm:$0xff]  ;;  %v11508_v9 = vld [vmem:[#allocation57_spill] sm:$0xff] }
 0xb2e   :  { %6808 = vmatprep.subr.bf16.mxu0 %v11498_v49  ;;  %6872 = vmatprep.subr.bf16.mxu1 %v11499_v59  ;;  %v11509_v49 = vld [vmem:[#allocation58_spill] sm:$0xff]  ;;  %v11510_v59 = vld [vmem:[#allocation59_spill] sm:$0xff] }
 0xb31   :  { %6810 = vmatpush1.bf16.msra.mxu0 %v11500_v7  ;;  %6874 = vmatpush1.bf16.msra.mxu1 %v11501_v51  ;;  %v11511_v7 = vld [vmem:[#allocation60_spill] sm:$0xff]  ;;  %v11512_v51 = vld [vmem:[#allocation61_spill] sm:$0xff] }
 0xb32   :  { %6812 = vmatprep.subr.bf16.mxu0 %v11502_v4  ;;  %6876 = vmatprep.subr.bf16.mxu1 %v11503_v30  ;;  %v11513_v4 = vld [vmem:[#allocation62_spill] sm:$0xff]  ;;  %v11514_v30 = vld [vmem:[#allocation63_spill] sm:$0xff] }
 0xb35   :  { %6814 = vmatpush1.bf16.msra.mxu0 %v11504_v41  ;;  %6878 = vmatpush1.bf16.msra.mxu1 %v11505_v62  ;;  %v11515_v41 = vld [vmem:[#allocation64_spill] sm:$0xff]  ;;  %v11516_v62 = vld [vmem:[#allocation65_spill] sm:$0xff] }
 0xb36   :  { %6816 = vmatprep.subr.bf16.mxu0 %v11506_v48  ;;  %6880 = vmatprep.subr.bf16.mxu1 %v11507_v27  ;;  %v11517_v48 = vld [vmem:[#allocation66_spill] sm:$0xff]  ;;  %v11518_v27 = vld [vmem:[#allocation67_spill] sm:$0xff] }
 0xb39   :  { %6818 = vmatpush1.bf16.msra.mxu0 %v11508_v9  ;;  %6882 = vmatpush1.bf16.msra.mxu1 %v11509_v49  ;;  %v11519_v9 = vld [vmem:[#allocation68_spill] sm:$0xff]  ;;  %v11520_v49 = vld [vmem:[#allocation69_spill] sm:$0xff] }
 0xb3a   :  { %6820 = vmatprep.subr.bf16.mxu0 %v11510_v59  ;;  %6884 = vmatprep.subr.bf16.mxu1 %v11511_v7  ;;  %v11521_v59 = vld [vmem:[#allocation70_spill] sm:$0xff]  ;;  %v11522_v7 = vld [vmem:[#allocation71_spill] sm:$0xff] }
 0xb3d   :  { %6822 = vmatpush1.bf16.msra.mxu0 %v11512_v51  ;;  %6886 = vmatpush1.bf16.msra.mxu1 %v11513_v4  ;;  %v11523_v51 = vld [vmem:[#allocation72_spill] sm:$0xff]  ;;  %v11524_v4 = vld [vmem:[#allocation73_spill] sm:$0xff] }
 0xb3e   :  { %6824 = vmatprep.subr.bf16.mxu0 %v11514_v30  ;;  %6888 = vmatprep.subr.bf16.mxu1 %v11515_v41  ;;  %v11525_v30 = vld [vmem:[#allocation74_spill] sm:$0xff]  ;;  %v11526_v41 = vld [vmem:[#allocation75_spill] sm:$0xff] }
 0xb41   :  { %6826 = vmatpush1.bf16.msra.mxu0 %v11516_v62  ;;  %6890 = vmatpush1.bf16.msra.mxu1 %v11517_v48  ;;  %v11527_v62 = vld [vmem:[#allocation76_spill] sm:$0xff]  ;;  %v11528_v48 = vld [vmem:[#allocation77_spill] sm:$0xff] }
 0xb42   :  { %6828 = vmatprep.subr.bf16.mxu0 %v11518_v27  ;;  %6892 = vmatprep.subr.bf16.mxu1 %v11519_v9  ;;  %v11529_v27 = vld [vmem:[#allocation78_spill] sm:$0xff]  ;;  %v11530_v9 = vld [vmem:[#allocation79_spill] sm:$0xff] }
 0xb45   :  { %6830 = vmatpush1.bf16.msra.mxu0 %v11520_v49  ;;  %6894 = vmatpush1.bf16.msra.mxu1 %v11521_v59  ;;  %v11531_v49 = vld [vmem:[#allocation80_spill] sm:$0xff]  ;;  %v11532_v59 = vld [vmem:[#allocation81_spill] sm:$0xff] }
 0xb46   :  { %6832 = vmatprep.subr.bf16.mxu0 %v11522_v7  ;;  %6896 = vmatprep.subr.bf16.mxu1 %v11523_v51  ;;  %v11533_v7 = vld [vmem:[#allocation82_spill] sm:$0xff]  ;;  %v11534_v51 = vld [vmem:[#allocation83_spill] sm:$0xff] }
 0xb49   :  { %6834 = vmatpush1.bf16.msra.mxu0 %v11524_v4  ;;  %6898 = vmatpush1.bf16.msra.mxu1 %v11525_v30  ;;  %v11535_v4 = vld [vmem:[#allocation84_spill] sm:$0xff]  ;;  %v11536_v30 = vld [vmem:[#allocation85_spill] sm:$0xff] }
 0xb4a   :  { %6836 = vmatprep.subr.bf16.mxu0 %v11526_v41  ;;  %6900 = vmatprep.subr.bf16.mxu1 %v11527_v62  ;;  %v11537_v41 = vld [vmem:[#allocation86_spill] sm:$0xff]  ;;  %v11538_v62 = vld [vmem:[#allocation87_spill] sm:$0xff] }
 0xb4d   :  { %6838 = vmatpush1.bf16.msra.mxu0 %v11528_v48  ;;  %6902 = vmatpush1.bf16.msra.mxu1 %v11529_v27  ;;  %v11539_v48 = vld [vmem:[#allocation88_spill] sm:$0xff] }
 0xb4e   :  { %6840 = vmatprep.subr.bf16.mxu0 %v11530_v9  ;;  %6904 = vmatprep.subr.bf16.mxu1 %v11531_v49 }
 0xb51   :  { %6842 = vmatpush1.bf16.msra.mxu0 %v11532_v59  ;;  %6906 = vmatpush1.bf16.msra.mxu1 %v11533_v7 }
 0xb52   :  { %6844 = vmatprep.subr.bf16.mxu0 %v11534_v51  ;;  %6908 = vmatprep.subr.bf16.mxu1 %v11535_v4  ;;  %v11541_v4 = vld [vmem:[#allocation160_spill] sm:$0xff] }
 0xb55   :  { %6846 = vmatpush1.bf16.msra.mxu0 %v11536_v30  ;;  %6910 = vmatpush1.bf16.msra.mxu1 %v11537_v41 }
 0xb56   :  { %6912 = vmatprep.subr.bf16.mxu0 %v11538_v62  ;;  %6976 = vmatprep.subr.bf16.mxu1 %v11539_v48 }
 0xbca   :  { %v3199_v27 = vpop.f32.mrb[34].mxu0  ;;  %v3270_v9 = vpop.f32.mrb[34].mxu1 }
 0xbcb   :  { %v3200_v49 = vadd.f32 %v3199_v27, %v11540_v18  ;;  %v3201_v12 = vpop.f32.mrb[35].mxu0  ;;  %v3272_v59 = vpop.f32.mrb[35].mxu1 }
 0xbcc   :  { %v3202_v7 = vadd.f32 %v3201_v12, %v11150_v26  ;;  %v3273_v30 = vadd.f32 %v3272_v59, %v11541_v4 }
 0xbcd   :  { %v5028_v40 = vmul.f32 -1.442695, %v3200_v49 }
 0xbce   :  { %v5029_v51 = vmul.f32 -1.442695, %v3202_v7 }
 0xbcf   :  { %8003 = vpow2.f32 %v5028_v40  ;;  %v11542_v40 = vld [vmem:[#allocation89_spill] sm:$0xff] }
 0xbd0   :  { %8005 = vpow2.f32 %v5029_v51 }
 0xbd1   :  { %8007 = vtanh.f32 %v3273_v30 }
 0xbd9   :  { %v8004_v45 = vpop.eup %8003 }
 0xbda   :  { %v3284_v41 = vadd.f32 1.0, %v8004_v45  ;;  %v8006_v0 = vpop.eup %8005 }
 0xbdb   :  { %v3285_v48 = vadd.f32 1.0, %v8006_v0  ;;  %v8008_v62 = vpop.eup %8007 }
 0xbdc   :  { %8009 = vrcp.f32 %v3284_v41 }
 0xbdd   :  { %8011 = vrcp.f32 %v3285_v48 }
 0xbe6   :  { %v8010_v3 = vpop.eup %8009 }
 0xbe7   :  { %v3295_v27 = vmul.f32 %v8010_v3, %v8008_v62  ;;  %v8012_v18 = vpop.eup %8011  ;;  %v3271_v3 = vadd.f32 %v3270_v9, %v9185_v44  ;;  %v11543_v62 = vld [vmem:[#allocation92_spill] sm:$0xff] }
 0xbe8   :  { %v3294_v1 = vmul.f32 %v8012_v18, %v9759_v53 }
 0xbea   :  { %v3369_v12 = vpop.f32.mrb[10].mxu0  ;;  %v3440_v49 = vpop.f32.mrb[10].mxu1  ;;  %v9951_v7 = vadd.f32 %v3295_v27, %v3294_v1  ;;  %v5030_v1 = vmul.f32 -1.442695, %v3271_v3 }
 0xbeb   :  { %v7713_v51 = vadd.f32 %v3369_v12, %v11542_v40  ;;  %v3371_v59 = vpop.f32.mrb[11].mxu0  ;;  %v3442_v4 = vpop.f32.mrb[11].mxu1  ;;  %v7729_v0 = vadd.f32 %v3440_v49, %v11021_v37 }
 0xbec   :  { %v7714_v45 = vadd.f32 %v3371_v59, %v11020_v63  ;;  %v7730_v53 = vadd.f32 %v3442_v4, %v11543_v62 }
 0xbed   :  { %v5031_v30 = vmul.f32 -1.442695, %v7713_v51  ;;  %v5033_v18 = vmul.f32 -1.442695, %v7729_v0 }
 0xbee   :  { %v5032_v41 = vmul.f32 -1.442695, %v7714_v45 }
 0xbef   :  { %8013 = vpow2.f32 %v5031_v30 }
 0xbf0   :  { %8015 = vpow2.f32 %v5032_v41 }
 0xbf1   :  { %8017 = vtanh.f32 %v7730_v53 }
 0xbf2   :  { %8019 = vpow2.f32 %v5033_v18 }
 0xbf9   :  { %v8014_v48 = vpop.eup %8013 }
 0xbfa   :  { %v3458_v27 = vadd.f32 1.0, %v8014_v48  ;;  %v8016_v12 = vpop.eup %8015 }
 0xbfb   :  { %v3459_v40 = vadd.f32 1.0, %v8016_v12  ;;  %v8018_v51 = vpop.eup %8017  ;;  %v11546_v12 = vld [vmem:[#allocation104_spill] sm:$0xff] }
 0xbfc   :  { %8021 = vrcp.f32 %v3458_v27  ;;  %v8020_v59 = vpop.eup %8019  ;;  %v11545_v27 = vld [vmem:[#allocation103_spill] sm:$0xff] }
 0xbfd   :  { %8023 = vpow2.f32 %v5030_v1  ;;  %v3460_v9 = vadd.f32 1.0, %v8020_v59  ;;  %v11548_v59 = vld [vmem:[#allocation106_spill] sm:$0xff] }
 0xbfe   :  { %8025 = vrcp.f32 %v3459_v40 }
 0xbff   :  { %8027 = vtanh.f32 %v9951_v7 }
 0xc00   :  { %8029 = vrcp.f32 %v3460_v9  ;;  %v11553_v9 = vld [vmem:[#allocation111_spill] sm:$0xff] }
 0xc06   :  { %v8022_v45 = vpop.eup %8021 }
 0xc07   :  { %v8024_v30 = vpop.eup %8023  ;;  %v3469_v49 = vmul.f32 %v8022_v45, %v8018_v51  ;;  %v11547_v51 = vld [vmem:[#allocation105_spill] sm:$0xff]  ;;  %v11549_v45 = vld [vmem:[#allocation107_spill] sm:$0xff] }
 0xc08   :  { %v8026_v41 = vpop.eup %8025  ;;  %v3286_v0 = vadd.f32 1.0, %v8024_v30  ;;  %v11550_v30 = vld [vmem:[#allocation108_spill] sm:$0xff] }
 0xc09   :  { %v3468_v4 = vmul.f32 %v8026_v41, %v9767_v10  ;;  %v8028_v3 = vpop.eup %8027  ;;  %v11544_v10 = vld [vmem:[#allocation102_spill] sm:$0xff] }
 0xc0a   :  { %v8030_v40 = vpop.eup %8029  ;;  %v11552_v41 = vld [vmem:[#allocation110_spill] sm:$0xff] }
 0xc0b   :  { %v9959_v62 = vadd.f32 %v3469_v49, %v3468_v4  ;;  %v11551_v49 = vld [vmem:[#allocation109_spill] sm:$0xff]  ;;  %v11554_v4 = vld [vmem:[#allocation112_spill] sm:$0xff] }
 0xc0d   :  { %8031 = vtanh.f32 %v9959_v62 }
 0xc0e   :  { %8033 = vrcp.f32 %v3286_v0  ;;  %v11555_v0 = vld [vmem:[#allocation113_spill] sm:$0xff] }
 0xc17   :  { %v8032_v53 = vpop.eup %8031 }
 0xc18   :  { %v8034_v18 = vpop.eup %8033  ;;  %v9963_v48 = vmul.f32 %v8032_v53, %v8030_v40  ;;  %v11557_v40 = vld [vmem:[#allocation115_spill] sm:$0xff]  ;;  %v11558_v53 = vld [vmem:[#allocation116_spill] sm:$0xff] }
 0xc19   :  { %v3298_v1 = vmul.f32 %v8034_v18, %v8028_v3  ;;  %v11556_v3 = vld [vmem:[#allocation114_spill] sm:$0xff]  ;;  %v11559_v18 = vld [vmem:[#allocation117_spill] sm:$0xff] }
 0xc1a   :  { %3538 = vmatmul.mubr.f32.vlgmr.msra.gmra.mrb[36].mxu0 %v9963_v48  ;;  %3609 = vmatmul.mubr.f32.vlgmr.msra.gmra.mrb[36].mxu1 %v9963_v48 }
 0xc1b   :  { %3703 = vmatprep.mubr.f32.mxu0 %v3298_v1  ;;  %3774 = vmatprep.mubr.f32.mxu1 %v3298_v1  ;;  %v11560_v1 = vld [vmem:[#allocation118_spill] sm:$0xff] }
 0xc1c   :  { %6914 = vmatpush1.bf16.msra.mxu0 %v11024_v6  ;;  %6978 = vmatpush1.bf16.msra.mxu1 %v11025_v31 }
 0xc1d   :  { %6916 = vmatprep.subr.bf16.mxu0 %v11026_v36  ;;  %6980 = vmatprep.subr.bf16.mxu1 %v11027_v16 }
 0xc20   :  { %6918 = vmatpush1.bf16.msra.mxu0 %v11028_v17  ;;  %6982 = vmatpush1.bf16.msra.mxu1 %v11154_v21 }
 0xc21   :  { %6920 = vmatprep.subr.bf16.mxu0 %v11284_v20  ;;  %6984 = vmatprep.subr.bf16.mxu1 %v11414_v32 }
 0xc24   :  { %6922 = vmatpush1.bf16.msra.mxu0 %v11544_v10  ;;  %6986 = vmatpush1.bf16.msra.mxu1 %v11545_v27 }
 0xc25   :  { %6924 = vmatprep.subr.bf16.mxu0 %v11546_v12  ;;  %6988 = vmatprep.subr.bf16.mxu1 %v11547_v51 }
 0xc28   :  { %6926 = vmatpush1.bf16.msra.mxu0 %v11548_v59  ;;  %6990 = vmatpush1.bf16.msra.mxu1 %v11549_v45  ;;  %v11600_v45 = vld [vmem:[#allocation156_spill] sm:$0xff] }
 0xc29   :  { %6928 = vmatprep.subr.bf16.mxu0 %v11550_v30  ;;  %6992 = vmatprep.subr.bf16.mxu1 %v11551_v49  ;;  %v11561_v30 = vld [vmem:[#allocation119_spill] sm:$0xff]  ;;  %v11562_v49 = vld [vmem:[#allocation120_spill] sm:$0xff] }
 0xc2c   :  { %6930 = vmatpush1.bf16.msra.mxu0 %v11552_v41  ;;  %6994 = vmatpush1.bf16.msra.mxu1 %v11553_v9  ;;  %v11563_v41 = vld [vmem:[#allocation121_spill] sm:$0xff]  ;;  %v11564_v9 = vld [vmem:[#allocation122_spill] sm:$0xff] }
 0xc2d   :  { %6932 = vmatprep.subr.bf16.mxu0 %v11554_v4  ;;  %6996 = vmatprep.subr.bf16.mxu1 %v11555_v0  ;;  %v11565_v4 = vld [vmem:[#allocation123_spill] sm:$0xff]  ;;  %v11566_v0 = vld [vmem:[#allocation124_spill] sm:$0xff] }
 0xc30   :  { %6934 = vmatpush1.bf16.msra.mxu0 %v11556_v3  ;;  %6998 = vmatpush1.bf16.msra.mxu1 %v11557_v40  ;;  %v11567_v3 = vld [vmem:[#allocation125_spill] sm:$0xff]  ;;  %v11568_v40 = vld [vmem:[#allocation126_spill] sm:$0xff] }
 0xc31   :  { %6936 = vmatprep.subr.bf16.mxu0 %v11558_v53  ;;  %7000 = vmatprep.subr.bf16.mxu1 %v11559_v18  ;;  %v11569_v53 = vld [vmem:[#allocation127_spill] sm:$0xff]  ;;  %v11570_v18 = vld [vmem:[#allocation128_spill] sm:$0xff] }
 0xc34   :  { %6938 = vmatpush1.bf16.msra.mxu0 %v11560_v1  ;;  %7002 = vmatpush1.bf16.msra.mxu1 %v11561_v30  ;;  %v11571_v1 = vld [vmem:[#allocation129_spill] sm:$0xff]  ;;  %v11572_v30 = vld [vmem:[#allocation130_spill] sm:$0xff] }
 0xc35   :  { %6940 = vmatprep.subr.bf16.mxu0 %v11562_v49  ;;  %7004 = vmatprep.subr.bf16.mxu1 %v11563_v41  ;;  %v11573_v49 = vld [vmem:[#allocation131_spill] sm:$0xff]  ;;  %v11574_v41 = vld [vmem:[#allocation132_spill] sm:$0xff] }
 0xc38   :  { %6942 = vmatpush1.bf16.msra.mxu0 %v11564_v9  ;;  %7006 = vmatpush1.bf16.msra.mxu1 %v11565_v4  ;;  %v11575_v9 = vld [vmem:[#allocation133_spill] sm:$0xff]  ;;  %v11576_v4 = vld [vmem:[#allocation134_spill] sm:$0xff] }
 0xc39   :  { %6944 = vmatprep.subr.bf16.mxu0 %v11566_v0  ;;  %7008 = vmatprep.subr.bf16.mxu1 %v11567_v3  ;;  %v11577_v0 = vld [vmem:[#allocation135_spill] sm:$0xff]  ;;  %v11578_v3 = vld [vmem:[#allocation136_spill] sm:$0xff] }
 0xc3c   :  { %6946 = vmatpush1.bf16.msra.mxu0 %v11568_v40  ;;  %7010 = vmatpush1.bf16.msra.mxu1 %v11569_v53  ;;  %v11579_v40 = vld [vmem:[#allocation137_spill] sm:$0xff]  ;;  %v11580_v53 = vld [vmem:[#allocation138_spill] sm:$0xff] }
 0xc3d   :  { %6948 = vmatprep.subr.bf16.mxu0 %v11570_v18  ;;  %7012 = vmatprep.subr.bf16.mxu1 %v11571_v1  ;;  %v11581_v18 = vld [vmem:[#allocation139_spill] sm:$0xff]  ;;  %v11582_v1 = vld [vmem:[#allocation140_spill] sm:$0xff] }
 0xc40   :  { %6950 = vmatpush1.bf16.msra.mxu0 %v11572_v30  ;;  %7014 = vmatpush1.bf16.msra.mxu1 %v11573_v49  ;;  %v11583_v30 = vld [vmem:[#allocation141_spill] sm:$0xff]  ;;  %v11584_v49 = vld [vmem:[#allocation142_spill] sm:$0xff] }
 0xc41   :  { %6952 = vmatprep.subr.bf16.mxu0 %v11574_v41  ;;  %7016 = vmatprep.subr.bf16.mxu1 %v11575_v9  ;;  %v11585_v41 = vld [vmem:[#allocation143_spill] sm:$0xff]  ;;  %v11586_v9 = vld [vmem:[#allocation144_spill] sm:$0xff] }
 0xc44   :  { %6954 = vmatpush1.bf16.msra.mxu0 %v11576_v4  ;;  %7018 = vmatpush1.bf16.msra.mxu1 %v11577_v0  ;;  %v11587_v4 = vld [vmem:[#allocation145_spill] sm:$0xff]  ;;  %v11588_v0 = vld [vmem:[#allocation146_spill] sm:$0xff] }
 0xc45   :  { %6956 = vmatprep.subr.bf16.mxu0 %v11578_v3  ;;  %7020 = vmatprep.subr.bf16.mxu1 %v11579_v40  ;;  %v11589_v3 = vld [vmem:[#allocation147_spill] sm:$0xff]  ;;  %v11590_v40 = vld [vmem:[#allocation148_spill] sm:$0xff] }
 0xc48   :  { %6958 = vmatpush1.bf16.msra.mxu0 %v11580_v53  ;;  %7022 = vmatpush1.bf16.msra.mxu1 %v11581_v18  ;;  %v11591_v53 = vld [vmem:[#allocation149_spill] sm:$0xff]  ;;  %v11592_v18 = vld [vmem:[#allocation150_spill] sm:$0xff] }
 0xc49   :  { %6960 = vmatprep.subr.bf16.mxu0 %v11582_v1  ;;  %7024 = vmatprep.subr.bf16.mxu1 %v11583_v30  ;;  %v11593_v1 = vld [vmem:[#allocation151_spill] sm:$0xff]  ;;  %v11594_v30 = vld [vmem:[#allocation152_spill] sm:$0xff] }
 0xc4c   :  { %6962 = vmatpush1.bf16.msra.mxu0 %v11584_v49  ;;  %7026 = vmatpush1.bf16.msra.mxu1 %v11585_v41  ;;  %v11595_v49 = vld [vmem:[#allocation153_spill] sm:$0xff]  ;;  %v11596_v41 = vld [vmem:[#allocation154_spill] sm:$0xff] }
 0xc4d   :  { %6964 = vmatprep.subr.bf16.mxu0 %v11586_v9  ;;  %7028 = vmatprep.subr.bf16.mxu1 %v11587_v4  ;;  %v11597_v9 = vld [vmem:[#allocation155_spill] sm:$0xff]  ;;  %v11598_v4 = vld [vmem:[#allocation17_spill] sm:$0xff] }
 0xc50   :  { %6966 = vmatpush1.bf16.msra.mxu0 %v11588_v0  ;;  %7030 = vmatpush1.bf16.msra.mxu1 %v11589_v3  ;;  %v11599_v0 = vld [vmem:[#allocation18_spill] sm:$0xff] }
 0xc51   :  { %6968 = vmatprep.subr.bf16.mxu0 %v11590_v40  ;;  %7032 = vmatprep.subr.bf16.mxu1 %v11591_v53 }
 0xc54   :  { %6970 = vmatpush1.bf16.msra.mxu0 %v11592_v18  ;;  %7034 = vmatpush1.bf16.msra.mxu1 %v11593_v1 }
 0xc55   :  { %6972 = vmatprep.subr.bf16.mxu0 %v11594_v30  ;;  %7036 = vmatprep.subr.bf16.mxu1 %v11595_v49 }
 0xc58   :  { %6974 = vmatpush1.bf16.msra.mxu0 %v11596_v41  ;;  %7038 = vmatpush1.bf16.msra.mxu1 %v11597_v9 }
 0xc59   :  { %7040 = vmatprep.subr.bf16.mxu0 %v11598_v4  ;;  %7072 = vmatprep.subr.bf16.mxu1 %v11599_v0 }
 0xced   :  { %v3539_v3 = vpop.f32.mrb[36].mxu0  ;;  %v3610_v40 = vpop.f32.mrb[36].mxu1 }
 0xcee   :  { %v3540_v53 = vadd.f32 %v3539_v3, %v11600_v45  ;;  %v3541_v59 = vpop.f32.mrb[37].mxu0  ;;  %v3612_v18 = vpop.f32.mrb[37].mxu1  ;;  %v3611_v41 = vadd.f32 %v3610_v40, %v9055_v13 }
 0xcef   :  { %v3542_v1 = vadd.f32 %v3541_v59, %v11084_v55  ;;  %v3613_v9 = vadd.f32 %v3612_v18, %v9058_v57  ;;  %v11607_v18 = vld [vmem:[#allocation26_spill] sm:$0xff] }
 0xcf0   :  { %v5034_v51 = vmul.f32 -1.442695, %v3540_v53  ;;  %v5036_v49 = vmul.f32 -1.442695, %v3611_v41 }
 0xcf1   :  { %v5035_v30 = vmul.f32 -1.442695, %v3542_v1 }
 0xcf2   :  { %8035 = vpow2.f32 %v5034_v51 }
 0xcf3   :  { %8037 = vpow2.f32 %v5035_v30 }
 0xcf4   :  { %8039 = vtanh.f32 %v3613_v9 }
 0xcf5   :  { %8041 = vpow2.f32 %v5036_v49  ;;  %v11605_v49 = vld [vmem:[#allocation24_spill] sm:$0xff] }
 0xcfc   :  { %v8036_v4 = vpop.eup %8035 }
 0xcfd   :  { %v3624_v12 = vadd.f32 1.0, %v8036_v4  ;;  %v8038_v0 = vpop.eup %8037 }
 0xcfe   :  { %v3625_v3 = vadd.f32 1.0, %v8038_v0  ;;  %v8040_v45 = vpop.eup %8039  ;;  %v11606_v0 = vld [vmem:[#allocation25_spill] sm:$0xff] }
 0xcff   :  { %8043 = vrcp.f32 %v3624_v12  ;;  %v8042_v27 = vpop.eup %8041  ;;  %v11603_v12 = vld [vmem:[#allocation22_spill] sm:$0xff] }
 0xd00   :  { %8045 = vrcp.f32 %v3625_v3  ;;  %v3626_v51 = vadd.f32 1.0, %v8042_v27  ;;  %v11602_v27 = vld [vmem:[#allocation21_spill] sm:$0xff]  ;;  %v11608_v3 = vld [vmem:[#allocation27_spill] sm:$0xff] }
 0xd02   :  { %8047 = vrcp.f32 %v3626_v51  ;;  %v11612_v51 = vld [vmem:[#allocation31_spill] sm:$0xff] }
 0xd09   :  { %v8044_v59 = vpop.eup %8043 }
 0xd0a   :  { %v3635_v53 = vmul.f32 %v8044_v59, %v8040_v45  ;;  %v8046_v1 = vpop.eup %8045  ;;  %v11604_v45 = vld [vmem:[#allocation23_spill] sm:$0xff]  ;;  %v11609_v59 = vld [vmem:[#allocation28_spill] sm:$0xff] }
 0xd0b   :  { %v3634_v30 = vmul.f32 %v8046_v1, %v9844_v14  ;;  %v11601_v14 = vld [vmem:[#allocation20_spill] sm:$0xff]  ;;  %v11611_v1 = vld [vmem:[#allocation30_spill] sm:$0xff] }
 0xd0c   :  { %v8048_v41 = vpop.eup %8047 }
 0xd0d   :  { %v10036_v40 = vadd.f32 %v3635_v53, %v3634_v30  ;;  %v11610_v53 = vld [vmem:[#allocation29_spill] sm:$0xff]  ;;  %v11613_v30 = vld [vmem:[#allocation32_spill] sm:$0xff] }
 0xd0f   :  { %8049 = vtanh.f32 %v10036_v40 }
 0xd19   :  { %v8050_v9 = vpop.eup %8049 }
 0xd1a   :  { %v3638_v4 = vmul.f32 %v8050_v9, %v8048_v41  ;;  %v11614_v41 = vld [vmem:[#allocation33_spill] sm:$0xff]  ;;  %v11616_v9 = vld [vmem:[#allocation35_spill] sm:$0xff] }
 0xd1c   :  { %3704 = vmatmul.mubr.f32.vlgmr.msra.gmra.mrb[38].mxu0 %v3638_v4  ;;  %3775 = vmatmul.mubr.f32.vlgmr.msra.gmra.mrb[38].mxu1 %v3638_v4 }
 0xd1d   :  { %7042 = vmatpush1.bf16.msra.mxu0 %v8472_v22  ;;  %7074 = vmatpush1.bf16.msra.mxu1 %v8475_v25 }
 0xd1e   :  { %7044 = vmatprep.subr.bf16.mxu0 %v8479_v29  ;;  %7076 = vmatprep.subr.bf16.mxu1 %v8486_v34 }
 0xd1f   :  { %3873 = vmatprep.mubr.f32.mxu0 %v10897_v23  ;;  %3944 = vmatprep.mubr.f32.mxu1 %v10897_v23 }
 0xd21   :  { %7046 = vmatpush1.bf16.msra.mxu0 %v8488_v35  ;;  %7078 = vmatpush1.bf16.msra.mxu1 %v8492_v38 }
 0xd22   :  { %7048 = vmatprep.subr.bf16.mxu0 %v8496_v42  ;;  %7080 = vmatprep.subr.bf16.mxu1 %v8503_v47 }
 0xd25   :  { %7050 = vmatpush1.bf16.msra.mxu0 %v8507_v50  ;;  %7082 = vmatpush1.bf16.msra.mxu1 %v8511_v54 }
 0xd26   :  { %7052 = vmatprep.subr.bf16.mxu0 %v8515_v58  ;;  %7084 = vmatprep.subr.bf16.mxu1 %v8519_v61 }
 0xd29   :  { %7054 = vmatpush1.bf16.msra.mxu0 %v8526_v2  ;;  %7086 = vmatpush1.bf16.msra.mxu1 %v8530_v5 }
 0xd2a   :  { %7056 = vmatprep.subr.bf16.mxu0 %v8534_v8  ;;  %7088 = vmatprep.subr.bf16.mxu1 %v8538_v11 }
 0xd2d   :  { %7058 = vmatpush1.bf16.msra.mxu0 %v8545_v15  ;;  %7090 = vmatpush1.bf16.msra.mxu1 %v8549_v19 }
 0xd2e   :  { %7060 = vmatprep.subr.bf16.mxu0 %v8553_v24  ;;  %7092 = vmatprep.subr.bf16.mxu1 %v8557_v28 }
 0xd31   :  { %7062 = vmatpush1.bf16.msra.mxu0 %v8564_v33  ;;  %7094 = vmatpush1.bf16.msra.mxu1 %v8568_v39 }
 0xd32   :  { %7064 = vmatprep.subr.bf16.mxu0 %v8572_v43  ;;  %7096 = vmatprep.subr.bf16.mxu1 %v8576_v46 }
 0xd35   :  { %7066 = vmatpush1.bf16.msra.mxu0 %v8583_v52  ;;  %7098 = vmatpush1.bf16.msra.mxu1 %v8587_v56 }
 0xd36   :  { %7068 = vmatprep.subr.bf16.mxu0 %v8591_v60  ;;  %7100 = vmatprep.subr.bf16.mxu1 %v11601_v14 }
 0xd39   :  { %7070 = vmatpush1.bf16.msra.mxu0 %v11602_v27  ;;  %7102 = vmatpush1.bf16.msra.mxu1 %v11603_v12 }
 0xd3a   :  { %7104 = vmatprep.subr.bf16.mxu0 %v11604_v45  ;;  %7168 = vmatprep.subr.bf16.mxu1 %v11605_v49 }
 0xd3c   :  { %3874 = vmatmul.mubr.f32.vlgmr.msra.gmra.mrb[12].mxu0 %v9963_v48  ;;  %3945 = vmatmul.mubr.f32.vlgmr.msra.gmra.mrb[12].mxu1 %v9963_v48  ;;  %v11615_v48 = vld [vmem:[#allocation34_spill] sm:$0xff] }
 0xd3d   :  { %4043 = vmatprep.mubr.f32.mxu0 %v3638_v4  ;;  %4114 = vmatprep.mubr.f32.mxu1 %v3638_v4  ;;  %v11617_v4 = vld [vmem:[#allocation36_spill] sm:$0xff] }
 0xd3e   :  { %7106 = vmatpush1.bf16.msra.mxu0 %v11606_v0  ;;  %7170 = vmatpush1.bf16.msra.mxu1 %v11607_v18  ;;  %v11618_v18 = vld [vmem:[#allocation37_spill] sm:$0xff]  ;;  %v11670_v0 = vld [vmem:[#allocation158_spill] sm:$0xff] }
 0xd3f   :  { %7108 = vmatprep.subr.bf16.mxu0 %v11608_v3  ;;  %7172 = vmatprep.subr.bf16.mxu1 %v11609_v59  ;;  %v11619_v3 = vld [vmem:[#allocation38_spill] sm:$0xff]  ;;  %v11620_v59 = vld [vmem:[#allocation39_spill] sm:$0xff] }
 0xd42   :  { %7110 = vmatpush1.bf16.msra.mxu0 %v11610_v53  ;;  %7174 = vmatpush1.bf16.msra.mxu1 %v11611_v1  ;;  %v11621_v53 = vld [vmem:[#allocation40_spill] sm:$0xff]  ;;  %v11622_v1 = vld [vmem:[#allocation41_spill] sm:$0xff] }
 0xd43   :  { %7112 = vmatprep.subr.bf16.mxu0 %v11612_v51  ;;  %7176 = vmatprep.subr.bf16.mxu1 %v11613_v30  ;;  %v11623_v51 = vld [vmem:[#allocation42_spill] sm:$0xff]  ;;  %v11624_v30 = vld [vmem:[#allocation43_spill] sm:$0xff] }
 0xd46   :  { %7114 = vmatpush1.bf16.msra.mxu0 %v11614_v41  ;;  %7178 = vmatpush1.bf16.msra.mxu1 %v11615_v48  ;;  %v11625_v41 = vld [vmem:[#allocation44_spill] sm:$0xff]  ;;  %v11626_v48 = vld [vmem:[#allocation45_spill] sm:$0xff] }
 0xd47   :  { %7116 = vmatprep.subr.bf16.mxu0 %v11616_v9  ;;  %7180 = vmatprep.subr.bf16.mxu1 %v11617_v4  ;;  %v11627_v9 = vld [vmem:[#allocation46_spill] sm:$0xff]  ;;  %v11628_v4 = vld [vmem:[#allocation47_spill] sm:$0xff] }
 0xd4a   :  { %7118 = vmatpush1.bf16.msra.mxu0 %v11618_v18  ;;  %7182 = vmatpush1.bf16.msra.mxu1 %v11619_v3  ;;  %v11629_v18 = vld [vmem:[#allocation48_spill] sm:$0xff]  ;;  %v11630_v3 = vld [vmem:[#allocation49_spill] sm:$0xff] }
 0xd4b   :  { %7120 = vmatprep.subr.bf16.mxu0 %v11620_v59  ;;  %7184 = vmatprep.subr.bf16.mxu1 %v11621_v53  ;;  %v11631_v59 = vld [vmem:[#allocation50_spill] sm:$0xff]  ;;  %v11632_v53 = vld [vmem:[#allocation51_spill] sm:$0xff] }
 0xd4e   :  { %7122 = vmatpush1.bf16.msra.mxu0 %v11622_v1  ;;  %7186 = vmatpush1.bf16.msra.mxu1 %v11623_v51  ;;  %v11633_v1 = vld [vmem:[#allocation52_spill] sm:$0xff]  ;;  %v11634_v51 = vld [vmem:[#allocation53_spill] sm:$0xff] }
 0xd4f   :  { %7124 = vmatprep.subr.bf16.mxu0 %v11624_v30  ;;  %7188 = vmatprep.subr.bf16.mxu1 %v11625_v41  ;;  %v11635_v30 = vld [vmem:[#allocation54_spill] sm:$0xff]  ;;  %v11636_v41 = vld [vmem:[#allocation55_spill] sm:$0xff] }
 0xd52   :  { %7126 = vmatpush1.bf16.msra.mxu0 %v11626_v48  ;;  %7190 = vmatpush1.bf16.msra.mxu1 %v11627_v9  ;;  %v11637_v48 = vld [vmem:[#allocation56_spill] sm:$0xff]  ;;  %v11638_v9 = vld [vmem:[#allocation57_spill] sm:$0xff] }
 0xd53   :  { %7128 = vmatprep.subr.bf16.mxu0 %v11628_v4  ;;  %7192 = vmatprep.subr.bf16.mxu1 %v11629_v18  ;;  %v11639_v4 = vld [vmem:[#allocation58_spill] sm:$0xff]  ;;  %v11640_v18 = vld [vmem:[#allocation59_spill] sm:$0xff] }
 0xd56   :  { %7130 = vmatpush1.bf16.msra.mxu0 %v11630_v3  ;;  %7194 = vmatpush1.bf16.msra.mxu1 %v11631_v59  ;;  %v11641_v3 = vld [vmem:[#allocation60_spill] sm:$0xff]  ;;  %v11642_v59 = vld [vmem:[#allocation61_spill] sm:$0xff] }
 0xd57   :  { %7132 = vmatprep.subr.bf16.mxu0 %v11632_v53  ;;  %7196 = vmatprep.subr.bf16.mxu1 %v11633_v1  ;;  %v11643_v53 = vld [vmem:[#allocation62_spill] sm:$0xff]  ;;  %v11644_v1 = vld [vmem:[#allocation63_spill] sm:$0xff] }
 0xd5a   :  { %7134 = vmatpush1.bf16.msra.mxu0 %v11634_v51  ;;  %7198 = vmatpush1.bf16.msra.mxu1 %v11635_v30  ;;  %v11645_v51 = vld [vmem:[#allocation64_spill] sm:$0xff]  ;;  %v11646_v30 = vld [vmem:[#allocation65_spill] sm:$0xff] }
 0xd5b   :  { %7136 = vmatprep.subr.bf16.mxu0 %v11636_v41  ;;  %7200 = vmatprep.subr.bf16.mxu1 %v11637_v48  ;;  %v11647_v41 = vld [vmem:[#allocation66_spill] sm:$0xff]  ;;  %v11648_v48 = vld [vmem:[#allocation67_spill] sm:$0xff] }
 0xd5e   :  { %7138 = vmatpush1.bf16.msra.mxu0 %v11638_v9  ;;  %7202 = vmatpush1.bf16.msra.mxu1 %v11639_v4  ;;  %v11649_v9 = vld [vmem:[#allocation68_spill] sm:$0xff]  ;;  %v11650_v4 = vld [vmem:[#allocation69_spill] sm:$0xff] }
 0xd5f   :  { %7140 = vmatprep.subr.bf16.mxu0 %v11640_v18  ;;  %7204 = vmatprep.subr.bf16.mxu1 %v11641_v3  ;;  %v11651_v18 = vld [vmem:[#allocation70_spill] sm:$0xff]  ;;  %v11652_v3 = vld [vmem:[#allocation71_spill] sm:$0xff] }
 0xd62   :  { %7142 = vmatpush1.bf16.msra.mxu0 %v11642_v59  ;;  %7206 = vmatpush1.bf16.msra.mxu1 %v11643_v53  ;;  %v11653_v59 = vld [vmem:[#allocation72_spill] sm:$0xff]  ;;  %v11654_v53 = vld [vmem:[#allocation73_spill] sm:$0xff] }
 0xd63   :  { %7144 = vmatprep.subr.bf16.mxu0 %v11644_v1  ;;  %7208 = vmatprep.subr.bf16.mxu1 %v11645_v51  ;;  %v11655_v1 = vld [vmem:[#allocation74_spill] sm:$0xff]  ;;  %v11656_v51 = vld [vmem:[#allocation75_spill] sm:$0xff] }
 0xd66   :  { %7146 = vmatpush1.bf16.msra.mxu0 %v11646_v30  ;;  %7210 = vmatpush1.bf16.msra.mxu1 %v11647_v41  ;;  %v11657_v30 = vld [vmem:[#allocation76_spill] sm:$0xff]  ;;  %v11658_v41 = vld [vmem:[#allocation77_spill] sm:$0xff] }
 0xd67   :  { %7148 = vmatprep.subr.bf16.mxu0 %v11648_v48  ;;  %7212 = vmatprep.subr.bf16.mxu1 %v11649_v9  ;;  %v11659_v48 = vld [vmem:[#allocation78_spill] sm:$0xff]  ;;  %v11660_v9 = vld [vmem:[#allocation79_spill] sm:$0xff] }
 0xd6a   :  { %7150 = vmatpush1.bf16.msra.mxu0 %v11650_v4  ;;  %7214 = vmatpush1.bf16.msra.mxu1 %v11651_v18  ;;  %v11661_v4 = vld [vmem:[#allocation80_spill] sm:$0xff]  ;;  %v11662_v18 = vld [vmem:[#allocation81_spill] sm:$0xff] }
 0xd6b   :  { %7152 = vmatprep.subr.bf16.mxu0 %v11652_v3  ;;  %7216 = vmatprep.subr.bf16.mxu1 %v11653_v59  ;;  %v11663_v3 = vld [vmem:[#allocation82_spill] sm:$0xff]  ;;  %v11664_v59 = vld [vmem:[#allocation83_spill] sm:$0xff] }
 0xd6e   :  { %7154 = vmatpush1.bf16.msra.mxu0 %v11654_v53  ;;  %7218 = vmatpush1.bf16.msra.mxu1 %v11655_v1  ;;  %v11665_v53 = vld [vmem:[#allocation84_spill] sm:$0xff]  ;;  %v11666_v1 = vld [vmem:[#allocation85_spill] sm:$0xff] }
 0xd6f   :  { %7156 = vmatprep.subr.bf16.mxu0 %v11656_v51  ;;  %7220 = vmatprep.subr.bf16.mxu1 %v11657_v30  ;;  %v11667_v51 = vld [vmem:[#allocation86_spill] sm:$0xff]  ;;  %v11668_v30 = vld [vmem:[#allocation87_spill] sm:$0xff] }
 0xd72   :  { %7158 = vmatpush1.bf16.msra.mxu0 %v11658_v41  ;;  %7222 = vmatpush1.bf16.msra.mxu1 %v11659_v48  ;;  %v11669_v41 = vld [vmem:[#allocation88_spill] sm:$0xff] }
 0xd73   :  { %7160 = vmatprep.subr.bf16.mxu0 %v11660_v9  ;;  %7224 = vmatprep.subr.bf16.mxu1 %v11661_v4 }
 0xd76   :  { %7162 = vmatpush1.bf16.msra.mxu0 %v11662_v18  ;;  %7226 = vmatpush1.bf16.msra.mxu1 %v11663_v3 }
 0xd77   :  { %7164 = vmatprep.subr.bf16.mxu0 %v11664_v59  ;;  %7228 = vmatprep.subr.bf16.mxu1 %v11665_v53  ;;  %v11671_v53 = vld [vmem:[#allocation160_spill] sm:$0xff] }
 0xd7a   :  { %7166 = vmatpush1.bf16.msra.mxu0 %v11666_v1  ;;  %7230 = vmatpush1.bf16.msra.mxu1 %v11667_v51 }
 0xd7b   :  { %7232 = vmatprep.subr.bf16.mxu0 %v11668_v30  ;;  %7296 = vmatprep.subr.bf16.mxu1 %v11669_v41 }
 0xdef   :  { %v3705_v48 = vpop.f32.mrb[38].mxu0  ;;  %v3776_v9 = vpop.f32.mrb[38].mxu1 }
 0xdf0   :  { %v3706_v4 = vadd.f32 %v3705_v48, %v11670_v0  ;;  %v3707_v49 = vpop.f32.mrb[39].mxu0  ;;  %v3778_v18 = vpop.f32.mrb[39].mxu1 }
 0xdf1   :  { %v3708_v3 = vadd.f32 %v3707_v49, %v11150_v26  ;;  %v3779_v1 = vadd.f32 %v3778_v18, %v11671_v53 }
 0xdf2   :  { %v5037_v45 = vmul.f32 -1.442695, %v3706_v4 }
 0xdf3   :  { %v5038_v59 = vmul.f32 -1.442695, %v3708_v3 }
 0xdf4   :  { %8051 = vpow2.f32 %v5037_v45  ;;  %v11672_v45 = vld [vmem:[#allocation89_spill] sm:$0xff] }
 0xdf5   :  { %8053 = vpow2.f32 %v5038_v59 }
 0xdf6   :  { %8055 = vtanh.f32 %v3779_v1 }
 0xdfe   :  { %v8052_v12 = vpop.eup %8051 }
 0xdff   :  { %v3790_v51 = vadd.f32 1.0, %v8052_v12  ;;  %v8054_v27 = vpop.eup %8053 }
 0xe00   :  { %v3791_v41 = vadd.f32 1.0, %v8054_v27  ;;  %v8056_v30 = vpop.eup %8055 }
 0xe01   :  { %8057 = vrcp.f32 %v3790_v51 }
 0xe02   :  { %8059 = vrcp.f32 %v3791_v41 }
 0xe0b   :  { %v8058_v14 = vpop.eup %8057 }
 0xe0c   :  { %v3801_v48 = vmul.f32 %v8058_v14, %v8056_v30  ;;  %v8060_v0 = vpop.eup %8059  ;;  %v3777_v14 = vadd.f32 %v3776_v9, %v9185_v44  ;;  %v11673_v30 = vld [vmem:[#allocation92_spill] sm:$0xff] }
 0xe0d   :  { %v3800_v60 = vmul.f32 %v8060_v0, %v9951_v7 }
 0xe0f   :  { %v3875_v49 = vpop.f32.mrb[12].mxu0  ;;  %v3946_v4 = vpop.f32.mrb[12].mxu1  ;;  %v10143_v3 = vadd.f32 %v3801_v48, %v3800_v60  ;;  %v5039_v60 = vmul.f32 -1.442695, %v3777_v14 }
 0xe10   :  { %v7715_v59 = vadd.f32 %v3875_v49, %v11672_v45  ;;  %v3877_v18 = vpop.f32.mrb[13].mxu0  ;;  %v3948_v53 = vpop.f32.mrb[13].mxu1  ;;  %v7731_v27 = vadd.f32 %v3946_v4, %v11021_v37 }
 0xe11   :  { %v7716_v12 = vadd.f32 %v3877_v18, %v11020_v63  ;;  %v7732_v7 = vadd.f32 %v3948_v53, %v11673_v30 }
 0xe12   :  { %v5040_v1 = vmul.f32 -1.442695, %v7715_v59  ;;  %v5042_v0 = vmul.f32 -1.442695, %v7731_v27 }
 0xe13   :  { %v5041_v51 = vmul.f32 -1.442695, %v7716_v12 }
 0xe14   :  { %8061 = vpow2.f32 %v5040_v1 }
 0xe15   :  { %8063 = vpow2.f32 %v5041_v51 }
 0xe16   :  { %8065 = vtanh.f32 %v7732_v7 }
 0xe17   :  { %8067 = vpow2.f32 %v5042_v0 }
 0xe1e   :  { %v8062_v41 = vpop.eup %8061 }
 0xe1f   :  { %v3964_v48 = vadd.f32 1.0, %v8062_v41  ;;  %v8064_v49 = vpop.eup %8063 }
 0xe20   :  { %v3965_v45 = vadd.f32 1.0, %v8064_v49  ;;  %v8066_v59 = vpop.eup %8065  ;;  %v11676_v49 = vld [vmem:[#allocation105_spill] sm:$0xff] }
 0xe21   :  { %8069 = vrcp.f32 %v3964_v48  ;;  %v8068_v18 = vpop.eup %8067  ;;  %v11675_v48 = vld [vmem:[#allocation104_spill] sm:$0xff] }
 0xe22   :  { %8071 = vpow2.f32 %v5039_v60  ;;  %v3966_v9 = vadd.f32 1.0, %v8068_v18  ;;  %v11678_v18 = vld [vmem:[#allocation107_spill] sm:$0xff] }
 0xe23   :  { %8073 = vrcp.f32 %v3965_v45 }
 0xe24   :  { %8075 = vtanh.f32 %v10143_v3 }
 0xe25   :  { %8077 = vrcp.f32 %v3966_v9  ;;  %v11683_v9 = vld [vmem:[#allocation112_spill] sm:$0xff] }
 0xe2b   :  { %v8070_v12 = vpop.eup %8069 }
 0xe2c   :  { %v8072_v1 = vpop.eup %8071  ;;  %v3975_v4 = vmul.f32 %v8070_v12, %v8066_v59  ;;  %v11677_v59 = vld [vmem:[#allocation106_spill] sm:$0xff]  ;;  %v11679_v12 = vld [vmem:[#allocation108_spill] sm:$0xff] }
 0xe2d   :  { %v8074_v51 = vpop.eup %8073  ;;  %v3792_v27 = vadd.f32 1.0, %v8072_v1  ;;  %v11680_v1 = vld [vmem:[#allocation109_spill] sm:$0xff] }
 0xe2e   :  { %v3974_v53 = vmul.f32 %v8074_v51, %v9959_v62  ;;  %v8076_v14 = vpop.eup %8075  ;;  %v11674_v62 = vld [vmem:[#allocation103_spill] sm:$0xff] }
 0xe2f   :  { %v8078_v45 = vpop.eup %8077  ;;  %v11682_v51 = vld [vmem:[#allocation111_spill] sm:$0xff] }
 0xe30   :  { %v10151_v30 = vadd.f32 %v3975_v4, %v3974_v53  ;;  %v11681_v4 = vld [vmem:[#allocation110_spill] sm:$0xff]  ;;  %v11684_v53 = vld [vmem:[#allocation113_spill] sm:$0xff] }
 0xe32   :  { %8079 = vtanh.f32 %v10151_v30 }
 0xe33   :  { %8081 = vrcp.f32 %v3792_v27  ;;  %v11685_v27 = vld [vmem:[#allocation114_spill] sm:$0xff] }
 0xe3c   :  { %v8080_v7 = vpop.eup %8079 }
 0xe3d   :  { %v8082_v0 = vpop.eup %8081  ;;  %v10155_v41 = vmul.f32 %v8080_v7, %v8078_v45  ;;  %v11687_v45 = vld [vmem:[#allocation116_spill] sm:$0xff]  ;;  %v11688_v7 = vld [vmem:[#allocation117_spill] sm:$0xff] }
 0xe3e   :  { %v3804_v60 = vmul.f32 %v8082_v0, %v8076_v14  ;;  %v11686_v14 = vld [vmem:[#allocation115_spill] sm:$0xff]  ;;  %v11689_v0 = vld [vmem:[#allocation118_spill] sm:$0xff] }
 0xe3f   :  { %4044 = vmatmul.mubr.f32.vlgmr.msra.gmra.mrb[40].mxu0 %v10155_v41  ;;  %4115 = vmatmul.mubr.f32.vlgmr.msra.gmra.mrb[40].mxu1 %v10155_v41 }
 0xe40   :  { %4209 = vmatprep.mubr.f32.mxu0 %v3804_v60  ;;  %4280 = vmatprep.mubr.f32.mxu1 %v3804_v60  ;;  %v11690_v60 = vld [vmem:[#allocation119_spill] sm:$0xff] }
 0xe41   :  { %7234 = vmatpush1.bf16.msra.mxu0 %v11024_v6  ;;  %7298 = vmatpush1.bf16.msra.mxu1 %v11025_v31 }
 0xe42   :  { %7236 = vmatprep.subr.bf16.mxu0 %v11026_v36  ;;  %7300 = vmatprep.subr.bf16.mxu1 %v11027_v16 }
 0xe45   :  { %7238 = vmatpush1.bf16.msra.mxu0 %v11028_v17  ;;  %7302 = vmatpush1.bf16.msra.mxu1 %v11154_v21 }
 0xe46   :  { %7240 = vmatprep.subr.bf16.mxu0 %v11284_v20  ;;  %7304 = vmatprep.subr.bf16.mxu1 %v11414_v32 }
 0xe49   :  { %7242 = vmatpush1.bf16.msra.mxu0 %v11544_v10  ;;  %7306 = vmatpush1.bf16.msra.mxu1 %v11674_v62 }
 0xe4a   :  { %7244 = vmatprep.subr.bf16.mxu0 %v11675_v48  ;;  %7308 = vmatprep.subr.bf16.mxu1 %v11676_v49 }
 0xe4d   :  { %7246 = vmatpush1.bf16.msra.mxu0 %v11677_v59  ;;  %7310 = vmatpush1.bf16.msra.mxu1 %v11678_v18 }
 0xe4e   :  { %7248 = vmatprep.subr.bf16.mxu0 %v11679_v12  ;;  %7312 = vmatprep.subr.bf16.mxu1 %v11680_v1  ;;  %v11691_v1 = vld [vmem:[#allocation120_spill] sm:$0xff] }
 0xe4f   :  { %v11729_v12 = vld [vmem:[#allocation156_spill] sm:$0xff] }
 0xe51   :  { %7250 = vmatpush1.bf16.msra.mxu0 %v11681_v4  ;;  %7314 = vmatpush1.bf16.msra.mxu1 %v11682_v51  ;;  %v11692_v4 = vld [vmem:[#allocation121_spill] sm:$0xff]  ;;  %v11693_v51 = vld [vmem:[#allocation122_spill] sm:$0xff] }
 0xe52   :  { %7252 = vmatprep.subr.bf16.mxu0 %v11683_v9  ;;  %7316 = vmatprep.subr.bf16.mxu1 %v11684_v53  ;;  %v11694_v9 = vld [vmem:[#allocation123_spill] sm:$0xff]  ;;  %v11695_v53 = vld [vmem:[#allocation124_spill] sm:$0xff] }
 0xe55   :  { %7254 = vmatpush1.bf16.msra.mxu0 %v11685_v27  ;;  %7318 = vmatpush1.bf16.msra.mxu1 %v11686_v14  ;;  %v11696_v27 = vld [vmem:[#allocation125_spill] sm:$0xff]  ;;  %v11697_v14 = vld [vmem:[#allocation126_spill] sm:$0xff] }
 0xe56   :  { %7256 = vmatprep.subr.bf16.mxu0 %v11687_v45  ;;  %7320 = vmatprep.subr.bf16.mxu1 %v11688_v7  ;;  %v11698_v45 = vld [vmem:[#allocation127_spill] sm:$0xff]  ;;  %v11699_v7 = vld [vmem:[#allocation128_spill] sm:$0xff] }
 0xe59   :  { %7258 = vmatpush1.bf16.msra.mxu0 %v11689_v0  ;;  %7322 = vmatpush1.bf16.msra.mxu1 %v11690_v60  ;;  %v11700_v0 = vld [vmem:[#allocation129_spill] sm:$0xff]  ;;  %v11701_v60 = vld [vmem:[#allocation130_spill] sm:$0xff] }
 0xe5a   :  { %7260 = vmatprep.subr.bf16.mxu0 %v11691_v1  ;;  %7324 = vmatprep.subr.bf16.mxu1 %v11692_v4  ;;  %v11702_v1 = vld [vmem:[#allocation131_spill] sm:$0xff]  ;;  %v11703_v4 = vld [vmem:[#allocation132_spill] sm:$0xff] }
 0xe5d   :  { %7262 = vmatpush1.bf16.msra.mxu0 %v11693_v51  ;;  %7326 = vmatpush1.bf16.msra.mxu1 %v11694_v9  ;;  %v11704_v51 = vld [vmem:[#allocation133_spill] sm:$0xff]  ;;  %v11705_v9 = vld [vmem:[#allocation134_spill] sm:$0xff] }
 0xe5e   :  { %7264 = vmatprep.subr.bf16.mxu0 %v11695_v53  ;;  %7328 = vmatprep.subr.bf16.mxu1 %v11696_v27  ;;  %v11706_v53 = vld [vmem:[#allocation135_spill] sm:$0xff]  ;;  %v11707_v27 = vld [vmem:[#allocation136_spill] sm:$0xff] }
 0xe61   :  { %7266 = vmatpush1.bf16.msra.mxu0 %v11697_v14  ;;  %7330 = vmatpush1.bf16.msra.mxu1 %v11698_v45  ;;  %v11708_v14 = vld [vmem:[#allocation137_spill] sm:$0xff]  ;;  %v11709_v45 = vld [vmem:[#allocation138_spill] sm:$0xff] }
 0xe62   :  { %7268 = vmatprep.subr.bf16.mxu0 %v11699_v7  ;;  %7332 = vmatprep.subr.bf16.mxu1 %v11700_v0  ;;  %v11710_v7 = vld [vmem:[#allocation139_spill] sm:$0xff]  ;;  %v11711_v0 = vld [vmem:[#allocation140_spill] sm:$0xff] }
 0xe65   :  { %7270 = vmatpush1.bf16.msra.mxu0 %v11701_v60  ;;  %7334 = vmatpush1.bf16.msra.mxu1 %v11702_v1  ;;  %v11712_v60 = vld [vmem:[#allocation141_spill] sm:$0xff]  ;;  %v11713_v1 = vld [vmem:[#allocation142_spill] sm:$0xff] }
 0xe66   :  { %7272 = vmatprep.subr.bf16.mxu0 %v11703_v4  ;;  %7336 = vmatprep.subr.bf16.mxu1 %v11704_v51  ;;  %v11714_v4 = vld [vmem:[#allocation143_spill] sm:$0xff]  ;;  %v11715_v51 = vld [vmem:[#allocation144_spill] sm:$0xff] }
 0xe69   :  { %7274 = vmatpush1.bf16.msra.mxu0 %v11705_v9  ;;  %7338 = vmatpush1.bf16.msra.mxu1 %v11706_v53  ;;  %v11716_v9 = vld [vmem:[#allocation145_spill] sm:$0xff]  ;;  %v11717_v53 = vld [vmem:[#allocation146_spill] sm:$0xff] }
 0xe6a   :  { %7276 = vmatprep.subr.bf16.mxu0 %v11707_v27  ;;  %7340 = vmatprep.subr.bf16.mxu1 %v11708_v14  ;;  %v11718_v27 = vld [vmem:[#allocation147_spill] sm:$0xff]  ;;  %v11719_v14 = vld [vmem:[#allocation148_spill] sm:$0xff] }
 0xe6d   :  { %7278 = vmatpush1.bf16.msra.mxu0 %v11709_v45  ;;  %7342 = vmatpush1.bf16.msra.mxu1 %v11710_v7  ;;  %v11720_v45 = vld [vmem:[#allocation149_spill] sm:$0xff]  ;;  %v11721_v7 = vld [vmem:[#allocation150_spill] sm:$0xff] }
 0xe6e   :  { %7280 = vmatprep.subr.bf16.mxu0 %v11711_v0  ;;  %7344 = vmatprep.subr.bf16.mxu1 %v11712_v60  ;;  %v11722_v0 = vld [vmem:[#allocation151_spill] sm:$0xff]  ;;  %v11723_v60 = vld [vmem:[#allocation152_spill] sm:$0xff] }
 0xe71   :  { %7282 = vmatpush1.bf16.msra.mxu0 %v11713_v1  ;;  %7346 = vmatpush1.bf16.msra.mxu1 %v11714_v4  ;;  %v11724_v1 = vld [vmem:[#allocation153_spill] sm:$0xff]  ;;  %v11725_v4 = vld [vmem:[#allocation154_spill] sm:$0xff] }
 0xe72   :  { %7284 = vmatprep.subr.bf16.mxu0 %v11715_v51  ;;  %7348 = vmatprep.subr.bf16.mxu1 %v11716_v9  ;;  %v11726_v51 = vld [vmem:[#allocation155_spill] sm:$0xff]  ;;  %v11727_v9 = vld [vmem:[#allocation17_spill] sm:$0xff] }
 0xe75   :  { %7286 = vmatpush1.bf16.msra.mxu0 %v11717_v53  ;;  %7350 = vmatpush1.bf16.msra.mxu1 %v11718_v27  ;;  %v11728_v53 = vld [vmem:[#allocation18_spill] sm:$0xff] }
 0xe76   :  { %7288 = vmatprep.subr.bf16.mxu0 %v11719_v14  ;;  %7352 = vmatprep.subr.bf16.mxu1 %v11720_v45 }
 0xe79   :  { %7290 = vmatpush1.bf16.msra.mxu0 %v11721_v7  ;;  %7354 = vmatpush1.bf16.msra.mxu1 %v11722_v0 }
 0xe7a   :  { %7292 = vmatprep.subr.bf16.mxu0 %v11723_v60  ;;  %7356 = vmatprep.subr.bf16.mxu1 %v11724_v1 }
 0xe7d   :  { %7294 = vmatpush1.bf16.msra.mxu0 %v11725_v4  ;;  %7358 = vmatpush1.bf16.msra.mxu1 %v11726_v51 }
 0xe7e   :  { %7360 = vmatprep.subr.bf16.mxu0 %v11727_v9  ;;  %7392 = vmatprep.subr.bf16.mxu1 %v11728_v53 }
 0xf12   :  { %v4045_v27 = vpop.f32.mrb[40].mxu0  ;;  %v4116_v14 = vpop.f32.mrb[40].mxu1 }
 0xf13   :  { %v4046_v45 = vadd.f32 %v4045_v27, %v11729_v12  ;;  %v4047_v18 = vpop.f32.mrb[41].mxu0  ;;  %v4118_v7 = vpop.f32.mrb[41].mxu1  ;;  %v4117_v4 = vadd.f32 %v4116_v14, %v9055_v13 }
 0xf14   :  { %v4048_v0 = vadd.f32 %v4047_v18, %v11084_v55  ;;  %v4119_v51 = vadd.f32 %v4118_v7, %v9058_v57 }
 0xf15   :  { %v5043_v59 = vmul.f32 -1.442695, %v4046_v45  ;;  %v5045_v1 = vmul.f32 -1.442695, %v4117_v4 }
 0xf16   :  { %v5044_v60 = vmul.f32 -1.442695, %v4048_v0 }
 0xf17   :  { %8083 = vpow2.f32 %v5043_v59 }
 0xf18   :  { %8085 = vpow2.f32 %v5044_v60 }
 0xf19   :  { %8087 = vtanh.f32 %v4119_v51 }
 0xf1a   :  { %8089 = vpow2.f32 %v5045_v1  ;;  %v11761_v1 = vld [vmem:[#allocation50_spill] sm:$0xff] }
 0xf21   :  { %v8084_v9 = vpop.eup %8083 }
 0xf22   :  { %v4130_v49 = vadd.f32 1.0, %v8084_v9  ;;  %v8086_v53 = vpop.eup %8085  ;;  %v11762_v9 = vld [vmem:[#allocation51_spill] sm:$0xff] }
 0xf23   :  { %v4131_v27 = vadd.f32 1.0, %v8086_v53  ;;  %v8088_v12 = vpop.eup %8087  ;;  %v11763_v53 = vld [vmem:[#allocation52_spill] sm:$0xff] }
 0xf24   :  { %8091 = vrcp.f32 %v4130_v49  ;;  %v8090_v48 = vpop.eup %8089  ;;  %v11759_v49 = vld [vmem:[#allocation48_spill] sm:$0xff] }
 0xf25   :  { %8093 = vrcp.f32 %v4131_v27  ;;  %v4132_v59 = vadd.f32 1.0, %v8090_v48  ;;  %v11758_v48 = vld [vmem:[#allocation47_spill] sm:$0xff]  ;;  %v11764_v27 = vld [vmem:[#allocation53_spill] sm:$0xff] }
 0xf27   :  { %8095 = vrcp.f32 %v4132_v59  ;;  %v11768_v59 = vld [vmem:[#allocation57_spill] sm:$0xff] }
 0xf2e   :  { %v8092_v18 = vpop.eup %8091 }
 0xf2f   :  { %v4141_v45 = vmul.f32 %v8092_v18, %v8088_v12  ;;  %v8094_v0 = vpop.eup %8093  ;;  %v11760_v12 = vld [vmem:[#allocation49_spill] sm:$0xff]  ;;  %v11765_v18 = vld [vmem:[#allocation54_spill] sm:$0xff] }
 0xf30   :  { %v4140_v60 = vmul.f32 %v8094_v0, %v10036_v40  ;;  %v11756_v40 = vld [vmem:[#allocation45_spill] sm:$0xff]  ;;  %v11767_v0 = vld [vmem:[#allocation56_spill] sm:$0xff] }
 0xf31   :  { %v8096_v4 = vpop.eup %8095 }
 0xf32   :  { %v10228_v14 = vadd.f32 %v4141_v45, %v4140_v60  ;;  %v11766_v45 = vld [vmem:[#allocation55_spill] sm:$0xff]  ;;  %v11769_v60 = vld [vmem:[#allocation58_spill] sm:$0xff] }
 0xf34   :  { %8097 = vtanh.f32 %v10228_v14 }
 0xf3e   :  { %v8098_v51 = vpop.eup %8097 }
 0xf3f   :  { %v4144_v7 = vmul.f32 %v8098_v51, %v8096_v4  ;;  %v11770_v4 = vld [vmem:[#allocation59_spill] sm:$0xff]  ;;  %v11771_v51 = vld [vmem:[#allocation60_spill] sm:$0xff] }
 0xf41   :  { %4210 = vmatmul.mubr.f32.vlgmr.msra.gmra.mrb[42].mxu0 %v4144_v7  ;;  %4281 = vmatmul.mubr.f32.vlgmr.msra.gmra.mrb[42].mxu1 %v4144_v7 }
 0xf42   :  { %7362 = vmatpush1.bf16.msra.mxu0 %v8472_v22  ;;  %7394 = vmatpush1.bf16.msra.mxu1 %v8475_v25  ;;  %v11730_v22 = vld [vmem:[#allocation19_spill] sm:$0xff]  ;;  %v11731_v25 = vld [vmem:[#allocation20_spill] sm:$0xff] }
 0xf43   :  { %7364 = vmatprep.subr.bf16.mxu0 %v8479_v29  ;;  %7396 = vmatprep.subr.bf16.mxu1 %v8486_v34  ;;  %v11732_v29 = vld [vmem:[#allocation21_spill] sm:$0xff]  ;;  %v11733_v34 = vld [vmem:[#allocation22_spill] sm:$0xff] }
 0xf44   :  { %4379 = vmatprep.mubr.f32.mxu0 %v10897_v23  ;;  %4450 = vmatprep.mubr.f32.mxu1 %v10897_v23 }
 0xf46   :  { %7366 = vmatpush1.bf16.msra.mxu0 %v8488_v35  ;;  %7398 = vmatpush1.bf16.msra.mxu1 %v8492_v38  ;;  %v11734_v35 = vld [vmem:[#allocation23_spill] sm:$0xff]  ;;  %v11735_v38 = vld [vmem:[#allocation24_spill] sm:$0xff] }
 0xf47   :  { %7368 = vmatprep.subr.bf16.mxu0 %v8496_v42  ;;  %7400 = vmatprep.subr.bf16.mxu1 %v8503_v47  ;;  %v11736_v42 = vld [vmem:[#allocation25_spill] sm:$0xff]  ;;  %v11737_v47 = vld [vmem:[#allocation26_spill] sm:$0xff] }
 0xf4a   :  { %7370 = vmatpush1.bf16.msra.mxu0 %v8507_v50  ;;  %7402 = vmatpush1.bf16.msra.mxu1 %v8511_v54  ;;  %v11738_v50 = vld [vmem:[#allocation27_spill] sm:$0xff]  ;;  %v11739_v54 = vld [vmem:[#allocation28_spill] sm:$0xff] }
 0xf4b   :  { %7372 = vmatprep.subr.bf16.mxu0 %v8515_v58  ;;  %7404 = vmatprep.subr.bf16.mxu1 %v8519_v61  ;;  %v11740_v58 = vld [vmem:[#allocation29_spill] sm:$0xff]  ;;  %v11741_v61 = vld [vmem:[#allocation30_spill] sm:$0xff] }
 0xf4e   :  { %7374 = vmatpush1.bf16.msra.mxu0 %v8526_v2  ;;  %7406 = vmatpush1.bf16.msra.mxu1 %v8530_v5  ;;  %v11742_v2 = vld [vmem:[#allocation31_spill] sm:$0xff]  ;;  %v11743_v5 = vld [vmem:[#allocation32_spill] sm:$0xff] }
 0xf4f   :  { %7376 = vmatprep.subr.bf16.mxu0 %v8534_v8  ;;  %7408 = vmatprep.subr.bf16.mxu1 %v8538_v11  ;;  %v11744_v8 = vld [vmem:[#allocation33_spill] sm:$0xff]  ;;  %v11745_v11 = vld [vmem:[#allocation34_spill] sm:$0xff] }
 0xf52   :  { %7378 = vmatpush1.bf16.msra.mxu0 %v8545_v15  ;;  %7410 = vmatpush1.bf16.msra.mxu1 %v8549_v19  ;;  %v11746_v15 = vld [vmem:[#allocation35_spill] sm:$0xff]  ;;  %v11747_v19 = vld [vmem:[#allocation36_spill] sm:$0xff] }
 0xf53   :  { %7380 = vmatprep.subr.bf16.mxu0 %v8553_v24  ;;  %7412 = vmatprep.subr.bf16.mxu1 %v8557_v28  ;;  %v11748_v24 = vld [vmem:[#allocation37_spill] sm:$0xff]  ;;  %v11749_v28 = vld [vmem:[#allocation38_spill] sm:$0xff] }
 0xf56   :  { %7382 = vmatpush1.bf16.msra.mxu0 %v8564_v33  ;;  %7414 = vmatpush1.bf16.msra.mxu1 %v8568_v39  ;;  %v11750_v33 = vld [vmem:[#allocation39_spill] sm:$0xff]  ;;  %v11751_v39 = vld [vmem:[#allocation40_spill] sm:$0xff] }
 0xf57   :  { %7384 = vmatprep.subr.bf16.mxu0 %v8572_v43  ;;  %7416 = vmatprep.subr.bf16.mxu1 %v8576_v46  ;;  %v11752_v43 = vld [vmem:[#allocation41_spill] sm:$0xff]  ;;  %v11753_v46 = vld [vmem:[#allocation42_spill] sm:$0xff] }
 0xf5a   :  { %7386 = vmatpush1.bf16.msra.mxu0 %v8583_v52  ;;  %7418 = vmatpush1.bf16.msra.mxu1 %v8587_v56  ;;  %v11754_v52 = vld [vmem:[#allocation43_spill] sm:$0xff]  ;;  %v11755_v56 = vld [vmem:[#allocation44_spill] sm:$0xff] }
 0xf5b   :  { %7388 = vmatprep.subr.bf16.mxu0 %v11730_v22  ;;  %7420 = vmatprep.subr.bf16.mxu1 %v11731_v25  ;;  %v11773_v22 = vld [vmem:[#allocation62_spill] sm:$0xff]  ;;  %v11774_v25 = vld [vmem:[#allocation63_spill] sm:$0xff] }
 0xf5e   :  { %7390 = vmatpush1.bf16.msra.mxu0 %v11732_v29  ;;  %7422 = vmatpush1.bf16.msra.mxu1 %v11733_v34  ;;  %v11775_v29 = vld [vmem:[#allocation64_spill] sm:$0xff]  ;;  %v11776_v34 = vld [vmem:[#allocation65_spill] sm:$0xff] }
 0xf5f   :  { %7424 = vmatprep.subr.bf16.mxu0 %v11734_v35  ;;  %7488 = vmatprep.subr.bf16.mxu1 %v11735_v38  ;;  %v11777_v35 = vld [vmem:[#allocation66_spill] sm:$0xff]  ;;  %v11778_v38 = vld [vmem:[#allocation67_spill] sm:$0xff] }
 0xf61   :  { %4380 = vmatmul.mubr.f32.vlgmr.msra.gmra.mrb[14].mxu0 %v10155_v41  ;;  %4451 = vmatmul.mubr.f32.vlgmr.msra.gmra.mrb[14].mxu1 %v10155_v41  ;;  %v11757_v41 = vld [vmem:[#allocation46_spill] sm:$0xff] }
 0xf62   :  { %4549 = vmatprep.mubr.f32.mxu0 %v4144_v7  ;;  %4620 = vmatprep.mubr.f32.mxu1 %v4144_v7  ;;  %v11772_v7 = vld [vmem:[#allocation61_spill] sm:$0xff] }
 0xf63   :  { %7426 = vmatpush1.bf16.msra.mxu0 %v11736_v42  ;;  %7490 = vmatpush1.bf16.msra.mxu1 %v11737_v47  ;;  %v11779_v42 = vld [vmem:[#allocation68_spill] sm:$0xff]  ;;  %v11780_v47 = vld [vmem:[#allocation69_spill] sm:$0xff] }
 0xf64   :  { %7428 = vmatprep.subr.bf16.mxu0 %v11738_v50  ;;  %7492 = vmatprep.subr.bf16.mxu1 %v11739_v54  ;;  %v11781_v50 = vld [vmem:[#allocation70_spill] sm:$0xff]  ;;  %v11782_v54 = vld [vmem:[#allocation71_spill] sm:$0xff] }
 0xf67   :  { %7430 = vmatpush1.bf16.msra.mxu0 %v11740_v58  ;;  %7494 = vmatpush1.bf16.msra.mxu1 %v11741_v61  ;;  %v11783_v58 = vld [vmem:[#allocation72_spill] sm:$0xff]  ;;  %v11784_v61 = vld [vmem:[#allocation73_spill] sm:$0xff] }
 0xf68   :  { %7432 = vmatprep.subr.bf16.mxu0 %v11742_v2  ;;  %7496 = vmatprep.subr.bf16.mxu1 %v11743_v5  ;;  %v11785_v2 = vld [vmem:[#allocation74_spill] sm:$0xff]  ;;  %v11786_v5 = vld [vmem:[#allocation75_spill] sm:$0xff] }
 0xf6b   :  { %7434 = vmatpush1.bf16.msra.mxu0 %v11744_v8  ;;  %7498 = vmatpush1.bf16.msra.mxu1 %v11745_v11  ;;  %v11787_v8 = vld [vmem:[#allocation76_spill] sm:$0xff]  ;;  %v11788_v11 = vld [vmem:[#allocation77_spill] sm:$0xff] }
 0xf6c   :  { %7436 = vmatprep.subr.bf16.mxu0 %v11746_v15  ;;  %7500 = vmatprep.subr.bf16.mxu1 %v11747_v19  ;;  %v11789_v15 = vld [vmem:[#allocation78_spill] sm:$0xff]  ;;  %v11790_v19 = vld [vmem:[#allocation79_spill] sm:$0xff] }
 0xf6f   :  { %7438 = vmatpush1.bf16.msra.mxu0 %v11748_v24  ;;  %7502 = vmatpush1.bf16.msra.mxu1 %v11749_v28  ;;  %v11791_v24 = vld [vmem:[#allocation80_spill] sm:$0xff]  ;;  %v11792_v28 = vld [vmem:[#allocation81_spill] sm:$0xff] }
 0xf70   :  { %7440 = vmatprep.subr.bf16.mxu0 %v11750_v33  ;;  %7504 = vmatprep.subr.bf16.mxu1 %v11751_v39  ;;  %v11793_v33 = vld [vmem:[#allocation82_spill] sm:$0xff]  ;;  %v11794_v39 = vld [vmem:[#allocation83_spill] sm:$0xff] }
 0xf73   :  { %7442 = vmatpush1.bf16.msra.mxu0 %v11752_v43  ;;  %7506 = vmatpush1.bf16.msra.mxu1 %v11753_v46  ;;  %v11795_v43 = vld [vmem:[#allocation84_spill] sm:$0xff]  ;;  %v11796_v46 = vld [vmem:[#allocation85_spill] sm:$0xff] }
 0xf74   :  { %7444 = vmatprep.subr.bf16.mxu0 %v11754_v52  ;;  %7508 = vmatprep.subr.bf16.mxu1 %v11755_v56  ;;  %v11797_v52 = vld [vmem:[#allocation86_spill] sm:$0xff]  ;;  %v11798_v56 = vld [vmem:[#allocation87_spill] sm:$0xff] }
 0xf77   :  { %7446 = vmatpush1.bf16.msra.mxu0 %v11756_v40  ;;  %7510 = vmatpush1.bf16.msra.mxu1 %v11757_v41  ;;  %v11799_v40 = vld [vmem:[#allocation88_spill] sm:$0xff] }
 0xf78   :  { %7448 = vmatprep.subr.bf16.mxu0 %v11758_v48  ;;  %7512 = vmatprep.subr.bf16.mxu1 %v11759_v49  ;;  %v11800_v49 = vld [vmem:[#allocation158_spill] sm:$0xff] }
 0xf7b   :  { %7450 = vmatpush1.bf16.msra.mxu0 %v11760_v12  ;;  %7514 = vmatpush1.bf16.msra.mxu1 %v11761_v1 }
 0xf7c   :  { %7452 = vmatprep.subr.bf16.mxu0 %v11762_v9  ;;  %7516 = vmatprep.subr.bf16.mxu1 %v11763_v53 }
 0xf7f   :  { %7454 = vmatpush1.bf16.msra.mxu0 %v11764_v27  ;;  %7518 = vmatpush1.bf16.msra.mxu1 %v11765_v18 }
 0xf80   :  { %7456 = vmatprep.subr.bf16.mxu0 %v11766_v45  ;;  %7520 = vmatprep.subr.bf16.mxu1 %v11767_v0  ;;  %v11801_v45 = vld [vmem:[#allocation160_spill] sm:$0xff] }
 0xf83   :  { %7458 = vmatpush1.bf16.msra.mxu0 %v11768_v59  ;;  %7522 = vmatpush1.bf16.msra.mxu1 %v11769_v60 }
 0xf84   :  { %7460 = vmatprep.subr.bf16.mxu0 %v11770_v4  ;;  %7524 = vmatprep.subr.bf16.mxu1 %v11771_v51 }
 0xf87   :  { %7462 = vmatpush1.bf16.msra.mxu0 %v11772_v7  ;;  %7526 = vmatpush1.bf16.msra.mxu1 %v11773_v22 }
 0xf88   :  { %7464 = vmatprep.subr.bf16.mxu0 %v11774_v25  ;;  %7528 = vmatprep.subr.bf16.mxu1 %v11775_v29 }
 0xf8b   :  { %7466 = vmatpush1.bf16.msra.mxu0 %v11776_v34  ;;  %7530 = vmatpush1.bf16.msra.mxu1 %v11777_v35 }
 0xf8c   :  { %7468 = vmatprep.subr.bf16.mxu0 %v11778_v38  ;;  %7532 = vmatprep.subr.bf16.mxu1 %v11779_v42 }
 0xf8f   :  { %7470 = vmatpush1.bf16.msra.mxu0 %v11780_v47  ;;  %7534 = vmatpush1.bf16.msra.mxu1 %v11781_v50  ;;  %v11802_v47 = vld [vmem:[#allocation89_spill] sm:$0xff] }
 0xf90   :  { %7472 = vmatprep.subr.bf16.mxu0 %v11782_v54  ;;  %7536 = vmatprep.subr.bf16.mxu1 %v11783_v58 }
 0xf93   :  { %7474 = vmatpush1.bf16.msra.mxu0 %v11784_v61  ;;  %7538 = vmatpush1.bf16.msra.mxu1 %v11785_v2 }
 0xf94   :  { %7476 = vmatprep.subr.bf16.mxu0 %v11786_v5  ;;  %7540 = vmatprep.subr.bf16.mxu1 %v11787_v8 }
 0xf97   :  { %7478 = vmatpush1.bf16.msra.mxu0 %v11788_v11  ;;  %7542 = vmatpush1.bf16.msra.mxu1 %v11789_v15  ;;  %v11803_v15 = vld [vmem:[#allocation92_spill] sm:$0xff] }
 0xf98   :  { %7480 = vmatprep.subr.bf16.mxu0 %v11790_v19  ;;  %7544 = vmatprep.subr.bf16.mxu1 %v11791_v24 }
 0xf9b   :  { %7482 = vmatpush1.bf16.msra.mxu0 %v11792_v28  ;;  %7546 = vmatpush1.bf16.msra.mxu1 %v11793_v33 }
 0xf9c   :  { %7484 = vmatprep.subr.bf16.mxu0 %v11794_v39  ;;  %7548 = vmatprep.subr.bf16.mxu1 %v11795_v43 }
 0xf9f   :  { %7486 = vmatpush1.bf16.msra.mxu0 %v11796_v46  ;;  %7550 = vmatpush1.bf16.msra.mxu1 %v11797_v52 }
 0xfa0   :  { %7552 = vmatprep.subr.bf16.mxu0 %v11798_v56  ;;  %7616 = vmatprep.subr.bf16.mxu1 %v11799_v40 }
0x1014   :  { %v4211_v41 = vpop.f32.mrb[42].mxu0  ;;  %v4282_v48 = vpop.f32.mrb[42].mxu1 }
0x1015   :  { %v4212_v12 = vadd.f32 %v4211_v41, %v11800_v49  ;;  %v4213_v1 = vpop.f32.mrb[43].mxu0  ;;  %v4284_v9 = vpop.f32.mrb[43].mxu1  ;;  %v4283_v11 = vadd.f32 %v4282_v48, %v9185_v44 }
0x1016   :  { %v4214_v53 = vadd.f32 %v4213_v1, %v11150_v26  ;;  %v4285_v0 = vadd.f32 %v4284_v9, %v11801_v45 }
0x1017   :  { %v5046_v27 = vmul.f32 -1.442695, %v4212_v12  ;;  %v5048_v28 = vmul.f32 -1.442695, %v4283_v11  ;;  %v11833_v11 = vld [vmem:[#allocation133_spill] sm:$0xff] }
0x1018   :  { %v5047_v18 = vmul.f32 -1.442695, %v4214_v53 }
0x1019   :  { %8099 = vpow2.f32 %v5046_v27 }
0x101a   :  { %8101 = vpow2.f32 %v5047_v18 }
0x101b   :  { %8103 = vtanh.f32 %v4285_v0 }
0x1023   :  { %v8100_v59 = vpop.eup %8099 }
0x1024   :  { %v4296_v60 = vadd.f32 1.0, %v8100_v59  ;;  %v8102_v4 = vpop.eup %8101 }
0x1025   :  { %v4297_v51 = vadd.f32 1.0, %v8102_v4  ;;  %v8104_v7 = vpop.eup %8103  ;;  %v11816_v4 = vld [vmem:[#allocation116_spill] sm:$0xff] }
0x1026   :  { %8105 = vrcp.f32 %v4296_v60  ;;  %v11815_v60 = vld [vmem:[#allocation115_spill] sm:$0xff] }
0x1027   :  { %8107 = vrcp.f32 %v4297_v51  ;;  %v11817_v51 = vld [vmem:[#allocation117_spill] sm:$0xff] }
0x1030   :  { %v8106_v22 = vpop.eup %8105 }
0x1031   :  { %v4307_v25 = vmul.f32 %v8106_v22, %v8104_v7  ;;  %v8108_v29 = vpop.eup %8107  ;;  %v11818_v7 = vld [vmem:[#allocation118_spill] sm:$0xff]  ;;  %v11819_v22 = vld [vmem:[#allocation119_spill] sm:$0xff] }
0x1032   :  { %v4306_v34 = vmul.f32 %v8108_v29, %v10143_v3  ;;  %v11821_v29 = vld [vmem:[#allocation121_spill] sm:$0xff] }
0x1034   :  { %v4381_v35 = vpop.f32.mrb[14].mxu0  ;;  %v4452_v38 = vpop.f32.mrb[14].mxu1  ;;  %v10335_v42 = vadd.f32 %v4307_v25, %v4306_v34  ;;  %v11820_v25 = vld [vmem:[#allocation120_spill] sm:$0xff]  ;;  %v11822_v34 = vld [vmem:[#allocation122_spill] sm:$0xff] }
0x1035   :  { %v7717_v50 = vadd.f32 %v4381_v35, %v11802_v47  ;;  %v4383_v54 = vpop.f32.mrb[15].mxu0  ;;  %v4454_v58 = vpop.f32.mrb[15].mxu1  ;;  %v7733_v8 = vadd.f32 %v4452_v38, %v11021_v37  ;;  %v11823_v35 = vld [vmem:[#allocation123_spill] sm:$0xff]  ;;  %v11824_v38 = vld [vmem:[#allocation124_spill] sm:$0xff]  ;;  %v11825_v47 = vld [vmem:[#allocation125_spill] sm:$0xff] }
0x1036   :  { %v7718_v61 = vadd.f32 %v4383_v54, %v11020_v63  ;;  %v7734_v3 = vadd.f32 %v4454_v58, %v11803_v15  ;;  %v11827_v54 = vld [vmem:[#allocation127_spill] sm:$0xff]  ;;  %v11828_v58 = vld [vmem:[#allocation128_spill] sm:$0xff]  ;;  %v11834_v15 = vld [vmem:[#allocation134_spill] sm:$0xff] }
0x1037   :  { %v5049_v2 = vmul.f32 -1.442695, %v7717_v50  ;;  %v5051_v19 = vmul.f32 -1.442695, %v7733_v8  ;;  %v11826_v50 = vld [vmem:[#allocation126_spill] sm:$0xff]  ;;  %v11832_v8 = vld [vmem:[#allocation132_spill] sm:$0xff] }
0x1038   :  { %v5050_v5 = vmul.f32 -1.442695, %v7718_v61  ;;  %v11829_v61 = vld [vmem:[#allocation129_spill] sm:$0xff] }
0x1039   :  { %8109 = vpow2.f32 %v5049_v2  ;;  %v11830_v2 = vld [vmem:[#allocation130_spill] sm:$0xff] }
0x103a   :  { %8111 = vpow2.f32 %v5050_v5  ;;  %v11831_v5 = vld [vmem:[#allocation131_spill] sm:$0xff] }
0x103b   :  { %8113 = vtanh.f32 %v7734_v3  ;;  %v11835_v3 = vld [vmem:[#allocation135_spill] sm:$0xff] }
0x103c   :  { %8115 = vpow2.f32 %v5051_v19  ;;  %v11836_v19 = vld [vmem:[#allocation136_spill] sm:$0xff] }
0x1043   :  { %v8110_v24 = vpop.eup %8109 }
0x1044   :  { %v4470_v33 = vadd.f32 1.0, %v8110_v24  ;;  %v8112_v39 = vpop.eup %8111  ;;  %v11837_v24 = vld [vmem:[#allocation137_spill] sm:$0xff] }
0x1045   :  { %v4471_v43 = vadd.f32 1.0, %v8112_v39  ;;  %v8114_v63 = vpop.eup %8113  ;;  %v11840_v39 = vld [vmem:[#allocation140_spill] sm:$0xff] }
0x1046   :  { %8117 = vrcp.f32 %v4470_v33  ;;  %v8116_v46 = vpop.eup %8115  ;;  %v11839_v33 = vld [vmem:[#allocation139_spill] sm:$0xff] }
0x1047   :  { %8119 = vpow2.f32 %v5048_v28  ;;  %v4472_v41 = vadd.f32 1.0, %v8116_v46  ;;  %v11838_v28 = vld [vmem:[#allocation138_spill] sm:$0xff]  ;;  %v11843_v46 = vld [vmem:[#allocation143_spill] sm:$0xff] }
0x1048   :  { %8121 = vrcp.f32 %v4471_v43  ;;  %v11841_v43 = vld [vmem:[#allocation141_spill] sm:$0xff] }
0x1049   :  { %8123 = vtanh.f32 %v10335_v42 }
0x104a   :  { %8125 = vrcp.f32 %v4472_v41  ;;  %v11848_v41 = vld [vmem:[#allocation148_spill] sm:$0xff] }
0x1050   :  { %v8118_v52 = vpop.eup %8117 }
0x1051   :  { %v8120_v56 = vpop.eup %8119  ;;  %v4481_v37 = vmul.f32 %v8118_v52, %v8114_v63  ;;  %v11842_v63 = vld [vmem:[#allocation142_spill] sm:$0xff]  ;;  %v11844_v52 = vld [vmem:[#allocation144_spill] sm:$0xff] }
0x1052   :  { %v8122_v40 = vpop.eup %8121  ;;  %v4298_v12 = vadd.f32 1.0, %v8120_v56  ;;  %v11845_v56 = vld [vmem:[#allocation145_spill] sm:$0xff] }
0x1053   :  { %v4480_v48 = vmul.f32 %v8122_v40, %v10151_v30  ;;  %v8124_v9 = vpop.eup %8123  ;;  %v11804_v30 = vld [vmem:[#allocation104_spill] sm:$0xff]  ;;  %v11847_v40 = vld [vmem:[#allocation147_spill] sm:$0xff] }
0x1054   :  { %v8126_v53 = vpop.eup %8125 }
0x1055   :  { %v4482_v1 = vadd.f32 %v4481_v37, %v4480_v48  ;;  %v11846_v37 = vld [vmem:[#allocation146_spill] sm:$0xff]  ;;  %v11849_v48 = vld [vmem:[#allocation149_spill] sm:$0xff] }
0x1057   :  { %8127 = vtanh.f32 %v4482_v1  ;;  %v11851_v1 = vld [vmem:[#allocation151_spill] sm:$0xff] }
0x1058   :  { %8129 = vrcp.f32 %v4298_v12  ;;  %v11850_v12 = vld [vmem:[#allocation150_spill] sm:$0xff] }
0x1061   :  { %v8128_v27 = vpop.eup %8127 }
0x1062   :  { %v8130_v18 = vpop.eup %8129  ;;  %v4484_v0 = vmul.f32 %v8128_v27, %v8126_v53  ;;  %v11853_v53 = vld [vmem:[#allocation153_spill] sm:$0xff]  ;;  %v11854_v27 = vld [vmem:[#allocation154_spill] sm:$0xff] }
0x1063   :  { %v4310_v59 = vmul.f32 %v8130_v18, %v8124_v9  ;;  %v11852_v9 = vld [vmem:[#allocation152_spill] sm:$0xff]  ;;  %v11855_v18 = vld [vmem:[#allocation155_spill] sm:$0xff] }
0x1064   :  { %4550 = vmatmul.mubr.f32.vlgmr.msra.gmra.mrb[44].mxu0 %v4484_v0  ;;  %4621 = vmatmul.mubr.f32.vlgmr.msra.gmra.mrb[44].mxu1 %v4484_v0 }
0x1065   :  { %4715 = vmatprep.mubr.f32.mxu0 %v4310_v59  ;;  %4786 = vmatprep.mubr.f32.mxu1 %v4310_v59 }
0x1066   :  { %7554 = vmatpush1.bf16.msra.mxu0 %v11024_v6  ;;  %7618 = vmatpush1.bf16.msra.mxu1 %v11025_v31  ;;  %v11805_v6 = vld [vmem:[#allocation105_spill] sm:$0xff]  ;;  %v11806_v31 = vld [vmem:[#allocation106_spill] sm:$0xff] }
0x1067   :  { %7556 = vmatprep.subr.bf16.mxu0 %v11026_v36  ;;  %7620 = vmatprep.subr.bf16.mxu1 %v11027_v16  ;;  %v11807_v36 = vld [vmem:[#allocation107_spill] sm:$0xff]  ;;  %v11808_v16 = vld [vmem:[#allocation108_spill] sm:$0xff] }
0x106a   :  { %7558 = vmatpush1.bf16.msra.mxu0 %v11028_v17  ;;  %7622 = vmatpush1.bf16.msra.mxu1 %v11154_v21  ;;  %v11809_v17 = vld [vmem:[#allocation109_spill] sm:$0xff]  ;;  %v11810_v21 = vld [vmem:[#allocation110_spill] sm:$0xff] }
0x106b   :  { %7560 = vmatprep.subr.bf16.mxu0 %v11284_v20  ;;  %7624 = vmatprep.subr.bf16.mxu1 %v11414_v32  ;;  %v11811_v20 = vld [vmem:[#allocation111_spill] sm:$0xff]  ;;  %v11812_v32 = vld [vmem:[#allocation112_spill] sm:$0xff] }
0x106e   :  { %7562 = vmatpush1.bf16.msra.mxu0 %v11544_v10  ;;  %7626 = vmatpush1.bf16.msra.mxu1 %v11674_v62  ;;  %v11813_v10 = vld [vmem:[#allocation113_spill] sm:$0xff]  ;;  %v11814_v62 = vld [vmem:[#allocation114_spill] sm:$0xff] }
0x106f   :  { %7564 = vmatprep.subr.bf16.mxu0 %v11804_v30  ;;  %7628 = vmatprep.subr.bf16.mxu1 %v11805_v6  ;;  %v11856_v30 = vld [vmem:[#allocation156_spill] sm:$0xff] }
0x1072   :  { %7566 = vmatpush1.bf16.msra.mxu0 %v11806_v31  ;;  %7630 = vmatpush1.bf16.msra.mxu1 %v11807_v36 }
0x1073   :  { %7568 = vmatprep.subr.bf16.mxu0 %v11808_v16  ;;  %7632 = vmatprep.subr.bf16.mxu1 %v11809_v17 }
0x1076   :  { %7570 = vmatpush1.bf16.msra.mxu0 %v11810_v21  ;;  %7634 = vmatpush1.bf16.msra.mxu1 %v11811_v20 }
0x1077   :  { %7572 = vmatprep.subr.bf16.mxu0 %v11812_v32  ;;  %7636 = vmatprep.subr.bf16.mxu1 %v11813_v10 }
0x107a   :  { %7574 = vmatpush1.bf16.msra.mxu0 %v11814_v62  ;;  %7638 = vmatpush1.bf16.msra.mxu1 %v11815_v60 }
0x107b   :  { %7576 = vmatprep.subr.bf16.mxu0 %v11816_v4  ;;  %7640 = vmatprep.subr.bf16.mxu1 %v11817_v51 }
0x107e   :  { %7578 = vmatpush1.bf16.msra.mxu0 %v11818_v7  ;;  %7642 = vmatpush1.bf16.msra.mxu1 %v11819_v22 }
0x107f   :  { %7580 = vmatprep.subr.bf16.mxu0 %v11820_v25  ;;  %7644 = vmatprep.subr.bf16.mxu1 %v11821_v29 }
0x1082   :  { %7582 = vmatpush1.bf16.msra.mxu0 %v11822_v34  ;;  %7646 = vmatpush1.bf16.msra.mxu1 %v11823_v35 }
0x1083   :  { %7584 = vmatprep.subr.bf16.mxu0 %v11824_v38  ;;  %7648 = vmatprep.subr.bf16.mxu1 %v11825_v47 }
0x1086   :  { %7586 = vmatpush1.bf16.msra.mxu0 %v11826_v50  ;;  %7650 = vmatpush1.bf16.msra.mxu1 %v11827_v54  ;;  %v4817_v50 = vld [vmem:[%s10518_s8] sm:$0xff]  ;;  %v4818_v54 = vld [vmem:[%s10518_s8 + $0x8] sm:$0xff] }
0x1087   :  { %7588 = vmatprep.subr.bf16.mxu0 %v11828_v58  ;;  %7652 = vmatprep.subr.bf16.mxu1 %v11829_v61  ;;  %v7680_v58 = vpack.c.bf16 %v4818_v54, %v4817_v50  ;;  %v8311_v61 = vmov 0.0|0.0  }
0x108a   :  { %7590 = vmatpush1.bf16.msra.mxu0 %v11830_v2  ;;  %7654 = vmatpush1.bf16.msra.mxu1 %v11831_v5  ;;  %v4820_v2 = vld [vmem:[%s10518_s8 + $0x18] sm:$0xff] }
0x108b   :  { %7592 = vmatprep.subr.bf16.mxu0 %v11832_v8  ;;  %7656 = vmatprep.subr.bf16.mxu1 %v11833_v11  ;;  %v4821_v8 = vld [vmem:[%s10518_s8 + $0x20] sm:$0xff]  ;;  %v4822_v11 = vld [vmem:[%s10518_s8 + $0x28] sm:$0xff] }
0x108e   :  { %7594 = vmatpush1.bf16.msra.mxu0 %v11834_v15  ;;  %7658 = vmatpush1.bf16.msra.mxu1 %v11835_v3  ;;  %v7686_v15 = vpack.c.bf16 %v4822_v11, %v4821_v8  ;;  %v4823_v3 = vld [vmem:[%s10518_s8 + $0x30] sm:$0xff] }
0x108f   :  { %7596 = vmatprep.subr.bf16.mxu0 %v11836_v19  ;;  %7660 = vmatprep.subr.bf16.mxu1 %v11837_v24  ;;  %v4824_v19 = vld [vmem:[%s10518_s8 + $0x38] sm:$0xff] }
0x1090   :  { %v7689_v24 = vpack.c.bf16 %v4824_v19, %v4823_v3 }
0x1092   :  { %7598 = vmatpush1.bf16.msra.mxu0 %v11838_v28  ;;  %7662 = vmatpush1.bf16.msra.mxu1 %v11839_v33  ;;  %v4825_v28 = vld [vmem:[%s10518_s8 + $0x40] sm:$0xff]  ;;  %v4826_v33 = vld [vmem:[%s10518_s8 + $0x48] sm:$0xff] }
0x1093   :  { %7600 = vmatprep.subr.bf16.mxu0 %v11840_v39  ;;  %7664 = vmatprep.subr.bf16.mxu1 %v11841_v43  ;;  %v7692_v39 = vpack.c.bf16 %v4826_v33, %v4825_v28  ;;  %v4827_v43 = vld [vmem:[%s10518_s8 + $0x50] sm:$0xff] }
0x1096   :  { %7602 = vmatpush1.bf16.msra.mxu0 %v11842_v63  ;;  %7666 = vmatpush1.bf16.msra.mxu1 %v11843_v46  ;;  %v4828_v63 = vld [vmem:[%s10518_s8 + $0x58] sm:$0xff] }
0x1097   :  { %7604 = vmatprep.subr.bf16.mxu0 %v11844_v52  ;;  %7668 = vmatprep.subr.bf16.mxu1 %v11845_v56  ;;  %v7695_v46 = vpack.c.bf16 %v4828_v63, %v4827_v43  ;;  %v4829_v52 = vld [vmem:[%s10518_s8 + $0x60] sm:$0xff]  ;;  %v4830_v56 = vld [vmem:[%s10518_s8 + $0x68] sm:$0xff] }
0x109a   :  { %7606 = vmatpush1.bf16.msra.mxu0 %v11846_v37  ;;  %7670 = vmatpush1.bf16.msra.mxu1 %v11847_v40  ;;  %v7698_v37 = vpack.c.bf16 %v4830_v56, %v4829_v52  ;;  %v4831_v40 = vld [vmem:[%s10518_s8 + $0x70] sm:$0xff] }
0x109b   :  { %7608 = vmatprep.subr.bf16.mxu0 %v11848_v41  ;;  %7672 = vmatprep.subr.bf16.mxu1 %v11849_v48  ;;  %v4832_v41 = vld [vmem:[%s10518_s8 + $0x78] sm:$0xff] }
0x109c   :  { %v7701_v48 = vpack.c.bf16 %v4832_v41, %v4831_v40 }
0x109e   :  { %7610 = vmatpush1.bf16.msra.mxu0 %v11850_v12  ;;  %7674 = vmatpush1.bf16.msra.mxu1 %v11851_v1 }
0x109f   :  { %7612 = vmatprep.subr.bf16.mxu0 %v11852_v9  ;;  %7676 = vmatprep.subr.bf16.mxu1 %v11853_v53 }
0x10a2   :  { %7614 = vmatpush1.bf16.msra.mxu0 %v11854_v27  ;;  %7678 = vmatpush1.bf16.msra.mxu1 %v11855_v18 }
0x10a3   :  { %7679 = vmatprep.subr.bf16.mxu0 %v8311_v61 }
0x1137   :  { %v4551_v0 = vpop.f32.mrb[44].mxu0  ;;  %v4622_v59 = vpop.f32.mrb[44].mxu1 }
0x1138   :  { %v4552_v6 = vadd.f32 %v4551_v0, %v11856_v30  ;;  %v4553_v31 = vpop.f32.mrb[45].mxu0  ;;  %v4624_v36 = vpop.f32.mrb[45].mxu1  ;;  %v4623_v20 = vadd.f32 %v4622_v59, %v9055_v13 }
0x1139   :  { %v4554_v16 = vadd.f32 %v4553_v31, %v11084_v55  ;;  %v4625_v32 = vadd.f32 %v4624_v36, %v9058_v57 }
0x113a   :  { %v5052_v17 = vmul.f32 -1.442695, %v4552_v6  ;;  %v5054_v10 = vmul.f32 -1.442695, %v4623_v20 }
0x113b   :  { %v5053_v21 = vmul.f32 -1.442695, %v4554_v16 }
0x113c   :  { %8131 = vpow2.f32 %v5052_v17 }
0x113d   :  { %8133 = vpow2.f32 %v5053_v21 }
0x113e   :  { %8135 = vtanh.f32 %v4625_v32 }
0x113f   :  { %8137 = vpow2.f32 %v5054_v10 }
0x1146   :  { %v8132_v62 = vpop.eup %8131 }
0x1147   :  { %v4636_v60 = vadd.f32 1.0, %v8132_v62  ;;  %v8134_v4 = vpop.eup %8133 }
0x1148   :  { %v4637_v51 = vadd.f32 1.0, %v8134_v4  ;;  %v8136_v7 = vpop.eup %8135 }
0x1149   :  { %8139 = vrcp.f32 %v4636_v60  ;;  %v8138_v22 = vpop.eup %8137 }
0x114a   :  { %8141 = vrcp.f32 %v4637_v51  ;;  %v4638_v34 = vadd.f32 1.0, %v8138_v22  ;;  %v5058_v51 = vld [vmem:[%s10519_s9] ss:$0 sm:$0xff] }
0x114c   :  { %8143 = vrcp.f32 %v4638_v34 }
0x1153   :  { %v8140_v55 = vpop.eup %8139 }
0x1154   :  { %v4647_v25 = vmul.f32 %v8140_v55, %v8136_v7  ;;  %v8142_v29 = vpop.eup %8141 }
0x1155   :  { %v4646_v35 = vmul.f32 %v8142_v29, %v10228_v14  ;;  %v4819_v14 = vld [vmem:[%s10518_s8 + $0x10] sm:$0xff] }
0x1156   :  { %v8144_v57 = vpop.eup %8143  ;;  %v7683_v5 = vpack.c.bf16 %v4820_v2, %v4819_v14 }
0x1157   :  { %v4648_v13 = vadd.f32 %v4647_v25, %v4646_v35 }
0x1159   :  { %8145 = vtanh.f32 %v4648_v13 }
0x1163   :  { %v8146_v38 = vpop.eup %8145 }
0x1164   :  { %v4650_v47 = vmul.f32 %v8146_v38, %v8144_v57 }
0x1166   :  { %4716 = vmatmul.mubr.f32.vlgmr.msra.gmra.mrb[46].mxu0 %v4650_v47  ;;  %4787 = vmatmul.mubr.f32.vlgmr.msra.gmra.mrb[46].mxu1 %v4650_v47 }
0x1167   :  { %7681 = vmatpush3.bf16.msra.mxu0 %v7680_v58  ;;  %5108 = vmatprep.mubr.msk.f32.mxu0 %vm8312_vm1, %v10897_v23 }
0x1168   :  { %7682 = vmatprep.subr.bf16.mxu0 %v8311_v61 }
0x116b   :  { %7684 = vmatpush3.bf16.msra.mxu0 %v7683_v5 }
0x116c   :  { %7685 = vmatprep.subr.bf16.mxu0 %v8311_v61 }
0x116f   :  { %7687 = vmatpush3.bf16.msra.mxu0 %v7686_v15 }
0x1170   :  { %7688 = vmatprep.subr.bf16.mxu0 %v8311_v61 }
0x1173   :  { %7690 = vmatpush3.bf16.msra.mxu0 %v7689_v24 }
0x1174   :  { %7691 = vmatprep.subr.bf16.mxu0 %v8311_v61 }
0x1177   :  { %7693 = vmatpush3.bf16.msra.mxu0 %v7692_v39 }
0x1178   :  { %7694 = vmatprep.subr.bf16.mxu0 %v8311_v61 }
0x117b   :  { %7696 = vmatpush3.bf16.msra.mxu0 %v7695_v46 }
0x117c   :  { %7697 = vmatprep.subr.bf16.mxu0 %v8311_v61 }
0x117f   :  { %7699 = vmatpush3.bf16.msra.mxu0 %v7698_v37 }
0x1180   :  { %7700 = vmatprep.subr.bf16.mxu0 %v8311_v61 }
0x1183   :  { %7702 = vmatpush3.bf16.msra.mxu0 %v7701_v48 }
0x1239   :  { %v4717_v12 = vpop.f32.mrb[46].mxu0  ;;  %v4788_v1 = vpop.f32.mrb[46].mxu1 }
0x123a   :  { %v4718_v9 = vadd.f32 %v4717_v12, %v11800_v49  ;;  %v4719_v23 = vpop.f32.mrb[47].mxu0  ;;  %v4790_v53 = vpop.f32.mrb[47].mxu1  ;;  %v4789_v59 = vadd.f32 %v4788_v1, %v9185_v44 }
0x123b   :  { %v4720_v27 = vadd.f32 %v4719_v23, %v11150_v26  ;;  %v4791_v30 = vadd.f32 %v4790_v53, %v11801_v45 }
0x123c   :  { %v5055_v18 = vmul.f32 -1.442695, %v4718_v9  ;;  %v5057_v6 = vmul.f32 -1.442695, %v4789_v59 }
0x123d   :  { %v5056_v0 = vmul.f32 -1.442695, %v4720_v27 }
0x123e   :  { %8147 = vpow2.f32 %v5055_v18 }
0x123f   :  { %8149 = vpow2.f32 %v5056_v0 }
0x1240   :  { %8151 = vtanh.f32 %v4791_v30 }
0x1241   :  { %8153 = vpow2.f32 %v5057_v6 }
0x1248   :  { %v8148_v31 = vpop.eup %8147 }
0x1249   :  { %v4802_v36 = vadd.f32 1.0, %v8148_v31  ;;  %v8150_v16 = vpop.eup %8149 }
0x124a   :  { %v4803_v49 = vadd.f32 1.0, %v8150_v16  ;;  %v8152_v17 = vpop.eup %8151 }
0x124b   :  { %8155 = vrcp.f32 %v4802_v36  ;;  %v8154_v21 = vpop.eup %8153 }
0x124c   :  { %8157 = vrcp.f32 %v4803_v49  ;;  %v4804_v10 = vadd.f32 1.0, %v8154_v21 }
0x124e   :  { %8159 = vrcp.f32 %v4804_v10 }
0x1255   :  { %v8156_v26 = vpop.eup %8155 }
0x1256   :  { %v4813_v20 = vmul.f32 %v8156_v26, %v8152_v17  ;;  %v8158_v32 = vpop.eup %8157 }
0x1257   :  { %v4812_v62 = vmul.f32 %v8158_v32, %v10335_v42 }
0x1258   :  { %v8160_v45 = vpop.eup %8159 }
0x1259   :  { %v4814_v44 = vadd.f32 %v4813_v20, %v4812_v62 }
0x125b   :  { %8161 = vtanh.f32 %v4814_v44 }
0x1265   :  { %v8162_v60 = vpop.eup %8161 }
0x1266   :  { %v4816_v4 = vmul.f32 %v8162_v60, %v8160_v45 }
0x1268   :  { %5109 = vmatmul.mubr.f32.vlgmr.msra.gmra.mrb[48].mxu0 %v4816_v4 }
0x133b   :  { %v4906_v7 = vpop.f32.mrb[48].mxu0 }
0x133c   :  { %v4907_v22 = vadd.f32 %v5058_v51, %v4906_v7  ;;  %v5110_v55 = vpop.f32.mrb[49].mxu0 }
0x133e   :  { %v4917_v25 = vmul.f32 0.5, %v4907_v22  ;;  %4910 = vst.msk [vmem:[#allocation10] sm:$0xff] %vm122_vm0, %v4907_v22 }
0x1340   :  { %v4918_v29 = vmul.f32 1.442695, %v4917_v25 }
0x1342   :  { %8163 = vpow2.f32 %v4918_v29 }
0x1343   :  { %8242 = shalt.err (!%p8239_p0)
}
0x1344   :  { %s8243_s26 = scalar_lea.hbm %s10522_s12, 128 }
0x1345   :  { %p8244_p1 = scmp.ne.s32.totalorder %s10522_s12, %s8243_s26  ;;  %p8247_p2 = scmp.lt.u32.totalorder %s8243_s26, %s10522_s12 }
0x1347   :  { %p8249_p3 = pnand %p8247_p2, %p8244_p1 }
0x1349   :  { %8252 = shalt.err (!%p8249_p3)
}
0x134a   :  { %4946 = dma.vmem_to_hbm [thread:$0]  %s4944_s15, 128, %s10522_s12, [#allocation11]   ;;  %v4916_v34 = vld [vmem:[%s10520_s10] sm:$0xff] }
0x134b   :  { %s8314_s0 = smov 112   ;;  %s8315_s23 = smov [#allocation9]  }
0x134c   :  { %v8164_v42 = vpop.eup %8163  ;;  %s4933_s5 = sshll.u32 %s8315_s23, 4  ;;  %s8316_s24 = smov [#allocation12]   ;;  %s4934_s5 = int_to_ptr.vmem [resolvable:$true] %s4933_s5 }
0x134d   :  { %4921 = vrot.lane.b32.xlu0 %v8164_v42, %s8314_s0  ;;  %s4953_s7 = sshll.u32 %s8316_s24, 4  ;;  %s8253_s12 = scalar_lea.vmem %s4934_s5, 128  ;;  %s4954_s7 = int_to_ptr.vmem [resolvable:$true] %s4953_s7 }
0x134e   :  { %p8254_p4 = scmp.ne.s32.totalorder %s4934_s5, %s8253_s12  ;;  %p8258_p5 = scmp.lt.s32.totalorder %s4934_s5, %s4934_s5 }
0x134f   :  { %p8259_p6 = scmp.lt.s32.totalorder %s8253_s12, %s8253_s12 }
0x1351   :  { %4912 = vrot.lane.b32.xlu0 %v4907_v22, %s8314_s0  ;;  %p8260_p7 = por %p8259_p6, %p8258_p5 }
0x1353   :  { %p8261_p8 = pnand %p8260_p7, %p8254_p4 }
0x13bf   :  { %v4922_v35 = vpop.permute.xlu0 %4921 }
0x13c0   :  { %v4924_v13 = vmul.f32 %v4922_v35, %v4916_v34 }
0x13c2   :  { %v4925_v57 = vadd.f32 %v4924_v13, %v4907_v22 }
0x13c3   :  { %v4913_v38 = vpop.permute.xlu0 %4912 }
0x13c4   :  { %4926 = vst.msk [vmem:[#allocation9] sm:$0xff] %vm122_vm0, %v4925_v57  ;;  %4915 = vst.msk [vmem:[#allocation12] sm:$0xff] %vm122_vm0, %v4913_v38 }
0x13c5   :  { %8264 = shalt.err (!%p8261_p8)
}
0x13c6   :  { %s8265_s27 = scalar_lea.hbm %s10521_s11, 128 }
0x13c7   :  { %p8266_p9 = scmp.ne.s32.totalorder %s10521_s11, %s8265_s27  ;;  %p8269_p10 = scmp.lt.u32.totalorder %s8265_s27, %s10521_s11 }
0x13c9   :  { %p8271_p11 = pnand %p8269_p10, %p8266_p9 }
0x13cb   :  { %8274 = shalt.err (!%p8271_p11)
}
0x13cc   :  { %4936 = dma.vmem_to_hbm [thread:$0]  %s4934_s5, 128, %s10521_s11, [#allocation5]  }
0x13cd   :  { %s8275_s14 = scalar_lea.vmem %s4954_s7, 128  ;;  %p8280_p13 = scmp.lt.s32.totalorder %s4954_s7, %s4954_s7 }
0x13ce   :  { %p8276_p12 = scmp.ne.s32.totalorder %s4954_s7, %s8275_s14  ;;  %p8281_p0 = scmp.lt.s32.totalorder %s8275_s14, %s8275_s14 }
0x13d0   :  { %p8282_p1 = por %p8281_p0, %p8280_p13 }
0x13d2   :  { %p8283_p2 = pnand %p8282_p1, %p8276_p12 }
0x13d4   :  { %8286 = shalt.err (!%p8283_p2)
}
0x13d5   :  { %s8287_s4 = scalar_lea.hbm %s10523_s13, 128 }
0x13d6   :  { %p8288_p3 = scmp.ne.s32.totalorder %s10523_s13, %s8287_s4  ;;  %p8291_p4 = scmp.lt.u32.totalorder %s8287_s4, %s10523_s13 }
0x13d8   :  { %p8293_p5 = pnand %p8291_p4, %p8288_p3 }
0x13da   :  { %8296 = shalt.err (!%p8293_p5)
}
0x13db   :  { %4956 = dma.vmem_to_hbm [thread:$0]  %s4954_s7, 128, %s10523_s13, [#allocation11]  }
0x13dc   :  { %8301 = dma.done.wait [#allocation5], 128  }
0x13dd   :  { %8302 = vsyncadd [#allocation5], 4294967168 }
0x13de   :  { %8303 = dma.done.wait [#allocation11], 256  }
0x13df   :  { %8304 = vsyncadd [#allocation11], 4294967040 }
0x13e0   :  { %4966 = vsyncpa [#allocation4], 1 }
0x13e1   :  { %4967 = vsyncpa [#allocation7], 1 }
0x13e2   :  { %4968 = vsyncpa [#allocation5], 1 }
0x13e3   :  { %4969 = vsyncpa [#allocation11], 1 }

</bundles_post_ra>
